<compile_context>
chip_gen: v7x
topology: tpu7x:2x2x1
jax: 0.10.0
libtpu: 0.0.40
codegen_flags: <defaults>
</compile_context>

<pallas_src>
import jax
import jax.numpy as jnp
from jax.experimental import pallas as pl
from jax.experimental.pallas import tpu as pltpu

EMB_DIM = 64
HIDDEN = 128
CROSS_DIM = 32
DEPTH_EMB_DIM = 8
DEPTH_VOCAB = 512
LANE = 128    # node-count / feature padding granularity
B_PAD = 8     # batch (num_graphs) padded to a full sublane group


# --------------------------- fused full-forward kernel ---------------------------
def _fused_kernel(x0s_ref, aas_ref, ws1_ref, ws2_ref,
                  x0g_ref, aag_ref, wg1_ref, wg2_ref,
                  bias_ref, aux_ref, wbil_ref, w1c_ref, hw_ref,
                  out_ref):
    # x0*_ref : [NP, 128]              bf16  node features (layer-1 din zero-padded to 128)
    # aa*_ref : [NP, R*NP]             bf16  [A_1 | ... | A_R] row-normalized per relation
    # w*_ref  : [128, (R+1)*128]       bf16  [W_root | W_1 | ... | W_R]
    # bias_ref: [4, 128]               f32   conv biases (state L1, state L2, goal L1, goal L2)
    # aux_ref : [24, NP]               f32   rows 0-7 pool_s, 8-15 pool_g, 16-23 depth block
    # wbil_ref: [128, K*128]           bf16  bilinear weight, W[k,i,j] at [i, k*128+j]
    # w1c_ref : [K*128, 128]           bf16  w1_cross repeated per lane-chunk (cross -> head fold)
    # hw_ref  : [512, 128]             bf16  rows 0-383 = W1cat (hs|hg|depth), rows 384-511 = W2
    # out_ref : [8, 128]               f32   col 0 = logit
    H = HIDDEN
    K = CROSS_DIM

    def rgcn_layer(x_bf, a_ref, w_ref, b_row):
        NP = x_bf.shape[0]
        n_rel = a_ref.shape[1] // NP
        # root/self term (identity aggregation) folded straight in — no A block needed
        acc = jnp.dot(x_bf, w_ref[:, 0:H], preferred_element_type=jnp.float32)
        for r in range(n_rel):  # static unroll, R <= 4; msg stays register-resident
            msg = jnp.dot(x_bf, w_ref[:, (r + 1) * H:(r + 2) * H],
                          preferred_element_type=jnp.float32).astype(jnp.bfloat16)
            acc = acc + jnp.dot(a_ref[:, r * NP:(r + 1) * NP], msg,
                                preferred_element_type=jnp.float32)
        return jnp.maximum(acc + b_row, 0.0)          # F.relu after every conv

    def encoder(x0_ref, a_ref, w1_ref, w2_ref, b1, b2):
        x1 = rgcn_layer(x0_ref[...], a_ref, w1_ref, b1)
        x2 = rgcn_layer(x1.astype(jnp.bfloat16), a_ref, w2_ref, b2)
        return x2.astype(jnp.bfloat16)                # [NP, H] bf16, stays in VMEM/vregs

    biases = bias_ref[...]
    xs = encoder(x0s_ref, aas_ref, ws1_ref, ws2_ref, biases[0:1, :], biases[1:2, :])
    xg = encoder(x0g_ref, aag_ref, wg1_ref, wg2_ref, biases[2:3, :], biases[3:4, :])

    aux = aux_ref[...]                                # [24, NP] f32
    ps = aux[0:8, :].astype(jnp.bfloat16)             # pooling matrices (zero for pad nodes/graphs)
    pg = aux[8:16, :].astype(jnp.bfloat16)
    depth_blk = aux[16:24, 0:H].astype(jnp.bfloat16)  # [8, 128]: depth | demb | 1 | zeros

    # global_mean_pool for both encoders
    hs = jnp.dot(ps, xs, preferred_element_type=jnp.float32)   # [8, 128] f32
    hg = jnp.dot(pg, xg, preferred_element_type=jnp.float32)
    hs_bf = hs.astype(jnp.bfloat16)
    hg_bf = hg.astype(jnp.bfloat16)

    # Bilinear cross (bias folded into the head bias row):
    #   t[b, k*H+j] = sum_i hs[b,i] * W[k,i,j];  prod[b, k*H+j] = t * hg[b,j]
    # The per-k lane-chunk reduction and the cross @ w1_cross contraction are fused into the
    # single MXU dot `prod @ w1c_ref` below — no (B,K,H) reshape, full vreg occupancy.
    t = jnp.dot(hs_bf, wbil_ref[...], preferred_element_type=jnp.float32)   # [8, K*H]
    hg_rep = jnp.concatenate([hg] * K, axis=-1)                             # lane-aligned copies
    prod = (t * hg_rep).astype(jnp.bfloat16)                                # [8, K*H]

    # head layer 1: one dot over the concatenated feature row + the folded cross term
    hw = hw_ref[...]                                                        # [512, 128] bf16
    zcat = jnp.concatenate([hs_bf, hg_bf, depth_blk], axis=-1)              # [8, 384] bf16
    h = (jnp.dot(zcat, hw[0:3 * H, :], preferred_element_type=jnp.float32)
         + jnp.dot(prod, w1c_ref[...], preferred_element_type=jnp.float32))
    h1 = jnp.maximum(h, 0.0).astype(jnp.bfloat16)     # col 127 carries constant 1 (-> b2)

    # head layer 2 (lane-dense [8, 128] output; col 0 is the real logit)
    out_ref[...] = jnp.dot(h1, hw[3 * H:4 * H, :], preferred_element_type=jnp.float32)


def fused_forward(prep, x0s, aas, x0g, aag, aux):
    vspec = pl.BlockSpec(memory_space=pltpu.MemorySpace.VMEM)
    return pl.pallas_call(
        _fused_kernel,
        out_shape=jax.ShapeDtypeStruct((B_PAD, LANE), jnp.float32),
        in_specs=[vspec] * 13,
        out_specs=vspec,
    )(x0s, aas, prep["enc_state"]["w"][0], prep["enc_state"]["w"][1],
      x0g, aag, prep["enc_goal"]["w"][0], prep["enc_goal"]["w"][1],
      prep["bias_stack"], aux, prep["wbil_flat"], prep["w1c_big"], prep["head_w"])


# --------------------------------- JAX glue ---------------------------------
def _round_up(n, m):
    return ((n + m - 1) // m) * m


def build_adj(edge_index, edge_type, np_nodes, num_rel):
    # Dense per-relation adjacency (row = destination), normalized by per-relation in-degree
    # (torch_geometric RGCNConv 'mean' aggregation; max(deg,1) so isolated nodes contribute 0).
    src, dst = edge_index[0], edge_index[1]
    adj = jnp.zeros((num_rel, np_nodes, np_nodes), jnp.float32)
    adj = adj.at[edge_type, dst, src].add(1.0)
    deg = jnp.sum(adj, axis=-1, keepdims=True)
    adj = adj / jnp.maximum(deg, 1.0)
    a_cat = jnp.transpose(adj, (1, 0, 2)).reshape(np_nodes, num_rel * np_nodes)
    return a_cat.astype(jnp.bfloat16)


def build_pool(batch, num_nodes, np_nodes):
    batch_p = jnp.full((np_nodes,), -1, jnp.int32).at[:num_nodes].set(batch)
    onehot = (batch_p[None, :] == jnp.arange(B_PAD)[:, None]).astype(jnp.float32)   # [8, NP]
    counts = jnp.sum(onehot, axis=1, keepdims=True)
    return onehot / jnp.maximum(counts, 1.0)


def build_depth_block(depth_emb, depth, np_nodes):
    # [8, NP] f32: col 0 = depth scalar, cols 1..8 = depth embedding, col 9 = constant 1
    B = depth.shape[0]
    demb = depth_emb[jnp.minimum(depth, DEPTH_VOCAB - 1)]                  # clamp_max lookup
    blk = jnp.zeros((B_PAD, np_nodes), jnp.float32)
    blk = blk.at[:B, 0].set(depth.astype(jnp.float32))                     # depth.float()
    blk = blk.at[:B, 1:1 + DEPTH_EMB_DIM].set(demb)
    blk = blk.at[:B, 1 + DEPTH_EMB_DIM].set(1.0)                           # bias carrier
    return blk


def encoder_inputs(enc_prep, data, np_nodes):
    n = data["num_nodes"]
    a_aug = build_adj(data["edge_index"], data["edge_type"], np_nodes, enc_prep["num_rel"])
    x0 = enc_prep["node_emb"][data["x"]]                    # nn.Embedding lookup (glue)
    x0 = jnp.pad(x0, ((0, np_nodes - n), (0, 0)))
    return x0, a_aug


# ------------------------------ parameter init ------------------------------
def init_graph_encoder(key, num_nodes_vocab, num_rel, emb_dim, hidden, num_layers=2):
    keys = jax.random.split(key, 2 + 4 * num_layers)
    num_bases = min(30, num_rel)
    params = {
        "node_emb": jax.random.normal(keys[0], (num_nodes_vocab, emb_dim), jnp.float32),
        "rel_emb": jax.random.normal(keys[1], (num_rel, emb_dim), jnp.float32),  # unused in forward (matches torch)
        "convs": [],
    }
    in_dim = emb_dim
    for l in range(num_layers):
        k0, k1, k2, k3 = keys[2 + 4 * l: 6 + 4 * l]
        scale = 1.0 / jnp.sqrt(jnp.float32(in_dim))
        params["convs"].append({
            "comp": jax.random.normal(k0, (num_rel, num_bases), jnp.float32) * scale,
            "basis": jax.random.normal(k1, (num_bases, in_dim, hidden), jnp.float32) * scale,
            "root": jax.random.normal(k2, (in_dim, hidden), jnp.float32) * scale,
            "bias": jax.random.normal(k3, (hidden,), jnp.float32) * 0.1,
        })
        in_dim = hidden
    return params


def init_model(key, vocab_sn, vocab_se, vocab_gn, vocab_ge):
    ks = jax.random.split(key, 11)
    return {
        "enc_state": init_graph_encoder(ks[0], vocab_sn, vocab_se, EMB_DIM, HIDDEN),
        "enc_goal": init_graph_encoder(ks[1], vocab_gn, vocab_ge, EMB_DIM, HIDDEN),
        "bilinear_w": jax.random.normal(ks[2], (CROSS_DIM, HIDDEN, HIDDEN), jnp.float32) / HIDDEN,
        "bilinear_b": jax.random.normal(ks[3], (CROSS_DIM,), jnp.float32) * 0.1,
        "depth_emb": jax.random.normal(ks[4], (DEPTH_VOCAB, DEPTH_EMB_DIM), jnp.float32),
        # head Linear(297, 64): rows split by concat order [hs, hg, cross, depth_scalar, depth_emb]
        "w1_hs": jax.random.normal(ks[5], (HIDDEN, 64), jnp.float32) * 0.05,
        "w1_hg": jax.random.normal(ks[6], (HIDDEN, 64), jnp.float32) * 0.05,
        "w1_cross": jax.random.normal(ks[7], (CROSS_DIM, 64), jnp.float32) * 0.05,
        "w1_depth": jax.random.normal(ks[8], (1, 64), jnp.float32) * 0.05,
        "w1_demb": jax.random.normal(ks[9], (DEPTH_EMB_DIM, 64), jnp.float32) * 0.05,
        "b1": jnp.zeros((1, 64), jnp.float32),
        "w2": jax.random.normal(ks[10], (64, 1), jnp.float32) * 0.1,
        "b2": jnp.zeros((1, 1), jnp.float32),
    }


# -------- one-time parameter preparation (hoisted out of the forward pass) --------
def prepare_encoder(enc_params, num_rel):
    ws = []
    in_dim = EMB_DIM
    for layer in enc_params["convs"]:
        # RGCN basis decomposition -> full relation weights, concat [W_root | W_1 | ... | W_R]
        w_rel = jnp.einsum("rb,bio->rio", layer["comp"], layer["basis"])           # [R, in, H]
        w_all = jnp.concatenate([layer["root"][None, :, :], w_rel], axis=0)        # [R+1, in, H]
        w_hcat = jnp.transpose(w_all, (1, 0, 2)).reshape(in_dim, (num_rel + 1) * HIDDEN)
        if in_dim < LANE:                                                           # pad 64 -> 128 rows
            w_hcat = jnp.pad(w_hcat, ((0, LANE - in_dim), (0, 0)))
        ws.append(w_hcat.astype(jnp.bfloat16))
        in_dim = HIDDEN
    node_emb = enc_params["node_emb"]
    if node_emb.shape[1] < LANE:
        node_emb = jnp.pad(node_emb, ((0, 0), (0, LANE - node_emb.shape[1])))
    return {"node_emb": node_emb.astype(jnp.bfloat16), "w": ws, "num_rel": num_rel}


def prepare_params(params, num_rel_s, num_rel_g):
    H, K = HIDDEN, CROSS_DIM
    # bilinear weight, flattened so t[b, k*H+j] = sum_i hs[b,i] * W[k,i,j]
    wbil_flat = jnp.transpose(params["bilinear_w"], (1, 0, 2)).reshape(H, K * H).astype(jnp.bfloat16)
    # cross -> head-layer-1 fold: repeat w1_cross over each lane chunk of `prod`
    w1c_pad = jnp.pad(params["w1_cross"], ((0, 0), (0, LANE - 64)))                 # [K, 128]
    w1c_big = jnp.repeat(w1c_pad, H, axis=0).astype(jnp.bfloat16)                   # [K*H, 128]
    # head layer-1 weight for the [hs | hg | depth_block] feature row (bilinear bias + b1 folded)
    b1_eff = params["b1"] + params["bilinear_b"][None, :] @ params["w1_cross"]      # [1, 64]
    bias_row = (jnp.zeros((LANE,), jnp.float32)
                .at[:64].set(b1_eff[0])
                .at[LANE - 1].set(1.0))                                             # const-1 carrier for b2
    w1cat = jnp.zeros((3 * LANE, LANE), jnp.float32)
    w1cat = w1cat.at[0:H, :64].set(params["w1_hs"])
    w1cat = w1cat.at[H:2 * H, :64].set(params["w1_hg"])
    w1cat = w1cat.at[2 * H, :64].set(params["w1_depth"][0])
    w1cat = w1cat.at[2 * H + 1:2 * H + 1 + DEPTH_EMB_DIM, :64].set(params["w1_demb"])
    w1cat = w1cat.at[2 * H + 1 + DEPTH_EMB_DIM].set(bias_row)
    # head layer-2 weight padded to 128x128, b2 folded via the constant-1 column (row 127)
    w2p = jnp.zeros((LANE, LANE), jnp.float32)
    w2p = w2p.at[:64, 0].set(params["w2"][:, 0])
    w2p = w2p.at[LANE - 1, 0].set(params["b2"][0, 0])
    head_w = jnp.concatenate([w1cat, w2p], axis=0).astype(jnp.bfloat16)             # [512, 128]
    bias_stack = jnp.stack([
        params["enc_state"]["convs"][0]["bias"],
        params["enc_state"]["convs"][1]["bias"],
        params["enc_goal"]["convs"][0]["bias"],
        params["enc_goal"]["convs"][1]["bias"],
    ], axis=0).astype(jnp.float32)                                                  # [4, 128]
    return {
        "enc_state": prepare_encoder(params["enc_state"], num_rel_s),
        "enc_goal": prepare_encoder(params["enc_goal"], num_rel_g),
        "bias_stack": bias_stack,
        "wbil_flat": wbil_flat,
        "w1c_big": w1c_big,
        "head_w": head_w,
        "depth_emb": params["depth_emb"],
    }


# ------------------------------- forward pass -------------------------------
def heuristic_forward(prep, data_s, data_g, depth, num_graphs):
    assert num_graphs <= B_PAD
    np_nodes = max(LANE, _round_up(max(data_s["num_nodes"], data_g["num_nodes"]), LANE))
    x0s, aas = encoder_inputs(prep["enc_state"], data_s, np_nodes)
    x0g, aag = encoder_inputs(prep["enc_goal"], data_g, np_nodes)
    ps = build_pool(data_s["batch"], data_s["num_nodes"], np_nodes)
    pg = build_pool(data_g["batch"], data_g["num_nodes"], np_nodes)
    dblk = build_depth_block(prep["depth_emb"], depth, np_nodes)
    aux = jnp.concatenate([ps, pg, dblk], axis=0)                        # [24, NP] f32
    out = fused_forward(prep, x0s, aas, x0g, aag, aux)                   # [8, 128] f32
    return out[:num_graphs, 0]                                           # .squeeze(-1)


def make_graph(key, nodes_per_graph, num_graphs, node_vocab, rel_vocab, edges_per_graph):
    k1, k2, k3, k4 = jax.random.split(key, 4)
    n_total = nodes_per_graph * num_graphs
    node_ids = jax.random.randint(k1, (n_total,), 0, node_vocab, dtype=jnp.int32)
    src_local = jax.random.randint(k2, (num_graphs, edges_per_graph), 0, nodes_per_graph, dtype=jnp.int32)
    dst_local = jax.random.randint(k3, (num_graphs, edges_per_graph), 0, nodes_per_graph, dtype=jnp.int32)
    offsets = (jnp.arange(num_graphs, dtype=jnp.int32) * nodes_per_graph)[:, None]
    src = (src_local + offsets).reshape(-1)
    dst = (dst_local + offsets).reshape(-1)
    edge_index = jnp.stack([src, dst])
    edge_type = jax.random.randint(k4, (src.shape[0],), 0, rel_vocab, dtype=jnp.int32)
    batch = jnp.repeat(jnp.arange(num_graphs, dtype=jnp.int32), nodes_per_graph)
    return dict(x=node_ids, edge_index=edge_index, edge_type=edge_type,
                batch=batch, num_nodes=n_total)


if __name__ == "__main__":
    key = jax.random.PRNGKey(0)
    k_model, k_s, k_g = jax.random.split(key, 3)

    VOCAB_STATE_NODES, VOCAB_STATE_EDGES = 32, 4
    VOCAB_GOAL_NODES, VOCAB_GOAL_EDGES = 24, 3
    NUM_GRAPHS = 2
    NODES_PER_GRAPH = 8
    EDGES_PER_GRAPH = 12

    params = init_model(k_model, VOCAB_STATE_NODES, VOCAB_STATE_EDGES,
                        VOCAB_GOAL_NODES, VOCAB_GOAL_EDGES)
    prep = prepare_params(params, VOCAB_STATE_EDGES, VOCAB_GOAL_EDGES)   # one-time prep

    data_s = make_graph(k_s, NODES_PER_GRAPH, NUM_GRAPHS,
                        VOCAB_STATE_NODES, VOCAB_STATE_EDGES, EDGES_PER_GRAPH)
    data_g = make_graph(k_g, NODES_PER_GRAPH, NUM_GRAPHS,
                        VOCAB_GOAL_NODES, VOCAB_GOAL_EDGES, EDGES_PER_GRAPH)
    depth = jnp.array([3, 7], dtype=jnp.int32)

    out = heuristic_forward(prep, data_s, data_g, depth, NUM_GRAPHS)
    out = jax.block_until_ready(out)
    assert out.shape == (NUM_GRAPHS,) and out.dtype == jnp.float32
    print("KERNEL_OK")
</pallas_src>

<mosaic_0001>
module attributes {stable_mosaic.version = 11 : i64} {
  func.func @_fused_kernel(%arg0: memref<128x128xbf16, #tpu.memory_space<vmem>>, %arg1: memref<128x512xbf16, #tpu.memory_space<vmem>>, %arg2: memref<128x640xbf16, #tpu.memory_space<vmem>>, %arg3: memref<128x640xbf16, #tpu.memory_space<vmem>>, %arg4: memref<128x128xbf16, #tpu.memory_space<vmem>>, %arg5: memref<128x384xbf16, #tpu.memory_space<vmem>>, %arg6: memref<128x512xbf16, #tpu.memory_space<vmem>>, %arg7: memref<128x512xbf16, #tpu.memory_space<vmem>>, %arg8: memref<4x128xf32, #tpu.memory_space<vmem>>, %arg9: memref<24x128xf32, #tpu.memory_space<vmem>>, %arg10: memref<128x4096xbf16, #tpu.memory_space<vmem>>, %arg11: memref<4096x128xbf16, #tpu.memory_space<vmem>>, %arg12: memref<512x128xbf16, #tpu.memory_space<vmem>>, %arg13: memref<8x128xf32, #tpu.memory_space<vmem>>) attributes {dimension_semantics = [], scalar_prefetch = 0 : i64, scratch_operands = 0 : i64, tpu.core_type = #tpu.core_type<tc>} {
    %c0 = arith.constant 0 : index
    %c0_0 = arith.constant 0 : index
    %0 = vector.load %arg8[%c0, %c0_0] : memref<4x128xf32, #tpu.memory_space<vmem>>, vector<4x128xf32>
    %1 = vector.extract_strided_slice %0 {offsets = [0, 0], sizes = [1, 128], strides = [1, 1]} : vector<4x128xf32> to vector<1x128xf32>
    %2 = vector.extract_strided_slice %0 {offsets = [1, 0], sizes = [1, 128], strides = [1, 1]} : vector<4x128xf32> to vector<1x128xf32>
    %c0_1 = arith.constant 0 : index
    %c0_2 = arith.constant 0 : index
    %3 = vector.load %arg0[%c0_1, %c0_2] : memref<128x128xbf16, #tpu.memory_space<vmem>>, vector<128x128xbf16>
    %c0_3 = arith.constant 0 : index
    %c0_4 = arith.constant 0 : index
    %4 = vector.load %arg2[%c0_3, %c0_4] : memref<128x640xbf16, #tpu.memory_space<vmem>>, vector<128x128xbf16>
    %cst = arith.constant dense<0.000000e+00> : vector<128x128xf32>
    %5 = tpu.matmul %3, %4, %cst {dimension_numbers = #tpu.dot_dimension_numbers<[1], [0], [0], [1], [0, 0, 1, 1], [], []>} : vector<128x128xbf16>, vector<128x128xbf16>, vector<128x128xf32> -> vector<128x128xf32>
    %c0_5 = arith.constant 0 : index
    %c128 = arith.constant 128 : index
    %6 = vector.load %arg2[%c0_5, %c128] : memref<128x640xbf16, #tpu.memory_space<vmem>>, vector<128x128xbf16>
    %cst_6 = arith.constant dense<0.000000e+00> : vector<128x128xf32>
    %7 = tpu.matmul %3, %6, %cst_6 {dimension_numbers = #tpu.dot_dimension_numbers<[1], [0], [0], [1], [0, 0, 1, 1], [], []>} : vector<128x128xbf16>, vector<128x128xbf16>, vector<128x128xf32> -> vector<128x128xf32>
    %8 = arith.truncf %7 : vector<128x128xf32> to vector<128x128xbf16>
    %c0_7 = arith.constant 0 : index
    %c0_8 = arith.constant 0 : index
    %9 = vector.load %arg1[%c0_7, %c0_8] : memref<128x512xbf16, #tpu.memory_space<vmem>>, vector<128x128xbf16>
    %cst_9 = arith.constant dense<0.000000e+00> : vector<128x128xf32>
    %10 = tpu.matmul %9, %8, %cst_9 {dimension_numbers = #tpu.dot_dimension_numbers<[1], [0], [0], [1], [0, 0, 1, 1], [], []>} : vector<128x128xbf16>, vector<128x128xbf16>, vector<128x128xf32> -> vector<128x128xf32>
    %11 = arith.addf %5, %10 : vector<128x128xf32>
    %c0_10 = arith.constant 0 : index
    %c256 = arith.constant 256 : index
    %12 = vector.load %arg2[%c0_10, %c256] : memref<128x640xbf16, #tpu.memory_space<vmem>>, vector<128x128xbf16>
    %cst_11 = arith.constant dense<0.000000e+00> : vector<128x128xf32>
    %13 = tpu.matmul %3, %12, %cst_11 {dimension_numbers = #tpu.dot_dimension_numbers<[1], [0], [0], [1], [0, 0, 1, 1], [], []>} : vector<128x128xbf16>, vector<128x128xbf16>, vector<128x128xf32> -> vector<128x128xf32>
    %14 = arith.truncf %13 : vector<128x128xf32> to vector<128x128xbf16>
    %c0_12 = arith.constant 0 : index
    %c128_13 = arith.constant 128 : index
    %15 = vector.load %arg1[%c0_12, %c128_13] : memref<128x512xbf16, #tpu.memory_space<vmem>>, vector<128x128xbf16>
    %cst_14 = arith.constant dense<0.000000e+00> : vector<128x128xf32>
    %16 = tpu.matmul %15, %14, %cst_14 {dimension_numbers = #tpu.dot_dimension_numbers<[1], [0], [0], [1], [0, 0, 1, 1], [], []>} : vector<128x128xbf16>, vector<128x128xbf16>, vector<128x128xf32> -> vector<128x128xf32>
    %17 = arith.addf %11, %16 : vector<128x128xf32>
    %c0_15 = arith.constant 0 : index
    %c384 = arith.constant 384 : index
    %18 = vector.load %arg2[%c0_15, %c384] : memref<128x640xbf16, #tpu.memory_space<vmem>>, vector<128x128xbf16>
    %cst_16 = arith.constant dense<0.000000e+00> : vector<128x128xf32>
    %19 = tpu.matmul %3, %18, %cst_16 {dimension_numbers = #tpu.dot_dimension_numbers<[1], [0], [0], [1], [0, 0, 1, 1], [], []>} : vector<128x128xbf16>, vector<128x128xbf16>, vector<128x128xf32> -> vector<128x128xf32>
    %20 = arith.truncf %19 : vector<128x128xf32> to vector<128x128xbf16>
    %c0_17 = arith.constant 0 : index
    %c256_18 = arith.constant 256 : index
    %21 = vector.load %arg1[%c0_17, %c256_18] : memref<128x512xbf16, #tpu.memory_space<vmem>>, vector<128x128xbf16>
    %cst_19 = arith.constant dense<0.000000e+00> : vector<128x128xf32>
    %22 = tpu.matmul %21, %20, %cst_19 {dimension_numbers = #tpu.dot_dimension_numbers<[1], [0], [0], [1], [0, 0, 1, 1], [], []>} : vector<128x128xbf16>, vector<128x128xbf16>, vector<128x128xf32> -> vector<128x128xf32>
    %23 = arith.addf %17, %22 : vector<128x128xf32>
    %c0_20 = arith.constant 0 : index
    %c512 = arith.constant 512 : index
    %24 = vector.load %arg2[%c0_20, %c512] : memref<128x640xbf16, #tpu.memory_space<vmem>>, vector<128x128xbf16>
    %cst_21 = arith.constant dense<0.000000e+00> : vector<128x128xf32>
    %25 = tpu.matmul %3, %24, %cst_21 {dimension_numbers = #tpu.dot_dimension_numbers<[1], [0], [0], [1], [0, 0, 1, 1], [], []>} : vector<128x128xbf16>, vector<128x128xbf16>, vector<128x128xf32> -> vector<128x128xf32>
    %26 = arith.truncf %25 : vector<128x128xf32> to vector<128x128xbf16>
    %c0_22 = arith.constant 0 : index
    %c384_23 = arith.constant 384 : index
    %27 = vector.load %arg1[%c0_22, %c384_23] : memref<128x512xbf16, #tpu.memory_space<vmem>>, vector<128x128xbf16>
    %cst_24 = arith.constant dense<0.000000e+00> : vector<128x128xf32>
    %28 = tpu.matmul %27, %26, %cst_24 {dimension_numbers = #tpu.dot_dimension_numbers<[1], [0], [0], [1], [0, 0, 1, 1], [], []>} : vector<128x128xbf16>, vector<128x128xbf16>, vector<128x128xf32> -> vector<128x128xf32>
    %29 = arith.addf %23, %28 : vector<128x128xf32>
    %30 = vector.broadcast %1 : vector<1x128xf32> to vector<128x128xf32>
    %31 = arith.addf %29, %30 : vector<128x128xf32>
    %cst_25 = arith.constant 0.000000e+00 : f32
    %32 = vector.broadcast %cst_25 : f32 to vector<128x128xf32>
    %33 = arith.maximumf %31, %32 : vector<128x128xf32>
    %34 = arith.truncf %33 : vector<128x128xf32> to vector<128x128xbf16>
    %c0_26 = arith.constant 0 : index
    %c0_27 = arith.constant 0 : index
    %35 = vector.load %arg3[%c0_26, %c0_27] : memref<128x640xbf16, #tpu.memory_space<vmem>>, vector<128x128xbf16>
    %cst_28 = arith.constant dense<0.000000e+00> : vector<128x128xf32>
    %36 = tpu.matmul %34, %35, %cst_28 {dimension_numbers = #tpu.dot_dimension_numbers<[1], [0], [0], [1], [0, 0, 1, 1], [], []>} : vector<128x128xbf16>, vector<128x128xbf16>, vector<128x128xf32> -> vector<128x128xf32>
    %c0_29 = arith.constant 0 : index
    %c128_30 = arith.constant 128 : index
    %37 = vector.load %arg3[%c0_29, %c128_30] : memref<128x640xbf16, #tpu.memory_space<vmem>>, vector<128x128xbf16>
    %cst_31 = arith.constant dense<0.000000e+00> : vector<128x128xf32>
    %38 = tpu.matmul %34, %37, %cst_31 {dimension_numbers = #tpu.dot_dimension_numbers<[1], [0], [0], [1], [0, 0, 1, 1], [], []>} : vector<128x128xbf16>, vector<128x128xbf16>, vector<128x128xf32> -> vector<128x128xf32>
    %39 = arith.truncf %38 : vector<128x128xf32> to vector<128x128xbf16>
    %c0_32 = arith.constant 0 : index
    %c0_33 = arith.constant 0 : index
    %40 = vector.load %arg1[%c0_32, %c0_33] : memref<128x512xbf16, #tpu.memory_space<vmem>>, vector<128x128xbf16>
    %cst_34 = arith.constant dense<0.000000e+00> : vector<128x128xf32>
    %41 = tpu.matmul %40, %39, %cst_34 {dimension_numbers = #tpu.dot_dimension_numbers<[1], [0], [0], [1], [0, 0, 1, 1], [], []>} : vector<128x128xbf16>, vector<128x128xbf16>, vector<128x128xf32> -> vector<128x128xf32>
    %42 = arith.addf %36, %41 : vector<128x128xf32>
    %c0_35 = arith.constant 0 : index
    %c256_36 = arith.constant 256 : index
    %43 = vector.load %arg3[%c0_35, %c256_36] : memref<128x640xbf16, #tpu.memory_space<vmem>>, vector<128x128xbf16>
    %cst_37 = arith.constant dense<0.000000e+00> : vector<128x128xf32>
    %44 = tpu.matmul %34, %43, %cst_37 {dimension_numbers = #tpu.dot_dimension_numbers<[1], [0], [0], [1], [0, 0, 1, 1], [], []>} : vector<128x128xbf16>, vector<128x128xbf16>, vector<128x128xf32> -> vector<128x128xf32>
    %45 = arith.truncf %44 : vector<128x128xf32> to vector<128x128xbf16>
    %c0_38 = arith.constant 0 : index
    %c128_39 = arith.constant 128 : index
    %46 = vector.load %arg1[%c0_38, %c128_39] : memref<128x512xbf16, #tpu.memory_space<vmem>>, vector<128x128xbf16>
    %cst_40 = arith.constant dense<0.000000e+00> : vector<128x128xf32>
    %47 = tpu.matmul %46, %45, %cst_40 {dimension_numbers = #tpu.dot_dimension_numbers<[1], [0], [0], [1], [0, 0, 1, 1], [], []>} : vector<128x128xbf16>, vector<128x128xbf16>, vector<128x128xf32> -> vector<128x128xf32>
    %48 = arith.addf %42, %47 : vector<128x128xf32>
    %c0_41 = arith.constant 0 : index
    %c384_42 = arith.constant 384 : index
    %49 = vector.load %arg3[%c0_41, %c384_42] : memref<128x640xbf16, #tpu.memory_space<vmem>>, vector<128x128xbf16>
    %cst_43 = arith.constant dense<0.000000e+00> : vector<128x128xf32>
    %50 = tpu.matmul %34, %49, %cst_43 {dimension_numbers = #tpu.dot_dimension_numbers<[1], [0], [0], [1], [0, 0, 1, 1], [], []>} : vector<128x128xbf16>, vector<128x128xbf16>, vector<128x128xf32> -> vector<128x128xf32>
    %51 = arith.truncf %50 : vector<128x128xf32> to vector<128x128xbf16>
    %c0_44 = arith.constant 0 : index
    %c256_45 = arith.constant 256 : index
    %52 = vector.load %arg1[%c0_44, %c256_45] : memref<128x512xbf16, #tpu.memory_space<vmem>>, vector<128x128xbf16>
    %cst_46 = arith.constant dense<0.000000e+00> : vector<128x128xf32>
    %53 = tpu.matmul %52, %51, %cst_46 {dimension_numbers = #tpu.dot_dimension_numbers<[1], [0], [0], [1], [0, 0, 1, 1], [], []>} : vector<128x128xbf16>, vector<128x128xbf16>, vector<128x128xf32> -> vector<128x128xf32>
    %54 = arith.addf %48, %53 : vector<128x128xf32>
    %c0_47 = arith.constant 0 : index
    %c512_48 = arith.constant 512 : index
    %55 = vector.load %arg3[%c0_47, %c512_48] : memref<128x640xbf16, #tpu.memory_space<vmem>>, vector<128x128xbf16>
    %cst_49 = arith.constant dense<0.000000e+00> : vector<128x128xf32>
    %56 = tpu.matmul %34, %55, %cst_49 {dimension_numbers = #tpu.dot_dimension_numbers<[1], [0], [0], [1], [0, 0, 1, 1], [], []>} : vector<128x128xbf16>, vector<128x128xbf16>, vector<128x128xf32> -> vector<128x128xf32>
    %57 = arith.truncf %56 : vector<128x128xf32> to vector<128x128xbf16>
    %c0_50 = arith.constant 0 : index
    %c384_51 = arith.constant 384 : index
    %58 = vector.load %arg1[%c0_50, %c384_51] : memref<128x512xbf16, #tpu.memory_space<vmem>>, vector<128x128xbf16>
    %cst_52 = arith.constant dense<0.000000e+00> : vector<128x128xf32>
    %59 = tpu.matmul %58, %57, %cst_52 {dimension_numbers = #tpu.dot_dimension_numbers<[1], [0], [0], [1], [0, 0, 1, 1], [], []>} : vector<128x128xbf16>, vector<128x128xbf16>, vector<128x128xf32> -> vector<128x128xf32>
    %60 = arith.addf %54, %59 : vector<128x128xf32>
    %61 = vector.broadcast %2 : vector<1x128xf32> to vector<128x128xf32>
    %62 = arith.addf %60, %61 : vector<128x128xf32>
    %cst_53 = arith.constant 0.000000e+00 : f32
    %63 = vector.broadcast %cst_53 : f32 to vector<128x128xf32>
    %64 = arith.maximumf %62, %63 : vector<128x128xf32>
    %65 = arith.truncf %64 : vector<128x128xf32> to vector<128x128xbf16>
    %66 = vector.extract_strided_slice %0 {offsets = [2, 0], sizes = [1, 128], strides = [1, 1]} : vector<4x128xf32> to vector<1x128xf32>
    %67 = vector.extract_strided_slice %0 {offsets = [3, 0], sizes = [1, 128], strides = [1, 1]} : vector<4x128xf32> to vector<1x128xf32>
    %c0_54 = arith.constant 0 : index
    %c0_55 = arith.constant 0 : index
    %68 = vector.load %arg4[%c0_54, %c0_55] : memref<128x128xbf16, #tpu.memory_space<vmem>>, vector<128x128xbf16>
    %c0_56 = arith.constant 0 : index
    %c0_57 = arith.constant 0 : index
    %69 = vector.load %arg6[%c0_56, %c0_57] : memref<128x512xbf16, #tpu.memory_space<vmem>>, vector<128x128xbf16>
    %cst_58 = arith.constant dense<0.000000e+00> : vector<128x128xf32>
    %70 = tpu.matmul %68, %69, %cst_58 {dimension_numbers = #tpu.dot_dimension_numbers<[1], [0], [0], [1], [0, 0, 1, 1], [], []>} : vector<128x128xbf16>, vector<128x128xbf16>, vector<128x128xf32> -> vector<128x128xf32>
    %c0_59 = arith.constant 0 : index
    %c128_60 = arith.constant 128 : index
    %71 = vector.load %arg6[%c0_59, %c128_60] : memref<128x512xbf16, #tpu.memory_space<vmem>>, vector<128x128xbf16>
    %cst_61 = arith.constant dense<0.000000e+00> : vector<128x128xf32>
    %72 = tpu.matmul %68, %71, %cst_61 {dimension_numbers = #tpu.dot_dimension_numbers<[1], [0], [0], [1], [0, 0, 1, 1], [], []>} : vector<128x128xbf16>, vector<128x128xbf16>, vector<128x128xf32> -> vector<128x128xf32>
    %73 = arith.truncf %72 : vector<128x128xf32> to vector<128x128xbf16>
    %c0_62 = arith.constant 0 : index
    %c0_63 = arith.constant 0 : index
    %74 = vector.load %arg5[%c0_62, %c0_63] : memref<128x384xbf16, #tpu.memory_space<vmem>>, vector<128x128xbf16>
    %cst_64 = arith.constant dense<0.000000e+00> : vector<128x128xf32>
    %75 = tpu.matmul %74, %73, %cst_64 {dimension_numbers = #tpu.dot_dimension_numbers<[1], [0], [0], [1], [0, 0, 1, 1], [], []>} : vector<128x128xbf16>, vector<128x128xbf16>, vector<128x128xf32> -> vector<128x128xf32>
    %76 = arith.addf %70, %75 : vector<128x128xf32>
    %c0_65 = arith.constant 0 : index
    %c256_66 = arith.constant 256 : index
    %77 = vector.load %arg6[%c0_65, %c256_66] : memref<128x512xbf16, #tpu.memory_space<vmem>>, vector<128x128xbf16>
    %cst_67 = arith.constant dense<0.000000e+00> : vector<128x128xf32>
    %78 = tpu.matmul %68, %77, %cst_67 {dimension_numbers = #tpu.dot_dimension_numbers<[1], [0], [0], [1], [0, 0, 1, 1], [], []>} : vector<128x128xbf16>, vector<128x128xbf16>, vector<128x128xf32> -> vector<128x128xf32>
    %79 = arith.truncf %78 : vector<128x128xf32> to vector<128x128xbf16>
    %c0_68 = arith.constant 0 : index
    %c128_69 = arith.constant 128 : index
    %80 = vector.load %arg5[%c0_68, %c128_69] : memref<128x384xbf16, #tpu.memory_space<vmem>>, vector<128x128xbf16>
    %cst_70 = arith.constant dense<0.000000e+00> : vector<128x128xf32>
    %81 = tpu.matmul %80, %79, %cst_70 {dimension_numbers = #tpu.dot_dimension_numbers<[1], [0], [0], [1], [0, 0, 1, 1], [], []>} : vector<128x128xbf16>, vector<128x128xbf16>, vector<128x128xf32> -> vector<128x128xf32>
    %82 = arith.addf %76, %81 : vector<128x128xf32>
    %c0_71 = arith.constant 0 : index
    %c384_72 = arith.constant 384 : index
    %83 = vector.load %arg6[%c0_71, %c384_72] : memref<128x512xbf16, #tpu.memory_space<vmem>>, vector<128x128xbf16>
    %cst_73 = arith.constant dense<0.000000e+00> : vector<128x128xf32>
    %84 = tpu.matmul %68, %83, %cst_73 {dimension_numbers = #tpu.dot_dimension_numbers<[1], [0], [0], [1], [0, 0, 1, 1], [], []>} : vector<128x128xbf16>, vector<128x128xbf16>, vector<128x128xf32> -> vector<128x128xf32>
    %85 = arith.truncf %84 : vector<128x128xf32> to vector<128x128xbf16>
    %c0_74 = arith.constant 0 : index
    %c256_75 = arith.constant 256 : index
    %86 = vector.load %arg5[%c0_74, %c256_75] : memref<128x384xbf16, #tpu.memory_space<vmem>>, vector<128x128xbf16>
    %cst_76 = arith.constant dense<0.000000e+00> : vector<128x128xf32>
    %87 = tpu.matmul %86, %85, %cst_76 {dimension_numbers = #tpu.dot_dimension_numbers<[1], [0], [0], [1], [0, 0, 1, 1], [], []>} : vector<128x128xbf16>, vector<128x128xbf16>, vector<128x128xf32> -> vector<128x128xf32>
    %88 = arith.addf %82, %87 : vector<128x128xf32>
    %89 = vector.broadcast %66 : vector<1x128xf32> to vector<128x128xf32>
    %90 = arith.addf %88, %89 : vector<128x128xf32>
    %cst_77 = arith.constant 0.000000e+00 : f32
    %91 = vector.broadcast %cst_77 : f32 to vector<128x128xf32>
    %92 = arith.maximumf %90, %91 : vector<128x128xf32>
    %93 = arith.truncf %92 : vector<128x128xf32> to vector<128x128xbf16>
    %c0_78 = arith.constant 0 : index
    %c0_79 = arith.constant 0 : index
    %94 = vector.load %arg7[%c0_78, %c0_79] : memref<128x512xbf16, #tpu.memory_space<vmem>>, vector<128x128xbf16>
    %cst_80 = arith.constant dense<0.000000e+00> : vector<128x128xf32>
    %95 = tpu.matmul %93, %94, %cst_80 {dimension_numbers = #tpu.dot_dimension_numbers<[1], [0], [0], [1], [0, 0, 1, 1], [], []>} : vector<128x128xbf16>, vector<128x128xbf16>, vector<128x128xf32> -> vector<128x128xf32>
    %c0_81 = arith.constant 0 : index
    %c128_82 = arith.constant 128 : index
    %96 = vector.load %arg7[%c0_81, %c128_82] : memref<128x512xbf16, #tpu.memory_space<vmem>>, vector<128x128xbf16>
    %cst_83 = arith.constant dense<0.000000e+00> : vector<128x128xf32>
    %97 = tpu.matmul %93, %96, %cst_83 {dimension_numbers = #tpu.dot_dimension_numbers<[1], [0], [0], [1], [0, 0, 1, 1], [], []>} : vector<128x128xbf16>, vector<128x128xbf16>, vector<128x128xf32> -> vector<128x128xf32>
    %98 = arith.truncf %97 : vector<128x128xf32> to vector<128x128xbf16>
    %c0_84 = arith.constant 0 : index
    %c0_85 = arith.constant 0 : index
    %99 = vector.load %arg5[%c0_84, %c0_85] : memref<128x384xbf16, #tpu.memory_space<vmem>>, vector<128x128xbf16>
    %cst_86 = arith.constant dense<0.000000e+00> : vector<128x128xf32>
    %100 = tpu.matmul %99, %98, %cst_86 {dimension_numbers = #tpu.dot_dimension_numbers<[1], [0], [0], [1], [0, 0, 1, 1], [], []>} : vector<128x128xbf16>, vector<128x128xbf16>, vector<128x128xf32> -> vector<128x128xf32>
    %101 = arith.addf %95, %100 : vector<128x128xf32>
    %c0_87 = arith.constant 0 : index
    %c256_88 = arith.constant 256 : index
    %102 = vector.load %arg7[%c0_87, %c256_88] : memref<128x512xbf16, #tpu.memory_space<vmem>>, vector<128x128xbf16>
    %cst_89 = arith.constant dense<0.000000e+00> : vector<128x128xf32>
    %103 = tpu.matmul %93, %102, %cst_89 {dimension_numbers = #tpu.dot_dimension_numbers<[1], [0], [0], [1], [0, 0, 1, 1], [], []>} : vector<128x128xbf16>, vector<128x128xbf16>, vector<128x128xf32> -> vector<128x128xf32>
    %104 = arith.truncf %103 : vector<128x128xf32> to vector<128x128xbf16>
    %c0_90 = arith.constant 0 : index
    %c128_91 = arith.constant 128 : index
    %105 = vector.load %arg5[%c0_90, %c128_91] : memref<128x384xbf16, #tpu.memory_space<vmem>>, vector<128x128xbf16>
    %cst_92 = arith.constant dense<0.000000e+00> : vector<128x128xf32>
    %106 = tpu.matmul %105, %104, %cst_92 {dimension_numbers = #tpu.dot_dimension_numbers<[1], [0], [0], [1], [0, 0, 1, 1], [], []>} : vector<128x128xbf16>, vector<128x128xbf16>, vector<128x128xf32> -> vector<128x128xf32>
    %107 = arith.addf %101, %106 : vector<128x128xf32>
    %c0_93 = arith.constant 0 : index
    %c384_94 = arith.constant 384 : index
    %108 = vector.load %arg7[%c0_93, %c384_94] : memref<128x512xbf16, #tpu.memory_space<vmem>>, vector<128x128xbf16>
    %cst_95 = arith.constant dense<0.000000e+00> : vector<128x128xf32>
    %109 = tpu.matmul %93, %108, %cst_95 {dimension_numbers = #tpu.dot_dimension_numbers<[1], [0], [0], [1], [0, 0, 1, 1], [], []>} : vector<128x128xbf16>, vector<128x128xbf16>, vector<128x128xf32> -> vector<128x128xf32>
    %110 = arith.truncf %109 : vector<128x128xf32> to vector<128x128xbf16>
    %c0_96 = arith.constant 0 : index
    %c256_97 = arith.constant 256 : index
    %111 = vector.load %arg5[%c0_96, %c256_97] : memref<128x384xbf16, #tpu.memory_space<vmem>>, vector<128x128xbf16>
    %cst_98 = arith.constant dense<0.000000e+00> : vector<128x128xf32>
    %112 = tpu.matmul %111, %110, %cst_98 {dimension_numbers = #tpu.dot_dimension_numbers<[1], [0], [0], [1], [0, 0, 1, 1], [], []>} : vector<128x128xbf16>, vector<128x128xbf16>, vector<128x128xf32> -> vector<128x128xf32>
    %113 = arith.addf %107, %112 : vector<128x128xf32>
    %114 = vector.broadcast %67 : vector<1x128xf32> to vector<128x128xf32>
    %115 = arith.addf %113, %114 : vector<128x128xf32>
    %cst_99 = arith.constant 0.000000e+00 : f32
    %116 = vector.broadcast %cst_99 : f32 to vector<128x128xf32>
    %117 = arith.maximumf %115, %116 : vector<128x128xf32>
    %118 = arith.truncf %117 : vector<128x128xf32> to vector<128x128xbf16>
    %c0_100 = arith.constant 0 : index
    %c0_101 = arith.constant 0 : index
    %119 = vector.load %arg9[%c0_100, %c0_101] : memref<24x128xf32, #tpu.memory_space<vmem>>, vector<24x128xf32>
    %120 = vector.extract_strided_slice %119 {offsets = [0, 0], sizes = [8, 128], strides = [1, 1]} : vector<24x128xf32> to vector<8x128xf32>
    %121 = arith.truncf %120 : vector<8x128xf32> to vector<8x128xbf16>
    %122 = vector.extract_strided_slice %119 {offsets = [8, 0], sizes = [8, 128], strides = [1, 1]} : vector<24x128xf32> to vector<8x128xf32>
    %123 = arith.truncf %122 : vector<8x128xf32> to vector<8x128xbf16>
    %124 = vector.extract_strided_slice %119 {offsets = [16, 0], sizes = [8, 128], strides = [1, 1]} : vector<24x128xf32> to vector<8x128xf32>
    %125 = arith.truncf %124 : vector<8x128xf32> to vector<8x128xbf16>
    %cst_102 = arith.constant dense<0.000000e+00> : vector<8x128xf32>
    %126 = tpu.matmul %121, %65, %cst_102 {dimension_numbers = #tpu.dot_dimension_numbers<[1], [0], [0], [1], [0, 0, 1, 1], [], []>} : vector<8x128xbf16>, vector<128x128xbf16>, vector<8x128xf32> -> vector<8x128xf32>
    %cst_103 = arith.constant dense<0.000000e+00> : vector<8x128xf32>
    %127 = tpu.matmul %123, %118, %cst_103 {dimension_numbers = #tpu.dot_dimension_numbers<[1], [0], [0], [1], [0, 0, 1, 1], [], []>} : vector<8x128xbf16>, vector<128x128xbf16>, vector<8x128xf32> -> vector<8x128xf32>
    %128 = arith.truncf %126 : vector<8x128xf32> to vector<8x128xbf16>
    %129 = arith.truncf %127 : vector<8x128xf32> to vector<8x128xbf16>
    %c0_104 = arith.constant 0 : index
    %c0_105 = arith.constant 0 : index
    %130 = vector.load %arg10[%c0_104, %c0_105] : memref<128x4096xbf16, #tpu.memory_space<vmem>>, vector<128x4096xbf16>
    %cst_106 = arith.constant dense<0.000000e+00> : vector<8x4096xf32>
    %131 = tpu.matmul %128, %130, %cst_106 {dimension_numbers = #tpu.dot_dimension_numbers<[1], [0], [0], [1], [0, 0, 1, 1], [], []>} : vector<8x128xbf16>, vector<128x4096xbf16>, vector<8x4096xf32> -> vector<8x4096xf32>
    %132 = tpu.concatenate %127, %127, %127, %127, %127, %127, %127, %127, %127, %127, %127, %127, %127, %127, %127, %127 in 1 : vector<8x128xf32>, vector<8x128xf32>, vector<8x128xf32>, vector<8x128xf32>, vector<8x128xf32>, vector<8x128xf32>, vector<8x128xf32>, vector<8x128xf32>, vector<8x128xf32>, vector<8x128xf32>, vector<8x128xf32>, vector<8x128xf32>, vector<8x128xf32>, vector<8x128xf32>, vector<8x128xf32>, vector<8x128xf32> -> vector<8x2048xf32>
    %133 = tpu.concatenate %127, %127, %127, %127, %127, %127, %127, %127, %127, %127, %127, %127, %127, %127, %127, %127 in 1 : vector<8x128xf32>, vector<8x128xf32>, vector<8x128xf32>, vector<8x128xf32>, vector<8x128xf32>, vector<8x128xf32>, vector<8x128xf32>, vector<8x128xf32>, vector<8x128xf32>, vector<8x128xf32>, vector<8x128xf32>, vector<8x128xf32>, vector<8x128xf32>, vector<8x128xf32>, vector<8x128xf32>, vector<8x128xf32> -> vector<8x2048xf32>
    %134 = tpu.concatenate %132, %133 in 1 : vector<8x2048xf32>, vector<8x2048xf32> -> vector<8x4096xf32>
    %135 = arith.mulf %131, %134 : vector<8x4096xf32>
    %136 = arith.truncf %135 : vector<8x4096xf32> to vector<8x4096xbf16>
    %c0_107 = arith.constant 0 : index
    %c0_108 = arith.constant 0 : index
    %137 = vector.load %arg12[%c0_107, %c0_108] : memref<512x128xbf16, #tpu.memory_space<vmem>>, vector<512x128xbf16>
    %138 = tpu.concatenate %128, %129, %125 in 1 : vector<8x128xbf16>, vector<8x128xbf16>, vector<8x128xbf16> -> vector<8x384xbf16>
    %139 = vector.extract_strided_slice %137 {offsets = [0, 0], sizes = [384, 128], strides = [1, 1]} : vector<512x128xbf16> to vector<384x128xbf16>
    %cst_109 = arith.constant dense<0.000000e+00> : vector<8x128xf32>
    %140 = tpu.matmul %138, %139, %cst_109 {dimension_numbers = #tpu.dot_dimension_numbers<[1], [0], [0], [1], [0, 0, 1, 1], [], []>} : vector<8x384xbf16>, vector<384x128xbf16>, vector<8x128xf32> -> vector<8x128xf32>
    %c0_110 = arith.constant 0 : index
    %c0_111 = arith.constant 0 : index
    %141 = vector.load %arg11[%c0_110, %c0_111] : memref<4096x128xbf16, #tpu.memory_space<vmem>>, vector<4096x128xbf16>
    %cst_112 = arith.constant dense<0.000000e+00> : vector<8x128xf32>
    %142 = tpu.matmul %136, %141, %cst_112 {dimension_numbers = #tpu.dot_dimension_numbers<[1], [0], [0], [1], [0, 0, 1, 1], [], []>} : vector<8x4096xbf16>, vector<4096x128xbf16>, vector<8x128xf32> -> vector<8x128xf32>
    %143 = arith.addf %140, %142 : vector<8x128xf32>
    %cst_113 = arith.constant 0.000000e+00 : f32
    %144 = vector.broadcast %cst_113 : f32 to vector<8x128xf32>
    %145 = arith.maximumf %143, %144 : vector<8x128xf32>
    %146 = arith.truncf %145 : vector<8x128xf32> to vector<8x128xbf16>
    %147 = vector.extract_strided_slice %137 {offsets = [384, 0], sizes = [128, 128], strides = [1, 1]} : vector<512x128xbf16> to vector<128x128xbf16>
    %cst_114 = arith.constant dense<0.000000e+00> : vector<8x128xf32>
    %148 = tpu.matmul %146, %147, %cst_114 {dimension_numbers = #tpu.dot_dimension_numbers<[1], [0], [0], [1], [0, 0, 1, 1], [], []>} : vector<8x128xbf16>, vector<128x128xbf16>, vector<8x128xf32> -> vector<8x128xf32>
    %c0_115 = arith.constant 0 : index
    %c0_116 = arith.constant 0 : index
    %149 = vector.load %arg13[%c0_115, %c0_116] : memref<8x128xf32, #tpu.memory_space<vmem>>, vector<8x128xf32>
    tpu.vector_store %arg13[%c0_115, %c0_116], %148 {strides = array<i32>} : memref<8x128xf32, #tpu.memory_space<vmem>>, vector<8x128xf32>,
    return
  }
}

</mosaic_0001>

<bundles_post_ra>
// kernel: tpu_custom_call.1
= control target key start
LH: loop header
LB: loop body
LE: loop exit
PB: predicated region body
PF: predicated region fallthrough
CT: control target
= control target key end

     0   :  { %18 = vsyncpa [#allocation3], 0  ;;  %s15967_s0 = inlined_call_operand.hbm [shape: bf16[128,128], index: 0, kind: input, shape index: {}]   ;;  %s15968_s1 = inlined_call_operand.hbm [shape: bf16[128,512], index: 1, kind: input, shape index: {}]   ;;  %s15969_s2 = inlined_call_operand.hbm [shape: bf16[128,640], index: 2, kind: input, shape index: {}]   ;;  %s15970_s3 = inlined_call_operand.hbm [shape: bf16[128,640], index: 3, kind: input, shape index: {}]   ;;  %s15971_s4 = inlined_call_operand.hbm [shape: bf16[128,128], index: 4, kind: input, shape index: {}]   ;;  %s15972_s5 = inlined_call_operand.hbm [shape: bf16[128,384], index: 5, kind: input, shape index: {}]   ;;  %s15973_s6 = inlined_call_operand.hbm [shape: bf16[128,512], index: 6, kind: input, shape index: {}]   ;;  %s15974_s7 = inlined_call_operand.hbm [shape: bf16[128,512], index: 7, kind: input, shape index: {}]   ;;  %s15975_s8 = inlined_call_operand.vmem [shape: f32[4,128], index: 8, kind: input, shape index: {}]   ;;  %s15976_s9 = inlined_call_operand.vmem [shape: f32[24,128], index: 9, kind: input, shape index: {}]   ;;  %s15977_s10 = inlined_call_operand.hbm [shape: bf16[128,4096], index: 10, kind: input, shape index: {}]   ;;  %s15978_s11 = inlined_call_operand.hbm [shape: bf16[4096,128], index: 11, kind: input, shape index: {}]   ;;  %s15979_s12 = inlined_call_operand.hbm [shape: bf16[512,128], index: 12, kind: input, shape index: {}]   ;;  %s15980_s13 = inlined_call_operand.hbm [shape: f32[8,128], index: 13, kind: output, shape index: {}]  }
   0x1   :  { %19 = vsyncpa [#allocation6], 0 }
   0x2   :  { %20 = vsyncpa [#allocation9], 0 }
   0x3   :  { %21 = vsyncpa [#allocation12], 0 }
   0x4   :  { %22 = vsyncpa [#allocation15], 0 }
   0x5   :  { %23 = vsyncpa [#allocation18], 0 }
   0x6   :  { %24 = vsyncpa [#allocation4], 0  ;;  %s14751_s25 = smov [#allocation5]   ;;  %s14473_s29 = scalar_lea.hbm %s15968_s1, 4096 }
   0x7   :  { %s42_s26 = sshll.u32 %s14751_s25, 4  ;;  %p14474_p0 = scmp.ne.s32.totalorder %s15968_s1, %s14473_s29  ;;  %s43_s26 = int_to_ptr.vmem [resolvable:$true] %s42_s26 }
   0x8   :  { %p14477_p1 = scmp.lt.u32.totalorder %s14473_s29, %s15968_s1 }
   0xa   :  { %p14479_p2 = pnand %p14477_p1, %p14474_p0 }
   0xc   :  { %14482 = shalt.err (!%p14479_p2)
}
   0xd   :  { %s14483_s17 = scalar_lea.vmem %s43_s26, 4096  ;;  %p14488_p4 = scmp.lt.s32.totalorder %s43_s26, %s43_s26 }
   0xe   :  { %p14484_p3 = scmp.ne.s32.totalorder %s43_s26, %s14483_s17  ;;  %p14489_p5 = scmp.lt.s32.totalorder %s14483_s17, %s14483_s17 }
  0x10   :  { %p14490_p6 = por %p14489_p5, %p14488_p4 }
  0x12   :  { %p14491_p7 = pnand %p14490_p6, %p14484_p3 }
  0x14   :  { %14494 = shalt.err (!%p14491_p7)
}
  0x15   :  { %s14752_s18 = smov 256   ;;  %s14753_s19 = smov 16  }
  0x16   :  { %48 = dma.hbm_to_vmem [thread:$0]  %s15968_s1, 4096, %s43_s26, [#allocation6], %s14752_s18, %s14752_s18, %s14753_s19  }
  0x17   :  { %s14754_s22 = smov [#allocation8]   ;;  %s14755_s24 = smov [#allocation11]  }
  0x18   :  { %s66_s23 = sshll.u32 %s14754_s22, 4  ;;  %s90_s25 = sshll.u32 %s14755_s24, 4  ;;  %s67_s23 = int_to_ptr.vmem [resolvable:$true] %s66_s23  ;;  %s91_s25 = int_to_ptr.vmem [resolvable:$true] %s90_s25 }
  0x19   :  { %s14495_s29 = scalar_lea.hbm %s15970_s3, 5120 }
  0x1a   :  { %p14496_p8 = scmp.ne.s32.totalorder %s15970_s3, %s14495_s29  ;;  %p14499_p9 = scmp.lt.u32.totalorder %s14495_s29, %s15970_s3 }
  0x1c   :  { %p14501_p10 = pnand %p14499_p9, %p14496_p8 }
  0x1e   :  { %14504 = shalt.err (!%p14501_p10)
}
  0x1f   :  { %s14505_s1 = scalar_lea.vmem %s67_s23, 5120  ;;  %p14510_p12 = scmp.lt.s32.totalorder %s67_s23, %s67_s23 }
  0x20   :  { %p14506_p11 = scmp.ne.s32.totalorder %s67_s23, %s14505_s1  ;;  %p14511_p13 = scmp.lt.s32.totalorder %s14505_s1, %s14505_s1 }
  0x22   :  { %p14512_p0 = por %p14511_p13, %p14510_p12 }
  0x24   :  { %p14513_p1 = pnand %p14512_p0, %p14506_p11 }
  0x26   :  { %14516 = shalt.err (!%p14513_p1)
}
  0x27   :  { %s14756_s26 = smov 320   ;;  %s14757_s17 = smov 20  }
  0x28   :  { %72 = dma.hbm_to_vmem [thread:$0]  %s15970_s3, 5120, %s67_s23, [#allocation9], %s14756_s26, %s14756_s26, %s14757_s17  }
  0x29   :  { %s14517_s27 = scalar_lea.hbm %s15972_s5, 3072 }
  0x2a   :  { %p14518_p2 = scmp.ne.s32.totalorder %s15972_s5, %s14517_s27  ;;  %p14521_p3 = scmp.lt.u32.totalorder %s14517_s27, %s15972_s5 }
  0x2c   :  { %p14523_p4 = pnand %p14521_p3, %p14518_p2 }
  0x2e   :  { %14526 = shalt.err (!%p14523_p4)
}
  0x2f   :  { %s14527_s15 = scalar_lea.vmem %s91_s25, 3072  ;;  %p14532_p6 = scmp.lt.s32.totalorder %s91_s25, %s91_s25 }
  0x30   :  { %p14528_p5 = scmp.ne.s32.totalorder %s91_s25, %s14527_s15  ;;  %p14533_p7 = scmp.lt.s32.totalorder %s14527_s15, %s14527_s15 }
  0x32   :  { %p14534_p8 = por %p14533_p7, %p14532_p6 }
  0x34   :  { %p14535_p9 = pnand %p14534_p8, %p14528_p5 }
  0x36   :  { %14538 = shalt.err (!%p14535_p9)
}
  0x37   :  { %s14758_s3 = smov 192   ;;  %s14759_s23 = smov 12  }
  0x38   :  { %96 = dma.hbm_to_vmem [thread:$0]  %s15972_s5, 3072, %s91_s25, [#allocation12], %s14758_s3, %s14758_s3, %s14759_s23  }
  0x39   :  { %s14760_s20 = smov [#allocation14]   ;;  %s14539_s27 = scalar_lea.hbm %s15974_s7, 4096 }
  0x3a   :  { %s114_s21 = sshll.u32 %s14760_s20, 4  ;;  %p14540_p10 = scmp.ne.s32.totalorder %s15974_s7, %s14539_s27  ;;  %s115_s21 = int_to_ptr.vmem [resolvable:$true] %s114_s21 }
  0x3b   :  { %p14543_p11 = scmp.lt.u32.totalorder %s14539_s27, %s15974_s7 }
  0x3d   :  { %p14545_p12 = pnand %p14543_p11, %p14540_p10 }
  0x3f   :  { %14548 = shalt.err (!%p14545_p12)
}
  0x40   :  { %s14549_s15 = scalar_lea.vmem %s115_s21, 4096  ;;  %p14554_p0 = scmp.lt.s32.totalorder %s115_s21, %s115_s21 }
  0x41   :  { %p14550_p13 = scmp.ne.s32.totalorder %s115_s21, %s14549_s15  ;;  %p14555_p1 = scmp.lt.s32.totalorder %s14549_s15, %s14549_s15 }
  0x43   :  { %p14556_p2 = por %p14555_p1, %p14554_p0 }
  0x45   :  { %p14557_p3 = pnand %p14556_p2, %p14550_p13 }
  0x47   :  { %14560 = shalt.err (!%p14557_p3)
}
  0x48   :  { %120 = dma.hbm_to_vmem [thread:$0]  %s15974_s7, 4096, %s115_s21, [#allocation15], %s14752_s18, %s14752_s18, %s14753_s19  }
  0x49   :  { %s14761_s3 = smov [#allocation17]   ;;  %s14762_s16 = smov [#allocation2]  }
  0x4a   :  { %s142_s23 = sshll.u32 %s14761_s3, 4  ;;  %s30_s1 = sshll.u32 %s14762_s16, 4  ;;  %s143_s23 = int_to_ptr.vmem [resolvable:$true] %s142_s23  ;;  %s14903_s1 = int_to_ptr.vmem [resolvable:$true] %s30_s1 }
  0x4b   :  { %s14561_s24 = scalar_lea.hbm %s15978_s11, 32768 }
  0x4c   :  { %p14562_p4 = scmp.ne.s32.totalorder %s15978_s11, %s14561_s24  ;;  %p14565_p5 = scmp.lt.u32.totalorder %s14561_s24, %s15978_s11 }
  0x4e   :  { %p14567_p6 = pnand %p14565_p5, %p14562_p4 }
  0x50   :  { %14570 = shalt.err (!%p14567_p6)
}
  0x51   :  { %s14571_s7 = scalar_lea.vmem %s143_s23, 32768  ;;  %p14576_p8 = scmp.lt.s32.totalorder %s143_s23, %s143_s23 }
  0x52   :  { %p14572_p7 = scmp.ne.s32.totalorder %s143_s23, %s14571_s7  ;;  %p14577_p9 = scmp.lt.s32.totalorder %s14571_s7, %s14571_s7 }
  0x54   :  { %p14578_p10 = por %p14577_p9, %p14576_p8 }
  0x56   :  { %p14579_p11 = pnand %p14578_p10, %p14572_p7 }
  0x58   :  { %14582 = shalt.err (!%p14579_p11)
}
  0x59   :  { %s14763_s21 = smov 64   ;;  %s14764_s14 = smov 4  }
  0x5a   :  { %148 = dma.hbm_to_vmem [thread:$0]  %s15978_s11, 32768, %s143_s23, [#allocation18], %s14763_s21, %s14763_s21, %s14764_s14  }
  0x5b   :  { %s14583_s16 = scalar_lea.hbm %s15967_s0, 1024 }
  0x5c   :  { %p14584_p12 = scmp.ne.s32.totalorder %s15967_s0, %s14583_s16  ;;  %p14587_p13 = scmp.lt.u32.totalorder %s14583_s16, %s15967_s0 }
  0x5e   :  { %p14589_p0 = pnand %p14587_p13, %p14584_p12 }
  0x60   :  { %14592 = shalt.err (!%p14589_p0)
}
  0x61   :  { %s14593_s28 = scalar_lea.vmem %s14903_s1, 1024  ;;  %p14598_p2 = scmp.lt.s32.totalorder %s14903_s1, %s14903_s1 }
  0x62   :  { %p14594_p1 = scmp.ne.s32.totalorder %s14903_s1, %s14593_s28  ;;  %p14599_p3 = scmp.lt.s32.totalorder %s14593_s28, %s14593_s28 }
  0x64   :  { %p14600_p4 = por %p14599_p3, %p14598_p2 }
  0x66   :  { %p14601_p5 = pnand %p14600_p4, %p14594_p1 }
  0x68   :  { %14604 = shalt.err (!%p14601_p5)
}
  0x69   :  { %36 = dma.hbm_to_vmem [thread:$0]  %s15967_s0, 1024, %s14903_s1, [#allocation3], %s14763_s21, %s14763_s21, %s14764_s14  }
  0x6a   :  { %s14765_s29 = smov [#allocation7]   ;;  %s14766_s7 = smov [#allocation10]  }
  0x6b   :  { %s54_s30 = sshll.u32 %s14765_s29, 4  ;;  %s78_s15 = sshll.u32 %s14766_s7, 4  ;;  %s55_s30 = int_to_ptr.vmem [resolvable:$true] %s54_s30  ;;  %s14940_s15 = int_to_ptr.vmem [resolvable:$true] %s78_s15 }
  0x6c   :  { %s14605_s3 = scalar_lea.hbm %s15969_s2, 5120 }
  0x6d   :  { %p14606_p6 = scmp.ne.s32.totalorder %s15969_s2, %s14605_s3  ;;  %p14609_p7 = scmp.lt.u32.totalorder %s14605_s3, %s15969_s2 }
  0x6f   :  { %p14611_p8 = pnand %p14609_p7, %p14606_p6 }
  0x71   :  { %14614 = shalt.err (!%p14611_p8)
}
  0x72   :  { %s14615_s0 = scalar_lea.vmem %s55_s30, 5120  ;;  %p14620_p10 = scmp.lt.s32.totalorder %s55_s30, %s55_s30 }
  0x73   :  { %p14616_p9 = scmp.ne.s32.totalorder %s55_s30, %s14615_s0  ;;  %p14621_p11 = scmp.lt.s32.totalorder %s14615_s0, %s14615_s0 }
  0x75   :  { %p14622_p12 = por %p14621_p11, %p14620_p10 }
  0x77   :  { %p14623_p13 = pnand %p14622_p12, %p14616_p9 }
  0x79   :  { %14626 = shalt.err (!%p14623_p13)
}
  0x7a   :  { %60 = dma.hbm_to_vmem [thread:$0]  %s15969_s2, 5120, %s55_s30, [#allocation6], %s14756_s26, %s14756_s26, %s14757_s17  }
  0x7b   :  { %s14627_s23 = scalar_lea.hbm %s15971_s4, 1024 }
  0x7c   :  { %p14628_p0 = scmp.ne.s32.totalorder %s15971_s4, %s14627_s23  ;;  %p14631_p1 = scmp.lt.u32.totalorder %s14627_s23, %s15971_s4 }
  0x7e   :  { %p14633_p2 = pnand %p14631_p1, %p14628_p0 }
  0x80   :  { %14636 = shalt.err (!%p14633_p2)
}
  0x81   :  { %s14637_s3 = scalar_lea.vmem %s14940_s15, 1024  ;;  %p14642_p4 = scmp.lt.s32.totalorder %s14940_s15, %s14940_s15 }
  0x82   :  { %p14638_p3 = scmp.ne.s32.totalorder %s14940_s15, %s14637_s3  ;;  %p14643_p5 = scmp.lt.s32.totalorder %s14637_s3, %s14637_s3 }
  0x84   :  { %p14644_p6 = por %p14643_p5, %p14642_p4 }
  0x86   :  { %p14645_p7 = pnand %p14644_p6, %p14638_p3 }
  0x88   :  { %14648 = shalt.err (!%p14645_p7)
}
  0x89   :  { %84 = dma.hbm_to_vmem [thread:$0]  %s15971_s4, 1024, %s14940_s15, [#allocation9], %s14763_s21, %s14763_s21, %s14764_s14  }
  0x8a   :  { %s14767_s17 = smov [#allocation13]   ;;  %s14768_s16 = smov [#allocation16]  }
  0x8b   :  { %s102_s30 = sshll.u32 %s14767_s17, 4  ;;  %s130_s20 = sshll.u32 %s14768_s16, 4  ;;  %s103_s30 = int_to_ptr.vmem [resolvable:$true] %s102_s30  ;;  %s14977_s20 = int_to_ptr.vmem [resolvable:$true] %s130_s20 }
  0x8c   :  { %s14649_s0 = scalar_lea.hbm %s15973_s6, 4096 }
  0x8d   :  { %p14650_p8 = scmp.ne.s32.totalorder %s15973_s6, %s14649_s0  ;;  %p14653_p9 = scmp.lt.u32.totalorder %s14649_s0, %s15973_s6 }
  0x8f   :  { %p14655_p10 = pnand %p14653_p9, %p14650_p8 }
  0x91   :  { %14658 = shalt.err (!%p14655_p10)
}
  0x92   :  { %s14659_s4 = scalar_lea.vmem %s103_s30, 4096  ;;  %p14664_p12 = scmp.lt.s32.totalorder %s103_s30, %s103_s30 }
  0x93   :  { %p14660_p11 = scmp.ne.s32.totalorder %s103_s30, %s14659_s4  ;;  %p14665_p13 = scmp.lt.s32.totalorder %s14659_s4, %s14659_s4 }
  0x95   :  { %p14666_p0 = por %p14665_p13, %p14664_p12 }
  0x97   :  { %p14667_p1 = pnand %p14666_p0, %p14660_p11 }
  0x99   :  { %14670 = shalt.err (!%p14667_p1)
}
  0x9a   :  { %108 = dma.hbm_to_vmem [thread:$0]  %s15973_s6, 4096, %s103_s30, [#allocation12], %s14752_s18, %s14752_s18, %s14753_s19  }
  0x9b   :  { %s14671_s5 = scalar_lea.hbm %s15977_s10, 32768 }
  0x9c   :  { %p14672_p2 = scmp.ne.s32.totalorder %s15977_s10, %s14671_s5  ;;  %p14675_p3 = scmp.lt.u32.totalorder %s14671_s5, %s15977_s10 }
  0x9e   :  { %p14677_p4 = pnand %p14675_p3, %p14672_p2 }
  0xa0   :  { %14680 = shalt.err (!%p14677_p4)
}
  0xa1   :  { %s14681_s17 = scalar_lea.vmem %s14977_s20, 32768  ;;  %p14686_p6 = scmp.lt.s32.totalorder %s14977_s20, %s14977_s20 }
  0xa2   :  { %p14682_p5 = scmp.ne.s32.totalorder %s14977_s20, %s14681_s17  ;;  %p14687_p7 = scmp.lt.s32.totalorder %s14681_s17, %s14681_s17 }
  0xa4   :  { %p14688_p8 = por %p14687_p7, %p14686_p6 }
  0xa6   :  { %p14689_p9 = pnand %p14688_p8, %p14682_p5 }
  0xa8   :  { %14692 = shalt.err (!%p14689_p9)
}
  0xa9   :  { %s14769_s6 = smov 2048   ;;  %s14770_s18 = smov 128  }
  0xaa   :  { %136 = dma.hbm_to_vmem [thread:$0]  %s15977_s10, 32768, %s14977_s20, [#allocation15], %s14769_s6, %s14769_s6, %s14770_s18  }
  0xab   :  { %s14771_s16 = smov [#allocation19]   ;;  %s14693_s1 = scalar_lea.hbm %s15979_s12, 4096 }
  0xac   :  { %s154_s22 = sshll.u32 %s14771_s16, 4  ;;  %p14694_p10 = scmp.ne.s32.totalorder %s15979_s12, %s14693_s1  ;;  %s155_s22 = int_to_ptr.vmem [resolvable:$true] %s154_s22 }
  0xad   :  { %p14697_p11 = scmp.lt.u32.totalorder %s14693_s1, %s15979_s12 }
  0xaf   :  { %p14699_p12 = pnand %p14697_p11, %p14694_p10 }
  0xb1   :  { %14702 = shalt.err (!%p14699_p12)
}
  0xb2   :  { %s14703_s15 = scalar_lea.vmem %s155_s22, 4096  ;;  %p14708_p0 = scmp.lt.s32.totalorder %s155_s22, %s155_s22 }
  0xb3   :  { %p14704_p13 = scmp.ne.s32.totalorder %s155_s22, %s14703_s15  ;;  %p14709_p1 = scmp.lt.s32.totalorder %s14703_s15, %s14703_s15 }
  0xb5   :  { %p14710_p2 = por %p14709_p1, %p14708_p0 }
  0xb7   :  { %p14711_p3 = pnand %p14710_p2, %p14704_p13 }
  0xb9   :  { %14714 = shalt.err (!%p14711_p3)
}
  0xba   :  { %160 = dma.hbm_to_vmem [thread:$0]  %s15979_s12, 4096, %s155_s22, [#allocation18], %s14763_s21, %s14763_s21, %s14764_s14  }
  0xbb   :  { %14737 = dma.done.wait [#allocation3], 1024  }
  0xbc   :  { %14738 = vsyncadd [#allocation3], 4294966272 }
  0xbd   :  { %14739 = dma.done.wait [#allocation6], 9216  }
  0xbe   :  { %14740 = vsyncadd [#allocation6], 4294958080 }
  0xbf   :  { %14741 = dma.done.wait [#allocation9], 6144  }
  0xc0   :  { %14742 = vsyncadd [#allocation9], 4294961152 }
  0xc1   :  { %14743 = dma.done.wait [#allocation12], 7168  }
  0xc2   :  { %14744 = vsyncadd [#allocation12], 4294960128 }
  0xc3   :  { %14745 = dma.done.wait [#allocation15], 36864  }
  0xc4   :  { %14746 = vsyncadd [#allocation15], 4294930432 }
  0xc5   :  { %14747 = dma.done.wait [#allocation18], 36864  }
  0xc6   :  { %14748 = vsyncadd [#allocation18], 4294930432  ;;  %v13942_v0 = vld [vmem:[#allocation7 + $0x4] ss:$20 sps:$4 sm:$0xff]   ;;  %v13943_v1 = vld [vmem:[#allocation7 + $0x2c] ss:$20 sps:$4 sm:$0xff]  }
  0xc7   :  { %12589 = vmatprep.subr.bf16.mxu0 %v13942_v0  ;;  %v13944_v2 = vld [vmem:[#allocation7 + $0x54] ss:$20 sps:$4 sm:$0xff]   ;;  %v13945_v3 = vld [vmem:[#allocation7 + $0x7c] ss:$20 sps:$4 sm:$0xff]   ;;  %v15026_v4 = vld [vmem:[#allocation2] sm:$0xff]   ;;  %vm14773_vm0 = vmmov 0  }
  0xc8   :  { %12590 = vmatpush3.bf16.msra.mxu0 %v13942_v0  ;;  %12605 = vmatprep.mubr.bf16.mxu0 %v15026_v4  ;;  %v13946_v5 = vld [vmem:[#allocation7 + $0xa4] ss:$20 sps:$4 sm:$0xff]   ;;  %v13947_v6 = vld [vmem:[#allocation7 + $0xcc] ss:$20 sps:$4 sm:$0xff]   ;;  %v13948_v7 = vld [vmem:[#allocation7 + $0xf4] ss:$20 sps:$4 sm:$0xff]  }
  0xc9   :  { %12591 = vmatprep.subr.bf16.mxu0 %v13943_v1  ;;  %v13949_v8 = vld [vmem:[#allocation7 + $0x11c] ss:$20 sps:$4 sm:$0xff]   ;;  %v15029_v10 = vld [vmem:[#allocation2 + $0x8] sm:$0xff]   ;;  %v15037_v15 = vld [vmem:[#allocation2 + $0x20] sm:$0xff]  }
  0xca   :  { %v13958_v9 = vld [vmem:[#allocation7 + $0x8] ss:$20 sps:$4 sm:$0xff]   ;;  %v15031_v11 = vld [vmem:[#allocation2 + $0x10] sm:$0xff]   ;;  %v13960_v13 = vld [vmem:[#allocation7 + $0x58] ss:$20 sps:$4 sm:$0xff]  }
  0xcb   :  { %v13959_v12 = vld [vmem:[#allocation7 + $0x30] ss:$20 sps:$4 sm:$0xff]   ;;  %v15035_v14 = vld [vmem:[#allocation2 + $0x18] sm:$0xff]   ;;  %v13961_v16 = vld [vmem:[#allocation7 + $0x80] ss:$20 sps:$4 sm:$0xff]  }
  0xcc   :  { %12592 = vmatpush3.bf16.msra.mxu0 %v13943_v1  ;;  %v13962_v17 = vld [vmem:[#allocation7 + $0xa8] ss:$20 sps:$4 sm:$0xff]   ;;  %v15043_v19 = vld [vmem:[#allocation2 + $0x30] sm:$0xff]   ;;  %v13964_v21 = vld [vmem:[#allocation7 + $0xf8] ss:$20 sps:$4 sm:$0xff]  }
  0xcd   :  { %12593 = vmatprep.subr.bf16.mxu0 %v13944_v2  ;;  %v15041_v18 = vld [vmem:[#allocation2 + $0x28] sm:$0xff]   ;;  %v13963_v20 = vld [vmem:[#allocation7 + $0xd0] ss:$20 sps:$4 sm:$0xff]   ;;  %v15047_v22 = vld [vmem:[#allocation2 + $0x38] sm:$0xff]  }
  0xce   :  { %v13965_v23 = vld [vmem:[#allocation7 + $0x120] ss:$20 sps:$4 sm:$0xff]   ;;  %v13968_v26 = vld [vmem:[#allocation7 + $0x5c] ss:$20 sps:$4 sm:$0xff]   ;;  %v13969_v27 = vld [vmem:[#allocation7 + $0x84] ss:$20 sps:$4 sm:$0xff]  }
  0xcf   :  { %v13966_v24 = vld [vmem:[#allocation7 + $0xc] ss:$20 sps:$4 sm:$0xff]   ;;  %v13967_v25 = vld [vmem:[#allocation7 + $0x34] ss:$20 sps:$4 sm:$0xff]   ;;  %v13972_v30 = vld [vmem:[#allocation7 + $0xfc] ss:$20 sps:$4 sm:$0xff]  }
  0xd0   :  { %12594 = vmatpush3.bf16.msra.mxu0 %v13944_v2  ;;  %v13970_v28 = vld [vmem:[#allocation7 + $0xac] ss:$20 sps:$4 sm:$0xff]   ;;  %v13971_v29 = vld [vmem:[#allocation7 + $0xd4] ss:$20 sps:$4 sm:$0xff]   ;;  %v13973_v31 = vld [vmem:[#allocation7 + $0x124] ss:$20 sps:$4 sm:$0xff]  }
  0xd1   :  { %12595 = vmatprep.subr.bf16.mxu0 %v13945_v3  ;;  %v13974_v32 = vld [vmem:[#allocation7 + $0x10] ss:$20 sps:$4 sm:$0xff]   ;;  %v13975_v33 = vld [vmem:[#allocation7 + $0x38] ss:$20 sps:$4 sm:$0xff]   ;;  %v13976_v34 = vld [vmem:[#allocation7 + $0x60] ss:$20 sps:$4 sm:$0xff]  }
  0xd2   :  { %v13977_v35 = vld [vmem:[#allocation7 + $0x88] ss:$20 sps:$4 sm:$0xff]   ;;  %v13978_v36 = vld [vmem:[#allocation7 + $0xb0] ss:$20 sps:$4 sm:$0xff]   ;;  %v13979_v37 = vld [vmem:[#allocation7 + $0xd8] ss:$20 sps:$4 sm:$0xff]  }
  0xd3   :  { %v13980_v38 = vld [vmem:[#allocation7 + $0x100] ss:$20 sps:$4 sm:$0xff]   ;;  %v13981_v39 = vld [vmem:[#allocation7 + $0x128] ss:$20 sps:$4 sm:$0xff]  }
  0xd4   :  { %12596 = vmatpush3.bf16.msra.mxu0 %v13945_v3  ;;  %v13982_v40 = vld [vmem:[#allocation5] ss:$16 sps:$4 sm:$0xff]  }
  0xd5   :  { %12597 = vmatprep.subr.bf16.mxu0 %v13946_v5  ;;  %12637 = vmatprep.mubr.bf16.mxu1 %v13982_v40  ;;  %v13984_v1 = vld [vmem:[#allocation7] ss:$20 sps:$4 sm:$0xff]   ;;  %v14022_v40 = vld [vmem:[#allocation8 + $0x4] ss:$20 sps:$4 sm:$0xff]  }
  0xd6   :  { %v13983_v2 = vld [vmem:[#allocation5 + $0x20] ss:$16 sps:$4 sm:$0xff]  }
  0xd8   :  { %12598 = vmatpush3.bf16.msra.mxu0 %v13946_v5 }
  0xd9   :  { %12599 = vmatprep.subr.bf16.mxu0 %v13947_v6 }
  0xdc   :  { %12600 = vmatpush3.bf16.msra.mxu0 %v13947_v6  ;;  %v13985_v6 = vld [vmem:[#allocation7 + $0x28] ss:$20 sps:$4 sm:$0xff]  }
  0xdd   :  { %12601 = vmatprep.subr.bf16.mxu0 %v13948_v7 }
  0xe0   :  { %12602 = vmatpush3.bf16.msra.mxu0 %v13948_v7  ;;  %v13986_v7 = vld [vmem:[#allocation5 + $0x40] ss:$16 sps:$4 sm:$0xff]  }
  0xe1   :  { %12603 = vmatprep.subr.bf16.mxu0 %v13949_v8 }
  0xe4   :  { %12604 = vmatpush3.bf16.msra.mxu0 %v13949_v8 }
  0xe5   :  { %12685 = vmatprep.subr.bf16.mxu0 %v13958_v9 }
  0xe7   :  { %12606 = vmatmul.mubr.bf16.vlgmr.msra.gmra.mrb[0].mxu0 %v15029_v10 }
  0xe8   :  { %12609 = vmatprep.mubr.bf16.mxu0 %v15031_v11  ;;  %12686 = vmatpush3.bf16.msra.mxu0 %v13958_v9 }
  0xe9   :  { %12687 = vmatprep.subr.bf16.mxu0 %v13959_v12 }
  0xec   :  { %12688 = vmatpush3.bf16.msra.mxu0 %v13959_v12  ;;  %v13987_v12 = vld [vmem:[#allocation5 + $0x60] ss:$16 sps:$4 sm:$0xff]  }
  0xed   :  { %12689 = vmatprep.subr.bf16.mxu0 %v13960_v13 }
  0xef   :  { %12610 = vmatmul.mubr.bf16.gmra.mrb[4].mxu0 %v15035_v14 }
  0xf0   :  { %12613 = vmatprep.mubr.bf16.mxu0 %v15037_v15  ;;  %12690 = vmatpush3.bf16.msra.mxu0 %v13960_v13 }
  0xf1   :  { %12691 = vmatprep.subr.bf16.mxu0 %v13961_v16 }
  0xf4   :  { %12692 = vmatpush3.bf16.msra.mxu0 %v13961_v16  ;;  %v13989_v16 = vld [vmem:[#allocation7 + $0x78] ss:$20 sps:$4 sm:$0xff]  }
  0xf5   :  { %12693 = vmatprep.subr.bf16.mxu0 %v13962_v17 }
  0xf7   :  { %12614 = vmatmul.mubr.bf16.gmra.mrb[8].mxu0 %v15041_v18 }
  0xf8   :  { %12617 = vmatprep.mubr.bf16.mxu0 %v15043_v19  ;;  %12694 = vmatpush3.bf16.msra.mxu0 %v13962_v17 }
  0xf9   :  { %12695 = vmatprep.subr.bf16.mxu0 %v13963_v20 }
  0xfc   :  { %12696 = vmatpush3.bf16.msra.mxu0 %v13963_v20 }
  0xfd   :  { %12697 = vmatprep.subr.bf16.mxu0 %v13964_v21 }
  0xff   :  { %12618 = vmatmul.mubr.bf16.gmra.mrb[12].mxu0 %v15047_v22 }
 0x100   :  { %12698 = vmatpush3.bf16.msra.mxu0 %v13964_v21  ;;  %12701 = vmatprep.mubr.bf16.mxu0 %v15026_v4  ;;  %v13992_v21 = vld [vmem:[#allocation7 + $0xa0] ss:$20 sps:$4 sm:$0xff]  }
 0x101   :  { %12699 = vmatprep.subr.bf16.mxu0 %v13965_v23 }
 0x104   :  { %12700 = vmatpush3.bf16.msra.mxu0 %v13965_v23 }
 0x105   :  { %12749 = vmatprep.subr.bf16.mxu0 %v13966_v24 }
 0x107   :  { %12702 = vmatmul.mubr.bf16.vlgmr.msra.gmra.mrb[16].mxu0 %v15029_v10 }
 0x108   :  { %12750 = vmatpush3.bf16.msra.mxu0 %v13966_v24  ;;  %12705 = vmatprep.mubr.bf16.mxu0 %v15031_v11  ;;  %v13994_v24 = vld [vmem:[#allocation5 + $0xc0] ss:$16 sps:$4 sm:$0xff]  }
 0x109   :  { %12751 = vmatprep.subr.bf16.mxu0 %v13967_v25 }
 0x10c   :  { %12752 = vmatpush3.bf16.msra.mxu0 %v13967_v25 }
 0x10d   :  { %12753 = vmatprep.subr.bf16.mxu0 %v13968_v26 }
 0x10f   :  { %12706 = vmatmul.mubr.bf16.gmra.mrb[20].mxu0 %v15035_v14 }
 0x110   :  { %12754 = vmatpush3.bf16.msra.mxu0 %v13968_v26  ;;  %12709 = vmatprep.mubr.bf16.mxu0 %v15037_v15  ;;  %v13993_v26 = vld [vmem:[#allocation7 + $0xc8] ss:$20 sps:$4 sm:$0xff]  }
 0x111   :  { %12755 = vmatprep.subr.bf16.mxu0 %v13969_v27 }
 0x114   :  { %12756 = vmatpush3.bf16.msra.mxu0 %v13969_v27 }
 0x115   :  { %12757 = vmatprep.subr.bf16.mxu0 %v13970_v28 }
 0x117   :  { %12710 = vmatmul.mubr.bf16.gmra.mrb[24].mxu0 %v15041_v18 }
 0x118   :  { %12758 = vmatpush3.bf16.msra.mxu0 %v13970_v28  ;;  %12713 = vmatprep.mubr.bf16.mxu0 %v15043_v19 }
 0x119   :  { %12759 = vmatprep.subr.bf16.mxu0 %v13971_v29 }
 0x11c   :  { %12760 = vmatpush3.bf16.msra.mxu0 %v13971_v29 }
 0x11d   :  { %12761 = vmatprep.subr.bf16.mxu0 %v13972_v30 }
 0x11f   :  { %12714 = vmatmul.mubr.bf16.gmra.mrb[28].mxu0 %v15047_v22 }
 0x120   :  { %12762 = vmatpush3.bf16.msra.mxu0 %v13972_v30  ;;  %12765 = vmatprep.mubr.bf16.mxu0 %v15026_v4 }
 0x121   :  { %12763 = vmatprep.subr.bf16.mxu0 %v13973_v31 }
 0x124   :  { %12764 = vmatpush3.bf16.msra.mxu0 %v13973_v31  ;;  %v13996_v31 = vld [vmem:[#allocation7 + $0xf0] ss:$20 sps:$4 sm:$0xff]  }
 0x125   :  { %12813 = vmatprep.subr.bf16.mxu0 %v13974_v32 }
 0x127   :  { %12766 = vmatmul.mubr.bf16.vlgmr.msra.gmra.mrb[32].mxu0 %v15029_v10 }
 0x128   :  { %12814 = vmatpush3.bf16.msra.mxu0 %v13974_v32  ;;  %12769 = vmatprep.mubr.bf16.mxu0 %v15031_v11  ;;  %v13995_v32 = vld [vmem:[#allocation5 + $0xe0] ss:$16 sps:$4 sm:$0xff]  }
 0x129   :  { %12815 = vmatprep.subr.bf16.mxu0 %v13975_v33 }
 0x12c   :  { %12816 = vmatpush3.bf16.msra.mxu0 %v13975_v33 }
 0x12d   :  { %12817 = vmatprep.subr.bf16.mxu0 %v13976_v34 }
 0x12f   :  { %12770 = vmatmul.mubr.bf16.gmra.mrb[36].mxu0 %v15035_v14 }
 0x130   :  { %12818 = vmatpush3.bf16.msra.mxu0 %v13976_v34  ;;  %12773 = vmatprep.mubr.bf16.mxu0 %v15037_v15 }
 0x131   :  { %12819 = vmatprep.subr.bf16.mxu0 %v13977_v35 }
 0x134   :  { %12820 = vmatpush3.bf16.msra.mxu0 %v13977_v35  ;;  %v13997_v35 = vld [vmem:[#allocation7 + $0x118] ss:$20 sps:$4 sm:$0xff]  }
 0x135   :  { %12821 = vmatprep.subr.bf16.mxu0 %v13978_v36 }
 0x137   :  { %12774 = vmatmul.mubr.bf16.gmra.mrb[40].mxu0 %v15041_v18 }
 0x138   :  { %12822 = vmatpush3.bf16.msra.mxu0 %v13978_v36  ;;  %12777 = vmatprep.mubr.bf16.mxu0 %v15043_v19 }
 0x139   :  { %12823 = vmatprep.subr.bf16.mxu0 %v13979_v37 }
 0x13c   :  { %12824 = vmatpush3.bf16.msra.mxu0 %v13979_v37 }
 0x13d   :  { %12825 = vmatprep.subr.bf16.mxu0 %v13980_v38 }
 0x13f   :  { %12778 = vmatmul.mubr.bf16.gmra.mrb[44].mxu0 %v15047_v22 }
 0x140   :  { %12826 = vmatpush3.bf16.msra.mxu0 %v13980_v38  ;;  %12829 = vmatprep.mubr.bf16.mxu0 %v15026_v4 }
 0x141   :  { %12827 = vmatprep.subr.bf16.mxu0 %v13981_v39 }
 0x144   :  { %12828 = vmatpush3.bf16.msra.mxu0 %v13981_v39 }
 0x145   :  { %12877 = vmatprep.subr.bf16.mxu0 %v14022_v40 }
 0x147   :  { %12830 = vmatmul.mubr.bf16.vlgmr.msra.gmra.mrb[48].mxu0 %v15029_v10 }
 0x148   :  { %12833 = vmatprep.mubr.bf16.mxu0 %v15031_v11  ;;  %v13988_v11 = vld [vmem:[#allocation7 + $0x50] ss:$20 sps:$4 sm:$0xff]   ;;  %12878 = vmatpush3.bf16.msra.mxu0 %v14022_v40 }
 0x14f   :  { %12834 = vmatmul.mubr.bf16.gmra.mrb[52].mxu0 %v15035_v14  ;;  %v13990_v14 = vld [vmem:[#allocation5 + $0x80] ss:$16 sps:$4 sm:$0xff]  }
 0x150   :  { %12837 = vmatprep.mubr.bf16.mxu0 %v15037_v15 }
 0x157   :  { %12838 = vmatmul.mubr.bf16.gmra.mrb[56].mxu0 %v15041_v18 }
 0x158   :  { %12841 = vmatprep.mubr.bf16.mxu0 %v15043_v19 }
 0x15f   :  { %12842 = vmatmul.mubr.bf16.gmra.mrb[60].mxu0 %v15047_v22  ;;  %v13991_v22 = vld [vmem:[#allocation5 + $0xa0] ss:$16 sps:$4 sm:$0xff]  }
 0x1ba   :  { %v12607_v41 = vpop.f32.mrb[0].mxu0 }
 0x1bb   :  { %v374_v42 = vpop.f32.mrb[1].mxu0 }
 0x1bc   :  { %v12608_v43 = vpop.f32.mrb[2].mxu0 }
 0x1bd   :  { %v438_v44 = vpack.c.bf16 %v12608_v43, %v12607_v41  ;;  %v377_v45 = vpop.f32.mrb[3].mxu0  ;;  %v14024_v41 = vld [vmem:[#allocation8 + $0x2c] ss:$20 sps:$4 sm:$0xff]  }
 0x1be   :  { %v437_v46 = vpack.c.bf16 %v377_v45, %v374_v42  ;;  %v14446_v42 = vld [vmem:[#allocation2] sm:$0xff]   ;;  %12879 = vmatprep.subr.bf16.mxu0 %v14024_v41 }
 0x1bf   :  { %12880 = vmatpush3.bf16.msra.mxu0 %v14024_v41  ;;  %v14006_v41 = vld [vmem:[#allocation5 + $0x8] ss:$16 sps:$4 sm:$0xff]  }
 0x1c0   :  { %12621 = vmatprep.subr.bf16.mxu1 %v437_v46 }
 0x1c1   :  { %12622 = vmatpush3.bf16.msra.mxu1 %v437_v46  ;;  %v14026_v46 = vld [vmem:[#allocation8 + $0x54] ss:$20 sps:$4 sm:$0xff]  }
 0x1c2   :  { %v12611_v47 = vpop.f32.mrb[4].mxu0  ;;  %12623 = vmatprep.subr.bf16.mxu1 %v438_v44  ;;  %12881 = vmatprep.subr.bf16.mxu0 %v14026_v46 }
 0x1c3   :  { %v390_v48 = vpop.f32.mrb[5].mxu0  ;;  %12882 = vmatpush3.bf16.msra.mxu0 %v14026_v46 }
 0x1c4   :  { %v12612_v49 = vpop.f32.mrb[6].mxu0 }
 0x1c5   :  { %v440_v50 = vpack.c.bf16 %v12612_v49, %v12611_v47  ;;  %v393_v51 = vpop.f32.mrb[7].mxu0  ;;  %12624 = vmatpush3.bf16.msra.mxu1 %v438_v44 }
 0x1c6   :  { %v439_v52 = vpack.c.bf16 %v393_v51, %v390_v48  ;;  %v14447_v51 = vld [vmem:[#allocation2 + $0x8] sm:$0xff]  }
 0x1c8   :  { %12625 = vmatprep.subr.bf16.mxu1 %v439_v52 }
 0x1c9   :  { %12626 = vmatpush3.bf16.msra.mxu1 %v439_v52  ;;  %v14448_v52 = vld [vmem:[#allocation2 + $0x10] sm:$0xff]  }
 0x1ca   :  { %v12615_v53 = vpop.f32.mrb[8].mxu0  ;;  %12627 = vmatprep.subr.bf16.mxu1 %v440_v50 }
 0x1cb   :  { %v406_v54 = vpop.f32.mrb[9].mxu0 }
 0x1cc   :  { %v12616_v55 = vpop.f32.mrb[10].mxu0 }
 0x1cd   :  { %v442_v56 = vpack.c.bf16 %v12616_v55, %v12615_v53  ;;  %v409_v57 = vpop.f32.mrb[11].mxu0  ;;  %12628 = vmatpush3.bf16.msra.mxu1 %v440_v50  ;;  %v14028_v50 = vld [vmem:[#allocation8 + $0x7c] ss:$20 sps:$4 sm:$0xff]  }
 0x1ce   :  { %v441_v58 = vpack.c.bf16 %v409_v57, %v406_v54  ;;  %v14030_v54 = vld [vmem:[#allocation8 + $0xa4] ss:$20 sps:$4 sm:$0xff]   ;;  %12883 = vmatprep.subr.bf16.mxu0 %v14028_v50 }
 0x1cf   :  { %12884 = vmatpush3.bf16.msra.mxu0 %v14028_v50  ;;  %v15138_v50 = vld [vmem:[#allocation5 + $0x88] ss:$16 sps:$4 sm:$0xff]  }
 0x1d0   :  { %12629 = vmatprep.subr.bf16.mxu1 %v441_v58  ;;  %12885 = vmatprep.subr.bf16.mxu0 %v14030_v54 }
 0x1d1   :  { %12630 = vmatpush3.bf16.msra.mxu1 %v441_v58 }
 0x1d2   :  { %v12619_v59 = vpop.f32.mrb[12].mxu0  ;;  %12631 = vmatprep.subr.bf16.mxu1 %v442_v56 }
 0x1d3   :  { %v422_v60 = vpop.f32.mrb[13].mxu0  ;;  %12886 = vmatpush3.bf16.msra.mxu0 %v14030_v54  ;;  %v15150_v54 = vld [vmem:[#allocation5 + $0xc] ss:$16 sps:$4 sm:$0xff]  }
 0x1d4   :  { %v12620_v61 = vpop.f32.mrb[14].mxu0 }
 0x1d5   :  { %v444_v62 = vpack.c.bf16 %v12620_v61, %v12619_v59  ;;  %v425_v63 = vpop.f32.mrb[15].mxu0  ;;  %12632 = vmatpush3.bf16.msra.mxu1 %v442_v56  ;;  %v14449_v61 = vld [vmem:[#allocation2 + $0x18] sm:$0xff]  }
 0x1d6   :  { %v443_v0 = vpack.c.bf16 %v425_v63, %v422_v60  ;;  %v14032_v60 = vld [vmem:[#allocation8 + $0xcc] ss:$20 sps:$4 sm:$0xff]  }
 0x1d7   :  { %12887 = vmatprep.subr.bf16.mxu0 %v14032_v60 }
 0x1d8   :  { %12633 = vmatprep.subr.bf16.mxu1 %v443_v0  ;;  %12888 = vmatpush3.bf16.msra.mxu0 %v14032_v60  ;;  %v15160_v60 = vld [vmem:[#allocation5 + $0x6c] ss:$16 sps:$4 sm:$0xff]  }
 0x1d9   :  { %12634 = vmatpush3.bf16.msra.mxu1 %v443_v0 }
 0x1da   :  { %12635 = vmatprep.subr.bf16.mxu1 %v444_v62  ;;  %v12703_v3 = vpop.f32.mrb[16].mxu0 }
 0x1db   :  { %v849_v4 = vpop.f32.mrb[17].mxu0 }
 0x1dc   :  { %v12704_v5 = vpop.f32.mrb[18].mxu0 }
 0x1dd   :  { %12636 = vmatpush3.bf16.msra.mxu1 %v444_v62  ;;  %v15074_v8 = vpack.c.bf16 %v12704_v5, %v12703_v3  ;;  %v852_v9 = vpop.f32.mrb[19].mxu0  ;;  %v14450_v62 = vld [vmem:[#allocation2 + $0x20] sm:$0xff]   ;;  %v14451_v5 = vld [vmem:[#allocation2 + $0x28] sm:$0xff]  }
 0x1de   :  { %12653 = vmatprep.subr.bf16.mxu1 %v13984_v1  ;;  %v15076_v10 = vpack.c.bf16 %v852_v9, %v849_v4 }
 0x1e0   :  { %12638 = vmatmul.mubr.bf16.vlgmr.msra.gmra.mrb[0].mxu1 %v13983_v2 }
 0x1e1   :  { %12654 = vmatpush3.bf16.msra.mxu1 %v13984_v1  ;;  %12641 = vmatprep.mubr.bf16.mxu1 %v13986_v7 }
 0x1e2   :  { %12655 = vmatprep.subr.bf16.mxu1 %v13985_v6  ;;  %v12707_v13 = vpop.f32.mrb[20].mxu0 }
 0x1e3   :  { %v865_v15 = vpop.f32.mrb[21].mxu0 }
 0x1e4   :  { %v12708_v17 = vpop.f32.mrb[22].mxu0 }
 0x1e5   :  { %12656 = vmatpush3.bf16.msra.mxu1 %v13985_v6  ;;  %v15078_v18 = vpack.c.bf16 %v12708_v17, %v12707_v13  ;;  %v868_v19 = vpop.f32.mrb[23].mxu0  ;;  %v14452_v6 = vld [vmem:[#allocation2 + $0x30] sm:$0xff]  }
 0x1e6   :  { %12657 = vmatprep.subr.bf16.mxu1 %v13988_v11  ;;  %v15080_v20 = vpack.c.bf16 %v868_v19, %v865_v15  ;;  %v13999_v15 = vld [vmem:[#allocation5 + $0x24] ss:$16 sps:$4 sm:$0xff]  }
 0x1e7   :  { %v14000_v17 = vld [vmem:[#allocation5 + $0x44] ss:$16 sps:$4 sm:$0xff]  }
 0x1e8   :  { %12642 = vmatmul.mubr.bf16.gmra.mrb[4].mxu1 %v13987_v12 }
 0x1e9   :  { %12658 = vmatpush3.bf16.msra.mxu1 %v13988_v11  ;;  %12645 = vmatprep.mubr.bf16.mxu1 %v13990_v14  ;;  %v14453_v14 = vld [vmem:[#allocation2 + $0x38] sm:$0xff]  }
 0x1ea   :  { %12659 = vmatprep.subr.bf16.mxu1 %v13989_v16  ;;  %v12711_v23 = vpop.f32.mrb[24].mxu0 }
 0x1eb   :  { %v881_v25 = vpop.f32.mrb[25].mxu0 }
 0x1ec   :  { %v12712_v27 = vpop.f32.mrb[26].mxu0 }
 0x1ed   :  { %12660 = vmatpush3.bf16.msra.mxu1 %v13989_v16  ;;  %v15082_v28 = vpack.c.bf16 %v12712_v27, %v12711_v23  ;;  %v884_v29 = vpop.f32.mrb[27].mxu0  ;;  %v14001_v23 = vld [vmem:[#allocation5 + $0x64] ss:$16 sps:$4 sm:$0xff]  }
 0x1ee   :  { %12661 = vmatprep.subr.bf16.mxu1 %v13992_v21  ;;  %v15084_v30 = vpack.c.bf16 %v884_v29, %v881_v25  ;;  %v14002_v25 = vld [vmem:[#allocation5 + $0x84] ss:$16 sps:$4 sm:$0xff]  }
 0x1f0   :  { %12646 = vmatmul.mubr.bf16.gmra.mrb[8].mxu1 %v13991_v22 }
 0x1f1   :  { %12662 = vmatpush3.bf16.msra.mxu1 %v13992_v21  ;;  %12649 = vmatprep.mubr.bf16.mxu1 %v13994_v24 }
 0x1f2   :  { %12663 = vmatprep.subr.bf16.mxu1 %v13993_v26  ;;  %v12715_v33 = vpop.f32.mrb[28].mxu0 }
 0x1f3   :  { %v897_v34 = vpop.f32.mrb[29].mxu0 }
 0x1f4   :  { %v12716_v36 = vpop.f32.mrb[30].mxu0 }
 0x1f5   :  { %12664 = vmatpush3.bf16.msra.mxu1 %v13993_v26  ;;  %v15086_v37 = vpack.c.bf16 %v12716_v36, %v12715_v33  ;;  %v900_v38 = vpop.f32.mrb[31].mxu0  ;;  %v14004_v33 = vld [vmem:[#allocation5 + $0xc4] ss:$16 sps:$4 sm:$0xff]  }
 0x1f6   :  { %12665 = vmatprep.subr.bf16.mxu1 %v13996_v31  ;;  %v15088_v39 = vpack.c.bf16 %v900_v38, %v897_v34 }
 0x1f8   :  { %12650 = vmatmul.mubr.bf16.gmra.mrb[12].mxu1 %v13995_v32 }
 0x1f9   :  { %12666 = vmatpush3.bf16.msra.mxu1 %v13996_v31  ;;  %12669 = vmatprep.mubr.bf16.mxu1 %v14446_v42  ;;  %v14003_v31 = vld [vmem:[#allocation5 + $0xa4] ss:$16 sps:$4 sm:$0xff]  }
 0x1fa   :  { %12667 = vmatprep.subr.bf16.mxu1 %v13997_v35  ;;  %v12767_v43 = vpop.f32.mrb[32].mxu0 }
 0x1fb   :  { %v1195_v44 = vpop.f32.mrb[33].mxu0 }
 0x1fc   :  { %v12768_v45 = vpop.f32.mrb[34].mxu0 }
 0x1fd   :  { %12668 = vmatpush3.bf16.msra.mxu1 %v13997_v35  ;;  %v15090_v47 = vpack.c.bf16 %v12768_v45, %v12767_v43  ;;  %v1198_v48 = vpop.f32.mrb[35].mxu0 }
 0x1fe   :  { %12717 = vmatprep.subr.bf16.mxu1 %v15076_v10  ;;  %v15093_v49 = vpack.c.bf16 %v1198_v48, %v1195_v44  ;;  %v15131_v48 = vld [vmem:[#allocation5 + $0x48] ss:$16 sps:$4 sm:$0xff]  }
 0x200   :  { %12670 = vmatmul.mubr.bf16.vlgmr.msra.gmra.mrb[0].mxu1 %v14447_v51  ;;  %v15142_v51 = vld [vmem:[#allocation5 + $0xa8] ss:$16 sps:$4 sm:$0xff]  }
 0x201   :  { %12718 = vmatpush3.bf16.msra.mxu1 %v15076_v10  ;;  %12673 = vmatprep.mubr.bf16.mxu1 %v14448_v52  ;;  %v15144_v52 = vld [vmem:[#allocation5 + $0xc8] ss:$16 sps:$4 sm:$0xff]  }
 0x202   :  { %12719 = vmatprep.subr.bf16.mxu1 %v15074_v8  ;;  %v12771_v53 = vpop.f32.mrb[36].mxu0 }
 0x203   :  { %v1211_v55 = vpop.f32.mrb[37].mxu0 }
 0x204   :  { %v12772_v56 = vpop.f32.mrb[38].mxu0 }
 0x205   :  { %12720 = vmatpush3.bf16.msra.mxu1 %v15074_v8  ;;  %v15098_v57 = vpack.c.bf16 %v12772_v56, %v12771_v53  ;;  %v1214_v58 = vpop.f32.mrb[39].mxu0  ;;  %v13998_v8 = vld [vmem:[#allocation5 + $0x4] ss:$16 sps:$4 sm:$0xff]   ;;  %v15148_v53 = vld [vmem:[#allocation5 + $0xe8] ss:$16 sps:$4 sm:$0xff]  }
 0x206   :  { %12721 = vmatprep.subr.bf16.mxu1 %v15080_v20  ;;  %v15101_v59 = vpack.c.bf16 %v1214_v58, %v1211_v55  ;;  %v14023_v55 = vld [vmem:[#allocation8 + $0x8] ss:$20 sps:$4 sm:$0xff]   ;;  %v14025_v58 = vld [vmem:[#allocation8 + $0x30] ss:$20 sps:$4 sm:$0xff]  }
 0x207   :  { %v15154_v56 = vld [vmem:[#allocation5 + $0x2c] ss:$16 sps:$4 sm:$0xff]  }
 0x208   :  { %12674 = vmatmul.mubr.bf16.gmra.mrb[4].mxu1 %v14449_v61  ;;  %v15162_v61 = vld [vmem:[#allocation5 + $0x8c] ss:$16 sps:$4 sm:$0xff]  }
 0x209   :  { %12722 = vmatpush3.bf16.msra.mxu1 %v15080_v20  ;;  %12677 = vmatprep.mubr.bf16.mxu1 %v14450_v62  ;;  %v14029_v62 = vld [vmem:[#allocation8 + $0x80] ss:$20 sps:$4 sm:$0xff]  }
 0x20a   :  { %12723 = vmatprep.subr.bf16.mxu1 %v15078_v18  ;;  %v12775_v63 = vpop.f32.mrb[40].mxu0 }
 0x20b   :  { %v1227_v0 = vpop.f32.mrb[41].mxu0 }
 0x20c   :  { %v12776_v1 = vpop.f32.mrb[42].mxu0 }
 0x20d   :  { %12724 = vmatpush3.bf16.msra.mxu1 %v15078_v18  ;;  %v15106_v2 = vpack.c.bf16 %v12776_v1, %v12775_v63  ;;  %v1230_v3 = vpop.f32.mrb[43].mxu0  ;;  %v14031_v63 = vld [vmem:[#allocation8 + $0xa8] ss:$20 sps:$4 sm:$0xff]  }
 0x20e   :  { %12725 = vmatprep.subr.bf16.mxu1 %v15084_v30  ;;  %v1262_v4 = vpack.c.bf16 %v1230_v3, %v1227_v0  ;;  %v15166_v0 = vld [vmem:[#allocation5 + $0xac] ss:$16 sps:$4 sm:$0xff]  }
 0x20f   :  { %v15168_v1 = vld [vmem:[#allocation5 + $0xcc] ss:$16 sps:$4 sm:$0xff]  }
 0x210   :  { %12678 = vmatmul.mubr.bf16.gmra.mrb[8].mxu1 %v14451_v5  ;;  %v15172_v3 = vld [vmem:[#allocation5 + $0xec] ss:$16 sps:$4 sm:$0xff]  }
 0x211   :  { %12726 = vmatpush3.bf16.msra.mxu1 %v15084_v30  ;;  %12681 = vmatprep.mubr.bf16.mxu1 %v14452_v6  ;;  %v14035_v5 = vld [vmem:[#allocation8 + $0xf8] ss:$20 sps:$4 sm:$0xff]   ;;  %v14036_v6 = vld [vmem:[#allocation8 + $0x11c] ss:$20 sps:$4 sm:$0xff]  }
 0x212   :  { %12727 = vmatprep.subr.bf16.mxu1 %v15082_v28  ;;  %v12779_v7 = vpop.f32.mrb[44].mxu0 }
 0x213   :  { %v1243_v9 = vpop.f32.mrb[45].mxu0 }
 0x214   :  { %v12780_v10 = vpop.f32.mrb[46].mxu0 }
 0x215   :  { %12728 = vmatpush3.bf16.msra.mxu1 %v15082_v28  ;;  %v15112_v11 = vpack.c.bf16 %v12780_v10, %v12779_v7  ;;  %v1246_v12 = vpop.f32.mrb[47].mxu0  ;;  %v14037_v7 = vld [vmem:[#allocation8 + $0x120] ss:$20 sps:$4 sm:$0xff]  }
 0x216   :  { %12729 = vmatprep.subr.bf16.mxu1 %v15088_v39  ;;  %v1264_v13 = vpack.c.bf16 %v1246_v12, %v1243_v9  ;;  %v1789_v9 = vlaneseq  ;;  %v195_v12 = vld [vmem:[%s15975_s8] sm:$0xf] }
 0x218   :  { %12682 = vmatmul.mubr.bf16.gmra.mrb[12].mxu1 %v14453_v14  ;;  %v15175_v10 = vshrl.u32 %v1789_v9, 7 }
 0x219   :  { %12730 = vmatpush3.bf16.msra.mxu1 %v15088_v39  ;;  %12733 = vmatprep.mubr.bf16.mxu1 %v13998_v8  ;;  %v14005_v39 = vld [vmem:[#allocation5 + $0xe4] ss:$16 sps:$4 sm:$0xff]   ;;  %v14038_v8 = vld [vmem:[#allocation8 + $0xc] ss:$20 sps:$4 sm:$0xff]  }
 0x21a   :  { %12731 = vmatprep.subr.bf16.mxu1 %v15086_v37  ;;  %v12831_v16 = vpop.f32.mrb[48].mxu0 }
 0x21b   :  { %v1541_v18 = vpop.f32.mrb[49].mxu0 }
 0x21c   :  { %v12832_v19 = vpop.f32.mrb[50].mxu0 }
 0x21d   :  { %12732 = vmatpush3.bf16.msra.mxu1 %v15086_v37  ;;  %v1605_v20 = vpack.c.bf16 %v12832_v19, %v12831_v16  ;;  %v1544_v21 = vpop.f32.mrb[51].mxu0 }
 0x21e   :  { %12781 = vmatprep.subr.bf16.mxu1 %v15093_v49  ;;  %v1604_v22 = vpack.c.bf16 %v1544_v21, %v1541_v18 }
 0x220   :  { %12734 = vmatmul.mubr.bf16.vlgmr.msra.gmra.mrb[0].mxu1 %v13999_v15 }
 0x221   :  { %12782 = vmatpush3.bf16.msra.mxu1 %v15093_v49  ;;  %12737 = vmatprep.mubr.bf16.mxu1 %v14000_v17  ;;  %v15136_v49 = vld [vmem:[#allocation5 + $0x68] ss:$16 sps:$4 sm:$0xff]  }
 0x222   :  { %12783 = vmatprep.subr.bf16.mxu1 %v15090_v47  ;;  %v12835_v24 = vpop.f32.mrb[52].mxu0 }
 0x223   :  { %v1557_v26 = vpop.f32.mrb[53].mxu0 }
 0x224   :  { %v12836_v27 = vpop.f32.mrb[54].mxu0 }
 0x225   :  { %12784 = vmatpush3.bf16.msra.mxu1 %v15090_v47  ;;  %v1607_v28 = vpack.c.bf16 %v12836_v27, %v12835_v24  ;;  %v1560_v29 = vpop.f32.mrb[55].mxu0  ;;  %v15129_v47 = vld [vmem:[#allocation5 + $0x28] ss:$16 sps:$4 sm:$0xff]  }
 0x226   :  { %12785 = vmatprep.subr.bf16.mxu1 %v15101_v59  ;;  %v1606_v30 = vpack.c.bf16 %v1560_v29, %v1557_v26 }
 0x228   :  { %12738 = vmatmul.mubr.bf16.gmra.mrb[4].mxu1 %v14001_v23 }
 0x229   :  { %12786 = vmatpush3.bf16.msra.mxu1 %v15101_v59  ;;  %12741 = vmatprep.mubr.bf16.mxu1 %v14002_v25  ;;  %v14027_v59 = vld [vmem:[#allocation8 + $0x58] ss:$20 sps:$4 sm:$0xff]  }
 0x22a   :  { %12787 = vmatprep.subr.bf16.mxu1 %v15098_v57  ;;  %v12839_v32 = vpop.f32.mrb[56].mxu0 }
 0x22b   :  { %v1573_v34 = vpop.f32.mrb[57].mxu0 }
 0x22c   :  { %v12840_v35 = vpop.f32.mrb[58].mxu0 }
 0x22d   :  { %12788 = vmatpush3.bf16.msra.mxu1 %v15098_v57  ;;  %v1609_v36 = vpack.c.bf16 %v12840_v35, %v12839_v32  ;;  %v1576_v37 = vpop.f32.mrb[59].mxu0  ;;  %v15156_v57 = vld [vmem:[#allocation5 + $0x4c] ss:$16 sps:$4 sm:$0xff]  }
 0x22e   :  { %12789 = vmatprep.subr.bf16.mxu1 %v1262_v4  ;;  %v1608_v38 = vpack.c.bf16 %v1576_v37, %v1573_v34 }
 0x230   :  { %12742 = vmatmul.mubr.bf16.gmra.mrb[8].mxu1 %v14003_v31  ;;  %v14039_v31 = vld [vmem:[#allocation8 + $0x34] ss:$20 sps:$4 sm:$0xff]  }
 0x231   :  { %12790 = vmatpush3.bf16.msra.mxu1 %v1262_v4  ;;  %12745 = vmatprep.mubr.bf16.mxu1 %v14004_v33  ;;  %v14034_v4 = vld [vmem:[#allocation8 + $0xf4] ss:$20 sps:$4 sm:$0xff]  }
 0x232   :  { %12791 = vmatprep.subr.bf16.mxu1 %v15106_v2  ;;  %v12843_v40 = vpop.f32.mrb[60].mxu0  ;;  %12889 = vmatprep.subr.bf16.mxu0 %v14034_v4 }
 0x233   :  { %v1589_v42 = vpop.f32.mrb[61].mxu0  ;;  %12890 = vmatpush3.bf16.msra.mxu0 %v14034_v4 }
 0x234   :  { %v12844_v43 = vpop.f32.mrb[62].mxu0  ;;  %12891 = vmatprep.subr.bf16.mxu0 %v14036_v6 }
 0x235   :  { %12792 = vmatpush3.bf16.msra.mxu1 %v15106_v2  ;;  %v1611_v44 = vpack.c.bf16 %v12844_v43, %v12843_v40  ;;  %v1592_v45 = vpop.f32.mrb[63].mxu0  ;;  %v14033_v2 = vld [vmem:[#allocation8 + $0xd0] ss:$20 sps:$4 sm:$0xff]  }
 0x236   :  { %12793 = vmatprep.subr.bf16.mxu1 %v1264_v13  ;;  %v1610_v46 = vpack.c.bf16 %v1592_v45, %v1589_v42 }
 0x237   :  { %12892 = vmatpush3.bf16.msra.mxu0 %v14036_v6  ;;  %v14042_v6 = vld [vmem:[#allocation8 + $0xac] ss:$20 sps:$4 sm:$0xff]  }
 0x238   :  { %12746 = vmatmul.mubr.bf16.gmra.mrb[12].mxu1 %v14005_v39  ;;  %v14040_v39 = vld [vmem:[#allocation8 + $0x5c] ss:$20 sps:$4 sm:$0xff]  }
 0x239   :  { %12794 = vmatpush3.bf16.msra.mxu1 %v1264_v13  ;;  %12797 = vmatprep.mubr.bf16.mxu1 %v14006_v41 }
 0x23a   :  { %12795 = vmatprep.subr.bf16.mxu1 %v15112_v11 }
 0x23d   :  { %12796 = vmatpush3.bf16.msra.mxu1 %v15112_v11  ;;  %v1791_v11 = vsub.s32 0, %v15175_v10 }
 0x23e   :  { %12845 = vmatprep.subr.bf16.mxu1 %v1604_v22 }
 0x23f   :  { %v15181_v13 = vrot.slane %v195_v12, %v1791_v11 }
 0x240   :  { %12798 = vmatmul.mubr.bf16.vlgmr.msra.gmra.mrb[0].mxu1 %v15129_v47 }
 0x241   :  { %12846 = vmatpush3.bf16.msra.mxu1 %v1604_v22  ;;  %12801 = vmatprep.mubr.bf16.mxu1 %v15131_v48 }
 0x242   :  { %12847 = vmatprep.subr.bf16.mxu1 %v1605_v20 }
 0x245   :  { %12848 = vmatpush3.bf16.msra.mxu1 %v1605_v20 }
 0x246   :  { %12849 = vmatprep.subr.bf16.mxu1 %v1606_v30 }
 0x248   :  { %12802 = vmatmul.mubr.bf16.gmra.mrb[4].mxu1 %v15136_v49 }
 0x249   :  { %12850 = vmatpush3.bf16.msra.mxu1 %v1606_v30  ;;  %12805 = vmatprep.mubr.bf16.mxu1 %v15138_v50 }
 0x24a   :  { %12851 = vmatprep.subr.bf16.mxu1 %v1607_v28 }
 0x24d   :  { %12852 = vmatpush3.bf16.msra.mxu1 %v1607_v28 }
 0x24e   :  { %12853 = vmatprep.subr.bf16.mxu1 %v1608_v38 }
 0x250   :  { %12806 = vmatmul.mubr.bf16.gmra.mrb[8].mxu1 %v15142_v51 }
 0x251   :  { %12854 = vmatpush3.bf16.msra.mxu1 %v1608_v38  ;;  %12809 = vmatprep.mubr.bf16.mxu1 %v15144_v52 }
 0x252   :  { %12855 = vmatprep.subr.bf16.mxu1 %v1609_v36 }
 0x255   :  { %12856 = vmatpush3.bf16.msra.mxu1 %v1609_v36 }
 0x256   :  { %12857 = vmatprep.subr.bf16.mxu1 %v1610_v46 }
 0x258   :  { %12810 = vmatmul.mubr.bf16.gmra.mrb[12].mxu1 %v15148_v53 }
 0x259   :  { %12858 = vmatpush3.bf16.msra.mxu1 %v1610_v46  ;;  %12861 = vmatprep.mubr.bf16.mxu1 %v15150_v54 }
 0x25a   :  { %12859 = vmatprep.subr.bf16.mxu1 %v1611_v44 }
 0x25d   :  { %12860 = vmatpush3.bf16.msra.mxu1 %v1611_v44 }
 0x25e   :  { %12973 = vmatprep.subr.bf16.mxu1 %v14023_v55 }
 0x260   :  { %12862 = vmatmul.mubr.bf16.vlgmr.msra.gmra.mrb[0].mxu1 %v15154_v56 }
 0x261   :  { %12865 = vmatprep.mubr.bf16.mxu1 %v15156_v57  ;;  %12974 = vmatpush3.bf16.msra.mxu1 %v14023_v55  ;;  %v14041_v55 = vld [vmem:[#allocation8 + $0x84] ss:$20 sps:$4 sm:$0xff]  }
 0x262   :  { %12975 = vmatprep.subr.bf16.mxu1 %v14025_v58 }
 0x265   :  { %12976 = vmatpush3.bf16.msra.mxu1 %v14025_v58 }
 0x266   :  { %12977 = vmatprep.subr.bf16.mxu1 %v14027_v59 }
 0x268   :  { %12866 = vmatmul.mubr.bf16.gmra.mrb[4].mxu1 %v15160_v60 }
 0x269   :  { %12869 = vmatprep.mubr.bf16.mxu1 %v15162_v61  ;;  %12978 = vmatpush3.bf16.msra.mxu1 %v14027_v59 }
 0x26a   :  { %12979 = vmatprep.subr.bf16.mxu1 %v14029_v62 }
 0x26d   :  { %12980 = vmatpush3.bf16.msra.mxu1 %v14029_v62 }
 0x26e   :  { %12981 = vmatprep.subr.bf16.mxu1 %v14031_v63 }
 0x270   :  { %12870 = vmatmul.mubr.bf16.gmra.mrb[8].mxu1 %v15166_v0 }
 0x271   :  { %12873 = vmatprep.mubr.bf16.mxu1 %v15168_v1  ;;  %12982 = vmatpush3.bf16.msra.mxu1 %v14031_v63 }
 0x272   :  { %12983 = vmatprep.subr.bf16.mxu1 %v14033_v2 }
 0x275   :  { %12984 = vmatpush3.bf16.msra.mxu1 %v14033_v2 }
 0x276   :  { %12985 = vmatprep.subr.bf16.mxu1 %v14035_v5 }
 0x278   :  { %12874 = vmatmul.mubr.bf16.gmra.mrb[12].mxu1 %v15172_v3 }
 0x279   :  { %12986 = vmatpush3.bf16.msra.mxu1 %v14035_v5 }
 0x27a   :  { %12987 = vmatprep.subr.bf16.mxu1 %v14037_v7 }
 0x27d   :  { %12988 = vmatpush3.bf16.msra.mxu1 %v14037_v7 }
 0x27e   :  { %13037 = vmatprep.subr.bf16.mxu1 %v14038_v8 }
 0x333   :  { %v12863_v14 = vpop.f32.mrb[0].mxu1 }
 0x334   :  { %v1795_v15 = vadd.f32 %v12863_v14, %v15181_v13  ;;  %v1710_v16 = vpop.f32.mrb[1].mxu1 }
 0x335   :  { %v1793_v17 = vadd.f32 %v15181_v13, %v1710_v16  ;;  %v12864_v18 = vpop.f32.mrb[2].mxu1  ;;  %v14043_v16 = vld [vmem:[#allocation8 + $0xd4] ss:$20 sps:$4 sm:$0xff]  }
 0x336   :  { %v1796_v19 = vadd.f32 %v12864_v18, %v15181_v13  ;;  %v1713_v20 = vpop.f32.mrb[3].mxu1  ;;  %v1811_v22 = vmax.f32 %v1795_v15, 0.0 }
 0x337   :  { %v1794_v21 = vadd.f32 %v15181_v13, %v1713_v20  ;;  %v1809_v24 = vmax.f32 %v1793_v17, 0.0 }
 0x338   :  { %v1812_v23 = vmax.f32 %v1796_v19, 0.0 }
 0x339   :  { %v1810_v25 = vmax.f32 %v1794_v21, 0.0 }
 0x33a   :  { %v15187_v26 = vpack.c.bf16 %v1812_v23, %v1811_v22 }
 0x33b   :  { %v15189_v27 = vpack.c.bf16 %v1810_v25, %v1809_v24  ;;  %v12867_v28 = vpop.f32.mrb[4].mxu1  ;;  %v14044_v24 = vld [vmem:[#allocation8 + $0xfc] ss:$20 sps:$4 sm:$0xff]  }
 0x33c   :  { %v1799_v29 = vadd.f32 %v12867_v28, %v15181_v13  ;;  %v1726_v30 = vpop.f32.mrb[5].mxu1 }
 0x33d   :  { %v1797_v32 = vadd.f32 %v15181_v13, %v1726_v30  ;;  %v12868_v33 = vpop.f32.mrb[6].mxu1  ;;  %12893 = vmatprep.mubr.bf16.mxu0 %v15189_v27  ;;  %12989 = vmatprep.mubr.bf16.mxu1 %v15189_v27 }
 0x33e   :  { %v1800_v34 = vadd.f32 %v12868_v33, %v15181_v13  ;;  %v1729_v35 = vpop.f32.mrb[7].mxu1  ;;  %12894 = vmatmul.mubr.bf16.vlgmr.msra.gmra.mrb[64].mxu0 %v15187_v26  ;;  %12990 = vmatmul.mubr.bf16.vlgmr.msra.gmra.mrb[16].mxu1 %v15187_v26  ;;  %v1815_v37 = vmax.f32 %v1799_v29, 0.0  ;;  %v14047_v33 = vld [vmem:[#allocation8 + $0x38] ss:$20 sps:$4 sm:$0xff]  }
 0x33f   :  { %v1798_v36 = vadd.f32 %v15181_v13, %v1729_v35  ;;  %13038 = vmatpush3.bf16.msra.mxu1 %v14038_v8  ;;  %v1813_v40 = vmax.f32 %v1797_v32, 0.0  ;;  %v14454_v32 = vld [vmem:[#allocation5] ss:$16 sps:$4 sm:$0xff]   ;;  %v14049_v35 = vld [vmem:[#allocation8 + $0x88] ss:$20 sps:$4 sm:$0xff]  }
 0x340   :  { %v1816_v38 = vmax.f32 %v1800_v34, 0.0  ;;  %13039 = vmatprep.subr.bf16.mxu1 %v14039_v31  ;;  %v14048_v34 = vld [vmem:[#allocation8 + $0x60] ss:$20 sps:$4 sm:$0xff]  }
 0x341   :  { %v1814_v41 = vmax.f32 %v1798_v36, 0.0  ;;  %v14050_v36 = vld [vmem:[#allocation8 + $0xb0] ss:$20 sps:$4 sm:$0xff]  }
 0x342   :  { %v15199_v42 = vpack.c.bf16 %v1816_v38, %v1815_v37  ;;  %v14051_v37 = vld [vmem:[#allocation8 + $0xd8] ss:$20 sps:$4 sm:$0xff]   ;;  %v14052_v38 = vld [vmem:[#allocation8 + $0x100] ss:$20 sps:$4 sm:$0xff]  }
 0x343   :  { %v15201_v43 = vpack.c.bf16 %v1814_v41, %v1813_v40  ;;  %v12871_v44 = vpop.f32.mrb[8].mxu1  ;;  %13040 = vmatpush3.bf16.msra.mxu1 %v14039_v31  ;;  %v14045_v31 = vld [vmem:[#allocation8 + $0x124] ss:$20 sps:$4 sm:$0xff]  }
 0x344   :  { %v1803_v45 = vadd.f32 %v12871_v44, %v15181_v13  ;;  %v1742_v46 = vpop.f32.mrb[9].mxu1  ;;  %13041 = vmatprep.subr.bf16.mxu1 %v14040_v39  ;;  %v14062_v40 = vld [vmem:[#allocation13 + $0x4] ss:$16 sps:$4 sm:$0xff]  }
 0x345   :  { %v1801_v58 = vadd.f32 %v15181_v13, %v1742_v46  ;;  %v12872_v59 = vpop.f32.mrb[10].mxu1  ;;  %12897 = vmatprep.mubr.bf16.mxu0 %v15201_v43  ;;  %12993 = vmatprep.mubr.bf16.mxu1 %v15201_v43  ;;  %v14063_v41 = vld [vmem:[#allocation13 + $0x24] ss:$16 sps:$4 sm:$0xff]  }
 0x346   :  { %v1804_v62 = vadd.f32 %v12872_v59, %v15181_v13  ;;  %v1745_v63 = vpop.f32.mrb[11].mxu1  ;;  %12898 = vmatmul.mubr.bf16.gmra.mrb[68].mxu0 %v15199_v42  ;;  %12994 = vmatmul.mubr.bf16.gmra.mrb[20].mxu1 %v15199_v42  ;;  %v1819_v4 = vmax.f32 %v1803_v45, 0.0  ;;  %v14064_v44 = vld [vmem:[#allocation13 + $0x44] ss:$16 sps:$4 sm:$0xff]  }
 0x347   :  { %v1802_v2 = vadd.f32 %v15181_v13, %v1745_v63  ;;  %13042 = vmatpush3.bf16.msra.mxu1 %v14040_v39  ;;  %v1817_v7 = vmax.f32 %v1801_v58, 0.0  ;;  %v14053_v39 = vld [vmem:[#allocation8 + $0x128] ss:$20 sps:$4 sm:$0xff]   ;;  %v14065_v45 = vld [vmem:[#allocation13 + $0x64] ss:$16 sps:$4 sm:$0xff]  }
 0x348   :  { %v1820_v5 = vmax.f32 %v1804_v62, 0.0  ;;  %13043 = vmatprep.subr.bf16.mxu1 %v14041_v55  ;;  %v14066_v46 = vld [vmem:[#allocation13 + $0x84] ss:$16 sps:$4 sm:$0xff]   ;;  %v15249_v63 = vld [vmem:[#allocation10 + $0x8] sm:$0xff]  }
 0x349   :  { %v1818_v8 = vmax.f32 %v1802_v2, 0.0  ;;  %v14068_v58 = vld [vmem:[#allocation13 + $0xc4] ss:$16 sps:$4 sm:$0xff]  }
 0x34a   :  { %v15211_v9 = vpack.c.bf16 %v1820_v5, %v1819_v4  ;;  %v14069_v59 = vld [vmem:[#allocation13 + $0xe4] ss:$16 sps:$4 sm:$0xff]  }
 0x34b   :  { %v15213_v11 = vpack.c.bf16 %v1818_v8, %v1817_v7  ;;  %v12875_v12 = vpop.f32.mrb[12].mxu1  ;;  %13044 = vmatpush3.bf16.msra.mxu1 %v14041_v55  ;;  %v14067_v55 = vld [vmem:[#allocation13 + $0xa4] ss:$16 sps:$4 sm:$0xff]  }
 0x34c   :  { %v1807_v14 = vadd.f32 %v12875_v12, %v15181_v13  ;;  %v1758_v15 = vpop.f32.mrb[13].mxu1  ;;  %13045 = vmatprep.subr.bf16.mxu1 %v14042_v6  ;;  %v15247_v62 = vld [vmem:[#allocation10] sm:$0xff]  }
 0x34d   :  { %v1805_v17 = vadd.f32 %v15181_v13, %v1758_v15  ;;  %v12876_v18 = vpop.f32.mrb[14].mxu1  ;;  %12901 = vmatprep.mubr.bf16.mxu0 %v15213_v11  ;;  %12997 = vmatprep.mubr.bf16.mxu1 %v15213_v11 }
 0x34e   :  { %v1808_v19 = vadd.f32 %v12876_v18, %v15181_v13  ;;  %v1761_v20 = vpop.f32.mrb[15].mxu1  ;;  %12902 = vmatmul.mubr.bf16.gmra.mrb[72].mxu0 %v15211_v9  ;;  %12998 = vmatmul.mubr.bf16.gmra.mrb[24].mxu1 %v15211_v9  ;;  %v1823_v22 = vmax.f32 %v1807_v14, 0.0 }
 0x34f   :  { %v1806_v21 = vadd.f32 %v15181_v13, %v1761_v20  ;;  %13046 = vmatpush3.bf16.msra.mxu1 %v14042_v6  ;;  %v1821_v25 = vmax.f32 %v1805_v17, 0.0  ;;  %v14046_v13 = vld [vmem:[#allocation8 + $0x10] ss:$20 sps:$4 sm:$0xff]   ;;  %v15259_v20 = vld [vmem:[#allocation10 + $0x18] sm:$0xff]  }
 0x350   :  { %v1824_v23 = vmax.f32 %v1808_v19, 0.0  ;;  %13047 = vmatprep.subr.bf16.mxu1 %v14043_v16  ;;  %v15255_v17 = vld [vmem:[#allocation10 + $0x10] sm:$0xff]  }
 0x351   :  { %v1822_v28 = vmax.f32 %v1806_v21, 0.0 }
 0x352   :  { %v15223_v29 = vpack.c.bf16 %v1824_v23, %v1823_v22 }
 0x353   :  { %v15225_v30 = vpack.c.bf16 %v1822_v28, %v1821_v25  ;;  %13048 = vmatpush3.bf16.msra.mxu1 %v14043_v16 }
 0x354   :  { %13049 = vmatprep.subr.bf16.mxu1 %v14044_v24 }
 0x355   :  { %12905 = vmatprep.mubr.bf16.mxu0 %v15225_v30  ;;  %13001 = vmatprep.mubr.bf16.mxu1 %v15225_v30 }
 0x356   :  { %12906 = vmatmul.mubr.bf16.gmra.mrb[76].mxu0 %v15223_v29  ;;  %13002 = vmatmul.mubr.bf16.gmra.mrb[28].mxu1 %v15223_v29 }
 0x357   :  { %13050 = vmatpush3.bf16.msra.mxu1 %v14044_v24  ;;  %13053 = vmatprep.mubr.bf16.mxu1 %v15189_v27 }
 0x358   :  { %13051 = vmatprep.subr.bf16.mxu1 %v14045_v31  ;;  %12925 = vmatprep.mubr.bf16.mxu0 %v14454_v32 }
 0x35b   :  { %13052 = vmatpush3.bf16.msra.mxu1 %v14045_v31 }
 0x35c   :  { %13101 = vmatprep.subr.bf16.mxu1 %v14046_v13 }
 0x35e   :  { %13054 = vmatmul.mubr.bf16.vlgmr.msra.gmra.mrb[32].mxu1 %v15187_v26 }
 0x35f   :  { %13057 = vmatprep.mubr.bf16.mxu1 %v15201_v43  ;;  %13102 = vmatpush3.bf16.msra.mxu1 %v14046_v13 }
 0x360   :  { %13103 = vmatprep.subr.bf16.mxu1 %v14047_v33 }
 0x363   :  { %13104 = vmatpush3.bf16.msra.mxu1 %v14047_v33 }
 0x364   :  { %13105 = vmatprep.subr.bf16.mxu1 %v14048_v34 }
 0x366   :  { %13058 = vmatmul.mubr.bf16.gmra.mrb[36].mxu1 %v15199_v42 }
 0x367   :  { %13061 = vmatprep.mubr.bf16.mxu1 %v15213_v11  ;;  %13106 = vmatpush3.bf16.msra.mxu1 %v14048_v34  ;;  %v15265_v34 = vld [vmem:[#allocation10 + $0x20] sm:$0xff]  }
 0x368   :  { %13107 = vmatprep.subr.bf16.mxu1 %v14049_v35 }
 0x36b   :  { %13108 = vmatpush3.bf16.msra.mxu1 %v14049_v35 }
 0x36c   :  { %13109 = vmatprep.subr.bf16.mxu1 %v14050_v36 }
 0x36e   :  { %13062 = vmatmul.mubr.bf16.gmra.mrb[40].mxu1 %v15211_v9 }
 0x36f   :  { %13065 = vmatprep.mubr.bf16.mxu1 %v15225_v30  ;;  %13110 = vmatpush3.bf16.msra.mxu1 %v14050_v36 }
 0x370   :  { %13111 = vmatprep.subr.bf16.mxu1 %v14051_v37 }
 0x373   :  { %13112 = vmatpush3.bf16.msra.mxu1 %v14051_v37  ;;  %v15269_v37 = vld [vmem:[#allocation10 + $0x28] sm:$0xff]  }
 0x374   :  { %13113 = vmatprep.subr.bf16.mxu1 %v14052_v38 }
 0x376   :  { %13066 = vmatmul.mubr.bf16.gmra.mrb[44].mxu1 %v15223_v29 }
 0x377   :  { %13114 = vmatpush3.bf16.msra.mxu1 %v14052_v38  ;;  %13117 = vmatprep.mubr.bf16.mxu1 %v15189_v27 }
 0x378   :  { %13115 = vmatprep.subr.bf16.mxu1 %v14053_v39 }
 0x37b   :  { %13116 = vmatpush3.bf16.msra.mxu1 %v14053_v39 }
 0x37c   :  { %13165 = vmatprep.subr.bf16.mxu1 %v14062_v40 }
 0x37e   :  { %13118 = vmatmul.mubr.bf16.vlgmr.msra.gmra.mrb[48].mxu1 %v15187_v26 }
 0x37f   :  { %13121 = vmatprep.mubr.bf16.mxu1 %v15201_v43  ;;  %13166 = vmatpush3.bf16.msra.mxu1 %v14062_v40 }
 0x380   :  { %13167 = vmatprep.subr.bf16.mxu1 %v14063_v41 }
 0x383   :  { %13168 = vmatpush3.bf16.msra.mxu1 %v14063_v41 }
 0x384   :  { %13169 = vmatprep.subr.bf16.mxu1 %v14064_v44 }
 0x386   :  { %13122 = vmatmul.mubr.bf16.gmra.mrb[52].mxu1 %v15199_v42 }
 0x387   :  { %13125 = vmatprep.mubr.bf16.mxu1 %v15213_v11  ;;  %13170 = vmatpush3.bf16.msra.mxu1 %v14064_v44 }
 0x388   :  { %13171 = vmatprep.subr.bf16.mxu1 %v14065_v45 }
 0x38b   :  { %13172 = vmatpush3.bf16.msra.mxu1 %v14065_v45 }
 0x38c   :  { %13173 = vmatprep.subr.bf16.mxu1 %v14066_v46 }
 0x38e   :  { %13126 = vmatmul.mubr.bf16.gmra.mrb[56].mxu1 %v15211_v9 }
 0x38f   :  { %13129 = vmatprep.mubr.bf16.mxu1 %v15225_v30  ;;  %13174 = vmatpush3.bf16.msra.mxu1 %v14066_v46 }
 0x390   :  { %13175 = vmatprep.subr.bf16.mxu1 %v14067_v55 }
 0x393   :  { %13176 = vmatpush3.bf16.msra.mxu1 %v14067_v55 }
 0x394   :  { %13177 = vmatprep.subr.bf16.mxu1 %v14068_v58 }
 0x396   :  { %13130 = vmatmul.mubr.bf16.gmra.mrb[60].mxu1 %v15223_v29 }
 0x397   :  { %13178 = vmatpush3.bf16.msra.mxu1 %v14068_v58  ;;  %13181 = vmatprep.mubr.bf16.mxu1 %v15247_v62 }
 0x398   :  { %13179 = vmatprep.subr.bf16.mxu1 %v14069_v59 }
 0x39b   :  { %13180 = vmatpush3.bf16.msra.mxu1 %v14069_v59 }
 0x39e   :  { %13182 = vmatmul.mubr.bf16.vlgmr.msra.gmra.mrb[64].mxu1 %v15249_v63 }
 0x39f   :  { %13185 = vmatprep.mubr.bf16.mxu1 %v15255_v17 }
 0x3a6   :  { %13186 = vmatmul.mubr.bf16.gmra.mrb[68].mxu1 %v15259_v20 }
 0x3a7   :  { %13189 = vmatprep.mubr.bf16.mxu1 %v15265_v34 }
 0x3ae   :  { %13190 = vmatmul.mubr.bf16.gmra.mrb[72].mxu1 %v15269_v37 }
 0x411   :  { %v12895_v2 = vpop.f32.mrb[64].mxu0  ;;  %v12991_v4 = vpop.f32.mrb[16].mxu1 }
 0x412   :  { %v1947_v5 = vpop.f32.mrb[65].mxu0  ;;  %v2358_v6 = vpop.f32.mrb[17].mxu1 }
 0x413   :  { %v12896_v7 = vpop.f32.mrb[66].mxu0  ;;  %v12992_v8 = vpop.f32.mrb[18].mxu1 }
 0x414   :  { %v2011_v12 = vpack.c.bf16 %v12896_v7, %v12895_v2  ;;  %v15253_v14 = vpack.c.bf16 %v12992_v8, %v12991_v4  ;;  %v1950_v15 = vpop.f32.mrb[67].mxu0  ;;  %v2361_v16 = vpop.f32.mrb[19].mxu1  ;;  %v15275_v2 = vld [vmem:[#allocation10 + $0x30] sm:$0xff]  }
 0x415   :  { %v2010_v18 = vpack.c.bf16 %v1950_v15, %v1947_v5  ;;  %v15257_v19 = vpack.c.bf16 %v2361_v16, %v2358_v6  ;;  %v15279_v6 = vld [vmem:[#allocation10 + $0x38] sm:$0xff]   ;;  %13193 = vmatprep.mubr.bf16.mxu1 %v15275_v2 }
 0x416   :  { %13194 = vmatmul.mubr.bf16.gmra.mrb[76].mxu1 %v15279_v6 }
 0x417   :  { %12909 = vmatprep.subr.bf16.mxu0 %v2010_v18 }
 0x418   :  { %12910 = vmatpush3.bf16.msra.mxu0 %v2010_v18 }
 0x419   :  { %v12899_v21 = vpop.f32.mrb[68].mxu0  ;;  %12911 = vmatprep.subr.bf16.mxu0 %v2011_v12  ;;  %v12995_v22 = vpop.f32.mrb[20].mxu1 }
 0x41a   :  { %v1963_v23 = vpop.f32.mrb[69].mxu0  ;;  %v2374_v24 = vpop.f32.mrb[21].mxu1 }
 0x41b   :  { %v12900_v25 = vpop.f32.mrb[70].mxu0  ;;  %v12996_v28 = vpop.f32.mrb[22].mxu1 }
 0x41c   :  { %v2013_v31 = vpack.c.bf16 %v12900_v25, %v12899_v21  ;;  %v15263_v13 = vpack.c.bf16 %v12996_v28, %v12995_v22  ;;  %v1966_v32 = vpop.f32.mrb[71].mxu0  ;;  %12912 = vmatpush3.bf16.msra.mxu0 %v2011_v12  ;;  %v2377_v33 = vpop.f32.mrb[23].mxu1 }
 0x41d   :  { %v2012_v35 = vpack.c.bf16 %v1966_v32, %v1963_v23  ;;  %v15267_v36 = vpack.c.bf16 %v2377_v33, %v2374_v24  ;;  %v14054_v32 = vld [vmem:[#allocation8] ss:$20 sps:$4 sm:$0xff]  }
 0x41f   :  { %12913 = vmatprep.subr.bf16.mxu0 %v2012_v35 }
 0x420   :  { %12914 = vmatpush3.bf16.msra.mxu0 %v2012_v35 }
 0x421   :  { %v12903_v38 = vpop.f32.mrb[72].mxu0  ;;  %12915 = vmatprep.subr.bf16.mxu0 %v2013_v31  ;;  %v12999_v39 = vpop.f32.mrb[24].mxu1 }
 0x422   :  { %v1979_v40 = vpop.f32.mrb[73].mxu0  ;;  %v2390_v41 = vpop.f32.mrb[25].mxu1 }
 0x423   :  { %v12904_v44 = vpop.f32.mrb[74].mxu0  ;;  %v13000_v45 = vpop.f32.mrb[26].mxu1 }
 0x424   :  { %v2015_v46 = vpack.c.bf16 %v12904_v44, %v12903_v38  ;;  %v15273_v55 = vpack.c.bf16 %v13000_v45, %v12999_v39  ;;  %v1982_v58 = vpop.f32.mrb[75].mxu0  ;;  %12916 = vmatpush3.bf16.msra.mxu0 %v2013_v31  ;;  %v2393_v59 = vpop.f32.mrb[27].mxu1  ;;  %v14455_v44 = vld [vmem:[#allocation5 + $0x20] ss:$16 sps:$4 sm:$0xff]  }
 0x425   :  { %v2014_v4 = vpack.c.bf16 %v1982_v58, %v1979_v40  ;;  %v15277_v5 = vpack.c.bf16 %v2393_v59, %v2390_v41  ;;  %v14055_v41 = vld [vmem:[#allocation8 + $0x28] ss:$20 sps:$4 sm:$0xff]   ;;  %v14456_v45 = vld [vmem:[#allocation5 + $0x40] ss:$16 sps:$4 sm:$0xff]  }
 0x426   :  { %v14056_v58 = vld [vmem:[#allocation8 + $0x50] ss:$20 sps:$4 sm:$0xff]  }
 0x427   :  { %12917 = vmatprep.subr.bf16.mxu0 %v2014_v4 }
 0x428   :  { %12918 = vmatpush3.bf16.msra.mxu0 %v2014_v4 }
 0x429   :  { %v12907_v7 = vpop.f32.mrb[76].mxu0  ;;  %12919 = vmatprep.subr.bf16.mxu0 %v2015_v46  ;;  %v13003_v8 = vpop.f32.mrb[28].mxu1 }
 0x42a   :  { %v1995_v12 = vpop.f32.mrb[77].mxu0  ;;  %v2406_v15 = vpop.f32.mrb[29].mxu1 }
 0x42b   :  { %v12908_v16 = vpop.f32.mrb[78].mxu0  ;;  %v13004_v18 = vpop.f32.mrb[30].mxu1 }
 0x42c   :  { %v2017_v21 = vpack.c.bf16 %v12908_v16, %v12907_v7  ;;  %v15283_v22 = vpack.c.bf16 %v13004_v18, %v13003_v8  ;;  %v1998_v23 = vpop.f32.mrb[79].mxu0  ;;  %12920 = vmatpush3.bf16.msra.mxu0 %v2015_v46  ;;  %v2409_v24 = vpop.f32.mrb[31].mxu1  ;;  %v14457_v16 = vld [vmem:[#allocation5 + $0x60] ss:$16 sps:$4 sm:$0xff]  }
 0x42d   :  { %v2016_v25 = vpack.c.bf16 %v1998_v23, %v1995_v12  ;;  %v15285_v28 = vpack.c.bf16 %v2409_v24, %v2406_v15  ;;  %v14057_v15 = vld [vmem:[#allocation8 + $0x78] ss:$20 sps:$4 sm:$0xff]   ;;  %v14458_v18 = vld [vmem:[#allocation5 + $0x80] ss:$16 sps:$4 sm:$0xff]  }
 0x42e   :  { %v14058_v23 = vld [vmem:[#allocation8 + $0xa0] ss:$20 sps:$4 sm:$0xff]  }
 0x42f   :  { %12921 = vmatprep.subr.bf16.mxu0 %v2016_v25 }
 0x430   :  { %12922 = vmatpush3.bf16.msra.mxu0 %v2016_v25 }
 0x431   :  { %12923 = vmatprep.subr.bf16.mxu0 %v2017_v21  ;;  %v13055_v31 = vpop.f32.mrb[32].mxu1 }
 0x432   :  { %v2640_v33 = vpop.f32.mrb[33].mxu1 }
 0x433   :  { %v13056_v35 = vpop.f32.mrb[34].mxu1 }
 0x434   :  { %v15287_v38 = vpack.c.bf16 %v13056_v35, %v13055_v31  ;;  %12924 = vmatpush3.bf16.msra.mxu0 %v2017_v21  ;;  %v2643_v39 = vpop.f32.mrb[35].mxu1  ;;  %v14059_v35 = vld [vmem:[#allocation8 + $0xc8] ss:$20 sps:$4 sm:$0xff]  }
 0x435   :  { %v15289_v40 = vpack.c.bf16 %v2643_v39, %v2640_v33  ;;  %12941 = vmatprep.subr.bf16.mxu0 %v14054_v32  ;;  %v14459_v39 = vld [vmem:[#allocation5 + $0xa0] ss:$16 sps:$4 sm:$0xff]  }
 0x437   :  { %12926 = vmatmul.mubr.bf16.vlgmr.msra.gmra.mrb[80].mxu0 %v14455_v44 }
 0x438   :  { %12942 = vmatpush3.bf16.msra.mxu0 %v14054_v32  ;;  %12929 = vmatprep.mubr.bf16.mxu0 %v14456_v45  ;;  %v14060_v45 = vld [vmem:[#allocation8 + $0xf0] ss:$20 sps:$4 sm:$0xff]  }
 0x439   :  { %v13059_v46 = vpop.f32.mrb[36].mxu1  ;;  %12943 = vmatprep.subr.bf16.mxu0 %v14055_v41 }
 0x43a   :  { %v2656_v59 = vpop.f32.mrb[37].mxu1 }
 0x43b   :  { %v13060_v4 = vpop.f32.mrb[38].mxu1 }
 0x43c   :  { %v15291_v7 = vpack.c.bf16 %v13060_v4, %v13059_v46  ;;  %12944 = vmatpush3.bf16.msra.mxu0 %v14055_v41  ;;  %v2659_v8 = vpop.f32.mrb[39].mxu1  ;;  %v14460_v41 = vld [vmem:[#allocation5 + $0xc0] ss:$16 sps:$4 sm:$0xff]  }
 0x43d   :  { %v15293_v12 = vpack.c.bf16 %v2659_v8, %v2656_v59  ;;  %12945 = vmatprep.subr.bf16.mxu0 %v14056_v58 }
 0x43f   :  { %12930 = vmatmul.mubr.bf16.gmra.mrb[84].mxu0 %v14457_v16  ;;  %v14461_v16 = vld [vmem:[#allocation5 + $0xe0] ss:$16 sps:$4 sm:$0xff]  }
 0x440   :  { %12946 = vmatpush3.bf16.msra.mxu0 %v14056_v58  ;;  %12933 = vmatprep.mubr.bf16.mxu0 %v14458_v18 }
 0x441   :  { %v13063_v21 = vpop.f32.mrb[40].mxu1  ;;  %12947 = vmatprep.subr.bf16.mxu0 %v14057_v15 }
 0x442   :  { %v2672_v24 = vpop.f32.mrb[41].mxu1 }
 0x443   :  { %v13064_v25 = vpop.f32.mrb[42].mxu1 }
 0x444   :  { %v15295_v31 = vpack.c.bf16 %v13064_v25, %v13063_v21  ;;  %12948 = vmatpush3.bf16.msra.mxu0 %v14057_v15  ;;  %v2675_v32 = vpop.f32.mrb[43].mxu1  ;;  %v14061_v15 = vld [vmem:[#allocation8 + $0x118] ss:$20 sps:$4 sm:$0xff]  }
 0x445   :  { %v15297_v33 = vpack.c.bf16 %v2675_v32, %v2672_v24  ;;  %12949 = vmatprep.subr.bf16.mxu0 %v14058_v23 }
 0x447   :  { %12934 = vmatmul.mubr.bf16.gmra.mrb[88].mxu0 %v14459_v39 }
 0x448   :  { %12950 = vmatpush3.bf16.msra.mxu0 %v14058_v23  ;;  %12937 = vmatprep.mubr.bf16.mxu0 %v14460_v41 }
 0x449   :  { %v13067_v44 = vpop.f32.mrb[44].mxu1  ;;  %12951 = vmatprep.subr.bf16.mxu0 %v14059_v35 }
 0x44a   :  { %v2688_v46 = vpop.f32.mrb[45].mxu1 }
 0x44b   :  { %v13068_v58 = vpop.f32.mrb[46].mxu1 }
 0x44c   :  { %v15299_v59 = vpack.c.bf16 %v13068_v58, %v13067_v44  ;;  %12952 = vmatpush3.bf16.msra.mxu0 %v14059_v35  ;;  %v2691_v4 = vpop.f32.mrb[47].mxu1 }
 0x44d   :  { %v15301_v8 = vpack.c.bf16 %v2691_v4, %v2688_v46  ;;  %12953 = vmatprep.subr.bf16.mxu0 %v14060_v45 }
 0x44f   :  { %12938 = vmatmul.mubr.bf16.gmra.mrb[92].mxu0 %v14461_v16 }
 0x450   :  { %12954 = vmatpush3.bf16.msra.mxu0 %v14060_v45  ;;  %12957 = vmatprep.mubr.bf16.mxu0 %v15189_v27 }
 0x451   :  { %v13119_v18 = vpop.f32.mrb[48].mxu1  ;;  %12955 = vmatprep.subr.bf16.mxu0 %v14061_v15 }
 0x452   :  { %v2922_v21 = vpop.f32.mrb[49].mxu1 }
 0x453   :  { %v13120_v23 = vpop.f32.mrb[50].mxu1 }
 0x454   :  { %v15304_v24 = vpack.c.bf16 %v13120_v23, %v13119_v18  ;;  %12956 = vmatpush3.bf16.msra.mxu0 %v14061_v15  ;;  %v2925_v25 = vpop.f32.mrb[51].mxu1  ;;  %v14093_v23 = vld [vmem:[#allocation13 + $0xec] ss:$16 sps:$4 sm:$0xff]  }
 0x455   :  { %v15306_v32 = vpack.c.bf16 %v2925_v25, %v2922_v21  ;;  %13005 = vmatprep.subr.bf16.mxu0 %v15257_v19 }
 0x457   :  { %12958 = vmatmul.mubr.bf16.vlgmr.msra.gmra.mrb[80].mxu0 %v15187_v26 }
 0x458   :  { %12961 = vmatprep.mubr.bf16.mxu0 %v15201_v43  ;;  %13006 = vmatpush3.bf16.msra.mxu0 %v15257_v19 }
 0x459   :  { %13007 = vmatprep.subr.bf16.mxu0 %v15253_v14  ;;  %v13123_v27 = vpop.f32.mrb[52].mxu1 }
 0x45a   :  { %v2938_v35 = vpop.f32.mrb[53].mxu1 }
 0x45b   :  { %v13124_v39 = vpop.f32.mrb[54].mxu1 }
 0x45c   :  { %v15313_v41 = vpack.c.bf16 %v13124_v39, %v13123_v27  ;;  %13008 = vmatpush3.bf16.msra.mxu0 %v15253_v14  ;;  %v2941_v44 = vpop.f32.mrb[55].mxu1 }
 0x45d   :  { %v15316_v45 = vpack.c.bf16 %v2941_v44, %v2938_v35  ;;  %13009 = vmatprep.subr.bf16.mxu0 %v15267_v36 }
 0x45f   :  { %12962 = vmatmul.mubr.bf16.gmra.mrb[84].mxu0 %v15199_v42 }
 0x460   :  { %12965 = vmatprep.mubr.bf16.mxu0 %v15213_v11  ;;  %13010 = vmatpush3.bf16.msra.mxu0 %v15267_v36 }
 0x461   :  { %13011 = vmatprep.subr.bf16.mxu0 %v15263_v13  ;;  %v13127_v26 = vpop.f32.mrb[56].mxu1 }
 0x462   :  { %v2954_v43 = vpop.f32.mrb[57].mxu1 }
 0x463   :  { %v13128_v19 = vpop.f32.mrb[58].mxu1 }
 0x464   :  { %v15323_v46 = vpack.c.bf16 %v13128_v19, %v13127_v26  ;;  %13012 = vmatpush3.bf16.msra.mxu0 %v15263_v13  ;;  %v2957_v14 = vpop.f32.mrb[59].mxu1 }
 0x465   :  { %v15326_v58 = vpack.c.bf16 %v2957_v14, %v2954_v43  ;;  %13013 = vmatprep.subr.bf16.mxu0 %v15277_v5 }
 0x467   :  { %12966 = vmatmul.mubr.bf16.gmra.mrb[88].mxu0 %v15211_v9  ;;  %v14462_v9 = vld [vmem:[#allocation5 + $0x4] ss:$16 sps:$4 sm:$0xff]  }
 0x468   :  { %12969 = vmatprep.mubr.bf16.mxu0 %v15225_v30  ;;  %13014 = vmatpush3.bf16.msra.mxu0 %v15277_v5  ;;  %v14463_v30 = vld [vmem:[#allocation5 + $0x24] ss:$16 sps:$4 sm:$0xff]  }
 0x469   :  { %13015 = vmatprep.subr.bf16.mxu0 %v15273_v55  ;;  %v13131_v42 = vpop.f32.mrb[60].mxu1  ;;  %v14466_v5 = vld [vmem:[#allocation5 + $0x84] ss:$16 sps:$4 sm:$0xff]  }
 0x46a   :  { %v2970_v11 = vpop.f32.mrb[61].mxu1 }
 0x46b   :  { %v13132_v36 = vpop.f32.mrb[62].mxu1 }
 0x46c   :  { %v15333_v4 = vpack.c.bf16 %v13132_v36, %v13131_v42  ;;  %13016 = vmatpush3.bf16.msra.mxu0 %v15273_v55  ;;  %v2973_v13 = vpop.f32.mrb[63].mxu1  ;;  %v14464_v55 = vld [vmem:[#allocation5 + $0x44] ss:$16 sps:$4 sm:$0xff]   ;;  %v15401_v42 = vld [vmem:[#allocation11] ss:$12 sps:$4 sm:$0xff]  }
 0x46d   :  { %v2991_v15 = vpack.c.bf16 %v2973_v13, %v2970_v11  ;;  %13017 = vmatprep.subr.bf16.mxu0 %v15285_v28  ;;  %v15403_v11 = vld [vmem:[#allocation11 + $0x18] ss:$12 sps:$4 sm:$0xff]   ;;  %v14096_v36 = vld [vmem:[#allocation13] ss:$16 sps:$4 sm:$0xff]   ;;  %13213 = vmatprep.mubr.bf16.mxu1 %v15401_v42 }
 0x46e   :  { %v15408_v13 = vld [vmem:[#allocation11 + $0x30] ss:$12 sps:$4 sm:$0xff]  }
 0x46f   :  { %12970 = vmatmul.mubr.bf16.gmra.mrb[92].mxu0 %v15223_v29  ;;  %v14465_v29 = vld [vmem:[#allocation5 + $0x64] ss:$16 sps:$4 sm:$0xff]  }
 0x470   :  { %13018 = vmatpush3.bf16.msra.mxu0 %v15285_v28  ;;  %13021 = vmatprep.mubr.bf16.mxu0 %v14462_v9  ;;  %v14468_v28 = vld [vmem:[#allocation5 + $0xc4] ss:$16 sps:$4 sm:$0xff]   ;;  %v14100_v9 = vld [vmem:[#allocation13 + $0x40] ss:$16 sps:$4 sm:$0xff]  }
 0x471   :  { %13019 = vmatprep.subr.bf16.mxu0 %v15283_v22 }
 0x474   :  { %13020 = vmatpush3.bf16.msra.mxu0 %v15283_v22  ;;  %v14467_v22 = vld [vmem:[#allocation5 + $0xa4] ss:$16 sps:$4 sm:$0xff]  }
 0x475   :  { %13069 = vmatprep.subr.bf16.mxu0 %v15289_v40 }
 0x477   :  { %13022 = vmatmul.mubr.bf16.vlgmr.msra.gmra.mrb[80].mxu0 %v14463_v30  ;;  %v14101_v30 = vld [vmem:[#allocation13 + $0x60] ss:$16 sps:$4 sm:$0xff]  }
 0x478   :  { %13070 = vmatpush3.bf16.msra.mxu0 %v15289_v40  ;;  %13025 = vmatprep.mubr.bf16.mxu0 %v14464_v55  ;;  %v14470_v40 = vld [vmem:[#allocation5 + $0x8] ss:$16 sps:$4 sm:$0xff]   ;;  %v15414_v55 = vld [vmem:[#allocation11 + $0x60] ss:$12 sps:$4 sm:$0xff]  }
 0x479   :  { %13071 = vmatprep.subr.bf16.mxu0 %v15287_v38 }
 0x47c   :  { %13072 = vmatpush3.bf16.msra.mxu0 %v15287_v38  ;;  %v14469_v38 = vld [vmem:[#allocation5 + $0xe4] ss:$16 sps:$4 sm:$0xff]  }
 0x47d   :  { %13073 = vmatprep.subr.bf16.mxu0 %v15293_v12 }
 0x47f   :  { %13026 = vmatmul.mubr.bf16.gmra.mrb[84].mxu0 %v14465_v29  ;;  %v15416_v29 = vld [vmem:[#allocation11 + $0x78] ss:$12 sps:$4 sm:$0xff]  }
 0x480   :  { %13074 = vmatpush3.bf16.msra.mxu0 %v15293_v12  ;;  %13029 = vmatprep.mubr.bf16.mxu0 %v14466_v5  ;;  %v14091_v12 = vld [vmem:[#allocation13 + $0xac] ss:$16 sps:$4 sm:$0xff]   ;;  %v14104_v5 = vld [vmem:[#allocation13 + $0x80] ss:$16 sps:$4 sm:$0xff]  }
 0x481   :  { %13075 = vmatprep.subr.bf16.mxu0 %v15291_v7 }
 0x484   :  { %13076 = vmatpush3.bf16.msra.mxu0 %v15291_v7 }
 0x485   :  { %13077 = vmatprep.subr.bf16.mxu0 %v15297_v33 }
 0x487   :  { %13030 = vmatmul.mubr.bf16.gmra.mrb[88].mxu0 %v14467_v22  ;;  %v14105_v22 = vld [vmem:[#allocation13 + $0xa0] ss:$16 sps:$4 sm:$0xff]  }
 0x488   :  { %13078 = vmatpush3.bf16.msra.mxu0 %v15297_v33  ;;  %13033 = vmatprep.mubr.bf16.mxu0 %v14468_v28  ;;  %v15420_v28 = vld [vmem:[#allocation11 + $0x90] ss:$12 sps:$4 sm:$0xff]  }
 0x489   :  { %13079 = vmatprep.subr.bf16.mxu0 %v15295_v31 }
 0x48c   :  { %13080 = vmatpush3.bf16.msra.mxu0 %v15295_v31 }
 0x48d   :  { %13081 = vmatprep.subr.bf16.mxu0 %v15301_v8 }
 0x48f   :  { %13034 = vmatmul.mubr.bf16.gmra.mrb[92].mxu0 %v14469_v38  ;;  %v15422_v38 = vld [vmem:[#allocation11 + $0xa8] ss:$12 sps:$4 sm:$0xff]  }
 0x490   :  { %13082 = vmatpush3.bf16.msra.mxu0 %v15301_v8  ;;  %13085 = vmatprep.mubr.bf16.mxu0 %v14470_v40  ;;  %v14092_v8 = vld [vmem:[#allocation13 + $0xcc] ss:$16 sps:$4 sm:$0xff]   ;;  %v14108_v40 = vld [vmem:[#allocation13 + $0xc0] ss:$16 sps:$4 sm:$0xff]  }
 0x491   :  { %13083 = vmatprep.subr.bf16.mxu0 %v15299_v59 }
 0x494   :  { %13084 = vmatpush3.bf16.msra.mxu0 %v15299_v59 }
 0x495   :  { %13133 = vmatprep.subr.bf16.mxu0 %v15306_v32 }
 0x497   :  { %13086 = vmatmul.mubr.bf16.vlgmr.msra.gmra.mrb[80].mxu0 %v15129_v47  ;;  %v14078_v47 = vld [vmem:[#allocation13 + $0x8] ss:$16 sps:$4 sm:$0xff]  }
 0x498   :  { %13134 = vmatpush3.bf16.msra.mxu0 %v15306_v32  ;;  %13089 = vmatprep.mubr.bf16.mxu0 %v15131_v48  ;;  %v14079_v48 = vld [vmem:[#allocation13 + $0x28] ss:$16 sps:$4 sm:$0xff]  }
 0x499   :  { %13135 = vmatprep.subr.bf16.mxu0 %v15304_v24 }
 0x49c   :  { %13136 = vmatpush3.bf16.msra.mxu0 %v15304_v24 }
 0x49d   :  { %13137 = vmatprep.subr.bf16.mxu0 %v15316_v45 }
 0x49f   :  { %13090 = vmatmul.mubr.bf16.gmra.mrb[84].mxu0 %v15136_v49  ;;  %v14080_v49 = vld [vmem:[#allocation13 + $0x48] ss:$16 sps:$4 sm:$0xff]  }
 0x4a0   :  { %13138 = vmatpush3.bf16.msra.mxu0 %v15316_v45  ;;  %13093 = vmatprep.mubr.bf16.mxu0 %v15138_v50  ;;  %v14081_v50 = vld [vmem:[#allocation13 + $0x68] ss:$16 sps:$4 sm:$0xff]  }
 0x4a1   :  { %13139 = vmatprep.subr.bf16.mxu0 %v15313_v41 }
 0x4a4   :  { %13140 = vmatpush3.bf16.msra.mxu0 %v15313_v41 }
 0x4a5   :  { %13141 = vmatprep.subr.bf16.mxu0 %v15326_v58 }
 0x4a7   :  { %13094 = vmatmul.mubr.bf16.gmra.mrb[88].mxu0 %v15142_v51  ;;  %v14082_v51 = vld [vmem:[#allocation13 + $0x88] ss:$16 sps:$4 sm:$0xff]  }
 0x4a8   :  { %13142 = vmatpush3.bf16.msra.mxu0 %v15326_v58  ;;  %13097 = vmatprep.mubr.bf16.mxu0 %v15144_v52  ;;  %v14083_v52 = vld [vmem:[#allocation13 + $0xa8] ss:$16 sps:$4 sm:$0xff]  }
 0x4a9   :  { %13143 = vmatprep.subr.bf16.mxu0 %v15323_v46 }
 0x4ac   :  { %13144 = vmatpush3.bf16.msra.mxu0 %v15323_v46 }
 0x4ad   :  { %13145 = vmatprep.subr.bf16.mxu0 %v2991_v15 }
 0x4af   :  { %13098 = vmatmul.mubr.bf16.gmra.mrb[92].mxu0 %v15148_v53  ;;  %v14084_v53 = vld [vmem:[#allocation13 + $0xc8] ss:$16 sps:$4 sm:$0xff]  }
 0x4b0   :  { %13146 = vmatpush3.bf16.msra.mxu0 %v2991_v15  ;;  %13149 = vmatprep.mubr.bf16.mxu0 %v15150_v54  ;;  %v14085_v54 = vld [vmem:[#allocation13 + $0xe8] ss:$16 sps:$4 sm:$0xff]  }
 0x4b1   :  { %13147 = vmatprep.subr.bf16.mxu0 %v15333_v4  ;;  %v15410_v15 = vld [vmem:[#allocation11 + $0x48] ss:$12 sps:$4 sm:$0xff]  }
 0x4b4   :  { %13148 = vmatpush3.bf16.msra.mxu0 %v15333_v4  ;;  %v14097_v4 = vld [vmem:[#allocation13 + $0x20] ss:$16 sps:$4 sm:$0xff]  }
 0x4b5   :  { %13261 = vmatprep.subr.bf16.mxu0 %v14078_v47 }
 0x4b7   :  { %13150 = vmatmul.mubr.bf16.vlgmr.msra.gmra.mrb[80].mxu0 %v15154_v56  ;;  %v14086_v56 = vld [vmem:[#allocation13 + $0xc] ss:$16 sps:$4 sm:$0xff]  }
 0x4b8   :  { %13262 = vmatpush3.bf16.msra.mxu0 %v14078_v47  ;;  %13153 = vmatprep.mubr.bf16.mxu0 %v15156_v57  ;;  %v14087_v57 = vld [vmem:[#allocation13 + $0x2c] ss:$16 sps:$4 sm:$0xff]   ;;  %v14109_v47 = vld [vmem:[#allocation13 + $0xe0] ss:$16 sps:$4 sm:$0xff]  }
 0x4b9   :  { %13263 = vmatprep.subr.bf16.mxu0 %v14079_v48 }
 0x4bc   :  { %13264 = vmatpush3.bf16.msra.mxu0 %v14079_v48  ;;  %v15434_v48 = vld [vmem:[#allocation11 + $0x4] ss:$12 sps:$4 sm:$0xff]  }
 0x4bd   :  { %13265 = vmatprep.subr.bf16.mxu0 %v14080_v49 }
 0x4bf   :  { %13154 = vmatmul.mubr.bf16.gmra.mrb[84].mxu0 %v15160_v60  ;;  %v14088_v60 = vld [vmem:[#allocation13 + $0x4c] ss:$16 sps:$4 sm:$0xff]  }
 0x4c0   :  { %13266 = vmatpush3.bf16.msra.mxu0 %v14080_v49  ;;  %13157 = vmatprep.mubr.bf16.mxu0 %v15162_v61  ;;  %v14089_v61 = vld [vmem:[#allocation13 + $0x6c] ss:$16 sps:$4 sm:$0xff]  }
 0x4c1   :  { %13267 = vmatprep.subr.bf16.mxu0 %v14081_v50 }
 0x4c4   :  { %13268 = vmatpush3.bf16.msra.mxu0 %v14081_v50 }
 0x4c5   :  { %13269 = vmatprep.subr.bf16.mxu0 %v14082_v51 }
 0x4c7   :  { %13158 = vmatmul.mubr.bf16.gmra.mrb[88].mxu0 %v15166_v0  ;;  %v14090_v0 = vld [vmem:[#allocation13 + $0x8c] ss:$16 sps:$4 sm:$0xff]  }
 0x4c8   :  { %13270 = vmatpush3.bf16.msra.mxu0 %v14082_v51  ;;  %13161 = vmatprep.mubr.bf16.mxu0 %v15168_v1  ;;  %v13183_v1 = vpop.f32.mrb[64].mxu1  ;;  %v14131_v51 = vld [vmem:[#allocation14 + $0x44] ss:$16 sps:$4 sm:$0xff]  }
 0x4c9   :  { %13271 = vmatprep.subr.bf16.mxu0 %v14083_v52 }
 0x4cc   :  { %13272 = vmatpush3.bf16.msra.mxu0 %v14083_v52 }
 0x4cd   :  { %13273 = vmatprep.subr.bf16.mxu0 %v14084_v53 }
 0x4cf   :  { %13162 = vmatmul.mubr.bf16.gmra.mrb[92].mxu0 %v15172_v3  ;;  %v3328_v3 = vpop.f32.mrb[65].mxu1 }
 0x4d0   :  { %13274 = vmatpush3.bf16.msra.mxu0 %v14084_v53  ;;  %13277 = vmatprep.mubr.bf16.mxu0 %v15247_v62  ;;  %v13184_v7 = vpop.f32.mrb[66].mxu1 }
 0x4d1   :  { %13275 = vmatprep.subr.bf16.mxu0 %v14085_v54  ;;  %v3392_v31 = vpack.c.bf16 %v13184_v7, %v13183_v1  ;;  %v3331_v33 = vpop.f32.mrb[67].mxu1 }
 0x4d2   :  { %v3391_v59 = vpack.c.bf16 %v3331_v33, %v3328_v3  ;;  %v13187_v16 = vpop.f32.mrb[68].mxu1 }
 0x4d3   :  { %v3344_v18 = vpop.f32.mrb[69].mxu1 }
 0x4d4   :  { %13276 = vmatpush3.bf16.msra.mxu0 %v14085_v54  ;;  %13197 = vmatprep.subr.bf16.mxu1 %v3391_v59  ;;  %v13188_v21 = vpop.f32.mrb[70].mxu1 }
 0x4d5   :  { %13325 = vmatprep.subr.bf16.mxu0 %v14086_v56  ;;  %13198 = vmatpush3.bf16.msra.mxu1 %v3391_v59  ;;  %v3394_v24 = vpack.c.bf16 %v13188_v21, %v13187_v16  ;;  %v3347_v25 = vpop.f32.mrb[71].mxu1 }
 0x4d6   :  { %13199 = vmatprep.subr.bf16.mxu1 %v3392_v31  ;;  %v3393_v32 = vpack.c.bf16 %v3347_v25, %v3344_v18  ;;  %v13191_v27 = vpop.f32.mrb[72].mxu1 }
 0x4d7   :  { %13278 = vmatmul.mubr.bf16.vlgmr.msra.gmra.mrb[96].mxu0 %v15249_v63  ;;  %v3360_v35 = vpop.f32.mrb[73].mxu1 }
 0x4d8   :  { %13326 = vmatpush3.bf16.msra.mxu0 %v14086_v56  ;;  %13281 = vmatprep.mubr.bf16.mxu0 %v15255_v17  ;;  %v13192_v39 = vpop.f32.mrb[74].mxu1 }
 0x4d9   :  { %13327 = vmatprep.subr.bf16.mxu0 %v14087_v57  ;;  %13200 = vmatpush3.bf16.msra.mxu1 %v3392_v31  ;;  %v3396_v41 = vpack.c.bf16 %v13192_v39, %v13191_v27  ;;  %v3363_v44 = vpop.f32.mrb[75].mxu1  ;;  %v14137_v27 = vld [vmem:[#allocation14 + $0xa4] ss:$16 sps:$4 sm:$0xff]  }
 0x4da   :  { %13201 = vmatprep.subr.bf16.mxu1 %v3393_v32  ;;  %v3395_v45 = vpack.c.bf16 %v3363_v44, %v3360_v35 }
 0x4dc   :  { %13328 = vmatpush3.bf16.msra.mxu0 %v14087_v57 }
 0x4dd   :  { %13329 = vmatprep.subr.bf16.mxu0 %v14088_v60  ;;  %13202 = vmatpush3.bf16.msra.mxu1 %v3393_v32 }
 0x4de   :  { %13203 = vmatprep.subr.bf16.mxu1 %v3394_v24 }
 0x4df   :  { %13282 = vmatmul.mubr.bf16.gmra.mrb[100].mxu0 %v15259_v20 }
 0x4e0   :  { %13330 = vmatpush3.bf16.msra.mxu0 %v14088_v60  ;;  %13285 = vmatprep.mubr.bf16.mxu0 %v15265_v34 }
 0x4e1   :  { %13331 = vmatprep.subr.bf16.mxu0 %v14089_v61  ;;  %13204 = vmatpush3.bf16.msra.mxu1 %v3394_v24 }
 0x4e2   :  { %13205 = vmatprep.subr.bf16.mxu1 %v3395_v45 }
 0x4e4   :  { %13332 = vmatpush3.bf16.msra.mxu0 %v14089_v61 }
 0x4e5   :  { %13333 = vmatprep.subr.bf16.mxu0 %v14090_v0  ;;  %13206 = vmatpush3.bf16.msra.mxu1 %v3395_v45 }
 0x4e6   :  { %13207 = vmatprep.subr.bf16.mxu1 %v3396_v41 }
 0x4e7   :  { %13286 = vmatmul.mubr.bf16.gmra.mrb[104].mxu0 %v15269_v37 }
 0x4e8   :  { %13334 = vmatpush3.bf16.msra.mxu0 %v14090_v0  ;;  %13289 = vmatprep.mubr.bf16.mxu0 %v15275_v2  ;;  %v14133_v0 = vld [vmem:[#allocation14 + $0x64] ss:$16 sps:$4 sm:$0xff]  }
 0x4e9   :  { %13335 = vmatprep.subr.bf16.mxu0 %v14091_v12  ;;  %v13195_v26 = vpop.f32.mrb[76].mxu1  ;;  %13208 = vmatpush3.bf16.msra.mxu1 %v3396_v41 }
 0x4ea   :  { %v3376_v43 = vpop.f32.mrb[77].mxu1 }
 0x4eb   :  { %v13196_v19 = vpop.f32.mrb[78].mxu1 }
 0x4ec   :  { %13336 = vmatpush3.bf16.msra.mxu0 %v14091_v12  ;;  %v3398_v46 = vpack.c.bf16 %v13196_v19, %v13195_v26  ;;  %v3379_v14 = vpop.f32.mrb[79].mxu1 }
 0x4ed   :  { %13337 = vmatprep.subr.bf16.mxu0 %v14092_v8  ;;  %v3397_v58 = vpack.c.bf16 %v3379_v14, %v3376_v43 }
 0x4ef   :  { %13290 = vmatmul.mubr.bf16.gmra.mrb[108].mxu0 %v15279_v6  ;;  %13209 = vmatprep.subr.bf16.mxu1 %v3397_v58 }
 0x4f0   :  { %13338 = vmatpush3.bf16.msra.mxu0 %v14092_v8  ;;  %13341 = vmatprep.mubr.bf16.mxu0 %v15247_v62  ;;  %v14135_v8 = vld [vmem:[#allocation14 + $0x84] ss:$16 sps:$4 sm:$0xff]  }
 0x4f1   :  { %13339 = vmatprep.subr.bf16.mxu0 %v14093_v23  ;;  %13210 = vmatpush3.bf16.msra.mxu1 %v3397_v58 }
 0x4f2   :  { %13211 = vmatprep.subr.bf16.mxu1 %v3398_v46 }
 0x4f4   :  { %13340 = vmatpush3.bf16.msra.mxu0 %v14093_v23 }
 0x4f5   :  { %13212 = vmatpush3.bf16.msra.mxu1 %v3398_v46 }
 0x4f6   :  { %13229 = vmatprep.subr.bf16.mxu1 %v14096_v36 }
 0x4f7   :  { %13342 = vmatmul.mubr.bf16.vlgmr.msra.gmra.mrb[112].mxu0 %v15249_v63 }
 0x4f8   :  { %13345 = vmatprep.mubr.bf16.mxu0 %v15255_v17  ;;  %13214 = vmatmul.mubr.bf16.vlgmr.msra.gmra.mrb[80].mxu1 %v15403_v11 }
 0x4f9   :  { %13230 = vmatpush3.bf16.msra.mxu1 %v14096_v36  ;;  %13217 = vmatprep.mubr.bf16.mxu1 %v15408_v13 }
 0x4fa   :  { %13231 = vmatprep.subr.bf16.mxu1 %v14097_v4 }
 0x4fd   :  { %13232 = vmatpush3.bf16.msra.mxu1 %v14097_v4 }
 0x4fe   :  { %13233 = vmatprep.subr.bf16.mxu1 %v14100_v9 }
 0x4ff   :  { %13346 = vmatmul.mubr.bf16.gmra.mrb[116].mxu0 %v15259_v20 }
 0x500   :  { %13349 = vmatprep.mubr.bf16.mxu0 %v15265_v34  ;;  %13218 = vmatmul.mubr.bf16.gmra.mrb[84].mxu1 %v15410_v15 }
 0x501   :  { %13234 = vmatpush3.bf16.msra.mxu1 %v14100_v9  ;;  %13221 = vmatprep.mubr.bf16.mxu1 %v15414_v55 }
 0x502   :  { %13235 = vmatprep.subr.bf16.mxu1 %v14101_v30 }
 0x505   :  { %13236 = vmatpush3.bf16.msra.mxu1 %v14101_v30 }
 0x506   :  { %13237 = vmatprep.subr.bf16.mxu1 %v14104_v5 }
 0x507   :  { %13350 = vmatmul.mubr.bf16.gmra.mrb[120].mxu0 %v15269_v37 }
 0x508   :  { %13353 = vmatprep.mubr.bf16.mxu0 %v15275_v2  ;;  %13222 = vmatmul.mubr.bf16.gmra.mrb[88].mxu1 %v15416_v29 }
 0x509   :  { %13238 = vmatpush3.bf16.msra.mxu1 %v14104_v5  ;;  %13225 = vmatprep.mubr.bf16.mxu1 %v15420_v28 }
 0x50a   :  { %13239 = vmatprep.subr.bf16.mxu1 %v14105_v22 }
 0x50d   :  { %13240 = vmatpush3.bf16.msra.mxu1 %v14105_v22 }
 0x50e   :  { %13241 = vmatprep.subr.bf16.mxu1 %v14108_v40 }
 0x50f   :  { %13354 = vmatmul.mubr.bf16.gmra.mrb[124].mxu0 %v15279_v6 }
 0x510   :  { %13226 = vmatmul.mubr.bf16.gmra.mrb[92].mxu1 %v15422_v38 }
 0x511   :  { %13242 = vmatpush3.bf16.msra.mxu1 %v14108_v40  ;;  %13245 = vmatprep.mubr.bf16.mxu1 %v15247_v62  ;;  %v3108_v62 = vsub.s32 1, %v15175_v10 }
 0x512   :  { %13243 = vmatprep.subr.bf16.mxu1 %v14109_v47 }
 0x515   :  { %13244 = vmatpush3.bf16.msra.mxu1 %v14109_v47 }
 0x518   :  { %13246 = vmatmul.mubr.bf16.vlgmr.msra.gmra.mrb[80].mxu1 %v15249_v63  ;;  %v15441_v63 = vld [vmem:[%s15975_s8] sm:$0xf] }
 0x519   :  { %13249 = vmatprep.mubr.bf16.mxu1 %v15255_v17  ;;  %v15444_v17 = vrot.slane %v15441_v63, %v3108_v62 }
 0x520   :  { %13250 = vmatmul.mubr.bf16.gmra.mrb[84].mxu1 %v15259_v20  ;;  %v14127_v20 = vld [vmem:[#allocation14 + $0x4] ss:$16 sps:$4 sm:$0xff]  }
 0x521   :  { %13253 = vmatprep.mubr.bf16.mxu1 %v15265_v34  ;;  %v14129_v34 = vld [vmem:[#allocation14 + $0x24] ss:$16 sps:$4 sm:$0xff]   ;;  %13389 = vmatprep.subr.bf16.mxu0 %v14127_v20 }
 0x522   :  { %13390 = vmatpush3.bf16.msra.mxu0 %v14127_v20 }
 0x523   :  { %13391 = vmatprep.subr.bf16.mxu0 %v14129_v34 }
 0x526   :  { %13392 = vmatpush3.bf16.msra.mxu0 %v14129_v34 }
 0x527   :  { %13393 = vmatprep.subr.bf16.mxu0 %v14131_v51 }
 0x528   :  { %13254 = vmatmul.mubr.bf16.gmra.mrb[88].mxu1 %v15269_v37 }
 0x529   :  { %13257 = vmatprep.mubr.bf16.mxu1 %v15275_v2 }
 0x52a   :  { %13394 = vmatpush3.bf16.msra.mxu0 %v14131_v51 }
 0x52b   :  { %13395 = vmatprep.subr.bf16.mxu0 %v14133_v0 }
 0x52e   :  { %13396 = vmatpush3.bf16.msra.mxu0 %v14133_v0 }
 0x52f   :  { %13397 = vmatprep.subr.bf16.mxu0 %v14135_v8 }
 0x530   :  { %13258 = vmatmul.mubr.bf16.gmra.mrb[92].mxu1 %v15279_v6 }
 0x531   :  { %13309 = vmatprep.mubr.bf16.mxu1 %v15434_v48 }
 0x532   :  { %13398 = vmatpush3.bf16.msra.mxu0 %v14135_v8 }
 0x533   :  { %13399 = vmatprep.subr.bf16.mxu0 %v14137_v27 }
 0x536   :  { %13400 = vmatpush3.bf16.msra.mxu0 %v14137_v27 }
 0x58a   :  { %v13151_v37 = vpop.f32.mrb[80].mxu0 }
 0x58b   :  { %v3112_v2 = vadd.f32 %v13151_v37, %v15444_v17  ;;  %v3027_v6 = vpop.f32.mrb[81].mxu0 }
 0x58c   :  { %v3110_v49 = vadd.f32 %v15444_v17, %v3027_v6  ;;  %v13152_v50 = vpop.f32.mrb[82].mxu0 }
 0x58d   :  { %v3113_v52 = vadd.f32 %v13152_v50, %v15444_v17  ;;  %v3030_v53 = vpop.f32.mrb[83].mxu0  ;;  %v3128_v56 = vmax.f32 %v3112_v2, 0.0 }
 0x58e   :  { %v3111_v54 = vadd.f32 %v15444_v17, %v3030_v53  ;;  %v3126_v60 = vmax.f32 %v3110_v49, 0.0 }
 0x58f   :  { %v3129_v57 = vmax.f32 %v3113_v52, 0.0 }
 0x590   :  { %v3127_v61 = vmax.f32 %v3111_v54, 0.0 }
 0x591   :  { %v15450_v1 = vpack.c.bf16 %v3129_v57, %v3128_v56 }
 0x592   :  { %v15452_v3 = vpack.c.bf16 %v3127_v61, %v3126_v60  ;;  %v13155_v7 = vpop.f32.mrb[84].mxu0 }
 0x593   :  { %v3116_v12 = vadd.f32 %v13155_v7, %v15444_v17  ;;  %v3043_v31 = vpop.f32.mrb[85].mxu0 }
 0x594   :  { %v3114_v33 = vadd.f32 %v15444_v17, %v3043_v31  ;;  %v13156_v59 = vpop.f32.mrb[86].mxu0 }
 0x595   :  { %v3117_v16 = vadd.f32 %v13156_v59, %v15444_v17  ;;  %v3046_v18 = vpop.f32.mrb[87].mxu0  ;;  %v3132_v23 = vmax.f32 %v3116_v12, 0.0 }
 0x596   :  { %v3115_v21 = vadd.f32 %v15444_v17, %v3046_v18  ;;  %v3130_v25 = vmax.f32 %v3114_v33, 0.0 }
 0x597   :  { %v3133_v24 = vmax.f32 %v3117_v16, 0.0 }
 0x598   :  { %v3131_v32 = vmax.f32 %v3115_v21, 0.0 }
 0x599   :  { %v15458_v35 = vpack.c.bf16 %v3133_v24, %v3132_v23 }
 0x59a   :  { %v15460_v39 = vpack.c.bf16 %v3131_v32, %v3130_v25  ;;  %v13159_v41 = vpop.f32.mrb[88].mxu0 }
 0x59b   :  { %v3120_v44 = vadd.f32 %v13159_v41, %v15444_v17  ;;  %v3059_v45 = vpop.f32.mrb[89].mxu0 }
 0x59c   :  { %v3118_v26 = vadd.f32 %v15444_v17, %v3059_v45  ;;  %v13160_v43 = vpop.f32.mrb[90].mxu0 }
 0x59d   :  { %v3121_v19 = vadd.f32 %v13160_v43, %v15444_v17  ;;  %v3062_v46 = vpop.f32.mrb[91].mxu0  ;;  %v3136_v58 = vmax.f32 %v3120_v44, 0.0 }
 0x59e   :  { %v3119_v14 = vadd.f32 %v15444_v17, %v3062_v46  ;;  %v3134_v4 = vmax.f32 %v3118_v26, 0.0  ;;  %v15478_v46 = vld [vmem:[#allocation11 + $0x1c] ss:$12 sps:$4 sm:$0xff]  }
 0x59f   :  { %v3137_v36 = vmax.f32 %v3121_v19, 0.0 }
 0x5a0   :  { %v3135_v9 = vmax.f32 %v3119_v14, 0.0 }
 0x5a1   :  { %v15466_v30 = vpack.c.bf16 %v3137_v36, %v3136_v58  ;;  %v15480_v36 = vld [vmem:[#allocation11 + $0x34] ss:$12 sps:$4 sm:$0xff]  }
 0x5a2   :  { %v15468_v5 = vpack.c.bf16 %v3135_v9, %v3134_v4  ;;  %v13163_v22 = vpop.f32.mrb[92].mxu0 }
 0x5a3   :  { %v3124_v40 = vadd.f32 %v13163_v22, %v15444_v17  ;;  %v3075_v47 = vpop.f32.mrb[93].mxu0 }
 0x5a4   :  { %v3122_v62 = vadd.f32 %v15444_v17, %v3075_v47  ;;  %v13164_v20 = vpop.f32.mrb[94].mxu0  ;;  %v15484_v47 = vld [vmem:[#allocation11 + $0x4c] ss:$12 sps:$4 sm:$0xff]  }
 0x5a5   :  { %v3125_v34 = vadd.f32 %v13164_v20, %v15444_v17  ;;  %v3078_v37 = vpop.f32.mrb[95].mxu0  ;;  %v3140_v6 = vmax.f32 %v3124_v40, 0.0 }
 0x5a6   :  { %v3123_v2 = vadd.f32 %v15444_v17, %v3078_v37  ;;  %v3138_v50 = vmax.f32 %v3122_v62, 0.0 }
 0x5a7   :  { %v3141_v49 = vmax.f32 %v3125_v34, 0.0  ;;  %v15486_v34 = vld [vmem:[#allocation11 + $0x64] ss:$12 sps:$4 sm:$0xff]  }
 0x5a8   :  { %v3139_v51 = vmax.f32 %v3123_v2, 0.0 }
 0x5a9   :  { %v15474_v52 = vpack.c.bf16 %v3141_v49, %v3140_v6 }
 0x5aa   :  { %v15476_v53 = vpack.c.bf16 %v3139_v51, %v3138_v50  ;;  %v13279_v54 = vpop.f32.mrb[96].mxu0  ;;  %v15490_v50 = vld [vmem:[#allocation11 + $0x7c] ss:$12 sps:$4 sm:$0xff]  }
 0x5ab   :  { %v3803_v56 = vpop.f32.mrb[97].mxu0 }
 0x5ac   :  { %v13280_v57 = vpop.f32.mrb[98].mxu0 }
 0x5ad   :  { %v3867_v60 = vpack.c.bf16 %v13280_v57, %v13279_v54  ;;  %v3806_v61 = vpop.f32.mrb[99].mxu0 }
 0x5ae   :  { %v3866_v0 = vpack.c.bf16 %v3806_v61, %v3803_v56  ;;  %v15492_v56 = vld [vmem:[#allocation11 + $0x94] ss:$12 sps:$4 sm:$0xff]  }
 0x5b0   :  { %13293 = vmatprep.subr.bf16.mxu1 %v3866_v0 }
 0x5b1   :  { %13294 = vmatpush3.bf16.msra.mxu1 %v3866_v0 }
 0x5b2   :  { %v13283_v7 = vpop.f32.mrb[100].mxu0  ;;  %13295 = vmatprep.subr.bf16.mxu1 %v3867_v60 }
 0x5b3   :  { %v3819_v12 = vpop.f32.mrb[101].mxu0 }
 0x5b4   :  { %v13284_v17 = vpop.f32.mrb[102].mxu0 }
 0x5b5   :  { %v3869_v31 = vpack.c.bf16 %v13284_v17, %v13283_v7  ;;  %v3822_v33 = vpop.f32.mrb[103].mxu0  ;;  %13296 = vmatpush3.bf16.msra.mxu1 %v3867_v60  ;;  %v15496_v7 = vld [vmem:[#allocation11 + $0xac] ss:$12 sps:$4 sm:$0xff]  }
 0x5b6   :  { %v3868_v59 = vpack.c.bf16 %v3822_v33, %v3819_v12 }
 0x5b8   :  { %13297 = vmatprep.subr.bf16.mxu1 %v3868_v59 }
 0x5b9   :  { %13298 = vmatpush3.bf16.msra.mxu1 %v3868_v59  ;;  %v14126_v59 = vld [vmem:[#allocation14 + $0x8] ss:$16 sps:$4 sm:$0xff]  }
 0x5ba   :  { %v13287_v8 = vpop.f32.mrb[104].mxu0  ;;  %13299 = vmatprep.subr.bf16.mxu1 %v3869_v31 }
 0x5bb   :  { %v3835_v16 = vpop.f32.mrb[105].mxu0 }
 0x5bc   :  { %v13288_v18 = vpop.f32.mrb[106].mxu0 }
 0x5bd   :  { %v3871_v21 = vpack.c.bf16 %v13288_v18, %v13287_v8  ;;  %v3838_v23 = vpop.f32.mrb[107].mxu0  ;;  %13300 = vmatpush3.bf16.msra.mxu1 %v3869_v31  ;;  %v15498_v31 = vld [vmem:[#allocation11 + $0x8] ss:$12 sps:$4 sm:$0xff]   ;;  %v15502_v8 = vld [vmem:[#allocation11 + $0x20] ss:$12 sps:$4 sm:$0xff]  }
 0x5be   :  { %v3870_v24 = vpack.c.bf16 %v3838_v23, %v3835_v16  ;;  %v15504_v16 = vld [vmem:[#allocation11 + $0x38] ss:$12 sps:$4 sm:$0xff]   ;;  %v15508_v23 = vld [vmem:[#allocation11 + $0x50] ss:$12 sps:$4 sm:$0xff]  }
 0x5bf   :  { %v14128_v18 = vld [vmem:[#allocation14 + $0x28] ss:$16 sps:$4 sm:$0xff]  }
 0x5c0   :  { %13301 = vmatprep.subr.bf16.mxu1 %v3870_v24 }
 0x5c1   :  { %13302 = vmatpush3.bf16.msra.mxu1 %v3870_v24  ;;  %v15510_v24 = vld [vmem:[#allocation11 + $0x68] ss:$12 sps:$4 sm:$0xff]  }
 0x5c2   :  { %v13291_v25 = vpop.f32.mrb[108].mxu0  ;;  %13303 = vmatprep.subr.bf16.mxu1 %v3871_v21 }
 0x5c3   :  { %v3851_v32 = vpop.f32.mrb[109].mxu0 }
 0x5c4   :  { %v13292_v27 = vpop.f32.mrb[110].mxu0 }
 0x5c5   :  { %v3873_v41 = vpack.c.bf16 %v13292_v27, %v13291_v25  ;;  %v3854_v44 = vpop.f32.mrb[111].mxu0  ;;  %13304 = vmatpush3.bf16.msra.mxu1 %v3871_v21  ;;  %v14130_v21 = vld [vmem:[#allocation14 + $0x48] ss:$16 sps:$4 sm:$0xff]   ;;  %v15514_v27 = vld [vmem:[#allocation11 + $0x80] ss:$12 sps:$4 sm:$0xff]  }
 0x5c6   :  { %v3872_v45 = vpack.c.bf16 %v3854_v44, %v3851_v32  ;;  %v14132_v25 = vld [vmem:[#allocation14 + $0x68] ss:$16 sps:$4 sm:$0xff]  }
 0x5c7   :  { %v14134_v32 = vld [vmem:[#allocation14 + $0x88] ss:$16 sps:$4 sm:$0xff]  }
 0x5c8   :  { %13305 = vmatprep.subr.bf16.mxu1 %v3872_v45  ;;  %v14136_v44 = vld [vmem:[#allocation14 + $0xa8] ss:$16 sps:$4 sm:$0xff]  }
 0x5c9   :  { %13306 = vmatpush3.bf16.msra.mxu1 %v3872_v45  ;;  %v15520_v45 = vld [vmem:[#allocation11 + $0xb0] ss:$12 sps:$4 sm:$0xff]  }
 0x5ca   :  { %13307 = vmatprep.subr.bf16.mxu1 %v3873_v41  ;;  %v13343_v26 = vpop.f32.mrb[112].mxu0 }
 0x5cb   :  { %v4149_v43 = vpop.f32.mrb[113].mxu0 }
 0x5cc   :  { %v13344_v19 = vpop.f32.mrb[114].mxu0 }
 0x5cd   :  { %v4213_v14 = vpack.c.bf16 %v13344_v19, %v13343_v26  ;;  %13308 = vmatpush3.bf16.msra.mxu1 %v3873_v41  ;;  %v4152_v58 = vpop.f32.mrb[115].mxu0  ;;  %v15516_v41 = vld [vmem:[#allocation11 + $0x98] ss:$12 sps:$4 sm:$0xff]  }
 0x5ce   :  { %v4212_v4 = vpack.c.bf16 %v4152_v58, %v4149_v43  ;;  %v14138_v26 = vld [vmem:[#allocation14 + $0xc8] ss:$16 sps:$4 sm:$0xff]   ;;  %v14139_v43 = vld [vmem:[#allocation14 + $0xc4] ss:$16 sps:$4 sm:$0xff]   ;;  %v14142_v58 = vld [vmem:[#allocation14 + $0xc] ss:$16 sps:$4 sm:$0xff]  }
 0x5cf   :  { %13401 = vmatprep.subr.bf16.mxu0 %v14139_v43  ;;  %v14140_v19 = vld [vmem:[#allocation14 + $0xe8] ss:$16 sps:$4 sm:$0xff]  }
 0x5d0   :  { %13310 = vmatmul.mubr.bf16.vlgmr.msra.gmra.mrb[80].mxu1 %v15478_v46  ;;  %13357 = vmatprep.subr.bf16.mxu1 %v4212_v4 }
 0x5d1   :  { %13358 = vmatpush3.bf16.msra.mxu1 %v4212_v4  ;;  %13313 = vmatprep.mubr.bf16.mxu1 %v15480_v36  ;;  %v4399_v4 = vsub.s32 2, %v15175_v10 }
 0x5d2   :  { %v13347_v9 = vpop.f32.mrb[116].mxu0  ;;  %13359 = vmatprep.subr.bf16.mxu1 %v4213_v14  ;;  %13402 = vmatpush3.bf16.msra.mxu0 %v14139_v43  ;;  %v14144_v43 = vld [vmem:[#allocation14 + $0x4c] ss:$16 sps:$4 sm:$0xff]  }
 0x5d3   :  { %v4165_v22 = vpop.f32.mrb[117].mxu0 }
 0x5d4   :  { %v13348_v40 = vpop.f32.mrb[118].mxu0 }
 0x5d5   :  { %v4215_v62 = vpack.c.bf16 %v13348_v40, %v13347_v9  ;;  %v4168_v20 = vpop.f32.mrb[119].mxu0  ;;  %13360 = vmatpush3.bf16.msra.mxu1 %v4213_v14  ;;  %v14141_v14 = vld [vmem:[#allocation14 + $0xe4] ss:$16 sps:$4 sm:$0xff]   ;;  %v15525_v9 = vrot.slane %v15441_v63, %v4399_v4 }
 0x5d6   :  { %v4214_v37 = vpack.c.bf16 %v4168_v20, %v4165_v22  ;;  %13403 = vmatprep.subr.bf16.mxu0 %v14141_v14 }
 0x5d7   :  { %13404 = vmatpush3.bf16.msra.mxu0 %v14141_v14 }
 0x5d8   :  { %13314 = vmatmul.mubr.bf16.gmra.mrb[84].mxu1 %v15484_v47  ;;  %13361 = vmatprep.subr.bf16.mxu1 %v4214_v37 }
 0x5d9   :  { %13362 = vmatpush3.bf16.msra.mxu1 %v4214_v37  ;;  %13317 = vmatprep.mubr.bf16.mxu1 %v15486_v34 }
 0x5da   :  { %v13351_v2 = vpop.f32.mrb[120].mxu0  ;;  %13363 = vmatprep.subr.bf16.mxu1 %v4215_v62 }
 0x5db   :  { %v4181_v6 = vpop.f32.mrb[121].mxu0 }
 0x5dc   :  { %v13352_v49 = vpop.f32.mrb[122].mxu0 }
 0x5dd   :  { %v4217_v51 = vpack.c.bf16 %v13352_v49, %v13351_v2  ;;  %v4184_v54 = vpop.f32.mrb[123].mxu0  ;;  %13364 = vmatpush3.bf16.msra.mxu1 %v4215_v62 }
 0x5de   :  { %v4216_v57 = vpack.c.bf16 %v4184_v54, %v4181_v6 }
 0x5e0   :  { %13318 = vmatmul.mubr.bf16.gmra.mrb[88].mxu1 %v15490_v50  ;;  %13365 = vmatprep.subr.bf16.mxu1 %v4216_v57 }
 0x5e1   :  { %13366 = vmatpush3.bf16.msra.mxu1 %v4216_v57  ;;  %13321 = vmatprep.mubr.bf16.mxu1 %v15492_v56 }
 0x5e2   :  { %v13355_v60 = vpop.f32.mrb[124].mxu0  ;;  %13367 = vmatprep.subr.bf16.mxu1 %v4217_v51 }
 0x5e3   :  { %v4197_v61 = vpop.f32.mrb[125].mxu0 }
 0x5e4   :  { %v13356_v0 = vpop.f32.mrb[126].mxu0 }
 0x5e5   :  { %v4219_v12 = vpack.c.bf16 %v13356_v0, %v13355_v60  ;;  %v4200_v17 = vpop.f32.mrb[127].mxu0  ;;  %13368 = vmatpush3.bf16.msra.mxu1 %v4217_v51 }
 0x5e6   :  { %v4218_v33 = vpack.c.bf16 %v4200_v17, %v4197_v61 }
 0x5e8   :  { %13322 = vmatmul.mubr.bf16.gmra.mrb[92].mxu1 %v15496_v7  ;;  %13369 = vmatprep.subr.bf16.mxu1 %v4218_v33 }
 0x5e9   :  { %13370 = vmatpush3.bf16.msra.mxu1 %v4218_v33  ;;  %13373 = vmatprep.mubr.bf16.mxu1 %v15498_v31  ;;  %v14143_v33 = vld [vmem:[#allocation14 + $0x2c] ss:$16 sps:$4 sm:$0xff]  }
 0x5ea   :  { %13371 = vmatprep.subr.bf16.mxu1 %v4219_v12 }
 0x5ed   :  { %13372 = vmatpush3.bf16.msra.mxu1 %v4219_v12 }
 0x5ee   :  { %13485 = vmatprep.subr.bf16.mxu1 %v14126_v59 }
 0x5f0   :  { %13374 = vmatmul.mubr.bf16.vlgmr.msra.gmra.mrb[80].mxu1 %v15502_v8 }
 0x5f1   :  { %13377 = vmatprep.mubr.bf16.mxu1 %v15504_v16  ;;  %13486 = vmatpush3.bf16.msra.mxu1 %v14126_v59 }
 0x5f2   :  { %13487 = vmatprep.subr.bf16.mxu1 %v14128_v18 }
 0x5f5   :  { %13488 = vmatpush3.bf16.msra.mxu1 %v14128_v18 }
 0x5f6   :  { %13489 = vmatprep.subr.bf16.mxu1 %v14130_v21 }
 0x5f8   :  { %13378 = vmatmul.mubr.bf16.gmra.mrb[84].mxu1 %v15508_v23 }
 0x5f9   :  { %13381 = vmatprep.mubr.bf16.mxu1 %v15510_v24  ;;  %13490 = vmatpush3.bf16.msra.mxu1 %v14130_v21 }
 0x5fa   :  { %13491 = vmatprep.subr.bf16.mxu1 %v14132_v25 }
 0x5fd   :  { %13492 = vmatpush3.bf16.msra.mxu1 %v14132_v25 }
 0x5fe   :  { %13493 = vmatprep.subr.bf16.mxu1 %v14134_v32 }
 0x600   :  { %13382 = vmatmul.mubr.bf16.gmra.mrb[88].mxu1 %v15514_v27 }
 0x601   :  { %13385 = vmatprep.mubr.bf16.mxu1 %v15516_v41  ;;  %13494 = vmatpush3.bf16.msra.mxu1 %v14134_v32 }
 0x602   :  { %13495 = vmatprep.subr.bf16.mxu1 %v14136_v44 }
 0x605   :  { %13496 = vmatpush3.bf16.msra.mxu1 %v14136_v44 }
 0x606   :  { %13497 = vmatprep.subr.bf16.mxu1 %v14138_v26 }
 0x608   :  { %13386 = vmatmul.mubr.bf16.gmra.mrb[92].mxu1 %v15520_v45 }
 0x609   :  { %13498 = vmatpush3.bf16.msra.mxu1 %v14138_v26 }
 0x60a   :  { %13499 = vmatprep.subr.bf16.mxu1 %v14140_v19 }
 0x60d   :  { %13500 = vmatpush3.bf16.msra.mxu1 %v14140_v19 }
 0x60e   :  { %13549 = vmatprep.subr.bf16.mxu1 %v14142_v58 }
 0x6c3   :  { %v13375_v22 = vpop.f32.mrb[80].mxu1 }
 0x6c4   :  { %v4403_v40 = vadd.f32 %v13375_v22, %v15525_v9  ;;  %v4318_v62 = vpop.f32.mrb[81].mxu1 }
 0x6c5   :  { %v4401_v20 = vadd.f32 %v15525_v9, %v4318_v62  ;;  %v13376_v37 = vpop.f32.mrb[82].mxu1 }
 0x6c6   :  { %v4404_v2 = vadd.f32 %v13376_v37, %v15525_v9  ;;  %v4321_v6 = vpop.f32.mrb[83].mxu1  ;;  %v4419_v51 = vmax.f32 %v4403_v40, 0.0  ;;  %v14145_v37 = vld [vmem:[#allocation14 + $0x6c] ss:$16 sps:$4 sm:$0xff]  }
 0x6c7   :  { %v4402_v49 = vadd.f32 %v15525_v9, %v4321_v6  ;;  %v4417_v57 = vmax.f32 %v4401_v20, 0.0 }
 0x6c8   :  { %v4420_v54 = vmax.f32 %v4404_v2, 0.0 }
 0x6c9   :  { %v4418_v60 = vmax.f32 %v4402_v49, 0.0 }
 0x6ca   :  { %v15531_v61 = vpack.c.bf16 %v4420_v54, %v4419_v51 }
 0x6cb   :  { %v15533_v63 = vpack.c.bf16 %v4418_v60, %v4417_v57  ;;  %v13379_v0 = vpop.f32.mrb[84].mxu1  ;;  %v14146_v60 = vld [vmem:[#allocation14 + $0x8c] ss:$16 sps:$4 sm:$0xff]  }
 0x6cc   :  { %v4407_v12 = vadd.f32 %v13379_v0, %v15525_v9  ;;  %v4334_v17 = vpop.f32.mrb[85].mxu1 }
 0x6cd   :  { %v4405_v59 = vadd.f32 %v15525_v9, %v4334_v17  ;;  %v13380_v18 = vpop.f32.mrb[86].mxu1  ;;  %13405 = vmatprep.mubr.bf16.mxu0 %v15533_v63  ;;  %13501 = vmatprep.mubr.bf16.mxu1 %v15533_v63 }
 0x6ce   :  { %v4408_v21 = vadd.f32 %v13380_v18, %v15525_v9  ;;  %v4337_v25 = vpop.f32.mrb[87].mxu1  ;;  %13406 = vmatmul.mubr.bf16.vlgmr.msra.gmra.mrb[128].mxu0 %v15531_v61  ;;  %13502 = vmatmul.mubr.bf16.vlgmr.msra.gmra.mrb[96].mxu1 %v15531_v61  ;;  %v4423_v44 = vmax.f32 %v4407_v12, 0.0 }
 0x6cf   :  { %v4406_v32 = vadd.f32 %v15525_v9, %v4337_v25  ;;  %13550 = vmatpush3.bf16.msra.mxu1 %v14142_v58  ;;  %v4421_v19 = vmax.f32 %v4405_v59, 0.0  ;;  %v14147_v25 = vld [vmem:[#allocation14 + $0xac] ss:$16 sps:$4 sm:$0xff]  }
 0x6d0   :  { %v4424_v26 = vmax.f32 %v4408_v21, 0.0  ;;  %13551 = vmatprep.subr.bf16.mxu1 %v14143_v33 }
 0x6d1   :  { %v4422_v14 = vmax.f32 %v4406_v32, 0.0 }
 0x6d2   :  { %v15543_v4 = vpack.c.bf16 %v4424_v26, %v4423_v44 }
 0x6d3   :  { %v15545_v22 = vpack.c.bf16 %v4422_v14, %v4421_v19  ;;  %13552 = vmatpush3.bf16.msra.mxu1 %v14143_v33  ;;  %v13383_v40 = vpop.f32.mrb[88].mxu1 }
 0x6d4   :  { %v4411_v62 = vadd.f32 %v13383_v40, %v15525_v9  ;;  %v4350_v20 = vpop.f32.mrb[89].mxu1  ;;  %13553 = vmatprep.subr.bf16.mxu1 %v14144_v43 }
 0x6d5   :  { %v4409_v2 = vadd.f32 %v15525_v9, %v4350_v20  ;;  %v13384_v58 = vpop.f32.mrb[90].mxu1  ;;  %13409 = vmatprep.mubr.bf16.mxu0 %v15545_v22  ;;  %13505 = vmatprep.mubr.bf16.mxu1 %v15545_v22 }
 0x6d6   :  { %v4412_v6 = vadd.f32 %v13384_v58, %v15525_v9  ;;  %v4353_v49 = vpop.f32.mrb[91].mxu1  ;;  %13410 = vmatmul.mubr.bf16.gmra.mrb[132].mxu0 %v15543_v4  ;;  %13506 = vmatmul.mubr.bf16.gmra.mrb[100].mxu1 %v15543_v4  ;;  %v4427_v54 = vmax.f32 %v4411_v62, 0.0  ;;  %v14148_v62 = vld [vmem:[#allocation14 + $0xcc] ss:$16 sps:$4 sm:$0xff]  }
 0x6d7   :  { %v4410_v51 = vadd.f32 %v15525_v9, %v4353_v49  ;;  %13554 = vmatpush3.bf16.msra.mxu1 %v14144_v43  ;;  %v4425_v0 = vmax.f32 %v4409_v2, 0.0 }
 0x6d8   :  { %v4428_v57 = vmax.f32 %v4412_v6, 0.0  ;;  %13555 = vmatprep.subr.bf16.mxu1 %v14145_v37  ;;  %v14149_v6 = vld [vmem:[#allocation14 + $0xec] ss:$16 sps:$4 sm:$0xff]  }
 0x6d9   :  { %v4426_v12 = vmax.f32 %v4410_v51, 0.0 }
 0x6da   :  { %v15555_v17 = vpack.c.bf16 %v4428_v57, %v4427_v54 }
 0x6db   :  { %v15557_v33 = vpack.c.bf16 %v4426_v12, %v4425_v0  ;;  %13556 = vmatpush3.bf16.msra.mxu1 %v14145_v37  ;;  %v13387_v59 = vpop.f32.mrb[92].mxu1 }
 0x6dc   :  { %v4415_v18 = vadd.f32 %v13387_v59, %v15525_v9  ;;  %v4366_v21 = vpop.f32.mrb[93].mxu1  ;;  %13557 = vmatprep.subr.bf16.mxu1 %v14146_v60 }
 0x6dd   :  { %v4413_v32 = vadd.f32 %v15525_v9, %v4366_v21  ;;  %v13388_v44 = vpop.f32.mrb[94].mxu1  ;;  %13413 = vmatprep.mubr.bf16.mxu0 %v15557_v33  ;;  %13509 = vmatprep.mubr.bf16.mxu1 %v15557_v33 }
 0x6de   :  { %v4416_v26 = vadd.f32 %v13388_v44, %v15525_v9  ;;  %v4369_v43 = vpop.f32.mrb[95].mxu1  ;;  %13414 = vmatmul.mubr.bf16.gmra.mrb[136].mxu0 %v15555_v17  ;;  %13510 = vmatmul.mubr.bf16.gmra.mrb[104].mxu1 %v15555_v17  ;;  %v4431_v14 = vmax.f32 %v4415_v18, 0.0 }
 0x6df   :  { %v4414_v19 = vadd.f32 %v15525_v9, %v4369_v43  ;;  %13558 = vmatpush3.bf16.msra.mxu1 %v14146_v60  ;;  %v4429_v20 = vmax.f32 %v4413_v32, 0.0  ;;  %v14772_v9 = vmov 0.0  }
 0x6e0   :  { %v4432_v40 = vmax.f32 %v4416_v26, 0.0  ;;  %13559 = vmatprep.subr.bf16.mxu1 %v14147_v25 }
 0x6e1   :  { %v4430_v37 = vmax.f32 %v4414_v19, 0.0 }
 0x6e2   :  { %v15567_v2 = vpack.c.bf16 %v4432_v40, %v4431_v14 }
 0x6e3   :  { %v15569_v58 = vpack.c.bf16 %v4430_v37, %v4429_v20  ;;  %13560 = vmatpush3.bf16.msra.mxu1 %v14147_v25 }
 0x6e4   :  { %13561 = vmatprep.subr.bf16.mxu1 %v14148_v62 }
 0x6e5   :  { %13417 = vmatprep.mubr.bf16.mxu0 %v15569_v58  ;;  %13513 = vmatprep.mubr.bf16.mxu1 %v15569_v58 }
 0x6e6   :  { %13418 = vmatmul.mubr.bf16.gmra.mrb[140].mxu0 %v15567_v2  ;;  %13514 = vmatmul.mubr.bf16.gmra.mrb[108].mxu1 %v15567_v2 }
 0x6e7   :  { %13562 = vmatpush3.bf16.msra.mxu1 %v14148_v62  ;;  %13565 = vmatprep.mubr.bf16.mxu1 %v15533_v63 }
 0x6e8   :  { %13563 = vmatprep.subr.bf16.mxu1 %v14149_v6  ;;  %13437 = vmatprep.mubr.bf16.mxu0 %v15401_v42  ;;  %v5476_v42 = vld [vmem:[%s15976_s9] sm:$0xff] }
 0x6eb   :  { %13564 = vmatpush3.bf16.msra.mxu1 %v14149_v6 }
 0x6ec   :  { %13613 = vmatprep.subr.bf16.mxu1 %v14772_v9 }
 0x6ee   :  { %13566 = vmatmul.mubr.bf16.vlgmr.msra.gmra.mrb[112].mxu1 %v15531_v61 }
 0x6ef   :  { %13614 = vmatpush3.bf16.msra.mxu1 %v15452_v3  ;;  %13569 = vmatprep.mubr.bf16.mxu1 %v15545_v22 }
 0x6f0   :  { %13615 = vmatprep.subr.bf16.mxu1 %v14772_v9 }
 0x6f3   :  { %13616 = vmatpush3.bf16.msra.mxu1 %v15450_v1  ;;  %v5479_v1 = vpack.c.bf16 %v5476_v42, %v5476_v42 }
 0x6f4   :  { %13617 = vmatprep.subr.bf16.mxu1 %v14772_v9 }
 0x6f6   :  { %13570 = vmatmul.mubr.bf16.gmra.mrb[116].mxu1 %v15543_v4 }
 0x6f7   :  { %13618 = vmatpush3.bf16.msra.mxu1 %v15460_v39  ;;  %13573 = vmatprep.mubr.bf16.mxu1 %v15557_v33 }
 0x6f8   :  { %13619 = vmatprep.subr.bf16.mxu1 %v14772_v9 }
 0x6fb   :  { %13620 = vmatpush3.bf16.msra.mxu1 %v15458_v35 }
 0x6fc   :  { %13621 = vmatprep.subr.bf16.mxu1 %v14772_v9 }
 0x6fe   :  { %13574 = vmatmul.mubr.bf16.gmra.mrb[120].mxu1 %v15555_v17 }
 0x6ff   :  { %13622 = vmatpush3.bf16.msra.mxu1 %v15468_v5  ;;  %13577 = vmatprep.mubr.bf16.mxu1 %v15569_v58 }
 0x700   :  { %13623 = vmatprep.subr.bf16.mxu1 %v14772_v9 }
 0x703   :  { %13624 = vmatpush3.bf16.msra.mxu1 %v15466_v30 }
 0x704   :  { %13625 = vmatprep.subr.bf16.mxu1 %v14772_v9 }
 0x706   :  { %13578 = vmatmul.mubr.bf16.gmra.mrb[124].mxu1 %v15567_v2 }
 0x707   :  { %13626 = vmatpush3.bf16.msra.mxu1 %v15476_v53  ;;  %13629 = vmatprep.mubr.msk.bf16.mxu1 %vm14773_vm0, %v14772_v9 }
 0x708   :  { %13627 = vmatprep.subr.bf16.mxu1 %v14772_v9 }
 0x70b   :  { %13628 = vmatpush3.bf16.msra.mxu1 %v15474_v52 }
 0x70c   :  { %13633 = vmatprep.subr.bf16.mxu1 %v14772_v9 }
 0x70e   :  { %13630 = vmatmul.mubr.bf16.vlgmr.msra.gmra.mrb[128].mxu1 %v5479_v1 }
 0x70f   :  { %13649 = vmatprep.mubr.msk.bf16.mxu1 %vm14773_vm0, %v14772_v9 }
 0x7a1   :  { %v13407_v3 = vpop.f32.mrb[128].mxu0  ;;  %v13503_v35 = vpop.f32.mrb[96].mxu1 }
 0x7a2   :  { %v4555_v39 = vpop.f32.mrb[129].mxu0  ;;  %v4966_v30 = vpop.f32.mrb[97].mxu1 }
 0x7a3   :  { %v13408_v5 = vpop.f32.mrb[130].mxu0  ;;  %v13504_v53 = vpop.f32.mrb[98].mxu1 }
 0x7a4   :  { %v4619_v49 = vpack.c.bf16 %v13408_v5, %v13407_v3  ;;  %v15608_v51 = vpack.c.bf16 %v13504_v53, %v13503_v35  ;;  %v4558_v54 = vpop.f32.mrb[131].mxu0  ;;  %v4969_v57 = vpop.f32.mrb[99].mxu1 }
 0x7a5   :  { %v4618_v60 = vpack.c.bf16 %v4558_v54, %v4555_v39  ;;  %v15610_v0 = vpack.c.bf16 %v4969_v57, %v4966_v30 }
 0x7a7   :  { %13421 = vmatprep.subr.bf16.mxu0 %v4618_v60 }
 0x7a8   :  { %13422 = vmatpush3.bf16.msra.mxu0 %v4618_v60 }
 0x7a9   :  { %v13411_v52 = vpop.f32.mrb[132].mxu0  ;;  %13423 = vmatprep.subr.bf16.mxu0 %v4619_v49  ;;  %v13507_v12 = vpop.f32.mrb[100].mxu1 }
 0x7aa   :  { %v4571_v59 = vpop.f32.mrb[133].mxu0  ;;  %v4982_v18 = vpop.f32.mrb[101].mxu1 }
 0x7ab   :  { %v13412_v21 = vpop.f32.mrb[134].mxu0  ;;  %v13508_v25 = vpop.f32.mrb[102].mxu1 }
 0x7ac   :  { %v4621_v32 = vpack.c.bf16 %v13412_v21, %v13411_v52  ;;  %v15612_v44 = vpack.c.bf16 %v13508_v25, %v13507_v12  ;;  %v4574_v26 = vpop.f32.mrb[135].mxu0  ;;  %13424 = vmatpush3.bf16.msra.mxu0 %v4619_v49  ;;  %v4985_v43 = vpop.f32.mrb[103].mxu1 }
 0x7ad   :  { %v4620_v19 = vpack.c.bf16 %v4574_v26, %v4571_v59  ;;  %v15614_v14 = vpack.c.bf16 %v4985_v43, %v4982_v18  ;;  %v14150_v43 = vld [vmem:[#allocation14] ss:$16 sps:$4 sm:$0xff]  }
 0x7af   :  { %13425 = vmatprep.subr.bf16.mxu0 %v4620_v19 }
 0x7b0   :  { %13426 = vmatpush3.bf16.msra.mxu0 %v4620_v19 }
 0x7b1   :  { %v13415_v40 = vpop.f32.mrb[136].mxu0  ;;  %13427 = vmatprep.subr.bf16.mxu0 %v4621_v32  ;;  %v13511_v62 = vpop.f32.mrb[104].mxu1 }
 0x7b2   :  { %v4587_v20 = vpop.f32.mrb[137].mxu0  ;;  %v4998_v37 = vpop.f32.mrb[105].mxu1 }
 0x7b3   :  { %v13416_v6 = vpop.f32.mrb[138].mxu0  ;;  %v13512_v42 = vpop.f32.mrb[106].mxu1 }
 0x7b4   :  { %v4623_v1 = vpack.c.bf16 %v13416_v6, %v13415_v40  ;;  %v15616_v3 = vpack.c.bf16 %v13512_v42, %v13511_v62  ;;  %v4590_v35 = vpop.f32.mrb[139].mxu0  ;;  %13428 = vmatpush3.bf16.msra.mxu0 %v4621_v32  ;;  %v5001_v39 = vpop.f32.mrb[107].mxu1  ;;  %v14151_v6 = vld [vmem:[#allocation14 + $0x20] ss:$16 sps:$4 sm:$0xff]  }
 0x7b5   :  { %v4622_v30 = vpack.c.bf16 %v4590_v35, %v4587_v20  ;;  %v15618_v5 = vpack.c.bf16 %v5001_v39, %v4998_v37 }
 0x7b7   :  { %13429 = vmatprep.subr.bf16.mxu0 %v4622_v30 }
 0x7b8   :  { %13430 = vmatpush3.bf16.msra.mxu0 %v4622_v30 }
 0x7b9   :  { %v13419_v53 = vpop.f32.mrb[140].mxu0  ;;  %13431 = vmatprep.subr.bf16.mxu0 %v4623_v1  ;;  %v13515_v49 = vpop.f32.mrb[108].mxu1 }
 0x7ba   :  { %v4603_v54 = vpop.f32.mrb[141].mxu0  ;;  %v5014_v57 = vpop.f32.mrb[109].mxu1 }
 0x7bb   :  { %v13420_v60 = vpop.f32.mrb[142].mxu0  ;;  %v13516_v52 = vpop.f32.mrb[110].mxu1 }
 0x7bc   :  { %v4625_v12 = vpack.c.bf16 %v13420_v60, %v13419_v53  ;;  %v15620_v59 = vpack.c.bf16 %v13516_v52, %v13515_v49  ;;  %v4606_v18 = vpop.f32.mrb[143].mxu0  ;;  %13432 = vmatpush3.bf16.msra.mxu0 %v4623_v1  ;;  %v5017_v21 = vpop.f32.mrb[111].mxu1  ;;  %v14152_v1 = vld [vmem:[#allocation14 + $0x40] ss:$16 sps:$4 sm:$0xff]  }
 0x7bd   :  { %v4624_v25 = vpack.c.bf16 %v4606_v18, %v4603_v54  ;;  %v15622_v32 = vpack.c.bf16 %v5017_v21, %v5014_v57  ;;  %v14153_v54 = vld [vmem:[#allocation14 + $0x60] ss:$16 sps:$4 sm:$0xff]  }
 0x7be   :  { %v14155_v21 = vld [vmem:[#allocation14 + $0xa0] ss:$16 sps:$4 sm:$0xff]  }
 0x7bf   :  { %13433 = vmatprep.subr.bf16.mxu0 %v4624_v25 }
 0x7c0   :  { %13434 = vmatpush3.bf16.msra.mxu0 %v4624_v25 }
 0x7c1   :  { %13435 = vmatprep.subr.bf16.mxu0 %v4625_v12  ;;  %v13567_v26 = vpop.f32.mrb[112].mxu1 }
 0x7c2   :  { %v5248_v19 = vpop.f32.mrb[113].mxu1 }
 0x7c3   :  { %v13568_v40 = vpop.f32.mrb[114].mxu1 }
 0x7c4   :  { %v15624_v62 = vpack.c.bf16 %v13568_v40, %v13567_v26  ;;  %13436 = vmatpush3.bf16.msra.mxu0 %v4625_v12  ;;  %v5251_v20 = vpop.f32.mrb[115].mxu1 }
 0x7c5   :  { %v15626_v37 = vpack.c.bf16 %v5251_v20, %v5248_v19  ;;  %13453 = vmatprep.subr.bf16.mxu0 %v14150_v43  ;;  %v14157_v20 = vld [vmem:[#allocation14 + $0xe0] ss:$16 sps:$4 sm:$0xff]  }
 0x7c7   :  { %13438 = vmatmul.mubr.bf16.vlgmr.msra.gmra.mrb[144].mxu0 %v15403_v11 }
 0x7c8   :  { %13454 = vmatpush3.bf16.msra.mxu0 %v14150_v43  ;;  %13441 = vmatprep.mubr.bf16.mxu0 %v15408_v13  ;;  %v14154_v13 = vld [vmem:[#allocation14 + $0x80] ss:$16 sps:$4 sm:$0xff]  }
 0x7c9   :  { %v13571_v42 = vpop.f32.mrb[116].mxu1  ;;  %13455 = vmatprep.subr.bf16.mxu0 %v14151_v6 }
 0x7ca   :  { %v5264_v35 = vpop.f32.mrb[117].mxu1 }
 0x7cb   :  { %v13572_v39 = vpop.f32.mrb[118].mxu1 }
 0x7cc   :  { %v15630_v30 = vpack.c.bf16 %v13572_v39, %v13571_v42  ;;  %13456 = vmatpush3.bf16.msra.mxu0 %v14151_v6  ;;  %v5267_v53 = vpop.f32.mrb[119].mxu1  ;;  %v14774_v39 = vmov 0  }
 0x7cd   :  { %v15632_v49 = vpack.c.bf16 %v5267_v53, %v5264_v35  ;;  %13457 = vmatprep.subr.bf16.mxu0 %v14152_v1 }
 0x7cf   :  { %13442 = vmatmul.mubr.bf16.gmra.mrb[148].mxu0 %v15410_v15 }
 0x7d0   :  { %13458 = vmatpush3.bf16.msra.mxu0 %v14152_v1  ;;  %13445 = vmatprep.mubr.bf16.mxu0 %v15414_v55  ;;  %v14156_v55 = vld [vmem:[#allocation14 + $0xc0] ss:$16 sps:$4 sm:$0xff]  }
 0x7d1   :  { %v13575_v11 = vpop.f32.mrb[120].mxu1  ;;  %13459 = vmatprep.subr.bf16.mxu0 %v14153_v54  ;;  %v5582_v1 = vld [vmem:[#allocation16 + $0x90] sm:$0xff] }
 0x7d2   :  { %v5280_v57 = vpop.f32.mrb[121].mxu1 }
 0x7d3   :  { %v13576_v60 = vpop.f32.mrb[122].mxu1 }
 0x7d4   :  { %v15636_v52 = vpack.c.bf16 %v13576_v60, %v13575_v11  ;;  %13460 = vmatpush3.bf16.msra.mxu0 %v14153_v54  ;;  %v5283_v12 = vpop.f32.mrb[123].mxu1  ;;  %v5630_v11 = vld [vmem:[#allocation16 + $0x210] sm:$0xff] }
 0x7d5   :  { %v15638_v18 = vpack.c.bf16 %v5283_v12, %v5280_v57  ;;  %13461 = vmatprep.subr.bf16.mxu0 %v14154_v13  ;;  %v5662_v60 = vld [vmem:[#allocation16 + $0x310] sm:$0xff] }
 0x7d7   :  { %13446 = vmatmul.mubr.bf16.gmra.mrb[152].mxu0 %v15416_v29 }
 0x7d8   :  { %13462 = vmatpush3.bf16.msra.mxu0 %v14154_v13  ;;  %13449 = vmatprep.mubr.bf16.mxu0 %v15420_v28  ;;  %v5646_v13 = vld [vmem:[#allocation16 + $0x290] sm:$0xff] }
 0x7d9   :  { %v13579_v15 = vpop.f32.mrb[124].mxu1  ;;  %13463 = vmatprep.subr.bf16.mxu0 %v14155_v21  ;;  %v11192_v57 = vcombine.high %v5630_v11, %v5646_v13  ;;  %v11191_v12 = vcombine.low %v5630_v11, %v5646_v13  ;;  %v5602_v11 = vld [vmem:[#allocation16 + $0x130] sm:$0xff] }
 0x7da   :  { %v5296_v25 = vpop.f32.mrb[125].mxu1  ;;  %v5618_v13 = vld [vmem:[#allocation16 + $0x1b0] sm:$0xff] }
 0x7db   :  { %v13580_v26 = vpop.f32.mrb[126].mxu1 }
 0x7dc   :  { %v15642_v43 = vpack.c.bf16 %v13580_v26, %v13579_v15  ;;  %13464 = vmatpush3.bf16.msra.mxu0 %v14155_v21  ;;  %v5299_v19 = vpop.f32.mrb[127].mxu1  ;;  %v5694_v21 = vld [vmem:[#allocation16 + $0x410] sm:$0xff] }
 0x7dd   :  { %v5317_v40 = vpack.c.bf16 %v5299_v19, %v5296_v25  ;;  %13465 = vmatprep.subr.bf16.mxu0 %v14156_v55  ;;  %v5710_v15 = vld [vmem:[#allocation16 + $0x490] sm:$0xff] }
 0x7de   :  { %v11256_v25 = vcombine.high %v5694_v21, %v5710_v15  ;;  %v5726_v26 = vld [vmem:[#allocation16 + $0x510] sm:$0xff]  ;;  %v11255_v19 = vcombine.low %v5694_v21, %v5710_v15 }
 0x7df   :  { %13450 = vmatmul.mubr.bf16.gmra.mrb[156].mxu0 %v15422_v38  ;;  %v5564_v38 = vld [vmem:[#allocation16] sm:$0xff]  ;;  %v5666_v21 = vld [vmem:[#allocation16 + $0x330] sm:$0xff] }
 0x7e0   :  { %13466 = vmatpush3.bf16.msra.mxu0 %v14156_v55  ;;  %13469 = vmatprep.mubr.bf16.mxu0 %v15533_v63  ;;  %v5682_v15 = vld [vmem:[#allocation16 + $0x3b0] sm:$0xff] }
 0x7e1   :  { %13467 = vmatprep.subr.bf16.mxu0 %v14157_v20  ;;  %v15646_v29 = vpop.f32.mrb[128].mxu1 }
 0x7e2   :  { %v13631_v28 = vpop.f32.mrb[129].mxu1  ;;  %v15704_v53 = vpack.c.bf16 %v15646_v29, %v15646_v29  ;;  %v5774_v29 = vld [vmem:[#allocation16 + $0x690] sm:$0xff] }
 0x7e3   :  { %v5519_v6 = vpop.f32.mrb[130].mxu1 }
 0x7e4   :  { %13468 = vmatpush3.bf16.msra.mxu0 %v14157_v20  ;;  %v13632_v42 = vpop.f32.mrb[131].mxu1  ;;  %v5758_v20 = vld [vmem:[#allocation16 + $0x610] sm:$0xff] }
 0x7e5   :  { %13517 = vmatprep.subr.bf16.mxu0 %v15610_v0  ;;  %v11320_v6 = vcombine.high %v5758_v20, %v5774_v29  ;;  %v5790_v42 = vld [vmem:[#allocation16 + $0x710] sm:$0xff] }
 0x7e7   :  { %13470 = vmatmul.mubr.bf16.vlgmr.msra.gmra.mrb[144].mxu0 %v15531_v61  ;;  %v5644_v61 = vld [vmem:[#allocation16 + $0x280] sm:$0xff] }
 0x7e8   :  { %13473 = vmatprep.mubr.bf16.mxu0 %v15545_v22  ;;  %13518 = vmatpush3.bf16.msra.mxu0 %v15610_v0 }
 0x7e9   :  { %13519 = vmatprep.subr.bf16.mxu0 %v15608_v51 }
 0x7ec   :  { %13520 = vmatpush3.bf16.msra.mxu0 %v15608_v51  ;;  %v5724_v51 = vld [vmem:[#allocation16 + $0x500] sm:$0xff] }
 0x7ed   :  { %13521 = vmatprep.subr.bf16.mxu0 %v15614_v14 }
 0x7ef   :  { %13474 = vmatmul.mubr.bf16.gmra.mrb[148].mxu0 %v15543_v4  ;;  %v5676_v4 = vld [vmem:[#allocation16 + $0x380] sm:$0xff] }
 0x7f0   :  { %13477 = vmatprep.mubr.bf16.mxu0 %v15557_v33  ;;  %13522 = vmatpush3.bf16.msra.mxu0 %v15614_v14  ;;  %v5692_v33 = vld [vmem:[#allocation16 + $0x400] sm:$0xff] }
 0x7f1   :  { %13523 = vmatprep.subr.bf16.mxu0 %v15612_v44  ;;  %v5756_v14 = vld [vmem:[#allocation16 + $0x600] sm:$0xff] }
 0x7f4   :  { %13524 = vmatpush3.bf16.msra.mxu0 %v15612_v44 }
 0x7f5   :  { %13525 = vmatprep.subr.bf16.mxu0 %v15618_v5 }
 0x7f7   :  { %13478 = vmatmul.mubr.bf16.gmra.mrb[152].mxu0 %v15555_v17 }
 0x7f8   :  { %13481 = vmatprep.mubr.bf16.mxu0 %v15569_v58  ;;  %13526 = vmatpush3.bf16.msra.mxu0 %v15618_v5 }
 0x7f9   :  { %13527 = vmatprep.subr.bf16.mxu0 %v15616_v3 }
 0x7fc   :  { %13528 = vmatpush3.bf16.msra.mxu0 %v15616_v3  ;;  %v5772_v3 = vld [vmem:[#allocation16 + $0x680] sm:$0xff] }
 0x7fd   :  { %13529 = vmatprep.subr.bf16.mxu0 %v15622_v32 }
 0x7ff   :  { %13482 = vmatmul.mubr.bf16.gmra.mrb[156].mxu0 %v15567_v2  ;;  %v5708_v2 = vld [vmem:[#allocation16 + $0x480] sm:$0xff] }
 0x800   :  { %13530 = vmatpush3.bf16.msra.mxu0 %v15622_v32  ;;  %13533 = vmatprep.mubr.bf16.mxu0 %v15434_v48  ;;  %v5580_v48 = vld [vmem:[#allocation16 + $0x80] sm:$0xff]  ;;  %v11251_v0 = vcombine.low %v5692_v33, %v5708_v2  ;;  %v11315_v32 = vcombine.low %v5756_v14, %v5772_v3 }
 0x801   :  { %13531 = vmatprep.subr.bf16.mxu0 %v15620_v59 }
 0x804   :  { %13532 = vmatpush3.bf16.msra.mxu0 %v15620_v59  ;;  %v5788_v59 = vld [vmem:[#allocation16 + $0x700] sm:$0xff] }
 0x805   :  { %13581 = vmatprep.subr.bf16.mxu0 %v15626_v37 }
 0x807   :  { %13534 = vmatmul.mubr.bf16.vlgmr.msra.gmra.mrb[144].mxu0 %v15478_v46  ;;  %v11124_v46 = vcombine.high %v5564_v38, %v5580_v48 }
 0x808   :  { %13582 = vmatpush3.bf16.msra.mxu0 %v15626_v37  ;;  %13537 = vmatprep.mubr.bf16.mxu0 %v15480_v36  ;;  %v5596_v36 = vld [vmem:[#allocation16 + $0x100] sm:$0xff]  ;;  %v5566_v37 = vld [vmem:[#allocation16 + $0x10] sm:$0xff] }
 0x809   :  { %13583 = vmatprep.subr.bf16.mxu0 %v15624_v62 }
 0x80c   :  { %13584 = vmatpush3.bf16.msra.mxu0 %v15624_v62 }
 0x80d   :  { %13585 = vmatprep.subr.bf16.mxu0 %v15632_v49 }
 0x80f   :  { %13538 = vmatmul.mubr.bf16.gmra.mrb[148].mxu0 %v15484_v47  ;;  %v5612_v47 = vld [vmem:[#allocation16 + $0x180] sm:$0xff] }
 0x810   :  { %13586 = vmatpush3.bf16.msra.mxu0 %v15632_v49  ;;  %13541 = vmatprep.mubr.bf16.mxu0 %v15486_v34  ;;  %v11123_v34 = vcombine.low %v5564_v38, %v5580_v48  ;;  %v11155_v63 = vcombine.low %v5596_v36, %v5612_v47  ;;  %v11127_v49 = vcombine.low %v5566_v37, %v5582_v1  ;;  %v5806_v38 = vld [vmem:[#allocation16 + $0x790] sm:$0xff] }
 0x811   :  { %13587 = vmatprep.subr.bf16.mxu0 %v15630_v30  ;;  %v11319_v48 = vcombine.low %v5758_v20, %v5774_v29  ;;  %v5730_v20 = vld [vmem:[#allocation16 + $0x530] sm:$0xff] }
 0x812   :  { %v5746_v29 = vld [vmem:[#allocation16 + $0x5b0] sm:$0xff] }
 0x814   :  { %13588 = vmatpush3.bf16.msra.mxu0 %v15630_v30  ;;  %v5614_v30 = vld [vmem:[#allocation16 + $0x190] sm:$0xff] }
 0x815   :  { %13589 = vmatprep.subr.bf16.mxu0 %v15638_v18 }
 0x817   :  { %13542 = vmatmul.mubr.bf16.gmra.mrb[152].mxu0 %v15490_v50  ;;  %v11156_v50 = vcombine.high %v5596_v36, %v5612_v47  ;;  %v5568_v36 = vld [vmem:[#allocation16 + $0x20] sm:$0xff] }
 0x818   :  { %13590 = vmatpush3.bf16.msra.mxu0 %v15638_v18  ;;  %13545 = vmatprep.mubr.bf16.mxu0 %v15492_v56  ;;  %v5628_v56 = vld [vmem:[#allocation16 + $0x200] sm:$0xff] }
 0x819   :  { %13591 = vmatprep.subr.bf16.mxu0 %v15636_v52  ;;  %v11187_v22 = vcombine.low %v5628_v56, %v5644_v61  ;;  %v5584_v47 = vld [vmem:[#allocation16 + $0xa0] sm:$0xff] }
 0x81c   :  { %13592 = vmatpush3.bf16.msra.mxu0 %v15636_v52  ;;  %v5678_v52 = vld [vmem:[#allocation16 + $0x390] sm:$0xff] }
 0x81d   :  { %13593 = vmatprep.subr.bf16.mxu0 %v5317_v40  ;;  %v11224_v18 = vcombine.high %v5662_v60, %v5678_v52  ;;  %v11223_v55 = vcombine.low %v5662_v60, %v5678_v52  ;;  %v5634_v60 = vld [vmem:[#allocation16 + $0x230] sm:$0xff] }
 0x81e   :  { %v5650_v52 = vld [vmem:[#allocation16 + $0x2b0] sm:$0xff] }
 0x81f   :  { %13546 = vmatmul.mubr.bf16.gmra.mrb[156].mxu0 %v15496_v7  ;;  %v11188_v7 = vcombine.high %v5628_v56, %v5644_v61  ;;  %v5600_v56 = vld [vmem:[#allocation16 + $0x120] sm:$0xff] }
 0x820   :  { %13594 = vmatpush3.bf16.msra.mxu0 %v5317_v40  ;;  %13597 = vmatprep.mubr.bf16.mxu0 %v15498_v31  ;;  %v5660_v31 = vld [vmem:[#allocation16 + $0x300] sm:$0xff] }
 0x821   :  { %13595 = vmatprep.subr.bf16.mxu0 %v15642_v43  ;;  %v11220_v17 = vcombine.high %v5660_v31, %v5676_v4  ;;  %v11219_v58 = vcombine.low %v5660_v31, %v5676_v4  ;;  %v5616_v61 = vld [vmem:[#allocation16 + $0x1a0] sm:$0xff] }
 0x822   :  { %v5632_v31 = vld [vmem:[#allocation16 + $0x220] sm:$0xff] }
 0x823   :  { %v5648_v4 = vld [vmem:[#allocation16 + $0x2a0] sm:$0xff] }
 0x824   :  { %13596 = vmatpush3.bf16.msra.mxu0 %v15642_v43  ;;  %v5742_v43 = vld [vmem:[#allocation16 + $0x590] sm:$0xff] }
 0x825   :  { %7100 = vmatprep.subr.bf16.mxu0 %v11124_v46  ;;  %v11288_v40 = vcombine.high %v5726_v26, %v5742_v43  ;;  %v11287_v28 = vcombine.low %v5726_v26, %v5742_v43  ;;  %v11352_v46 = vcombine.high %v5790_v42, %v5806_v38  ;;  %v5698_v26 = vld [vmem:[#allocation16 + $0x430] sm:$0xff] }
 0x826   :  { %v5714_v43 = vld [vmem:[#allocation16 + $0x4b0] sm:$0xff] }
 0x827   :  { %13598 = vmatmul.mubr.bf16.vlgmr.msra.gmra.mrb[144].mxu0 %v15502_v8  ;;  %v11252_v8 = vcombine.high %v5692_v33, %v5708_v2  ;;  %v5664_v33 = vld [vmem:[#allocation16 + $0x320] sm:$0xff] }
 0x828   :  { %7101 = vmatpush1.bf16.msra.mxu0 %v11123_v34  ;;  %13601 = vmatprep.mubr.bf16.mxu0 %v15504_v16  ;;  %v5740_v16 = vld [vmem:[#allocation16 + $0x580] sm:$0xff]  ;;  %v11351_v34 = vcombine.low %v5790_v42, %v5806_v38  ;;  %v5762_v42 = vld [vmem:[#allocation16 + $0x630] sm:$0xff] }
 0x829   :  { %7102 = vmatprep.subr.bf16.mxu0 %v11156_v50  ;;  %v11284_v44 = vcombine.high %v5724_v51, %v5740_v16  ;;  %v11283_v5 = vcombine.low %v5724_v51, %v5740_v16  ;;  %v11132_v50 = vcombine.high %v5568_v36, %v5584_v47  ;;  %v5680_v2 = vld [vmem:[#allocation16 + $0x3a0] sm:$0xff]  ;;  %v5778_v38 = vld [vmem:[#allocation16 + $0x6b0] sm:$0xff] }
 0x82a   :  { %v5696_v51 = vld [vmem:[#allocation16 + $0x420] sm:$0xff] }
 0x82b   :  { %v5712_v16 = vld [vmem:[#allocation16 + $0x4a0] sm:$0xff] }
 0x82c   :  { %7103 = vmatpush1.bf16.msra.mxu0 %v11155_v63  ;;  %v11131_v63 = vcombine.low %v5568_v36, %v5584_v47  ;;  %v5794_v36 = vld [vmem:[#allocation16 + $0x730] sm:$0xff] }
 0x82d   :  { %7104 = vmatprep.subr.bf16.mxu0 %v11188_v7  ;;  %v11164_v7 = vcombine.high %v5600_v56, %v5616_v61  ;;  %v5810_v47 = vld [vmem:[#allocation16 + $0x7b0] sm:$0xff] }
 0x82f   :  { %13602 = vmatmul.mubr.bf16.gmra.mrb[148].mxu0 %v15508_v23  ;;  %v11316_v23 = vcombine.high %v5756_v14, %v5772_v3  ;;  %v5728_v14 = vld [vmem:[#allocation16 + $0x520] sm:$0xff] }
 0x830   :  { %7105 = vmatpush1.bf16.msra.mxu0 %v11187_v22  ;;  %13605 = vmatprep.mubr.bf16.mxu0 %v15510_v24  ;;  %v5804_v24 = vld [vmem:[#allocation16 + $0x780] sm:$0xff]  ;;  %v11163_v22 = vcombine.low %v5600_v56, %v5616_v61 }
 0x831   :  { %7106 = vmatprep.subr.bf16.mxu0 %v11220_v17  ;;  %v11348_v62 = vcombine.high %v5788_v59, %v5804_v24  ;;  %v11347_v35 = vcombine.low %v5788_v59, %v5804_v24  ;;  %v11196_v17 = vcombine.high %v5632_v31, %v5648_v4  ;;  %v5744_v3 = vld [vmem:[#allocation16 + $0x5a0] sm:$0xff] }
 0x832   :  { %v5760_v59 = vld [vmem:[#allocation16 + $0x620] sm:$0xff] }
 0x833   :  { %v5776_v24 = vld [vmem:[#allocation16 + $0x6a0] sm:$0xff] }
 0x834   :  { %7107 = vmatpush1.bf16.msra.mxu0 %v11219_v58  ;;  %v11195_v58 = vcombine.low %v5632_v31, %v5648_v4  ;;  %v5572_v56 = vld [vmem:[#allocation16 + $0x40] sm:$0xff] }
 0x835   :  { %7108 = vmatprep.subr.bf16.mxu0 %v11252_v8  ;;  %v11228_v8 = vcombine.high %v5664_v33, %v5680_v2  ;;  %v5588_v61 = vld [vmem:[#allocation16 + $0xc0] sm:$0xff] }
 0x836   :  { %v5604_v31 = vld [vmem:[#allocation16 + $0x140] sm:$0xff] }
 0x837   :  { %13606 = vmatmul.mubr.bf16.gmra.mrb[152].mxu0 %v15514_v27  ;;  %v11128_v27 = vcombine.high %v5566_v37, %v5582_v1  ;;  %v5792_v37 = vld [vmem:[#allocation16 + $0x720] sm:$0xff] }
 0x838   :  { %7109 = vmatpush1.bf16.msra.mxu0 %v11251_v0  ;;  %13609 = vmatprep.mubr.bf16.mxu0 %v15516_v41  ;;  %v5598_v41 = vld [vmem:[#allocation16 + $0x110] sm:$0xff]  ;;  %v11227_v0 = vcombine.low %v5664_v33, %v5680_v2  ;;  %v5808_v1 = vld [vmem:[#allocation16 + $0x7a0] sm:$0xff] }
 0x839   :  { %7110 = vmatprep.subr.bf16.mxu0 %v11284_v44  ;;  %v11160_v54 = vcombine.high %v5598_v41, %v5614_v30  ;;  %v11260_v44 = vcombine.high %v5696_v51, %v5712_v16  ;;  %v5620_v4 = vld [vmem:[#allocation16 + $0x1c0] sm:$0xff] }
 0x83a   :  { %v5636_v33 = vld [vmem:[#allocation16 + $0x240] sm:$0xff] }
 0x83b   :  { %v5652_v2 = vld [vmem:[#allocation16 + $0x2c0] sm:$0xff] }
 0x83c   :  { %7111 = vmatpush1.bf16.msra.mxu0 %v11283_v5  ;;  %v11259_v5 = vcombine.low %v5696_v51, %v5712_v16  ;;  %v5668_v51 = vld [vmem:[#allocation16 + $0x340] sm:$0xff] }
 0x83d   :  { %7112 = vmatprep.subr.bf16.mxu0 %v11316_v23  ;;  %v11292_v23 = vcombine.high %v5728_v14, %v5744_v3  ;;  %v5684_v16 = vld [vmem:[#allocation16 + $0x3c0] sm:$0xff] }
 0x83f   :  { %13610 = vmatmul.mubr.bf16.gmra.mrb[156].mxu0 %v15520_v45  ;;  %v11159_v45 = vcombine.low %v5598_v41, %v5614_v30  ;;  %v5570_v41 = vld [vmem:[#allocation16 + $0x30] sm:$0xff] }
 0x840   :  { %7113 = vmatpush1.bf16.msra.mxu0 %v11315_v32  ;;  %7132 = vmatprep.mubr.bf16.mxu0 %v14774_v39  ;;  %v11291_v32 = vcombine.low %v5728_v14, %v5744_v3  ;;  %v5586_v30 = vld [vmem:[#allocation16 + $0xb0] sm:$0xff]  ;;  %v5700_v14 = vld [vmem:[#allocation16 + $0x440] sm:$0xff] }
 0x841   :  { %7114 = vmatprep.subr.bf16.mxu0 %v11348_v62  ;;  %v11324_v62 = vcombine.high %v5760_v59, %v5776_v24  ;;  %v5716_v3 = vld [vmem:[#allocation16 + $0x4c0] sm:$0xff] }
 0x844   :  { %7115 = vmatpush1.bf16.msra.mxu0 %v11347_v35  ;;  %v11323_v35 = vcombine.low %v5760_v59, %v5776_v24  ;;  %v5732_v59 = vld [vmem:[#allocation16 + $0x540] sm:$0xff] }
 0x845   :  { %7182 = vmatprep.subr.bf16.mxu0 %v11128_v27  ;;  %v11356_v27 = vcombine.high %v5792_v37, %v5808_v1  ;;  %v5748_v24 = vld [vmem:[#allocation16 + $0x5c0] sm:$0xff] }
 0x847   :  { %7133 = vmatmul.mubr.bf16.vlgmr.msra.gmra.mrb[160].mxu0 %v15704_v53 }
 0x848   :  { %7183 = vmatpush1.bf16.msra.mxu0 %v11127_v49  ;;  %7214 = vmatprep.mubr.bf16.mxu0 %v14774_v39  ;;  %v11355_v49 = vcombine.low %v5792_v37, %v5808_v1  ;;  %v5764_v37 = vld [vmem:[#allocation16 + $0x640] sm:$0xff] }
 0x849   :  { %7184 = vmatprep.subr.bf16.mxu0 %v11160_v54  ;;  %v11136_v54 = vcombine.high %v5570_v41, %v5586_v30  ;;  %v5780_v1 = vld [vmem:[#allocation16 + $0x6c0] sm:$0xff] }
 0x84c   :  { %7185 = vmatpush1.bf16.msra.mxu0 %v11159_v45  ;;  %v11135_v45 = vcombine.low %v5570_v41, %v5586_v30  ;;  %v5796_v41 = vld [vmem:[#allocation16 + $0x740] sm:$0xff] }
 0x84d   :  { %7186 = vmatprep.subr.bf16.mxu0 %v11192_v57  ;;  %v11168_v57 = vcombine.high %v5602_v11, %v5618_v13  ;;  %v5812_v30 = vld [vmem:[#allocation16 + $0x7c0] sm:$0xff] }
 0x850   :  { %7187 = vmatpush1.bf16.msra.mxu0 %v11191_v12  ;;  %v11167_v12 = vcombine.low %v5602_v11, %v5618_v13  ;;  %v5574_v11 = vld [vmem:[#allocation16 + $0x50] sm:$0xff] }
 0x851   :  { %7188 = vmatprep.subr.bf16.mxu0 %v11224_v18  ;;  %v11200_v18 = vcombine.high %v5634_v60, %v5650_v52  ;;  %v5590_v13 = vld [vmem:[#allocation16 + $0xd0] sm:$0xff] }
 0x854   :  { %7189 = vmatpush1.bf16.msra.mxu0 %v11223_v55  ;;  %v11199_v55 = vcombine.low %v5634_v60, %v5650_v52  ;;  %v5606_v60 = vld [vmem:[#allocation16 + $0x150] sm:$0xff] }
 0x855   :  { %7190 = vmatprep.subr.bf16.mxu0 %v11256_v25  ;;  %v11232_v25 = vcombine.high %v5666_v21, %v5682_v15  ;;  %v5622_v52 = vld [vmem:[#allocation16 + $0x1d0] sm:$0xff] }
 0x858   :  { %7191 = vmatpush1.bf16.msra.mxu0 %v11255_v19  ;;  %v11231_v19 = vcombine.low %v5666_v21, %v5682_v15  ;;  %v5638_v21 = vld [vmem:[#allocation16 + $0x250] sm:$0xff] }
 0x859   :  { %7192 = vmatprep.subr.bf16.mxu0 %v11288_v40  ;;  %v11264_v40 = vcombine.high %v5698_v26, %v5714_v43  ;;  %v5654_v15 = vld [vmem:[#allocation16 + $0x2d0] sm:$0xff] }
 0x85c   :  { %7193 = vmatpush1.bf16.msra.mxu0 %v11287_v28  ;;  %v11263_v28 = vcombine.low %v5698_v26, %v5714_v43  ;;  %v5670_v26 = vld [vmem:[#allocation16 + $0x350] sm:$0xff] }
 0x85d   :  { %7194 = vmatprep.subr.bf16.mxu0 %v11320_v6  ;;  %v11296_v6 = vcombine.high %v5730_v20, %v5746_v29  ;;  %v5686_v43 = vld [vmem:[#allocation16 + $0x3d0] sm:$0xff] }
 0x860   :  { %7195 = vmatpush1.bf16.msra.mxu0 %v11319_v48  ;;  %v11295_v48 = vcombine.low %v5730_v20, %v5746_v29  ;;  %v5702_v20 = vld [vmem:[#allocation16 + $0x450] sm:$0xff] }
 0x861   :  { %7196 = vmatprep.subr.bf16.mxu0 %v11352_v46  ;;  %v11328_v46 = vcombine.high %v5762_v42, %v5778_v38  ;;  %v5718_v29 = vld [vmem:[#allocation16 + $0x4d0] sm:$0xff] }
 0x864   :  { %7197 = vmatpush1.bf16.msra.mxu0 %v11351_v34  ;;  %v11327_v34 = vcombine.low %v5762_v42, %v5778_v38  ;;  %v5734_v42 = vld [vmem:[#allocation16 + $0x550] sm:$0xff] }
 0x865   :  { %7264 = vmatprep.subr.bf16.mxu0 %v11132_v50  ;;  %v11360_v50 = vcombine.high %v5794_v36, %v5810_v47  ;;  %v5750_v38 = vld [vmem:[#allocation16 + $0x5d0] sm:$0xff] }
 0x867   :  { %7215 = vmatmul.mubr.bf16.vlgmr.msra.gmra.mrb[164].mxu0 %v15704_v53 }
 0x868   :  { %7265 = vmatpush1.bf16.msra.mxu0 %v11131_v63  ;;  %7296 = vmatprep.mubr.bf16.mxu0 %v14774_v39  ;;  %v11359_v63 = vcombine.low %v5794_v36, %v5810_v47  ;;  %v5766_v36 = vld [vmem:[#allocation16 + $0x650] sm:$0xff] }
 0x869   :  { %7266 = vmatprep.subr.bf16.mxu0 %v11164_v7  ;;  %v11140_v7 = vcombine.high %v5572_v56, %v5588_v61  ;;  %v5782_v47 = vld [vmem:[#allocation16 + $0x6d0] sm:$0xff] }
 0x86c   :  { %7267 = vmatpush1.bf16.msra.mxu0 %v11163_v22  ;;  %v11139_v22 = vcombine.low %v5572_v56, %v5588_v61  ;;  %v5798_v56 = vld [vmem:[#allocation16 + $0x750] sm:$0xff] }
 0x86d   :  { %7268 = vmatprep.subr.bf16.mxu0 %v11196_v17  ;;  %v11172_v17 = vcombine.high %v5604_v31, %v5620_v4  ;;  %v5814_v61 = vld [vmem:[#allocation16 + $0x7d0] sm:$0xff] }
 0x870   :  { %7269 = vmatpush1.bf16.msra.mxu0 %v11195_v58  ;;  %v11171_v58 = vcombine.low %v5604_v31, %v5620_v4  ;;  %v5576_v31 = vld [vmem:[#allocation16 + $0x60] sm:$0xff] }
 0x871   :  { %7270 = vmatprep.subr.bf16.mxu0 %v11228_v8  ;;  %v11204_v8 = vcombine.high %v5636_v33, %v5652_v2  ;;  %v5592_v4 = vld [vmem:[#allocation16 + $0xe0] sm:$0xff] }
 0x874   :  { %7271 = vmatpush1.bf16.msra.mxu0 %v11227_v0  ;;  %v11203_v0 = vcombine.low %v5636_v33, %v5652_v2  ;;  %v5608_v33 = vld [vmem:[#allocation16 + $0x160] sm:$0xff] }
 0x875   :  { %7272 = vmatprep.subr.bf16.mxu0 %v11260_v44  ;;  %v11236_v44 = vcombine.high %v5668_v51, %v5684_v16  ;;  %v5624_v2 = vld [vmem:[#allocation16 + $0x1e0] sm:$0xff] }
 0x878   :  { %7273 = vmatpush1.bf16.msra.mxu0 %v11259_v5  ;;  %v11235_v5 = vcombine.low %v5668_v51, %v5684_v16  ;;  %v5640_v51 = vld [vmem:[#allocation16 + $0x260] sm:$0xff] }
 0x879   :  { %7274 = vmatprep.subr.bf16.mxu0 %v11292_v23  ;;  %v11268_v23 = vcombine.high %v5700_v14, %v5716_v3  ;;  %v5656_v16 = vld [vmem:[#allocation16 + $0x2e0] sm:$0xff] }
 0x87c   :  { %7275 = vmatpush1.bf16.msra.mxu0 %v11291_v32  ;;  %v11267_v32 = vcombine.low %v5700_v14, %v5716_v3  ;;  %v5672_v14 = vld [vmem:[#allocation16 + $0x360] sm:$0xff] }
 0x87d   :  { %7276 = vmatprep.subr.bf16.mxu0 %v11324_v62  ;;  %v11300_v62 = vcombine.high %v5732_v59, %v5748_v24  ;;  %v5688_v3 = vld [vmem:[#allocation16 + $0x3e0] sm:$0xff] }
 0x880   :  { %7277 = vmatpush1.bf16.msra.mxu0 %v11323_v35  ;;  %v11299_v35 = vcombine.low %v5732_v59, %v5748_v24  ;;  %v5704_v59 = vld [vmem:[#allocation16 + $0x460] sm:$0xff] }
 0x881   :  { %7278 = vmatprep.subr.bf16.mxu0 %v11356_v27  ;;  %v11332_v27 = vcombine.high %v5764_v37, %v5780_v1  ;;  %v5720_v24 = vld [vmem:[#allocation16 + $0x4e0] sm:$0xff] }
 0x884   :  { %7279 = vmatpush1.bf16.msra.mxu0 %v11355_v49  ;;  %v11331_v49 = vcombine.low %v5764_v37, %v5780_v1  ;;  %v5736_v37 = vld [vmem:[#allocation16 + $0x560] sm:$0xff] }
 0x885   :  { %7346 = vmatprep.subr.bf16.mxu0 %v11136_v54  ;;  %v11364_v54 = vcombine.high %v5796_v41, %v5812_v30  ;;  %v5752_v1 = vld [vmem:[#allocation16 + $0x5e0] sm:$0xff] }
 0x887   :  { %7297 = vmatmul.mubr.bf16.vlgmr.msra.gmra.mrb[168].mxu0 %v15704_v53 }
 0x888   :  { %7347 = vmatpush1.bf16.msra.mxu0 %v11135_v45  ;;  %7378 = vmatprep.mubr.bf16.mxu0 %v14774_v39  ;;  %v11363_v45 = vcombine.low %v5796_v41, %v5812_v30  ;;  %v11308_v41 = vcombine.high %v5736_v37, %v5752_v1  ;;  %v5768_v30 = vld [vmem:[#allocation16 + $0x660] sm:$0xff] }
 0x889   :  { %7348 = vmatprep.subr.bf16.mxu0 %v11168_v57  ;;  %v11144_v57 = vcombine.high %v5574_v11, %v5590_v13 }
 0x88c   :  { %7349 = vmatpush1.bf16.msra.mxu0 %v11167_v12  ;;  %v11143_v12 = vcombine.low %v5574_v11, %v5590_v13  ;;  %v11307_v13 = vcombine.low %v5736_v37, %v5752_v1 }
 0x88d   :  { %7350 = vmatprep.subr.bf16.mxu0 %v11200_v18  ;;  %v11176_v18 = vcombine.high %v5606_v60, %v5622_v52 }
 0x890   :  { %7351 = vmatpush1.bf16.msra.mxu0 %v11199_v55  ;;  %v11175_v55 = vcombine.low %v5606_v60, %v5622_v52  ;;  %v5800_v60 = vld [vmem:[#allocation16 + $0x760] sm:$0xff] }
 0x891   :  { %7352 = vmatprep.subr.bf16.mxu0 %v11232_v25  ;;  %v11208_v25 = vcombine.high %v5638_v21, %v5654_v15  ;;  %v5816_v52 = vld [vmem:[#allocation16 + $0x7e0] sm:$0xff] }
 0x894   :  { %7353 = vmatpush1.bf16.msra.mxu0 %v11231_v19  ;;  %v11207_v19 = vcombine.low %v5638_v21, %v5654_v15 }
 0x895   :  { %7354 = vmatprep.subr.bf16.mxu0 %v11264_v40  ;;  %v11240_v40 = vcombine.high %v5670_v26, %v5686_v43 }
 0x898   :  { %7355 = vmatpush1.bf16.msra.mxu0 %v11263_v28  ;;  %v11239_v28 = vcombine.low %v5670_v26, %v5686_v43  ;;  %v11372_v26 = vcombine.high %v5800_v60, %v5816_v52 }
 0x899   :  { %7356 = vmatprep.subr.bf16.mxu0 %v11296_v6  ;;  %v11272_v6 = vcombine.high %v5702_v20, %v5718_v29 }
 0x89c   :  { %7357 = vmatpush1.bf16.msra.mxu0 %v11295_v48  ;;  %v11271_v48 = vcombine.low %v5702_v20, %v5718_v29 }
 0x89d   :  { %7358 = vmatprep.subr.bf16.mxu0 %v11328_v46  ;;  %v11304_v46 = vcombine.high %v5734_v42, %v5750_v38 }
 0x8a0   :  { %7359 = vmatpush1.bf16.msra.mxu0 %v11327_v34  ;;  %v11303_v34 = vcombine.low %v5734_v42, %v5750_v38  ;;  %v11371_v42 = vcombine.low %v5800_v60, %v5816_v52 }
 0x8a1   :  { %7360 = vmatprep.subr.bf16.mxu0 %v11360_v50  ;;  %v11336_v50 = vcombine.high %v5766_v36, %v5782_v47 }
 0x8a4   :  { %7361 = vmatpush1.bf16.msra.mxu0 %v11359_v63  ;;  %v11335_v63 = vcombine.low %v5766_v36, %v5782_v47  ;;  %v5610_v47 = vld [vmem:[#allocation16 + $0x170] sm:$0xff] }
 0x8a5   :  { %7428 = vmatprep.subr.bf16.mxu0 %v11140_v7  ;;  %v11368_v7 = vcombine.high %v5798_v56, %v5814_v61 }
 0x8a7   :  { %7379 = vmatmul.mubr.bf16.vlgmr.msra.gmra.mrb[172].mxu0 %v15704_v53 }
 0x8a8   :  { %7429 = vmatpush1.bf16.msra.mxu0 %v11139_v22  ;;  %7460 = vmatprep.mubr.bf16.mxu0 %v14774_v39  ;;  %v11367_v22 = vcombine.low %v5798_v56, %v5814_v61 }
 0x8a9   :  { %7430 = vmatprep.subr.bf16.mxu0 %v11172_v17  ;;  %v11148_v17 = vcombine.high %v5576_v31, %v5592_v4 }
 0x8ac   :  { %7431 = vmatpush1.bf16.msra.mxu0 %v11171_v58  ;;  %v11147_v58 = vcombine.low %v5576_v31, %v5592_v4 }
 0x8ad   :  { %7432 = vmatprep.subr.bf16.mxu0 %v11204_v8  ;;  %v11180_v8 = vcombine.high %v5608_v33, %v5624_v2 }
 0x8b0   :  { %7433 = vmatpush1.bf16.msra.mxu0 %v11203_v0  ;;  %v11179_v0 = vcombine.low %v5608_v33, %v5624_v2  ;;  %v5642_v33 = vld [vmem:[#allocation16 + $0x270] sm:$0xff] }
 0x8b1   :  { %7434 = vmatprep.subr.bf16.mxu0 %v11236_v44  ;;  %v11212_v44 = vcombine.high %v5640_v51, %v5656_v16  ;;  %v5658_v2 = vld [vmem:[#allocation16 + $0x2f0] sm:$0xff] }
 0x8b2   :  { %v11215_v1 = vcombine.low %v5642_v33, %v5658_v2 }
 0x8b4   :  { %7435 = vmatpush1.bf16.msra.mxu0 %v11235_v5  ;;  %v11211_v5 = vcombine.low %v5640_v51, %v5656_v16 }
 0x8b5   :  { %7436 = vmatprep.subr.bf16.mxu0 %v11268_v23  ;;  %v11244_v23 = vcombine.high %v5672_v14, %v5688_v3 }
 0x8b8   :  { %7437 = vmatpush1.bf16.msra.mxu0 %v11267_v32  ;;  %v11243_v32 = vcombine.low %v5672_v14, %v5688_v3  ;;  %v11216_v14 = vcombine.high %v5642_v33, %v5658_v2  ;;  %v5597_v2 = vld [vmem:[#allocation16 + $0x108] sm:$0xff] }
 0x8b9   :  { %7438 = vmatprep.subr.bf16.mxu0 %v11300_v62  ;;  %v11276_v62 = vcombine.high %v5704_v59, %v5720_v24 }
 0x8bc   :  { %7439 = vmatpush1.bf16.msra.mxu0 %v11299_v35  ;;  %v5434_v35 = vsub.s32 3, %v15175_v10 }
 0x8bd   :  { %7440 = vmatprep.subr.bf16.mxu0 %v11332_v27  ;;  %v11275_v27 = vcombine.low %v5704_v59, %v5720_v24  ;;  %v5690_v59 = vld [vmem:[#allocation16 + $0x3f0] sm:$0xff] }
 0x8c0   :  { %7441 = vmatpush1.bf16.msra.mxu0 %v11331_v49  ;;  %v5784_v49 = vld [vmem:[#allocation16 + $0x6e0] sm:$0xff] }
 0x8c1   :  { %7442 = vmatprep.subr.bf16.mxu0 %v11364_v54  ;;  %v14472_v54 = vld [vmem:[%s15975_s8] sm:$0xf]  ;;  %v11339_v15 = vcombine.low %v5768_v30, %v5784_v49 }
 0x8c2   :  { %v15722_v11 = vrot.slane %v14472_v54, %v5434_v35  ;;  %v5722_v54 = vld [vmem:[#allocation16 + $0x4f0] sm:$0xff] }
 0x8c4   :  { %7443 = vmatpush1.bf16.msra.mxu0 %v11363_v45  ;;  %v11340_v45 = vcombine.high %v5768_v30, %v5784_v49  ;;  %v5706_v49 = vld [vmem:[#allocation16 + $0x470] sm:$0xff] }
 0x8c5   :  { %7510 = vmatprep.subr.bf16.mxu0 %v11144_v57 }
 0x8c7   :  { %7461 = vmatmul.mubr.bf16.vlgmr.msra.gmra.mrb[176].mxu0 %v15704_v53 }
 0x8c8   :  { %7511 = vmatpush1.bf16.msra.mxu0 %v11143_v12  ;;  %7542 = vmatprep.mubr.bf16.mxu0 %v14774_v39 }
 0x8c9   :  { %7512 = vmatprep.subr.bf16.mxu0 %v11176_v18 }
 0x8cc   :  { %7513 = vmatpush1.bf16.msra.mxu0 %v11175_v55 }
 0x8cd   :  { %7514 = vmatprep.subr.bf16.mxu0 %v11208_v25 }
 0x8d0   :  { %7515 = vmatpush1.bf16.msra.mxu0 %v11207_v19  ;;  %v5578_v19 = vld [vmem:[#allocation16 + $0x70] sm:$0xff] }
 0x8d1   :  { %7516 = vmatprep.subr.bf16.mxu0 %v11240_v40  ;;  %v5594_v40 = vld [vmem:[#allocation16 + $0xf0] sm:$0xff] }
 0x8d4   :  { %7517 = vmatpush1.bf16.msra.mxu0 %v11239_v28 }
 0x8d5   :  { %7518 = vmatprep.subr.bf16.mxu0 %v11272_v6 }
 0x8d8   :  { %7519 = vmatpush1.bf16.msra.mxu0 %v11271_v48  ;;  %v11152_v48 = vcombine.high %v5578_v19, %v5594_v40 }
 0x8d9   :  { %7520 = vmatprep.subr.bf16.mxu0 %v11304_v46 }
 0x8dc   :  { %7521 = vmatpush1.bf16.msra.mxu0 %v11303_v34  ;;  %v5626_v34 = vld [vmem:[#allocation16 + $0x1f0] sm:$0xff] }
 0x8dd   :  { %7522 = vmatprep.subr.bf16.mxu0 %v11336_v50 }
 0x8e0   :  { %7523 = vmatpush1.bf16.msra.mxu0 %v11335_v63 }
 0x8e1   :  { %7524 = vmatprep.subr.bf16.mxu0 %v11368_v7  ;;  %v11151_v7 = vcombine.low %v5578_v19, %v5594_v40  ;;  %v11279_v40 = vcombine.low %v5706_v49, %v5722_v54 }
 0x8e4   :  { %7525 = vmatpush1.bf16.msra.mxu0 %v11367_v22  ;;  %v11184_v22 = vcombine.high %v5610_v47, %v5626_v34 }
 0x8e5   :  { %7592 = vmatprep.subr.bf16.mxu0 %v11148_v17 }
 0x8e7   :  { %7543 = vmatmul.mubr.bf16.vlgmr.msra.gmra.mrb[180].mxu0 %v15704_v53 }
 0x8e8   :  { %7593 = vmatpush1.bf16.msra.mxu0 %v11147_v58  ;;  %7624 = vmatprep.mubr.bf16.mxu0 %v14774_v39 }
 0x8e9   :  { %7594 = vmatprep.subr.bf16.mxu0 %v11180_v8 }
 0x8ec   :  { %7595 = vmatpush1.bf16.msra.mxu0 %v11179_v0  ;;  %v11183_v0 = vcombine.low %v5610_v47, %v5626_v34 }
 0x8ed   :  { %7596 = vmatprep.subr.bf16.mxu0 %v11212_v44 }
 0x8f0   :  { %7597 = vmatpush1.bf16.msra.mxu0 %v11211_v5 }
 0x8f1   :  { %7598 = vmatprep.subr.bf16.mxu0 %v11244_v23  ;;  %v5674_v23 = vld [vmem:[#allocation16 + $0x370] sm:$0xff] }
 0x8f2   :  { %v11247_v52 = vcombine.low %v5674_v23, %v5690_v59 }
 0x8f4   :  { %7599 = vmatpush1.bf16.msra.mxu0 %v11243_v32 }
 0x8f5   :  { %7600 = vmatprep.subr.bf16.mxu0 %v11276_v62 }
 0x8f8   :  { %7601 = vmatpush1.bf16.msra.mxu0 %v11275_v27 }
 0x8f9   :  { %7602 = vmatprep.subr.bf16.mxu0 %v11308_v41  ;;  %v11248_v41 = vcombine.high %v5674_v23, %v5690_v59  ;;  %v5661_v23 = vld [vmem:[#allocation16 + $0x308] sm:$0xff] }
 0x8fa   :  { %v13599_v57 = vpop.f32.mrb[144].mxu0  ;;  %v5677_v59 = vld [vmem:[#allocation16 + $0x388] sm:$0xff] }
 0x8fb   :  { %v5438_v10 = vadd.f32 %v13599_v57, %v15722_v11  ;;  %v5353_v12 = vpop.f32.mrb[145].mxu0 }
 0x8fc   :  { %v5436_v18 = vadd.f32 %v15722_v11, %v5353_v12  ;;  %v13600_v21 = vpop.f32.mrb[146].mxu0  ;;  %7603 = vmatpush1.bf16.msra.mxu0 %v11307_v13  ;;  %v11280_v12 = vcombine.high %v5706_v49, %v5722_v54  ;;  %v5757_v54 = vld [vmem:[#allocation16 + $0x608] sm:$0xff] }
 0x8fd   :  { %v5439_v55 = vadd.f32 %v13600_v21, %v15722_v11  ;;  %v5356_v25 = vpop.f32.mrb[147].mxu0  ;;  %7604 = vmatprep.subr.bf16.mxu0 %v11340_v45  ;;  %v5454_v20 = vmax.f32 %v5438_v10, 0.0 }
 0x8fe   :  { %v5437_v43 = vadd.f32 %v15722_v11, %v5356_v25  ;;  %v5452_v28 = vmax.f32 %v5436_v18, 0.0 }
 0x8ff   :  { %v5455_v29 = vmax.f32 %v5439_v55, 0.0  ;;  %v5754_v55 = vld [vmem:[#allocation16 + $0x5f0] sm:$0xff] }
 0x900   :  { %v5453_v6 = vmax.f32 %v5437_v43, 0.0  ;;  %7605 = vmatpush1.bf16.msra.mxu0 %v11339_v15  ;;  %v5738_v15 = vld [vmem:[#allocation16 + $0x570] sm:$0xff] }
 0x901   :  { %v5469_v38 = vpack.c.bf16 %v5455_v29, %v5454_v20  ;;  %7606 = vmatprep.subr.bf16.mxu0 %v11372_v26  ;;  %v11311_v34 = vcombine.low %v5738_v15, %v5754_v55 }
 0x902   :  { %v5468_v46 = vpack.c.bf16 %v5453_v6, %v5452_v28  ;;  %v13603_v36 = vpop.f32.mrb[148].mxu0  ;;  %v11312_v28 = vcombine.high %v5738_v15, %v5754_v55 }
 0x903   :  { %v5442_v50 = vadd.f32 %v13603_v36, %v15722_v11  ;;  %v5369_v56 = vpop.f32.mrb[149].mxu0 }
 0x904   :  { %v5440_v61 = vadd.f32 %v15722_v11, %v5369_v56  ;;  %v13604_v63 = vpop.f32.mrb[150].mxu0  ;;  %13634 = vmatpush3.bf16.msra.mxu1 %v5468_v46  ;;  %7607 = vmatpush1.bf16.msra.mxu0 %v11371_v42  ;;  %v5770_v42 = vld [vmem:[#allocation16 + $0x670] sm:$0xff] }
 0x905   :  { %v5443_v31 = vadd.f32 %v13604_v63, %v15722_v11  ;;  %v5372_v4 = vpop.f32.mrb[151].mxu0  ;;  %13635 = vmatprep.subr.bf16.mxu1 %v14772_v9  ;;  %7674 = vmatprep.subr.bf16.mxu0 %v11152_v48  ;;  %v5458_v58 = vmax.f32 %v5442_v50, 0.0 }
 0x906   :  { %v5441_v17 = vadd.f32 %v15722_v11, %v5372_v4  ;;  %v5456_v51 = vmax.f32 %v5440_v61, 0.0  ;;  %v5565_v61 = vld [vmem:[#allocation16 + $0x8] sm:$0xff]  ;;  %v5818_v4 = vld [vmem:[#allocation16 + $0x7f0] sm:$0xff] }
 0x907   :  { %v5459_v8 = vmax.f32 %v5443_v31, 0.0  ;;  %7625 = vmatmul.mubr.bf16.vlgmr.msra.gmra.mrb[184].mxu0 %v15704_v53  ;;  %v5802_v31 = vld [vmem:[#allocation16 + $0x770] sm:$0xff] }
 0x908   :  { %v5457_v16 = vmax.f32 %v5441_v17, 0.0  ;;  %13636 = vmatpush3.bf16.msra.mxu1 %v5469_v38  ;;  %7675 = vmatpush1.bf16.msra.mxu0 %v11151_v7  ;;  %v5786_v38 = vld [vmem:[#allocation16 + $0x6f0] sm:$0xff]  ;;  %v5581_v7 = vld [vmem:[#allocation16 + $0x88] sm:$0xff]  ;;  %v11376_v33 = vcombine.high %v5802_v31, %v5818_v4 }
 0x909   :  { %v5471_v44 = vpack.c.bf16 %v5459_v8, %v5458_v58  ;;  %13637 = vmatprep.subr.bf16.mxu1 %v14772_v9  ;;  %7676 = vmatprep.subr.bf16.mxu0 %v11184_v22  ;;  %v11344_v56 = vcombine.high %v5770_v42, %v5786_v38  ;;  %v5477_v22 = vld [vmem:[%s15976_s9 + $0x8] sm:$0xff]  ;;  %v11126_v17 = vcombine.high %v5565_v61, %v5581_v7 }
 0x90a   :  { %v5470_v3 = vpack.c.bf16 %v5457_v16, %v5456_v51  ;;  %v13607_v5 = vpop.f32.mrb[152].mxu0  ;;  %7706 = vmatprep.mubr.bf16.mxu0 %v14774_v39  ;;  %v5613_v58 = vld [vmem:[#allocation16 + $0x188] sm:$0xff]  ;;  %v5480_v8 = vpack.c.bf16 %v5477_v22, %v5477_v22  ;;  %v11125_v51 = vcombine.low %v5565_v61, %v5581_v7  ;;  %v11375_v16 = vcombine.low %v5802_v31, %v5818_v4  ;;  %v5759_v7 = vld [vmem:[#allocation16 + $0x618] sm:$0xff] }
 0x90b   :  { %v5446_v24 = vadd.f32 %v13607_v5, %v15722_v11  ;;  %v5385_v32 = vpop.f32.mrb[153].mxu0  ;;  %v5775_v31 = vld [vmem:[#allocation16 + $0x698] sm:$0xff] }
 0x90c   :  { %v5444_v62 = vadd.f32 %v15722_v11, %v5385_v32  ;;  %v13608_v37 = vpop.f32.mrb[154].mxu0  ;;  %13638 = vmatpush3.bf16.msra.mxu1 %v5470_v3  ;;  %7677 = vmatpush1.bf16.msra.mxu0 %v11183_v0  ;;  %v11158_v0 = vcombine.high %v5597_v2, %v5613_v58  ;;  %v11157_v3 = vcombine.low %v5597_v2, %v5613_v58  ;;  %v5791_v22 = vld [vmem:[#allocation16 + $0x718] sm:$0xff]  ;;  %v14158_v58 = vld [vmem:[#allocation17 + $0x40] sm:$0xff]  }
 0x90d   :  { %v5447_v35 = vadd.f32 %v13608_v37, %v15722_v11  ;;  %v5388_v27 = vpop.f32.mrb[155].mxu0  ;;  %13639 = vmatprep.subr.bf16.mxu1 %v14772_v9  ;;  %7678 = vmatprep.subr.bf16.mxu0 %v11216_v14  ;;  %v5462_v13 = vmax.f32 %v5446_v24, 0.0  ;;  %v5645_v14 = vld [vmem:[#allocation16 + $0x288] sm:$0xff]  ;;  %v11222_v32 = vcombine.high %v5661_v23, %v5677_v59 }
 0x90e   :  { %v5445_v30 = vadd.f32 %v15722_v11, %v5388_v27  ;;  %v5460_v57 = vmax.f32 %v5444_v62, 0.0  ;;  %v5693_v62 = vld [vmem:[#allocation16 + $0x408] sm:$0xff] }
 0x90f   :  { %v5463_v45 = vmax.f32 %v5447_v35, 0.0  ;;  %v5709_v37 = vld [vmem:[#allocation16 + $0x488] sm:$0xff] }
 0x910   :  { %v5461_v60 = vmax.f32 %v5445_v30, 0.0  ;;  %13640 = vmatpush3.bf16.msra.mxu1 %v5471_v44  ;;  %7679 = vmatpush1.bf16.msra.mxu0 %v11215_v1  ;;  %v5629_v44 = vld [vmem:[#allocation16 + $0x208] sm:$0xff]  ;;  %v11221_v1 = vcombine.low %v5661_v23, %v5677_v59  ;;  %v11254_v35 = vcombine.high %v5693_v62, %v5709_v37  ;;  %v11253_v30 = vcombine.low %v5693_v62, %v5709_v37 }
 0x911   :  { %v5473_v10 = vpack.c.bf16 %v5463_v45, %v5462_v13  ;;  %13641 = vmatprep.subr.bf16.mxu1 %v14772_v9  ;;  %7680 = vmatprep.subr.bf16.mxu0 %v11248_v41  ;;  %v11190_v5 = vcombine.high %v5629_v44, %v5645_v14  ;;  %v11189_v24 = vcombine.low %v5629_v44, %v5645_v14  ;;  %v5725_v27 = vld [vmem:[#allocation16 + $0x508] sm:$0xff] }
 0x912   :  { %v5472_v18 = vpack.c.bf16 %v5461_v60, %v5460_v57  ;;  %v13611_v21 = vpop.f32.mrb[156].mxu0  ;;  %v5741_v41 = vld [vmem:[#allocation16 + $0x588] sm:$0xff] }
 0x913   :  { %v5450_v25 = vadd.f32 %v13611_v21, %v15722_v11  ;;  %v5401_v26 = vpop.f32.mrb[157].mxu0  ;;  %v11286_v49 = vcombine.high %v5725_v27, %v5741_v41  ;;  %v5773_v13 = vld [vmem:[#allocation16 + $0x688] sm:$0xff]  ;;  %v11285_v45 = vcombine.low %v5725_v27, %v5741_v41  ;;  %v5583_v21 = vld [vmem:[#allocation16 + $0x98] sm:$0xff] }
 0x914   :  { %v5448_v43 = vadd.f32 %v15722_v11, %v5401_v26  ;;  %v13612_v19 = vpop.f32.mrb[158].mxu0  ;;  %13642 = vmatpush3.bf16.msra.mxu1 %v5472_v18  ;;  %7681 = vmatpush1.bf16.msra.mxu0 %v11247_v52  ;;  %v11318_v57 = vcombine.high %v5757_v54, %v5773_v13  ;;  %v5789_v60 = vld [vmem:[#allocation16 + $0x708] sm:$0xff]  ;;  %v5567_v18 = vld [vmem:[#allocation16 + $0x18] sm:$0xff] }
 0x915   :  { %v5451_v20 = vadd.f32 %v13612_v19, %v15722_v11  ;;  %v5404_v29 = vpop.f32.mrb[159].mxu0  ;;  %13643 = vmatprep.subr.bf16.mxu1 %v14772_v9  ;;  %7682 = vmatprep.subr.bf16.mxu0 %v11280_v12  ;;  %v5466_v48 = vmax.f32 %v5450_v25, 0.0  ;;  %v5805_v52 = vld [vmem:[#allocation16 + $0x788] sm:$0xff]  ;;  %v11130_v55 = vcombine.high %v5567_v18, %v5583_v21  ;;  %v5599_v25 = vld [vmem:[#allocation16 + $0x118] sm:$0xff] }
 0x916   :  { %v5449_v6 = vadd.f32 %v15722_v11, %v5404_v29  ;;  %v5464_v36 = vmax.f32 %v5448_v43, 0.0  ;;  %v11343_v11 = vcombine.low %v5770_v42, %v5786_v38  ;;  %v11350_v12 = vcombine.high %v5789_v60, %v5805_v52  ;;  %v5615_v26 = vld [vmem:[#allocation16 + $0x198] sm:$0xff]  ;;  %v5601_v23 = vld [vmem:[#allocation16 + $0x128] sm:$0xff] }
 0x917   :  { %v5467_v46 = vmax.f32 %v5451_v20, 0.0  ;;  %v11349_v15 = vcombine.low %v5789_v60, %v5805_v52  ;;  %v11129_v43 = vcombine.low %v5567_v18, %v5583_v21  ;;  %v11162_v19 = vcombine.high %v5599_v25, %v5615_v26  ;;  %v5647_v20 = vld [vmem:[#allocation16 + $0x298] sm:$0xff]  ;;  %v5617_v59 = vld [vmem:[#allocation16 + $0x1a8] sm:$0xff] }
 0x918   :  { %v5465_v47 = vmax.f32 %v5449_v6, 0.0  ;;  %13644 = vmatpush3.bf16.msra.mxu1 %v5473_v10  ;;  %7683 = vmatpush1.bf16.msra.mxu0 %v11279_v40  ;;  %v11317_v10 = vcombine.low %v5757_v54, %v5773_v13  ;;  %v5631_v40 = vld [vmem:[#allocation16 + $0x218] sm:$0xff]  ;;  %v11161_v29 = vcombine.low %v5599_v25, %v5615_v26  ;;  %v5633_v41 = vld [vmem:[#allocation16 + $0x228] sm:$0xff]  ;;  %v14163_v13 = vld [vmem:[#allocation17 + $0x10] sm:$0xff]  }
 0x919   :  { %v5475_v50 = vpack.c.bf16 %v5467_v46, %v5466_v48  ;;  %13645 = vmatprep.subr.bf16.mxu1 %v14772_v9  ;;  %7684 = vmatprep.subr.bf16.mxu0 %v11312_v28  ;;  %v11194_v28 = vcombine.high %v5631_v40, %v5647_v20  ;;  %v5663_v6 = vld [vmem:[#allocation16 + $0x318] sm:$0xff]  ;;  %v11193_v38 = vcombine.low %v5631_v40, %v5647_v20  ;;  %v5665_v18 = vld [vmem:[#allocation16 + $0x328] sm:$0xff] }
 0x91a   :  { %v5474_v63 = vpack.c.bf16 %v5465_v47, %v5464_v36  ;;  %v5679_v42 = vld [vmem:[#allocation16 + $0x398] sm:$0xff]  ;;  %v15756_v44 = vpop.f32.mrb[160].mxu0  ;;  %v5681_v21 = vld [vmem:[#allocation16 + $0x3a8] sm:$0xff] }
 0x91b   :  { %v11226_v48 = vcombine.high %v5663_v6, %v5679_v42  ;;  %v5695_v46 = vld [vmem:[#allocation16 + $0x418] sm:$0xff]  ;;  %v11225_v47 = vcombine.low %v5663_v6, %v5679_v42  ;;  %v5697_v40 = vld [vmem:[#allocation16 + $0x428] sm:$0xff] }
 0x91c   :  { %13646 = vmatpush3.bf16.msra.mxu1 %v5474_v63  ;;  %7685 = vmatpush1.bf16.msra.mxu0 %v11311_v34  ;;  %v5711_v36 = vld [vmem:[#allocation16 + $0x498] sm:$0xff]  ;;  %v5713_v20 = vld [vmem:[#allocation16 + $0x4a8] sm:$0xff] }
 0x91d   :  { %13647 = vmatprep.subr.bf16.mxu1 %v14772_v9  ;;  %7686 = vmatprep.subr.bf16.mxu0 %v11344_v56  ;;  %v11258_v34 = vcombine.high %v5695_v46, %v5711_v36  ;;  %v5743_v56 = vld [vmem:[#allocation16 + $0x598] sm:$0xff]  ;;  %v11257_v61 = vcombine.low %v5695_v46, %v5711_v36  ;;  %v11262_v6 = vcombine.high %v5697_v40, %v5713_v20  ;;  %v14168_v42 = vld [vmem:[#allocation17 + $0x68] sm:$0xff]  }
 0x91e   :  { %v14169_v46 = vld [vmem:[#allocation17 + $0x28] sm:$0xff]   ;;  %v11261_v36 = vcombine.low %v5697_v40, %v5713_v20  ;;  %v5795_v20 = vld [vmem:[#allocation16 + $0x738] sm:$0xff] }
 0x920   :  { %13648 = vmatpush3.bf16.msra.mxu1 %v5475_v50  ;;  %7687 = vmatpush1.bf16.msra.mxu0 %v11343_v11  ;;  %v5727_v50 = vld [vmem:[#allocation16 + $0x518] sm:$0xff]  ;;  %v11322_v11 = vcombine.high %v5759_v7, %v5775_v31 }
 0x921   :  { %7141 = vmatprep.subr.bf16.mxu1 %v11126_v17  ;;  %7688 = vmatprep.subr.bf16.mxu0 %v11376_v33  ;;  %v11290_v63 = vcombine.high %v5727_v50, %v5743_v56  ;;  %v11289_v4 = vcombine.low %v5727_v50, %v5743_v56  ;;  %v5807_v17 = vld [vmem:[#allocation16 + $0x798] sm:$0xff]  ;;  %v11321_v33 = vcombine.low %v5759_v7, %v5775_v31  ;;  %v5761_v50 = vld [vmem:[#allocation16 + $0x628] sm:$0xff] }
 0x922   :  { %v11354_v2 = vcombine.high %v5791_v22, %v5807_v17  ;;  %v5777_v56 = vld [vmem:[#allocation16 + $0x6a8] sm:$0xff] }
 0x923   :  { %13650 = vmatmul.mubr.bf16.vlgmr.msra.gmra.mrb[132].mxu1 %v5480_v8  ;;  %v5569_v8 = vld [vmem:[#allocation16 + $0x28] sm:$0xff]  ;;  %v11326_v7 = vcombine.high %v5761_v50, %v5777_v56 }
 0x924   :  { %7142 = vmatpush1.bf16.msra.mxu1 %v11125_v51  ;;  %7689 = vmatpush1.bf16.msra.mxu0 %v11375_v16  ;;  %v5585_v51 = vld [vmem:[#allocation16 + $0xa8] sm:$0xff]  ;;  %v14159_v16 = vld [vmem:[#allocation17] sm:$0xff]  }
 0x925   :  { %7143 = vmatprep.subr.bf16.mxu1 %v11158_v0  ;;  %7173 = vmatprep.mubr.bf16.mxu1 %v14774_v39  ;;  %v11353_v0 = vcombine.low %v5791_v22, %v5807_v17  ;;  %v11134_v14 = vcombine.high %v5569_v8, %v5585_v51  ;;  %v11133_v37 = vcombine.low %v5569_v8, %v5585_v51  ;;  %v5793_v31 = vld [vmem:[#allocation16 + $0x728] sm:$0xff]  ;;  %v14173_v22 = vld [vmem:[#allocation17 + $0x38] sm:$0xff]   ;;  %v14174_v51 = vld [vmem:[#allocation17 + $0x140] sm:$0xff]  }
 0x926   :  { %12197 = vmatprep.subr.bf16.mxu0 %v14158_v58  ;;  %v11325_v17 = vcombine.low %v5761_v50, %v5777_v56  ;;  %v5587_v58 = vld [vmem:[#allocation16 + $0xb8] sm:$0xff]  ;;  %v5605_v56 = vld [vmem:[#allocation16 + $0x148] sm:$0xff] }
 0x927   :  { %7707 = vmatmul.mubr.bf16.vlgmr.msra.gmra.mrb[188].mxu0 %v15704_v53 }
 0x928   :  { %7144 = vmatpush1.bf16.msra.mxu1 %v11157_v3  ;;  %12198 = vmatpush3.bf16.msra.mxu0 %v14159_v16  ;;  %v15758_v3 = vpop.f32.mrb[161].mxu0 }
 0x929   :  { %7145 = vmatprep.subr.bf16.mxu1 %v11190_v5  ;;  %v14160_v5 = vld [vmem:[#allocation17 + $0x48] sm:$0xff]  }
 0x92a   :  { %12199 = vmatprep.subr.bf16.mxu0 %v14160_v5 }
 0x92c   :  { %7146 = vmatpush1.bf16.msra.mxu1 %v11189_v24  ;;  %v7138_v24 = vpop.f32.mrb[162].mxu0 }
 0x92d   :  { %7147 = vmatprep.subr.bf16.mxu1 %v11222_v32  ;;  %v14161_v32 = vld [vmem:[#allocation17 + $0x8] sm:$0xff]   ;;  %v7139_v62 = vpop.f32.mrb[163].mxu0  ;;  %v5619_v24 = vld [vmem:[#allocation16 + $0x1b8] sm:$0xff] }
 0x92e   :  { %12200 = vmatpush3.bf16.msra.mxu0 %v14161_v32 }
 0x930   :  { %7148 = vmatpush1.bf16.msra.mxu1 %v11221_v1 }
 0x931   :  { %7149 = vmatprep.subr.bf16.mxu1 %v11254_v35  ;;  %v11166_v35 = vcombine.high %v5601_v23, %v5617_v59 }
 0x934   :  { %7150 = vmatpush1.bf16.msra.mxu1 %v11253_v30  ;;  %v5649_v30 = vld [vmem:[#allocation16 + $0x2a8] sm:$0xff] }
 0x935   :  { %7151 = vmatprep.subr.bf16.mxu1 %v11286_v49  ;;  %v14162_v49 = vld [vmem:[#allocation17 + $0x50] sm:$0xff]   ;;  %v11198_v52 = vcombine.high %v5633_v41, %v5649_v30  ;;  %v11197_v26 = vcombine.low %v5633_v41, %v5649_v30 }
 0x936   :  { %12201 = vmatprep.subr.bf16.mxu0 %v14162_v49  ;;  %v5667_v49 = vld [vmem:[#allocation16 + $0x338] sm:$0xff] }
 0x937   :  { %12202 = vmatpush3.bf16.msra.mxu0 %v14163_v13 }
 0x938   :  { %7152 = vmatpush1.bf16.msra.mxu1 %v11285_v45 }
 0x939   :  { %7153 = vmatprep.subr.bf16.mxu1 %v11318_v57  ;;  %v11165_v57 = vcombine.low %v5601_v23, %v5617_v59  ;;  %v5603_v59 = vld [vmem:[#allocation16 + $0x138] sm:$0xff] }
 0x93a   :  { %v15760_v1 = vpop.f32.mrb[164].mxu0  ;;  %v11170_v62 = vcombine.high %v5603_v59, %v5619_v24  ;;  %v11169_v41 = vcombine.low %v5603_v59, %v5619_v24  ;;  %v5749_v59 = vld [vmem:[#allocation16 + $0x5c8] sm:$0xff] }
 0x93b   :  { %v15762_v27 = vpop.f32.mrb[165].mxu0 }
 0x93c   :  { %7154 = vmatpush1.bf16.msra.mxu1 %v11317_v10  ;;  %v7220_v54 = vpop.f32.mrb[166].mxu0 }
 0x93d   :  { %7155 = vmatprep.subr.bf16.mxu1 %v11350_v12  ;;  %v7221_v45 = vpop.f32.mrb[167].mxu0  ;;  %v14164_v12 = vld [vmem:[#allocation17 + $0x58] sm:$0xff]  }
 0x93e   :  { %12203 = vmatprep.subr.bf16.mxu0 %v14164_v12  ;;  %v5683_v54 = vld [vmem:[#allocation16 + $0x3b8] sm:$0xff] }
 0x93f   :  { %v11234_v45 = vcombine.high %v5667_v49, %v5683_v54  ;;  %v11233_v12 = vcombine.low %v5667_v49, %v5683_v54  ;;  %v5813_v49 = vld [vmem:[#allocation16 + $0x7c8] sm:$0xff] }
 0x940   :  { %7156 = vmatpush1.bf16.msra.mxu1 %v11349_v15 }
 0x941   :  { %7223 = vmatprep.subr.bf16.mxu1 %v11130_v55  ;;  %v14165_v55 = vld [vmem:[#allocation17 + $0x18] sm:$0xff]  }
 0x942   :  { %12204 = vmatpush3.bf16.msra.mxu0 %v14165_v55 }
 0x943   :  { %7174 = vmatmul.mubr.bf16.vlgmr.msra.gmra.mrb[136].mxu1 %v15704_v53 }
 0x944   :  { %7224 = vmatpush1.bf16.msra.mxu1 %v11129_v43  ;;  %7255 = vmatprep.mubr.bf16.mxu1 %v14774_v39  ;;  %v11230_v43 = vcombine.high %v5665_v18, %v5681_v21 }
 0x945   :  { %7225 = vmatprep.subr.bf16.mxu1 %v11162_v19  ;;  %v14166_v19 = vld [vmem:[#allocation17 + $0x60] sm:$0xff]  }
 0x946   :  { %12205 = vmatprep.subr.bf16.mxu0 %v14166_v19 }
 0x948   :  { %7226 = vmatpush1.bf16.msra.mxu1 %v11161_v29  ;;  %v14167_v29 = vld [vmem:[#allocation17 + $0x20] sm:$0xff]  }
 0x949   :  { %7227 = vmatprep.subr.bf16.mxu1 %v11194_v28  ;;  %v11229_v28 = vcombine.low %v5665_v18, %v5681_v21  ;;  %12206 = vmatpush3.bf16.msra.mxu0 %v14167_v29  ;;  %v5731_v21 = vld [vmem:[#allocation16 + $0x538] sm:$0xff] }
 0x94a   :  { %12207 = vmatprep.subr.bf16.mxu0 %v14168_v42  ;;  %v5811_v29 = vld [vmem:[#allocation16 + $0x7b8] sm:$0xff]  ;;  %v5573_v42 = vld [vmem:[#allocation16 + $0x48] sm:$0xff] }
 0x94c   :  { %7228 = vmatpush1.bf16.msra.mxu1 %v11193_v38  ;;  %v5729_v38 = vld [vmem:[#allocation16 + $0x528] sm:$0xff] }
 0x94d   :  { %7229 = vmatprep.subr.bf16.mxu1 %v11226_v48  ;;  %v5745_v48 = vld [vmem:[#allocation16 + $0x5a8] sm:$0xff]  ;;  %12208 = vmatpush3.bf16.msra.mxu0 %v14169_v46 }
 0x950   :  { %7230 = vmatpush1.bf16.msra.mxu1 %v11225_v47  ;;  %v11294_v47 = vcombine.high %v5729_v38, %v5745_v48 }
 0x951   :  { %7231 = vmatprep.subr.bf16.mxu1 %v11258_v34  ;;  %v14170_v34 = vld [vmem:[#allocation17 + $0x70] sm:$0xff]  }
 0x952   :  { %12209 = vmatprep.subr.bf16.mxu0 %v14170_v34 }
 0x954   :  { %7232 = vmatpush1.bf16.msra.mxu1 %v11257_v61  ;;  %v14171_v61 = vld [vmem:[#allocation17 + $0x30] sm:$0xff]  }
 0x955   :  { %7233 = vmatprep.subr.bf16.mxu1 %v11290_v63  ;;  %v11293_v63 = vcombine.low %v5729_v38, %v5745_v48  ;;  %12210 = vmatpush3.bf16.msra.mxu0 %v14171_v61  ;;  %v5589_v38 = vld [vmem:[#allocation16 + $0xc8] sm:$0xff] }
 0x956   :  { %v11142_v34 = vcombine.high %v5573_v42, %v5589_v38  ;;  %v5621_v61 = vld [vmem:[#allocation16 + $0x1c8] sm:$0xff] }
 0x958   :  { %7234 = vmatpush1.bf16.msra.mxu1 %v11289_v4  ;;  %v5809_v4 = vld [vmem:[#allocation16 + $0x7a8] sm:$0xff] }
 0x959   :  { %7235 = vmatprep.subr.bf16.mxu1 %v11322_v11  ;;  %v14172_v11 = vld [vmem:[#allocation17 + $0x78] sm:$0xff]  }
 0x95a   :  { %v15766_v60 = vpop.f32.mrb[168].mxu0  ;;  %12211 = vmatprep.subr.bf16.mxu0 %v14172_v11  ;;  %v11173_v11 = vcombine.low %v5605_v56, %v5621_v61 }
 0x95b   :  { %v15768_v10 = vpop.f32.mrb[169].mxu0  ;;  %12212 = vmatpush3.bf16.msra.mxu0 %v14173_v22 }
 0x95c   :  { %7236 = vmatpush1.bf16.msra.mxu1 %v11321_v33  ;;  %v7302_v15 = vpop.f32.mrb[170].mxu0  ;;  %v11358_v33 = vcombine.high %v5793_v31, %v5809_v4  ;;  %12241 = vmatprep.subr.bf16.mxu0 %v14174_v51  ;;  %v5701_v51 = vld [vmem:[#allocation16 + $0x448] sm:$0xff] }
 0x95d   :  { %7237 = vmatprep.subr.bf16.mxu1 %v11354_v2  ;;  %v7303_v25 = vpop.f32.mrb[171].mxu0  ;;  %v5571_v2 = vld [vmem:[#allocation16 + $0x38] sm:$0xff] }
 0x95e   :  { %v11138_v5 = vcombine.high %v5571_v2, %v5587_v58  ;;  %v11137_v32 = vcombine.low %v5571_v2, %v5587_v58  ;;  %v5747_v15 = vld [vmem:[#allocation16 + $0x5b8] sm:$0xff] }
 0x95f   :  { %v11298_v25 = vcombine.high %v5731_v21, %v5747_v15  ;;  %v11297_v19 = vcombine.low %v5731_v21, %v5747_v15 }
 0x960   :  { %7238 = vmatpush1.bf16.msra.mxu1 %v11353_v0  ;;  %v11357_v0 = vcombine.low %v5793_v31, %v5809_v4  ;;  %v5637_v31 = vld [vmem:[#allocation16 + $0x248] sm:$0xff] }
 0x961   :  { %7305 = vmatprep.subr.bf16.mxu1 %v11134_v14  ;;  %v5653_v4 = vld [vmem:[#allocation16 + $0x2c8] sm:$0xff] }
 0x962   :  { %v11206_v22 = vcombine.high %v5637_v31, %v5653_v4  ;;  %v11205_v2 = vcombine.low %v5637_v31, %v5653_v4  ;;  %v5767_v4 = vld [vmem:[#allocation16 + $0x658] sm:$0xff] }
 0x963   :  { %7256 = vmatmul.mubr.bf16.vlgmr.msra.gmra.mrb[140].mxu1 %v15704_v53 }
 0x964   :  { %7306 = vmatpush1.bf16.msra.mxu1 %v11133_v37  ;;  %7337 = vmatprep.mubr.bf16.mxu1 %v14774_v39  ;;  %v5635_v37 = vld [vmem:[#allocation16 + $0x238] sm:$0xff] }
 0x965   :  { %7307 = vmatprep.subr.bf16.mxu1 %v11166_v35  ;;  %v5651_v35 = vld [vmem:[#allocation16 + $0x2b8] sm:$0xff] }
 0x966   :  { %v11202_v30 = vcombine.high %v5635_v37, %v5651_v35  ;;  %v11201_v13 = vcombine.low %v5635_v37, %v5651_v35  ;;  %v5781_v37 = vld [vmem:[#allocation16 + $0x6c8] sm:$0xff] }
 0x968   :  { %7308 = vmatpush1.bf16.msra.mxu1 %v11165_v57  ;;  %v5699_v57 = vld [vmem:[#allocation16 + $0x438] sm:$0xff] }
 0x969   :  { %7309 = vmatprep.subr.bf16.mxu1 %v11198_v52  ;;  %v5715_v52 = vld [vmem:[#allocation16 + $0x4b8] sm:$0xff] }
 0x96a   :  { %v11266_v18 = vcombine.high %v5699_v57, %v5715_v52  ;;  %v11265_v55 = vcombine.low %v5699_v57, %v5715_v52  ;;  %v5591_v57 = vld [vmem:[#allocation16 + $0xd8] sm:$0xff] }
 0x96c   :  { %7310 = vmatpush1.bf16.msra.mxu1 %v11197_v26  ;;  %v5763_v26 = vld [vmem:[#allocation16 + $0x638] sm:$0xff] }
 0x96d   :  { %7311 = vmatprep.subr.bf16.mxu1 %v11230_v43  ;;  %v5779_v43 = vld [vmem:[#allocation16 + $0x6b8] sm:$0xff] }
 0x96e   :  { %v11330_v40 = vcombine.high %v5763_v26, %v5779_v43 }
 0x970   :  { %7312 = vmatpush1.bf16.msra.mxu1 %v11229_v28  ;;  %v11329_v28 = vcombine.low %v5763_v26, %v5779_v43  ;;  %v5623_v26 = vld [vmem:[#allocation16 + $0x1d8] sm:$0xff] }
 0x971   :  { %7313 = vmatprep.subr.bf16.mxu1 %v11262_v6  ;;  %v11362_v6 = vcombine.high %v5795_v20, %v5811_v29 }
 0x974   :  { %7314 = vmatpush1.bf16.msra.mxu1 %v11261_v36  ;;  %v11361_v36 = vcombine.low %v5795_v20, %v5811_v29  ;;  %v5655_v20 = vld [vmem:[#allocation16 + $0x2d8] sm:$0xff] }
 0x975   :  { %7315 = vmatprep.subr.bf16.mxu1 %v11294_v47 }
 0x978   :  { %7316 = vmatpush1.bf16.msra.mxu1 %v11293_v63  ;;  %v11141_v63 = vcombine.low %v5573_v42, %v5589_v38  ;;  %v5687_v42 = vld [vmem:[#allocation16 + $0x3d8] sm:$0xff] }
 0x979   :  { %7317 = vmatprep.subr.bf16.mxu1 %v11326_v7  ;;  %v11174_v7 = vcombine.high %v5605_v56, %v5621_v61  ;;  %v5735_v61 = vld [vmem:[#allocation16 + $0x558] sm:$0xff] }
 0x97a   :  { %v15770_v8 = vpop.f32.mrb[172].mxu0 }
 0x97b   :  { %v15772_v16 = vpop.f32.mrb[173].mxu0 }
 0x97c   :  { %7318 = vmatpush1.bf16.msra.mxu1 %v11325_v17  ;;  %v7384_v14 = vpop.f32.mrb[174].mxu0  ;;  %v5669_v17 = vld [vmem:[#allocation16 + $0x348] sm:$0xff] }
 0x97d   :  { %7319 = vmatprep.subr.bf16.mxu1 %v11358_v33  ;;  %v7385_v23 = vpop.f32.mrb[175].mxu0  ;;  %v5685_v33 = vld [vmem:[#allocation16 + $0x3c8] sm:$0xff] }
 0x97e   :  { %v11238_v58 = vcombine.high %v5669_v17, %v5685_v33  ;;  %v11237_v14 = vcombine.low %v5669_v17, %v5685_v33  ;;  %v5733_v23 = vld [vmem:[#allocation16 + $0x548] sm:$0xff]  ;;  %v5799_v33 = vld [vmem:[#allocation16 + $0x758] sm:$0xff] }
 0x97f   :  { %v11301_v35 = vcombine.low %v5733_v23, %v5749_v59 }
 0x980   :  { %7320 = vmatpush1.bf16.msra.mxu1 %v11357_v0  ;;  %v5717_v0 = vld [vmem:[#allocation16 + $0x4c8] sm:$0xff] }
 0x981   :  { %7387 = vmatprep.subr.bf16.mxu1 %v11138_v5  ;;  %v11270_v5 = vcombine.high %v5701_v51, %v5717_v0  ;;  %v11269_v24 = vcombine.low %v5701_v51, %v5717_v0  ;;  %v5577_v0 = vld [vmem:[#allocation16 + $0x68] sm:$0xff] }
 0x983   :  { %7338 = vmatmul.mubr.bf16.vlgmr.msra.gmra.mrb[144].mxu1 %v15704_v53 }
 0x984   :  { %7388 = vmatpush1.bf16.msra.mxu1 %v11137_v32  ;;  %7419 = vmatprep.mubr.bf16.mxu1 %v14774_v39  ;;  %v11302_v32 = vcombine.high %v5733_v23, %v5749_v59 }
 0x985   :  { %7389 = vmatprep.subr.bf16.mxu1 %v11170_v62  ;;  %v5765_v62 = vld [vmem:[#allocation16 + $0x648] sm:$0xff] }
 0x986   :  { %v11333_v54 = vcombine.low %v5765_v62, %v5781_v37 }
 0x988   :  { %7390 = vmatpush1.bf16.msra.mxu1 %v11169_v41  ;;  %v11334_v41 = vcombine.high %v5765_v62, %v5781_v37  ;;  %v5609_v37 = vld [vmem:[#allocation16 + $0x168] sm:$0xff] }
 0x989   :  { %7391 = vmatprep.subr.bf16.mxu1 %v11202_v30  ;;  %v5797_v30 = vld [vmem:[#allocation16 + $0x748] sm:$0xff] }
 0x98c   :  { %7392 = vmatpush1.bf16.msra.mxu1 %v11201_v13  ;;  %v11366_v13 = vcombine.high %v5797_v30, %v5813_v49 }
 0x98d   :  { %7393 = vmatprep.subr.bf16.mxu1 %v11234_v45  ;;  %v5575_v45 = vld [vmem:[#allocation16 + $0x58] sm:$0xff] }
 0x98e   :  { %v11146_v15 = vcombine.high %v5575_v45, %v5591_v57  ;;  %v11145_v43 = vcombine.low %v5575_v45, %v5591_v57  ;;  %v5673_v57 = vld [vmem:[#allocation16 + $0x368] sm:$0xff] }
 0x990   :  { %7394 = vmatpush1.bf16.msra.mxu1 %v11233_v12 }
 0x991   :  { %7395 = vmatprep.subr.bf16.mxu1 %v11266_v18  ;;  %v11365_v18 = vcombine.low %v5797_v30, %v5813_v49  ;;  %v5641_v49 = vld [vmem:[#allocation16 + $0x268] sm:$0xff] }
 0x994   :  { %7396 = vmatpush1.bf16.msra.mxu1 %v11265_v55 }
 0x995   :  { %7397 = vmatprep.subr.bf16.mxu1 %v11298_v25  ;;  %v5607_v25 = vld [vmem:[#allocation16 + $0x158] sm:$0xff] }
 0x996   :  { %v11177_v29 = vcombine.low %v5607_v25, %v5623_v26 }
 0x998   :  { %7398 = vmatpush1.bf16.msra.mxu1 %v11297_v19  ;;  %v11178_v19 = vcombine.high %v5607_v25, %v5623_v26  ;;  %v5721_v25 = vld [vmem:[#allocation16 + $0x4e8] sm:$0xff] }
 0x999   :  { %7399 = vmatprep.subr.bf16.mxu1 %v11330_v40  ;;  %v5639_v40 = vld [vmem:[#allocation16 + $0x258] sm:$0xff] }
 0x99a   :  { %v15776_v48 = vpop.f32.mrb[176].mxu0  ;;  %v11209_v38 = vcombine.low %v5639_v40, %v5655_v20 }
 0x99b   :  { %v15778_v46 = vpop.f32.mrb[177].mxu0 }
 0x99c   :  { %7400 = vmatpush1.bf16.msra.mxu1 %v11329_v28  ;;  %v7466_v47 = vpop.f32.mrb[178].mxu0  ;;  %v11210_v28 = vcombine.high %v5639_v40, %v5655_v20  ;;  %v5753_v40 = vld [vmem:[#allocation16 + $0x5e8] sm:$0xff] }
 0x99d   :  { %7401 = vmatprep.subr.bf16.mxu1 %v11362_v6  ;;  %v7467_v50 = vpop.f32.mrb[179].mxu0  ;;  %v5671_v6 = vld [vmem:[#allocation16 + $0x358] sm:$0xff] }
 0x99e   :  { %v5703_v47 = vld [vmem:[#allocation16 + $0x458] sm:$0xff]  ;;  %v11241_v50 = vcombine.low %v5671_v6, %v5687_v42 }
 0x9a0   :  { %7402 = vmatpush1.bf16.msra.mxu1 %v11361_v36  ;;  %v11242_v36 = vcombine.high %v5671_v6, %v5687_v42  ;;  %v5785_v6 = vld [vmem:[#allocation16 + $0x6e8] sm:$0xff] }
 0x9a1   :  { %7469 = vmatprep.subr.bf16.mxu1 %v11142_v34  ;;  %v5719_v34 = vld [vmem:[#allocation16 + $0x4d8] sm:$0xff] }
 0x9a2   :  { %v11274_v56 = vcombine.high %v5703_v47, %v5719_v34 }
 0x9a3   :  { %7420 = vmatmul.mubr.bf16.vlgmr.msra.gmra.mrb[148].mxu1 %v15704_v53 }
 0x9a4   :  { %7470 = vmatpush1.bf16.msra.mxu1 %v11141_v63  ;;  %7501 = vmatprep.mubr.bf16.mxu1 %v14774_v39  ;;  %v5751_v63 = vld [vmem:[#allocation16 + $0x5d8] sm:$0xff] }
 0x9a5   :  { %7471 = vmatprep.subr.bf16.mxu1 %v11174_v7  ;;  %v11273_v7 = vcombine.low %v5703_v47, %v5719_v34  ;;  %v11306_v31 = vcombine.high %v5735_v61, %v5751_v63 }
 0x9a8   :  { %7472 = vmatpush1.bf16.msra.mxu1 %v11173_v11  ;;  %v5783_v11 = vld [vmem:[#allocation16 + $0x6d8] sm:$0xff] }
 0x9a9   :  { %7473 = vmatprep.subr.bf16.mxu1 %v11206_v22  ;;  %v11305_v22 = vcombine.low %v5735_v61, %v5751_v63  ;;  %v11338_v17 = vcombine.high %v5767_v4, %v5783_v11 }
 0x9ac   :  { %7474 = vmatpush1.bf16.msra.mxu1 %v11205_v2  ;;  %v5815_v2 = vld [vmem:[#allocation16 + $0x7d8] sm:$0xff] }
 0x9ad   :  { %7475 = vmatprep.subr.bf16.mxu1 %v11238_v58  ;;  %v11337_v58 = vcombine.low %v5767_v4, %v5783_v11  ;;  %v11370_v51 = vcombine.high %v5799_v33, %v5815_v2  ;;  %v11369_v59 = vcombine.low %v5799_v33, %v5815_v2 }
 0x9b0   :  { %7476 = vmatpush1.bf16.msra.mxu1 %v11237_v14  ;;  %v5593_v14 = vld [vmem:[#allocation16 + $0xe8] sm:$0xff] }
 0x9b1   :  { %7477 = vmatprep.subr.bf16.mxu1 %v11270_v5 }
 0x9b4   :  { %7478 = vmatpush1.bf16.msra.mxu1 %v11269_v24 }
 0x9b5   :  { %7479 = vmatprep.subr.bf16.mxu1 %v11302_v32  ;;  %v11150_v32 = vcombine.high %v5577_v0, %v5593_v14 }
 0x9b8   :  { %7480 = vmatpush1.bf16.msra.mxu1 %v11301_v35  ;;  %v5625_v35 = vld [vmem:[#allocation16 + $0x1e8] sm:$0xff] }
 0x9b9   :  { %7481 = vmatprep.subr.bf16.mxu1 %v11334_v41  ;;  %v11149_v41 = vcombine.low %v5577_v0, %v5593_v14  ;;  %v11182_v30 = vcombine.high %v5609_v37, %v5625_v35 }
 0x9ba   :  { %v15782_v52 = vpop.f32.mrb[180].mxu0 }
 0x9bb   :  { %v15784_v12 = vpop.f32.mrb[181].mxu0 }
 0x9bc   :  { %7482 = vmatpush1.bf16.msra.mxu1 %v11333_v54  ;;  %v7548_v21 = vpop.f32.mrb[182].mxu0  ;;  %v5657_v54 = vld [vmem:[#allocation16 + $0x2e8] sm:$0xff] }
 0x9bd   :  { %7483 = vmatprep.subr.bf16.mxu1 %v11366_v13  ;;  %v7549_v55 = vpop.f32.mrb[183].mxu0  ;;  %v11181_v13 = vcombine.low %v5609_v37, %v5625_v35  ;;  %v11214_v45 = vcombine.high %v5641_v49, %v5657_v54  ;;  %v11213_v21 = vcombine.low %v5641_v49, %v5657_v54  ;;  %v5611_v49 = vld [vmem:[#allocation16 + $0x178] sm:$0xff] }
 0x9be   :  { %v5705_v55 = vld [vmem:[#allocation16 + $0x468] sm:$0xff]  ;;  %v5627_v54 = vld [vmem:[#allocation16 + $0x1f8] sm:$0xff] }
 0x9bf   :  { %v11277_v20 = vcombine.low %v5705_v55, %v5721_v25 }
 0x9c0   :  { %7484 = vmatpush1.bf16.msra.mxu1 %v11365_v18  ;;  %v5689_v18 = vld [vmem:[#allocation16 + $0x3e8] sm:$0xff] }
 0x9c1   :  { %7551 = vmatprep.subr.bf16.mxu1 %v11146_v15  ;;  %v11246_v15 = vcombine.high %v5673_v57, %v5689_v18  ;;  %v11245_v26 = vcombine.low %v5673_v57, %v5689_v18  ;;  %v14180_v57 = vld [vmem:[#allocation17 + $0x158] sm:$0xff]  }
 0x9c2   :  { %v5643_v18 = vld [vmem:[#allocation16 + $0x278] sm:$0xff] }
 0x9c3   :  { %7502 = vmatmul.mubr.bf16.vlgmr.msra.gmra.mrb[152].mxu1 %v15704_v53 }
 0x9c4   :  { %7552 = vmatpush1.bf16.msra.mxu1 %v11145_v43  ;;  %7583 = vmatprep.mubr.bf16.mxu1 %v14774_v39  ;;  %v11278_v43 = vcombine.high %v5705_v55, %v5721_v25  ;;  %v14182_v25 = vld [vmem:[#allocation17 + $0x160] sm:$0xff]  }
 0x9c5   :  { %7553 = vmatprep.subr.bf16.mxu1 %v11178_v19  ;;  %v5737_v19 = vld [vmem:[#allocation16 + $0x568] sm:$0xff] }
 0x9c6   :  { %v11309_v42 = vcombine.low %v5737_v19, %v5753_v40 }
 0x9c8   :  { %7554 = vmatpush1.bf16.msra.mxu1 %v11177_v29  ;;  %v11310_v29 = vcombine.high %v5737_v19, %v5753_v40  ;;  %v14183_v40 = vld [vmem:[#allocation17 + $0x120] sm:$0xff]  }
 0x9c9   :  { %7555 = vmatprep.subr.bf16.mxu1 %v11210_v28  ;;  %v5769_v28 = vld [vmem:[#allocation16 + $0x668] sm:$0xff] }
 0x9ca   :  { %v11341_v47 = vcombine.low %v5769_v28, %v5785_v6 }
 0x9cc   :  { %7556 = vmatpush1.bf16.msra.mxu1 %v11209_v38  ;;  %v11342_v38 = vcombine.high %v5769_v28, %v5785_v6  ;;  %v5707_v28 = vld [vmem:[#allocation16 + $0x478] sm:$0xff] }
 0x9cd   :  { %7557 = vmatprep.subr.bf16.mxu1 %v11242_v36  ;;  %v5723_v6 = vld [vmem:[#allocation16 + $0x4f8] sm:$0xff] }
 0x9d0   :  { %7558 = vmatpush1.bf16.msra.mxu1 %v11241_v50 }
 0x9d1   :  { %7559 = vmatprep.subr.bf16.mxu1 %v11274_v56 }
 0x9d4   :  { %7560 = vmatpush1.bf16.msra.mxu1 %v11273_v7  ;;  %v5801_v7 = vld [vmem:[#allocation16 + $0x768] sm:$0xff] }
 0x9d5   :  { %7561 = vmatprep.subr.bf16.mxu1 %v11306_v31  ;;  %v5817_v31 = vld [vmem:[#allocation16 + $0x7e8] sm:$0xff] }
 0x9d6   :  { %v11374_v14 = vcombine.high %v5801_v7, %v5817_v31 }
 0x9d8   :  { %7562 = vmatpush1.bf16.msra.mxu1 %v11305_v22 }
 0x9d9   :  { %7563 = vmatprep.subr.bf16.mxu1 %v11338_v17 }
 0x9da   :  { %v7626_v5 = vpop.f32.mrb[184].mxu0 }
 0x9db   :  { %v7628_v23 = vpop.f32.mrb[185].mxu0 }
 0x9dc   :  { %7564 = vmatpush1.bf16.msra.mxu1 %v11337_v58  ;;  %v7630_v24 = vpop.f32.mrb[186].mxu0  ;;  %v14175_v58 = vld [vmem:[#allocation17 + $0x100] sm:$0xff]  }
 0x9dd   :  { %7565 = vmatprep.subr.bf16.mxu1 %v11370_v51  ;;  %v7631_v62 = vpop.f32.mrb[187].mxu0 }
 0x9e0   :  { %7566 = vmatpush1.bf16.msra.mxu1 %v11369_v59 }
 0x9e1   :  { %7633 = vmatprep.subr.bf16.mxu1 %v11150_v32 }
 0x9e3   :  { %7584 = vmatmul.mubr.bf16.vlgmr.msra.gmra.mrb[156].mxu1 %v15704_v53 }
 0x9e4   :  { %7634 = vmatpush1.bf16.msra.mxu1 %v11149_v41  ;;  %7665 = vmatprep.mubr.bf16.mxu1 %v14774_v39 }
 0x9e5   :  { %7635 = vmatprep.subr.bf16.mxu1 %v11182_v30  ;;  %v14178_v30 = vld [vmem:[#allocation17 + $0x150] sm:$0xff]  }
 0x9e8   :  { %7636 = vmatpush1.bf16.msra.mxu1 %v11181_v13 }
 0x9e9   :  { %7637 = vmatprep.subr.bf16.mxu1 %v11214_v45  ;;  %v11186_v45 = vcombine.high %v5611_v49, %v5627_v54 }
 0x9ec   :  { %7638 = vmatpush1.bf16.msra.mxu1 %v11213_v21  ;;  %v5659_v21 = vld [vmem:[#allocation16 + $0x2f8] sm:$0xff] }
 0x9ed   :  { %7639 = vmatprep.subr.bf16.mxu1 %v11246_v15  ;;  %v11185_v15 = vcombine.low %v5611_v49, %v5627_v54  ;;  %v11218_v55 = vcombine.high %v5643_v18, %v5659_v21  ;;  %v11217_v19 = vcombine.low %v5643_v18, %v5659_v21  ;;  %v14192_v49 = vld [vmem:[#allocation17 + $0x248] sm:$0xff]   ;;  %v14196_v18 = vld [vmem:[#allocation17 + $0x80] sm:$0xff]  }
 0x9ee   :  { %v14198_v21 = vld [vmem:[#allocation17 + $0xc8] sm:$0xff]  }
 0x9f0   :  { %7640 = vmatpush1.bf16.msra.mxu1 %v11245_v26  ;;  %v5675_v26 = vld [vmem:[#allocation16 + $0x378] sm:$0xff] }
 0x9f1   :  { %7641 = vmatprep.subr.bf16.mxu1 %v11278_v43  ;;  %v5691_v43 = vld [vmem:[#allocation16 + $0x3f8] sm:$0xff] }
 0x9f4   :  { %7642 = vmatpush1.bf16.msra.mxu1 %v11277_v20  ;;  %v11250_v20 = vcombine.high %v5675_v26, %v5691_v43 }
 0x9f5   :  { %7643 = vmatprep.subr.bf16.mxu1 %v11310_v29  ;;  %v14184_v29 = vld [vmem:[#allocation17 + $0x168] sm:$0xff]  }
 0x9f6   :  { %v15790_v36 = vpop.f32.mrb[132].mxu1 }
 0x9f7   :  { %v15793_v34 = vmul.f32 %v7626_v5, %v15790_v36  ;;  %v13651_v50 = vpop.f32.mrb[133].mxu1  ;;  %v15796_v56 = vmul.f32 %v7628_v23, %v15790_v36  ;;  %v7757_v61 = vmul.f32 %v15758_v3, %v15790_v36  ;;  %v7756_v63 = vmul.f32 %v15756_v44, %v15790_v36  ;;  %v14176_v5 = vld [vmem:[#allocation17 + $0x148] sm:$0xff]   ;;  %v5595_v23 = vld [vmem:[#allocation16 + $0xf8] sm:$0xff] }
 0x9f8   :  { %v5559_v4 = vpop.f32.mrb[134].mxu1  ;;  %7644 = vmatpush1.bf16.msra.mxu1 %v11309_v42  ;;  %v7761_v11 = vmul.f32 %v15762_v27, %v15790_v36  ;;  %v15806_v22 = vmul.f32 %v15760_v1, %v15790_v36  ;;  %v15810_v17 = vmul.f32 %v15768_v10, %v15790_v36  ;;  %v15814_v3 = vmul.f32 %v15766_v60, %v15790_v36  ;;  %v5579_v1 = vld [vmem:[#allocation16 + $0x78] sm:$0xff]  ;;  %v14185_v42 = vld [vmem:[#allocation17 + $0x128] sm:$0xff]  }
 0x9f9   :  { %v13652_v44 = vpop.f32.mrb[135].mxu1  ;;  %7645 = vmatprep.subr.bf16.mxu1 %v11342_v38  ;;  %v7789_v33 = vpack.c.bf16 %v7757_v61, %v7757_v61  ;;  %v7788_v2 = vpack.c.bf16 %v7756_v63, %v7756_v63  ;;  %v11373_v27 = vcombine.low %v5801_v7, %v5817_v31  ;;  %v15821_v60 = vmul.f32 %v15772_v16, %v15790_v36  ;;  %v5739_v50 = vld [vmem:[#allocation16 + $0x578] sm:$0xff]  ;;  %v14187_v7 = vld [vmem:[#allocation17 + $0x130] sm:$0xff]  }
 0x9fa   :  { %v7708_v51 = vpop.f32.mrb[188].mxu0  ;;  %v7793_v0 = vpack.c.bf16 %v7761_v11, %v7761_v11  ;;  %v15825_v24 = vmul.f32 %v15770_v8, %v15790_v36  ;;  %v15829_v32 = vmul.f32 %v15778_v46, %v15790_v36  ;;  %v15836_v35 = vmul.f32 %v15776_v48, %v15790_v36  ;;  %v14177_v8 = vld [vmem:[#allocation17 + $0x108] sm:$0xff]   ;;  %v5755_v61 = vld [vmem:[#allocation16 + $0x5f8] sm:$0xff] }
 0x9fb   :  { %v15817_v59 = vmul.f32 %v7708_v51, %v15790_v36  ;;  %v7710_v10 = vpop.f32.mrb[189].mxu0  ;;  %9964 = vmatprep.mubr.bf16.mxu0 %v7789_v33  ;;  %v15840_v16 = vmul.f32 %v15784_v12, %v15790_v36  ;;  %v11154_v41 = vcombine.high %v5579_v1, %v5595_v23  ;;  %v15844_v13 = vmul.f32 %v15782_v52, %v15790_v36  ;;  %v14179_v12 = vld [vmem:[#allocation17 + $0x110] sm:$0xff]   ;;  %v14181_v52 = vld [vmem:[#allocation17 + $0x118] sm:$0xff]  }
 0x9fc   :  { %v15832_v62 = vmul.f32 %v7710_v10, %v15790_v36  ;;  %7646 = vmatpush1.bf16.msra.mxu1 %v11341_v47  ;;  %9965 = vmatmul.mubr.bf16.vlgmr.msra.gmra.mrb[192].mxu0 %v7788_v2  ;;  %v7712_v37 = vpop.f32.mrb[190].mxu0  ;;  %v11153_v48 = vcombine.low %v5579_v1, %v5595_v23  ;;  %v11282_v38 = vcombine.high %v5707_v28, %v5723_v6  ;;  %v14186_v47 = vld [vmem:[#allocation17 + $0x170] sm:$0xff]   ;;  %v14188_v4 = vld [vmem:[#allocation17 + $0x178] sm:$0xff]  }
 0x9fd   :  { %12242 = vmatpush3.bf16.msra.mxu0 %v14175_v58  ;;  %10044 = vmatprep.mubr.bf16.mxu0 %v7793_v0  ;;  %v7713_v46 = vpop.f32.mrb[191].mxu0  ;;  %v11281_v63 = vcombine.low %v5707_v28, %v5723_v6  ;;  %v11314_v31 = vcombine.high %v5739_v50, %v5755_v61  ;;  %v5771_v11 = vld [vmem:[#allocation16 + $0x678] sm:$0xff]  ;;  %v11313_v33 = vcombine.low %v5739_v50, %v5755_v61  ;;  %v14190_v0 = vld [vmem:[#allocation17 + $0x240] sm:$0xff]   ;;  %v14209_v28 = vld [vmem:[#allocation17 + $0x228] sm:$0xff]  }
 0x9fe   :  { %7647 = vmatprep.subr.bf16.mxu1 %v11374_v14  ;;  %12243 = vmatprep.subr.bf16.mxu0 %v14176_v5  ;;  %v5787_v44 = vld [vmem:[#allocation16 + $0x6f8] sm:$0xff]  ;;  %v7792_v46 = vpack.c.bf16 %v15806_v22, %v15806_v22  ;;  %v7797_v54 = vpack.c.bf16 %v15810_v17, %v15810_v17  ;;  %v14197_v22 = vld [vmem:[#allocation17 + $0x210] sm:$0xff]   ;;  %v14200_v17 = vld [vmem:[#allocation17 + $0x88] sm:$0xff]  }
 0x9ff   :  { %v14189_v2 = vld [vmem:[#allocation17 + $0x138] sm:$0xff]   ;;  %v11346_v58 = vcombine.high %v5771_v11, %v5787_v44  ;;  %v11345_v37 = vcombine.low %v5771_v11, %v5787_v44  ;;  %v14210_v6 = vld [vmem:[#allocation17 + $0xe0] sm:$0xff]   ;;  %v14216_v61 = vld [vmem:[#allocation17 + $0xa8] sm:$0xff]  }
 0xa00   :  { %7648 = vmatpush1.bf16.msra.mxu1 %v11373_v27  ;;  %v5803_v5 = vld [vmem:[#allocation16 + $0x778] sm:$0xff] }
 0xa01   :  { %12244 = vmatpush3.bf16.msra.mxu0 %v14177_v8  ;;  %7715 = vmatprep.subr.bf16.mxu1 %v11154_v41  ;;  %v5819_v1 = vld [vmem:[#allocation16 + $0x7f8] sm:$0xff]  ;;  %v14191_v41 = vld [vmem:[#allocation17 + $0x200] sm:$0xff]  }
 0xa02   :  { %12245 = vmatprep.subr.bf16.mxu0 %v14178_v30  ;;  %v11378_v30 = vcombine.high %v5803_v5, %v5819_v1  ;;  %v14215_v50 = vld [vmem:[#allocation17 + $0x278] sm:$0xff]  }
 0xa03   :  { %7666 = vmatmul.mubr.bf16.vlgmr.msra.gmra.mrb[160].mxu1 %v15704_v53 }
 0xa04   :  { %7716 = vmatpush1.bf16.msra.mxu1 %v11153_v48  ;;  %7747 = vmatprep.mubr.bf16.mxu1 %v14774_v39  ;;  %v11249_v39 = vcombine.low %v5675_v26, %v5691_v43  ;;  %v11377_v48 = vcombine.low %v5803_v5, %v5819_v1  ;;  %v14203_v26 = vld [vmem:[#allocation17 + $0x260] sm:$0xff]   ;;  %v14204_v43 = vld [vmem:[#allocation17 + $0x90] sm:$0xff]   ;;  %v14222_v5 = vld [vmem:[#allocation17 + $0xf8] sm:$0xff]  }
 0xa05   :  { %12246 = vmatpush3.bf16.msra.mxu0 %v14179_v12  ;;  %7717 = vmatprep.subr.bf16.mxu1 %v11186_v45  ;;  %v14193_v12 = vld [vmem:[#allocation17 + $0x208] sm:$0xff]   ;;  %v14194_v45 = vld [vmem:[#allocation17 + $0xc0] sm:$0xff]  }
 0xa06   :  { %12247 = vmatprep.subr.bf16.mxu0 %v14180_v57  ;;  %v14195_v57 = vld [vmem:[#allocation17 + $0x250] sm:$0xff]   ;;  %v14223_v1 = vld [vmem:[#allocation17 + $0x348] sm:$0xff]  }
 0xa08   :  { %7718 = vmatpush1.bf16.msra.mxu1 %v11185_v15 }
 0xa09   :  { %12248 = vmatpush3.bf16.msra.mxu0 %v14181_v52  ;;  %7719 = vmatprep.subr.bf16.mxu1 %v11218_v55  ;;  %v14199_v52 = vld [vmem:[#allocation17 + $0x258] sm:$0xff]  }
 0xa0a   :  { %12249 = vmatprep.subr.bf16.mxu0 %v14182_v25  ;;  %v14201_v55 = vld [vmem:[#allocation17 + $0x218] sm:$0xff]   ;;  %v14202_v25 = vld [vmem:[#allocation17 + $0xd0] sm:$0xff]  }
 0xa0c   :  { %7720 = vmatpush1.bf16.msra.mxu1 %v11217_v19  ;;  %v14205_v19 = vld [vmem:[#allocation17 + $0x220] sm:$0xff]  }
 0xa0d   :  { %12250 = vmatpush3.bf16.msra.mxu0 %v14183_v40  ;;  %7721 = vmatprep.subr.bf16.mxu1 %v11250_v20  ;;  %v14206_v40 = vld [vmem:[#allocation17 + $0xd8] sm:$0xff]   ;;  %v14207_v20 = vld [vmem:[#allocation17 + $0x268] sm:$0xff]  }
 0xa0e   :  { %12251 = vmatprep.subr.bf16.mxu0 %v14184_v29  ;;  %v14208_v29 = vld [vmem:[#allocation17 + $0x98] sm:$0xff]  }
 0xa10   :  { %7722 = vmatpush1.bf16.msra.mxu1 %v11249_v39  ;;  %v14211_v39 = vld [vmem:[#allocation17 + $0x270] sm:$0xff]  }
 0xa11   :  { %12252 = vmatpush3.bf16.msra.mxu0 %v14185_v42  ;;  %7723 = vmatprep.subr.bf16.mxu1 %v11282_v38  ;;  %v14212_v42 = vld [vmem:[#allocation17 + $0xa0] sm:$0xff]   ;;  %v14213_v38 = vld [vmem:[#allocation17 + $0x230] sm:$0xff]  }
 0xa12   :  { %12253 = vmatprep.subr.bf16.mxu0 %v14186_v47  ;;  %v14214_v47 = vld [vmem:[#allocation17 + $0xe8] sm:$0xff]  }
 0xa14   :  { %7724 = vmatpush1.bf16.msra.mxu1 %v11281_v63  ;;  %v14217_v63 = vld [vmem:[#allocation17 + $0x238] sm:$0xff]  }
 0xa15   :  { %12254 = vmatpush3.bf16.msra.mxu0 %v14187_v7  ;;  %7725 = vmatprep.subr.bf16.mxu1 %v11314_v31  ;;  %v14218_v7 = vld [vmem:[#allocation17 + $0xf0] sm:$0xff]  }
 0xa16   :  { %v7175_v51 = vpop.f32.mrb[136].mxu1  ;;  %12255 = vmatprep.subr.bf16.mxu0 %v14188_v4  ;;  %v14219_v4 = vld [vmem:[#allocation17 + $0x340] sm:$0xff]  }
 0xa17   :  { %v15849_v27 = vmul.f32 %v7175_v51, %v15790_v36  ;;  %v7177_v14 = vpop.f32.mrb[137].mxu1 }
 0xa18   :  { %v7759_v23 = vmul.f32 %v7177_v14, %v15790_v36  ;;  %v7179_v10 = vpop.f32.mrb[138].mxu1  ;;  %7726 = vmatpush1.bf16.msra.mxu1 %v11313_v33  ;;  %v7796_v14 = vpack.c.bf16 %v15814_v3, %v15814_v3 }
 0xa19   :  { %12256 = vmatpush3.bf16.msra.mxu0 %v14189_v2  ;;  %v7180_v8 = vpop.f32.mrb[139].mxu1  ;;  %7727 = vmatprep.subr.bf16.mxu1 %v11346_v58  ;;  %v14220_v58 = vld [vmem:[#allocation17 + $0xb0] sm:$0xff]   ;;  %v14224_v10 = vld [vmem:[#allocation17 + $0xb8] sm:$0xff]   ;;  %v7790_v3 = vpack.c.bf16 %v15849_v27, %v15849_v27  ;;  %v14237_v27 = vld [vmem:[#allocation17 + $0x320] sm:$0xff]  }
 0xa1a   :  { %12285 = vmatprep.subr.bf16.mxu0 %v14190_v0  ;;  %v7791_v15 = vpack.c.bf16 %v7759_v23, %v7759_v23  ;;  %v14221_v0 = vld [vmem:[#allocation17 + $0x300] sm:$0xff]   ;;  %v7801_v23 = vpack.c.bf16 %v15821_v60, %v15821_v60 }
 0xa1b   :  { %v14226_v8 = vld [vmem:[#allocation17 + $0x1c0] sm:$0xff]  }
 0xa1c   :  { %10045 = vmatmul.mubr.bf16.vlgmr.msra.gmra.mrb[196].mxu0 %v7792_v46  ;;  %7728 = vmatpush1.bf16.msra.mxu1 %v11345_v37  ;;  %v14225_v37 = vld [vmem:[#allocation17 + $0x308] sm:$0xff]   ;;  %v14228_v46 = vld [vmem:[#allocation17 + $0x180] sm:$0xff]  }
 0xa1d   :  { %12286 = vmatpush3.bf16.msra.mxu0 %v14191_v41  ;;  %10124 = vmatprep.mubr.bf16.mxu0 %v7797_v54  ;;  %v14227_v41 = vld [vmem:[#allocation17 + $0x350] sm:$0xff]   ;;  %v14231_v54 = vld [vmem:[#allocation17 + $0x358] sm:$0xff]  }
 0xa1e   :  { %7729 = vmatprep.subr.bf16.mxu1 %v11378_v30  ;;  %12287 = vmatprep.subr.bf16.mxu0 %v14192_v49  ;;  %v14229_v30 = vld [vmem:[#allocation17 + $0x310] sm:$0xff]   ;;  %v14230_v49 = vld [vmem:[#allocation17 + $0x1c8] sm:$0xff]  }
 0xa20   :  { %7730 = vmatpush1.bf16.msra.mxu1 %v11377_v48  ;;  %v14232_v48 = vld [vmem:[#allocation17 + $0x188] sm:$0xff]  }
 0xa21   :  { %12288 = vmatpush3.bf16.msra.mxu0 %v14193_v12  ;;  %12219 = vmatprep.subr.bf16.mxu1 %v14194_v45  ;;  %v14233_v12 = vld [vmem:[#allocation17 + $0x318] sm:$0xff]   ;;  %v14234_v45 = vld [vmem:[#allocation17 + $0x1d0] sm:$0xff]  }
 0xa22   :  { %12289 = vmatprep.subr.bf16.mxu0 %v14195_v57  ;;  %v14235_v57 = vld [vmem:[#allocation17 + $0x360] sm:$0xff]  }
 0xa23   :  { %7748 = vmatmul.mubr.bf16.vlgmr.msra.gmra.mrb[164].mxu1 %v15704_v53 }
 0xa24   :  { %12220 = vmatpush3.bf16.msra.mxu1 %v14196_v18  ;;  %10004 = vmatprep.mubr.bf16.mxu1 %v7791_v15  ;;  %v14236_v18 = vld [vmem:[#allocation17 + $0x190] sm:$0xff]   ;;  %v14240_v15 = vld [vmem:[#allocation17 + $0x198] sm:$0xff]  }
 0xa25   :  { %12290 = vmatpush3.bf16.msra.mxu0 %v14197_v22  ;;  %12221 = vmatprep.subr.bf16.mxu1 %v14198_v21  ;;  %v14238_v22 = vld [vmem:[#allocation17 + $0x1d8] sm:$0xff]   ;;  %v14239_v21 = vld [vmem:[#allocation17 + $0x368] sm:$0xff]  }
 0xa26   :  { %12291 = vmatprep.subr.bf16.mxu0 %v14199_v52  ;;  %v14241_v52 = vld [vmem:[#allocation17 + $0x328] sm:$0xff]  }
 0xa28   :  { %12222 = vmatpush3.bf16.msra.mxu1 %v14200_v17  ;;  %v14242_v17 = vld [vmem:[#allocation17 + $0x1e0] sm:$0xff]  }
 0xa29   :  { %12292 = vmatpush3.bf16.msra.mxu0 %v14201_v55  ;;  %12223 = vmatprep.subr.bf16.mxu1 %v14202_v25  ;;  %v14243_v55 = vld [vmem:[#allocation17 + $0x370] sm:$0xff]   ;;  %v14244_v25 = vld [vmem:[#allocation17 + $0x1a0] sm:$0xff]  }
 0xa2a   :  { %12293 = vmatprep.subr.bf16.mxu0 %v14203_v26  ;;  %v14245_v26 = vld [vmem:[#allocation17 + $0x330] sm:$0xff]  }
 0xa2c   :  { %12224 = vmatpush3.bf16.msra.mxu1 %v14204_v43  ;;  %v14246_v43 = vld [vmem:[#allocation17 + $0x1e8] sm:$0xff]  }
 0xa2d   :  { %12294 = vmatpush3.bf16.msra.mxu0 %v14205_v19  ;;  %12225 = vmatprep.subr.bf16.mxu1 %v14206_v40  ;;  %v14247_v19 = vld [vmem:[#allocation17 + $0x378] sm:$0xff]   ;;  %v14248_v40 = vld [vmem:[#allocation17 + $0x1a8] sm:$0xff]  }
 0xa2e   :  { %12295 = vmatprep.subr.bf16.mxu0 %v14207_v20  ;;  %v14249_v20 = vld [vmem:[#allocation17 + $0x338] sm:$0xff]  }
 0xa30   :  { %12226 = vmatpush3.bf16.msra.mxu1 %v14208_v29  ;;  %v14250_v29 = vld [vmem:[#allocation17 + $0x1f0] sm:$0xff]  }
 0xa31   :  { %12296 = vmatpush3.bf16.msra.mxu0 %v14209_v28  ;;  %12227 = vmatprep.subr.bf16.mxu1 %v14210_v6  ;;  %v14251_v6 = vld [vmem:[#allocation17 + $0x440] sm:$0xff]  }
 0xa32   :  { %12297 = vmatprep.subr.bf16.mxu0 %v14211_v39 }
 0xa34   :  { %12228 = vmatpush3.bf16.msra.mxu1 %v14212_v42 }
 0xa35   :  { %12298 = vmatpush3.bf16.msra.mxu0 %v14213_v38  ;;  %12229 = vmatprep.subr.bf16.mxu1 %v14214_v47 }
 0xa36   :  { %v7257_v31 = vpop.f32.mrb[140].mxu1  ;;  %12299 = vmatprep.subr.bf16.mxu0 %v14215_v50  ;;  %v14252_v50 = vld [vmem:[#allocation17 + $0x1b0] sm:$0xff]  }
 0xa37   :  { %v15858_v11 = vmul.f32 %v7257_v31, %v15790_v36  ;;  %v7259_v44 = vpop.f32.mrb[141].mxu1  ;;  %v14254_v31 = vld [vmem:[#allocation17 + $0x1f8] sm:$0xff]  }
 0xa38   :  { %v7763_v33 = vmul.f32 %v7259_v44, %v15790_v36  ;;  %v7261_v2 = vpop.f32.mrb[142].mxu1  ;;  %12230 = vmatpush3.bf16.msra.mxu1 %v14216_v61  ;;  %v7805_v44 = vpack.c.bf16 %v15829_v32, %v15829_v32 }
 0xa39   :  { %12300 = vmatpush3.bf16.msra.mxu0 %v14217_v63  ;;  %v7262_v51 = vpop.f32.mrb[143].mxu1  ;;  %12231 = vmatprep.subr.bf16.mxu1 %v14218_v7  ;;  %v14253_v63 = vld [vmem:[#allocation17 + $0x400] sm:$0xff]   ;;  %v7800_v7 = vpack.c.bf16 %v15825_v24, %v15825_v24  ;;  %v14257_v2 = vld [vmem:[#allocation17 + $0x408] sm:$0xff]   ;;  %v7794_v24 = vpack.c.bf16 %v15858_v11, %v15858_v11 }
 0xa3a   :  { %12329 = vmatprep.subr.bf16.mxu0 %v14219_v4  ;;  %v7795_v60 = vpack.c.bf16 %v7763_v33, %v7763_v33  ;;  %v14255_v4 = vld [vmem:[#allocation17 + $0x448] sm:$0xff]   ;;  %v14256_v33 = vld [vmem:[#allocation17 + $0x1b8] sm:$0xff]   ;;  %v14259_v51 = vld [vmem:[#allocation17 + $0x450] sm:$0xff]  }
 0xa3b   :  { %v14269_v11 = vld [vmem:[#allocation17 + $0x420] sm:$0xff]  }
 0xa3c   :  { %10125 = vmatmul.mubr.bf16.vlgmr.msra.gmra.mrb[200].mxu0 %v7796_v14  ;;  %12232 = vmatpush3.bf16.msra.mxu1 %v14220_v58  ;;  %v14258_v58 = vld [vmem:[#allocation17 + $0x2c0] sm:$0xff]   ;;  %v14261_v14 = vld [vmem:[#allocation17 + $0x410] sm:$0xff]  }
 0xa3d   :  { %12330 = vmatpush3.bf16.msra.mxu0 %v14221_v0  ;;  %10204 = vmatprep.mubr.bf16.mxu0 %v7801_v23  ;;  %v14260_v0 = vld [vmem:[#allocation17 + $0x280] sm:$0xff]   ;;  %v14264_v23 = vld [vmem:[#allocation17 + $0x288] sm:$0xff]  }
 0xa3e   :  { %12233 = vmatprep.subr.bf16.mxu1 %v14222_v5  ;;  %12331 = vmatprep.subr.bf16.mxu0 %v14223_v1  ;;  %v14262_v5 = vld [vmem:[#allocation17 + $0x2c8] sm:$0xff]   ;;  %v14263_v1 = vld [vmem:[#allocation17 + $0x458] sm:$0xff]  }
 0xa40   :  { %12234 = vmatpush3.bf16.msra.mxu1 %v14224_v10  ;;  %v14265_v10 = vld [vmem:[#allocation17 + $0x418] sm:$0xff]  }
 0xa41   :  { %12332 = vmatpush3.bf16.msra.mxu0 %v14225_v37  ;;  %12263 = vmatprep.subr.bf16.mxu1 %v14226_v8  ;;  %v14266_v37 = vld [vmem:[#allocation17 + $0x2d0] sm:$0xff]   ;;  %v14267_v8 = vld [vmem:[#allocation17 + $0x460] sm:$0xff]  }
 0xa42   :  { %12333 = vmatprep.subr.bf16.mxu0 %v14227_v41  ;;  %v14268_v41 = vld [vmem:[#allocation17 + $0x290] sm:$0xff]  }
 0xa43   :  { %10005 = vmatmul.mubr.bf16.vlgmr.msra.gmra.mrb[168].mxu1 %v7790_v3  ;;  %v14271_v3 = vld [vmem:[#allocation17 + $0x468] sm:$0xff]  }
 0xa44   :  { %12264 = vmatpush3.bf16.msra.mxu1 %v14228_v46  ;;  %10084 = vmatprep.mubr.bf16.mxu1 %v7795_v60  ;;  %v14270_v46 = vld [vmem:[#allocation17 + $0x2d8] sm:$0xff]   ;;  %v14274_v60 = vld [vmem:[#allocation17 + $0x2e0] sm:$0xff]  }
 0xa45   :  { %12334 = vmatpush3.bf16.msra.mxu0 %v14229_v30  ;;  %12265 = vmatprep.subr.bf16.mxu1 %v14230_v49  ;;  %v14272_v30 = vld [vmem:[#allocation17 + $0x298] sm:$0xff]   ;;  %v14273_v49 = vld [vmem:[#allocation17 + $0x428] sm:$0xff]  }
 0xa46   :  { %12335 = vmatprep.subr.bf16.mxu0 %v14231_v54  ;;  %v14275_v54 = vld [vmem:[#allocation17 + $0x470] sm:$0xff]  }
 0xa48   :  { %12266 = vmatpush3.bf16.msra.mxu1 %v14232_v48  ;;  %v14276_v48 = vld [vmem:[#allocation17 + $0x2a0] sm:$0xff]  }
 0xa49   :  { %12336 = vmatpush3.bf16.msra.mxu0 %v14233_v12  ;;  %12267 = vmatprep.subr.bf16.mxu1 %v14234_v45  ;;  %v14277_v12 = vld [vmem:[#allocation17 + $0x430] sm:$0xff]   ;;  %v14278_v45 = vld [vmem:[#allocation17 + $0x2e8] sm:$0xff]  }
 0xa4a   :  { %12337 = vmatprep.subr.bf16.mxu0 %v14235_v57  ;;  %v14279_v57 = vld [vmem:[#allocation17 + $0x478] sm:$0xff]  }
 0xa4c   :  { %12268 = vmatpush3.bf16.msra.mxu1 %v14236_v18  ;;  %v14280_v18 = vld [vmem:[#allocation17 + $0x2a8] sm:$0xff]  }
 0xa4d   :  { %12338 = vmatpush3.bf16.msra.mxu0 %v14237_v27  ;;  %12269 = vmatprep.subr.bf16.mxu1 %v14238_v22  ;;  %v14281_v27 = vld [vmem:[#allocation17 + $0x438] sm:$0xff]   ;;  %v14282_v22 = vld [vmem:[#allocation17 + $0x2f0] sm:$0xff]  }
 0xa4e   :  { %12339 = vmatprep.subr.bf16.mxu0 %v14239_v21 }
 0xa50   :  { %12270 = vmatpush3.bf16.msra.mxu1 %v14240_v15  ;;  %v14283_v15 = vld [vmem:[#allocation17 + $0x540] sm:$0xff]  }
 0xa51   :  { %12340 = vmatpush3.bf16.msra.mxu0 %v14241_v52  ;;  %12271 = vmatprep.subr.bf16.mxu1 %v14242_v17 }
 0xa52   :  { %12341 = vmatprep.subr.bf16.mxu0 %v14243_v55 }
 0xa54   :  { %12272 = vmatpush3.bf16.msra.mxu1 %v14244_v25 }
 0xa55   :  { %12342 = vmatpush3.bf16.msra.mxu0 %v14245_v26  ;;  %12273 = vmatprep.subr.bf16.mxu1 %v14246_v43  ;;  %v14284_v26 = vld [vmem:[#allocation17 + $0x2b0] sm:$0xff]  }
 0xa56   :  { %v7339_v28 = vpop.f32.mrb[144].mxu1  ;;  %12343 = vmatprep.subr.bf16.mxu0 %v14247_v19  ;;  %v14285_v19 = vld [vmem:[#allocation17 + $0x500] sm:$0xff]  }
 0xa57   :  { %v15868_v39 = vmul.f32 %v7339_v28, %v15790_v36  ;;  %v7341_v42 = vpop.f32.mrb[145].mxu1  ;;  %v7809_v28 = vpack.c.bf16 %v15840_v16, %v15840_v16 }
 0xa58   :  { %v7767_v38 = vmul.f32 %v7341_v42, %v15790_v36  ;;  %v7343_v47 = vpop.f32.mrb[146].mxu1  ;;  %12274 = vmatpush3.bf16.msra.mxu1 %v14248_v40  ;;  %v7804_v40 = vpack.c.bf16 %v15836_v35, %v15836_v35  ;;  %v14289_v42 = vld [vmem:[#allocation17 + $0x508] sm:$0xff]  }
 0xa59   :  { %12344 = vmatpush3.bf16.msra.mxu0 %v14249_v20  ;;  %v7344_v61 = vpop.f32.mrb[147].mxu1  ;;  %12275 = vmatprep.subr.bf16.mxu1 %v14250_v29  ;;  %v14286_v20 = vld [vmem:[#allocation17 + $0x2f8] sm:$0xff]   ;;  %v14287_v29 = vld [vmem:[#allocation17 + $0x548] sm:$0xff]   ;;  %v14291_v47 = vld [vmem:[#allocation17 + $0x550] sm:$0xff]   ;;  %v7798_v35 = vpack.c.bf16 %v15868_v39, %v15868_v39 }
 0xa5a   :  { %12373 = vmatprep.subr.bf16.mxu0 %v14251_v6  ;;  %v7799_v32 = vpack.c.bf16 %v7767_v38, %v7767_v38  ;;  %v14288_v6 = vld [vmem:[#allocation17 + $0x2b8] sm:$0xff]   ;;  %v14290_v38 = vld [vmem:[#allocation17 + $0x3c0] sm:$0xff]   ;;  %v14293_v61 = vld [vmem:[#allocation17 + $0x510] sm:$0xff]  }
 0xa5b   :  { %v14301_v39 = vld [vmem:[#allocation17 + $0x520] sm:$0xff]  }
 0xa5c   :  { %10205 = vmatmul.mubr.bf16.vlgmr.msra.gmra.mrb[204].mxu0 %v7800_v7  ;;  %12276 = vmatpush3.bf16.msra.mxu1 %v14252_v50  ;;  %v14292_v50 = vld [vmem:[#allocation17 + $0x380] sm:$0xff]   ;;  %v14295_v7 = vld [vmem:[#allocation17 + $0x558] sm:$0xff]  }
 0xa5d   :  { %12374 = vmatpush3.bf16.msra.mxu0 %v14253_v63  ;;  %10284 = vmatprep.mubr.bf16.mxu0 %v7805_v44  ;;  %v14294_v63 = vld [vmem:[#allocation17 + $0x3c8] sm:$0xff]   ;;  %v14298_v44 = vld [vmem:[#allocation17 + $0x3d0] sm:$0xff]  }
 0xa5e   :  { %12277 = vmatprep.subr.bf16.mxu1 %v14254_v31  ;;  %12375 = vmatprep.subr.bf16.mxu0 %v14255_v4  ;;  %v14296_v31 = vld [vmem:[#allocation17 + $0x388] sm:$0xff]   ;;  %v14297_v4 = vld [vmem:[#allocation17 + $0x518] sm:$0xff]  }
 0xa60   :  { %12278 = vmatpush3.bf16.msra.mxu1 %v14256_v33  ;;  %v14299_v33 = vld [vmem:[#allocation17 + $0x560] sm:$0xff]  }
 0xa61   :  { %12376 = vmatpush3.bf16.msra.mxu0 %v14257_v2  ;;  %12307 = vmatprep.subr.bf16.mxu1 %v14258_v58  ;;  %v14300_v2 = vld [vmem:[#allocation17 + $0x390] sm:$0xff]   ;;  %v14302_v58 = vld [vmem:[#allocation17 + $0x3d8] sm:$0xff]  }
 0xa62   :  { %12377 = vmatprep.subr.bf16.mxu0 %v14259_v51  ;;  %v14303_v51 = vld [vmem:[#allocation17 + $0x568] sm:$0xff]  }
 0xa63   :  { %10085 = vmatmul.mubr.bf16.vlgmr.msra.gmra.mrb[172].mxu1 %v7794_v24  ;;  %v14305_v24 = vld [vmem:[#allocation17 + $0x528] sm:$0xff]  }
 0xa64   :  { %12308 = vmatpush3.bf16.msra.mxu1 %v14260_v0  ;;  %10164 = vmatprep.mubr.bf16.mxu1 %v7799_v32  ;;  %v14304_v0 = vld [vmem:[#allocation17 + $0x398] sm:$0xff]   ;;  %v14308_v32 = vld [vmem:[#allocation17 + $0x3a0] sm:$0xff]  }
 0xa65   :  { %12378 = vmatpush3.bf16.msra.mxu0 %v14261_v14  ;;  %12309 = vmatprep.subr.bf16.mxu1 %v14262_v5  ;;  %v14306_v14 = vld [vmem:[#allocation17 + $0x3e0] sm:$0xff]   ;;  %v14307_v5 = vld [vmem:[#allocation17 + $0x570] sm:$0xff]  }
 0xa66   :  { %12379 = vmatprep.subr.bf16.mxu0 %v14263_v1  ;;  %v14309_v1 = vld [vmem:[#allocation17 + $0x530] sm:$0xff]  }
 0xa68   :  { %12310 = vmatpush3.bf16.msra.mxu1 %v14264_v23  ;;  %v14310_v23 = vld [vmem:[#allocation17 + $0x3e8] sm:$0xff]  }
 0xa69   :  { %12380 = vmatpush3.bf16.msra.mxu0 %v14265_v10  ;;  %12311 = vmatprep.subr.bf16.mxu1 %v14266_v37  ;;  %v14311_v10 = vld [vmem:[#allocation17 + $0x578] sm:$0xff]   ;;  %v14312_v37 = vld [vmem:[#allocation17 + $0x3a8] sm:$0xff]  }
 0xa6a   :  { %12381 = vmatprep.subr.bf16.mxu0 %v14267_v8  ;;  %v14313_v8 = vld [vmem:[#allocation17 + $0x538] sm:$0xff]  }
 0xa6c   :  { %12312 = vmatpush3.bf16.msra.mxu1 %v14268_v41  ;;  %v14314_v41 = vld [vmem:[#allocation17 + $0x3f0] sm:$0xff]  }
 0xa6d   :  { %12382 = vmatpush3.bf16.msra.mxu0 %v14269_v11  ;;  %12313 = vmatprep.subr.bf16.mxu1 %v14270_v46  ;;  %v14315_v46 = vld [vmem:[#allocation17 + $0x640] sm:$0xff]  }
 0xa6e   :  { %12383 = vmatprep.subr.bf16.mxu0 %v14271_v3 }
 0xa70   :  { %12314 = vmatpush3.bf16.msra.mxu1 %v14272_v30 }
 0xa71   :  { %12384 = vmatpush3.bf16.msra.mxu0 %v14273_v49  ;;  %12315 = vmatprep.subr.bf16.mxu1 %v14274_v60 }
 0xa72   :  { %12385 = vmatprep.subr.bf16.mxu0 %v14275_v54  ;;  %v14316_v54 = vld [vmem:[#allocation17 + $0x3b0] sm:$0xff]  }
 0xa74   :  { %12316 = vmatpush3.bf16.msra.mxu1 %v14276_v48 }
 0xa75   :  { %12386 = vmatpush3.bf16.msra.mxu0 %v14277_v12  ;;  %12317 = vmatprep.subr.bf16.mxu1 %v14278_v45  ;;  %v14317_v12 = vld [vmem:[#allocation17 + $0x600] sm:$0xff]   ;;  %v7808_v45 = vpack.c.bf16 %v15844_v13, %v15844_v13 }
 0xa76   :  { %v7421_v21 = vpop.f32.mrb[148].mxu1  ;;  %12387 = vmatprep.subr.bf16.mxu0 %v14279_v57  ;;  %v14318_v57 = vld [vmem:[#allocation17 + $0x3f8] sm:$0xff]  }
 0xa77   :  { %v15878_v52 = vmul.f32 %v7421_v21, %v15790_v36  ;;  %v7423_v17 = vpop.f32.mrb[149].mxu1  ;;  %v14321_v21 = vld [vmem:[#allocation17 + $0x608] sm:$0xff]  }
 0xa78   :  { %v7771_v55 = vmul.f32 %v7423_v17, %v15790_v36  ;;  %v7425_v25 = vpop.f32.mrb[150].mxu1  ;;  %12318 = vmatpush3.bf16.msra.mxu1 %v14280_v18  ;;  %v14319_v18 = vld [vmem:[#allocation17 + $0x648] sm:$0xff]   ;;  %v14323_v17 = vld [vmem:[#allocation17 + $0x650] sm:$0xff]  }
 0xa79   :  { %12388 = vmatpush3.bf16.msra.mxu0 %v14281_v27  ;;  %v7426_v43 = vpop.f32.mrb[151].mxu1  ;;  %12319 = vmatprep.subr.bf16.mxu1 %v14282_v22  ;;  %v7813_v27 = vpack.c.bf16 %v15796_v56, %v15796_v56  ;;  %v14320_v22 = vld [vmem:[#allocation17 + $0x3b8] sm:$0xff]   ;;  %v7802_v13 = vpack.c.bf16 %v15878_v52, %v15878_v52  ;;  %v14325_v25 = vld [vmem:[#allocation17 + $0x610] sm:$0xff]   ;;  %v14333_v52 = vld [vmem:[#allocation17 + $0x620] sm:$0xff]  }
 0xa7a   :  { %12417 = vmatprep.subr.bf16.mxu0 %v14283_v15  ;;  %v7803_v16 = vpack.c.bf16 %v7771_v55, %v7771_v55  ;;  %v14322_v15 = vld [vmem:[#allocation17 + $0x4c0] sm:$0xff]   ;;  %v14327_v43 = vld [vmem:[#allocation17 + $0x658] sm:$0xff]  }
 0xa7b   :  { %v14324_v55 = vld [vmem:[#allocation17 + $0x480] sm:$0xff]  }
 0xa7c   :  { %10285 = vmatmul.mubr.bf16.vlgmr.msra.gmra.mrb[208].mxu0 %v7804_v40  ;;  %12320 = vmatpush3.bf16.msra.mxu1 %v14284_v26  ;;  %v14326_v26 = vld [vmem:[#allocation17 + $0x4c8] sm:$0xff]   ;;  %v14329_v40 = vld [vmem:[#allocation17 + $0x618] sm:$0xff]  }
 0xa7d   :  { %12418 = vmatpush3.bf16.msra.mxu0 %v14285_v19  ;;  %10364 = vmatprep.mubr.bf16.mxu0 %v7809_v28  ;;  %v14328_v19 = vld [vmem:[#allocation17 + $0x488] sm:$0xff]   ;;  %v14332_v28 = vld [vmem:[#allocation17 + $0x490] sm:$0xff]  }
 0xa7e   :  { %12321 = vmatprep.subr.bf16.mxu1 %v14286_v20  ;;  %12419 = vmatprep.subr.bf16.mxu0 %v14287_v29  ;;  %v14330_v20 = vld [vmem:[#allocation17 + $0x4d0] sm:$0xff]   ;;  %v14331_v29 = vld [vmem:[#allocation17 + $0x660] sm:$0xff]  }
 0xa80   :  { %12322 = vmatpush3.bf16.msra.mxu1 %v14288_v6  ;;  %v14334_v6 = vld [vmem:[#allocation17 + $0x4d8] sm:$0xff]  }
 0xa81   :  { %12420 = vmatpush3.bf16.msra.mxu0 %v14289_v42  ;;  %12351 = vmatprep.subr.bf16.mxu1 %v14290_v38  ;;  %v14335_v42 = vld [vmem:[#allocation17 + $0x668] sm:$0xff]   ;;  %v14336_v38 = vld [vmem:[#allocation17 + $0x498] sm:$0xff]  }
 0xa82   :  { %12421 = vmatprep.subr.bf16.mxu0 %v14291_v47  ;;  %v14337_v47 = vld [vmem:[#allocation17 + $0x628] sm:$0xff]  }
 0xa83   :  { %10165 = vmatmul.mubr.bf16.vlgmr.msra.gmra.mrb[176].mxu1 %v7798_v35  ;;  %v14339_v35 = vld [vmem:[#allocation17 + $0x670] sm:$0xff]  }
 0xa84   :  { %12352 = vmatpush3.bf16.msra.mxu1 %v14292_v50  ;;  %10244 = vmatprep.mubr.bf16.mxu1 %v7803_v16  ;;  %v14338_v50 = vld [vmem:[#allocation17 + $0x4e0] sm:$0xff]   ;;  %v14342_v16 = vld [vmem:[#allocation17 + $0x4e8] sm:$0xff]  }
 0xa85   :  { %12422 = vmatpush3.bf16.msra.mxu0 %v14293_v61  ;;  %12353 = vmatprep.subr.bf16.mxu1 %v14294_v63  ;;  %v14340_v61 = vld [vmem:[#allocation17 + $0x4a0] sm:$0xff]   ;;  %v14341_v63 = vld [vmem:[#allocation17 + $0x630] sm:$0xff]  }
 0xa86   :  { %12423 = vmatprep.subr.bf16.mxu0 %v14295_v7  ;;  %v14343_v7 = vld [vmem:[#allocation17 + $0x678] sm:$0xff]  }
 0xa88   :  { %12354 = vmatpush3.bf16.msra.mxu1 %v14296_v31  ;;  %v14344_v31 = vld [vmem:[#allocation17 + $0x4a8] sm:$0xff]  }
 0xa89   :  { %12424 = vmatpush3.bf16.msra.mxu0 %v14297_v4  ;;  %12355 = vmatprep.subr.bf16.mxu1 %v14298_v44  ;;  %v14345_v4 = vld [vmem:[#allocation17 + $0x638] sm:$0xff]   ;;  %v14346_v44 = vld [vmem:[#allocation17 + $0x4f0] sm:$0xff]  }
 0xa8a   :  { %12425 = vmatprep.subr.bf16.mxu0 %v14299_v33 }
 0xa8c   :  { %12356 = vmatpush3.bf16.msra.mxu1 %v14300_v2  ;;  %v14347_v2 = vld [vmem:[#allocation17 + $0x740] sm:$0xff]  }
 0xa8d   :  { %12426 = vmatpush3.bf16.msra.mxu0 %v14301_v39  ;;  %12357 = vmatprep.subr.bf16.mxu1 %v14302_v58 }
 0xa8e   :  { %12427 = vmatprep.subr.bf16.mxu0 %v14303_v51 }
 0xa90   :  { %12358 = vmatpush3.bf16.msra.mxu1 %v14304_v0 }
 0xa91   :  { %12428 = vmatpush3.bf16.msra.mxu0 %v14305_v24  ;;  %12359 = vmatprep.subr.bf16.mxu1 %v14306_v14  ;;  %v14348_v24 = vld [vmem:[#allocation17 + $0x4b0] sm:$0xff]  }
 0xa92   :  { %12429 = vmatprep.subr.bf16.mxu0 %v14307_v5  ;;  %v14349_v5 = vld [vmem:[#allocation17 + $0x700] sm:$0xff]  }
 0xa94   :  { %12360 = vmatpush3.bf16.msra.mxu1 %v14308_v32  ;;  %v7812_v32 = vpack.c.bf16 %v15793_v34, %v15793_v34 }
 0xa95   :  { %12430 = vmatpush3.bf16.msra.mxu0 %v14309_v1  ;;  %12361 = vmatprep.subr.bf16.mxu1 %v14310_v23  ;;  %v14350_v1 = vld [vmem:[#allocation17 + $0x4f8] sm:$0xff]   ;;  %v14351_v23 = vld [vmem:[#allocation17 + $0x748] sm:$0xff]  }
 0xa96   :  { %v7503_v11 = vpop.f32.mrb[152].mxu1  ;;  %12431 = vmatprep.subr.bf16.mxu0 %v14311_v10  ;;  %v7817_v10 = vpack.c.bf16 %v15832_v62, %v15832_v62 }
 0xa97   :  { %v15888_v3 = vmul.f32 %v7503_v11, %v15790_v36  ;;  %v7505_v30 = vpop.f32.mrb[153].mxu1  ;;  %v14355_v11 = vld [vmem:[#allocation17 + $0x750] sm:$0xff]  }
 0xa98   :  { %v7775_v49 = vmul.f32 %v7505_v30, %v15790_v36  ;;  %v7507_v60 = vpop.f32.mrb[154].mxu1  ;;  %12362 = vmatpush3.bf16.msra.mxu1 %v14312_v37  ;;  %v14352_v37 = vld [vmem:[#allocation17 + $0x4b8] sm:$0xff]   ;;  %v14357_v30 = vld [vmem:[#allocation17 + $0x710] sm:$0xff]  }
 0xa99   :  { %12432 = vmatpush3.bf16.msra.mxu0 %v14313_v8  ;;  %v7508_v48 = vpop.f32.mrb[155].mxu1  ;;  %12363 = vmatprep.subr.bf16.mxu1 %v14314_v41  ;;  %v14353_v8 = vld [vmem:[#allocation17 + $0x708] sm:$0xff]   ;;  %v14354_v41 = vld [vmem:[#allocation17 + $0x5c0] sm:$0xff]   ;;  %v7806_v34 = vpack.c.bf16 %v15888_v3, %v15888_v3  ;;  %v14359_v60 = vld [vmem:[#allocation17 + $0x758] sm:$0xff]  }
 0xa9a   :  { %12461 = vmatprep.subr.bf16.mxu0 %v14315_v46  ;;  %v7807_v56 = vpack.c.bf16 %v7775_v49, %v7775_v49  ;;  %v14356_v46 = vld [vmem:[#allocation17 + $0x580] sm:$0xff]   ;;  %v14358_v49 = vld [vmem:[#allocation17 + $0x5c8] sm:$0xff]   ;;  %v14361_v48 = vld [vmem:[#allocation17 + $0x718] sm:$0xff]  }
 0xa9b   :  { %v14365_v3 = vld [vmem:[#allocation17 + $0x720] sm:$0xff]  }
 0xa9c   :  { %10365 = vmatmul.mubr.bf16.vlgmr.msra.gmra.mrb[212].mxu0 %v7808_v45  ;;  %12364 = vmatpush3.bf16.msra.mxu1 %v14316_v54  ;;  %v14360_v54 = vld [vmem:[#allocation17 + $0x588] sm:$0xff]   ;;  %v14363_v45 = vld [vmem:[#allocation17 + $0x760] sm:$0xff]  }
 0xa9d   :  { %12462 = vmatpush3.bf16.msra.mxu0 %v14317_v12  ;;  %10444 = vmatprep.mubr.bf16.mxu0 %v7813_v27  ;;  %v14362_v12 = vld [vmem:[#allocation17 + $0x5d0] sm:$0xff]   ;;  %v14367_v27 = vld [vmem:[#allocation17 + $0x768] sm:$0xff]  }
 0xa9e   :  { %12365 = vmatprep.subr.bf16.mxu1 %v14318_v57  ;;  %12463 = vmatprep.subr.bf16.mxu0 %v14319_v18  ;;  %v14364_v57 = vld [vmem:[#allocation17 + $0x590] sm:$0xff]   ;;  %v14366_v18 = vld [vmem:[#allocation17 + $0x5d8] sm:$0xff]  }
 0xaa0   :  { %12366 = vmatpush3.bf16.msra.mxu1 %v14320_v22  ;;  %v14368_v22 = vld [vmem:[#allocation17 + $0x598] sm:$0xff]  }
 0xaa1   :  { %12464 = vmatpush3.bf16.msra.mxu0 %v14321_v21  ;;  %12395 = vmatprep.subr.bf16.mxu1 %v14322_v15  ;;  %v14369_v21 = vld [vmem:[#allocation17 + $0x728] sm:$0xff]   ;;  %v14370_v15 = vld [vmem:[#allocation17 + $0x5e0] sm:$0xff]  }
 0xaa2   :  { %12465 = vmatprep.subr.bf16.mxu0 %v14323_v17  ;;  %v14371_v17 = vld [vmem:[#allocation17 + $0x770] sm:$0xff]  }
 0xaa3   :  { %10245 = vmatmul.mubr.bf16.vlgmr.msra.gmra.mrb[180].mxu1 %v7802_v13 }
 0xaa4   :  { %12396 = vmatpush3.bf16.msra.mxu1 %v14324_v55  ;;  %10324 = vmatprep.mubr.bf16.mxu1 %v7807_v56 }
 0xaa5   :  { %12466 = vmatpush3.bf16.msra.mxu0 %v14325_v25  ;;  %12397 = vmatprep.subr.bf16.mxu1 %v14326_v26  ;;  %v14372_v25 = vld [vmem:[#allocation17 + $0x5a0] sm:$0xff]  }
 0xaa6   :  { %12467 = vmatprep.subr.bf16.mxu0 %v14327_v43  ;;  %v14373_v43 = vld [vmem:[#allocation17 + $0x730] sm:$0xff]  }
 0xaa8   :  { %12398 = vmatpush3.bf16.msra.mxu1 %v14328_v19  ;;  %v14374_v19 = vld [vmem:[#allocation17 + $0x5e8] sm:$0xff]  }
 0xaa9   :  { %12468 = vmatpush3.bf16.msra.mxu0 %v14329_v40  ;;  %12399 = vmatprep.subr.bf16.mxu1 %v14330_v20  ;;  %v14375_v20 = vld [vmem:[#allocation17 + $0x778] sm:$0xff]  }
 0xaaa   :  { %12469 = vmatprep.subr.bf16.mxu0 %v14331_v29  ;;  %v14376_v29 = vld [vmem:[#allocation17 + $0x5a8] sm:$0xff]  }
 0xaac   :  { %12400 = vmatpush3.bf16.msra.mxu1 %v14332_v28  ;;  %v14377_v28 = vld [vmem:[#allocation17 + $0x738] sm:$0xff]  }
 0xaad   :  { %12470 = vmatpush3.bf16.msra.mxu0 %v14333_v52  ;;  %12401 = vmatprep.subr.bf16.mxu1 %v14334_v6  ;;  %v14378_v52 = vld [vmem:[#allocation17 + $0x5f0] sm:$0xff]  }
 0xaae   :  { %12471 = vmatprep.subr.bf16.mxu0 %v14335_v42  ;;  %v14379_v42 = vld [vmem:[#allocation19 + $0x40] sm:$0xff]  }
 0xab0   :  { %12402 = vmatpush3.bf16.msra.mxu1 %v14336_v38 }
 0xab1   :  { %12472 = vmatpush3.bf16.msra.mxu0 %v14337_v47  ;;  %12403 = vmatprep.subr.bf16.mxu1 %v14338_v50 }
 0xab2   :  { %12473 = vmatprep.subr.bf16.mxu0 %v14339_v35 }
 0xab4   :  { %12404 = vmatpush3.bf16.msra.mxu1 %v14340_v61  ;;  %v14380_v61 = vld [vmem:[#allocation17 + $0x5b0] sm:$0xff]  }
 0xab5   :  { %12474 = vmatpush3.bf16.msra.mxu0 %v14341_v63  ;;  %12405 = vmatprep.subr.bf16.mxu1 %v14342_v16  ;;  %v14381_v16 = vld [vmem:[#allocation19] sm:$0xff]  }
 0xab6   :  { %v7585_v33 = vpop.f32.mrb[156].mxu1  ;;  %12475 = vmatprep.subr.bf16.mxu0 %v14343_v7  ;;  %v7816_v7 = vpack.c.bf16 %v15817_v59, %v15817_v59 }
 0xab7   :  { %v15898_v39 = vmul.f32 %v7585_v33, %v15790_v36  ;;  %v7587_v58 = vpop.f32.mrb[157].mxu1  ;;  %v14384_v33 = vld [vmem:[#allocation17 + $0x5b8] sm:$0xff]  }
 0xab8   :  { %v7779_v51 = vmul.f32 %v7587_v58, %v15790_v36  ;;  %v7589_v0 = vpop.f32.mrb[158].mxu1  ;;  %12406 = vmatpush3.bf16.msra.mxu1 %v14344_v31  ;;  %v14382_v31 = vld [vmem:[#allocation17 + $0x5f8] sm:$0xff]   ;;  %v14386_v58 = vld [vmem:[#allocation17 + $0x6c0] sm:$0xff]  }
 0xab9   :  { %12476 = vmatpush3.bf16.msra.mxu0 %v14345_v4  ;;  %v7590_v14 = vpop.f32.mrb[159].mxu1  ;;  %12407 = vmatprep.subr.bf16.mxu1 %v14346_v44  ;;  %v14383_v4 = vld [vmem:[#allocation19 + $0x48] sm:$0xff]   ;;  %v5563_v44 = vpack.c.bf16 %v15790_v36, %v15790_v36  ;;  %v14388_v0 = vld [vmem:[#allocation17 + $0x680] sm:$0xff]   ;;  %v7810_v59 = vpack.c.bf16 %v15898_v39, %v15898_v39 }
 0xaba   :  { %12505 = vmatprep.subr.bf16.mxu0 %v14347_v2  ;;  %v7811_v62 = vpack.c.bf16 %v7779_v51, %v7779_v51  ;;  %v14385_v2 = vld [vmem:[#allocation19 + $0x8] sm:$0xff]   ;;  %v14387_v51 = vld [vmem:[#allocation19 + $0x50] sm:$0xff]   ;;  %v14397_v39 = vld [vmem:[#allocation19 + $0x20] sm:$0xff]  }
 0xabb   :  { %v14390_v14 = vld [vmem:[#allocation17 + $0x6c8] sm:$0xff]  }
 0xabc   :  { %10445 = vmatmul.mubr.bf16.vlgmr.msra.gmra.mrb[216].mxu0 %v7812_v32  ;;  %12408 = vmatpush3.bf16.msra.mxu1 %v14348_v24  ;;  %v14389_v24 = vld [vmem:[#allocation19 + $0x10] sm:$0xff]   ;;  %v14391_v32 = vld [vmem:[#allocation19 + $0x58] sm:$0xff]  }
 0xabd   :  { %12506 = vmatpush3.bf16.msra.mxu0 %v14349_v5  ;;  %10524 = vmatprep.mubr.bf16.mxu0 %v7817_v10  ;;  %v14394_v10 = vld [vmem:[#allocation17 + $0x6d0] sm:$0xff]  }
 0xabe   :  { %12409 = vmatprep.subr.bf16.mxu1 %v14350_v1  ;;  %12507 = vmatprep.subr.bf16.mxu0 %v14351_v23  ;;  %v14392_v1 = vld [vmem:[#allocation17 + $0x688] sm:$0xff]   ;;  %v14393_v23 = vld [vmem:[#allocation19 + $0x18] sm:$0xff]  }
 0xac0   :  { %12410 = vmatpush3.bf16.msra.mxu1 %v14352_v37  ;;  %v14395_v37 = vld [vmem:[#allocation19 + $0x60] sm:$0xff]  }
 0xac1   :  { %12508 = vmatpush3.bf16.msra.mxu0 %v14353_v8  ;;  %12439 = vmatprep.subr.bf16.mxu1 %v14354_v41  ;;  %v14396_v8 = vld [vmem:[#allocation17 + $0x690] sm:$0xff]   ;;  %v14398_v41 = vld [vmem:[#allocation17 + $0x6d8] sm:$0xff]  }
 0xac2   :  { %12509 = vmatprep.subr.bf16.mxu0 %v14355_v11  ;;  %v14399_v11 = vld [vmem:[#allocation19 + $0x68] sm:$0xff]  }
 0xac3   :  { %10325 = vmatmul.mubr.bf16.vlgmr.msra.gmra.mrb[184].mxu1 %v7806_v34  ;;  %v14401_v34 = vld [vmem:[#allocation19 + $0x28] sm:$0xff]  }
 0xac4   :  { %12440 = vmatpush3.bf16.msra.mxu1 %v14356_v46  ;;  %10404 = vmatprep.mubr.bf16.mxu1 %v7811_v62  ;;  %v14400_v46 = vld [vmem:[#allocation17 + $0x698] sm:$0xff]  }
 0xac5   :  { %12510 = vmatpush3.bf16.msra.mxu0 %v14357_v30  ;;  %12441 = vmatprep.subr.bf16.mxu1 %v14358_v49  ;;  %v14402_v30 = vld [vmem:[#allocation17 + $0x6e0] sm:$0xff]   ;;  %v14403_v49 = vld [vmem:[#allocation19 + $0x70] sm:$0xff]  }
 0xac6   :  { %12511 = vmatprep.subr.bf16.mxu0 %v14359_v60 }
 0xac8   :  { %12442 = vmatpush3.bf16.msra.mxu1 %v14360_v54  ;;  %v14404_v54 = vld [vmem:[#allocation17 + $0x6a0] sm:$0xff]  }
 0xac9   :  { %12512 = vmatpush3.bf16.msra.mxu0 %v14361_v48  ;;  %12443 = vmatprep.subr.bf16.mxu1 %v14362_v12 }
 0xaca   :  { %12513 = vmatprep.subr.bf16.mxu0 %v14363_v45  ;;  %v14405_v45 = vld [vmem:[#allocation19 + $0x30] sm:$0xff]  }
 0xacc   :  { %12444 = vmatpush3.bf16.msra.mxu1 %v14364_v57  ;;  %v14406_v57 = vld [vmem:[#allocation17 + $0x6e8] sm:$0xff]  }
 0xacd   :  { %12514 = vmatpush3.bf16.msra.mxu0 %v14365_v3  ;;  %12445 = vmatprep.subr.bf16.mxu1 %v14366_v18  ;;  %v14407_v18 = vld [vmem:[#allocation19 + $0x78] sm:$0xff]  }
 0xace   :  { %12515 = vmatprep.subr.bf16.mxu0 %v14367_v27  ;;  %v14408_v27 = vld [vmem:[#allocation17 + $0x6a8] sm:$0xff]  }
 0xacf   :  { %v12213_v55 = vpop.f32.mrb[192].mxu0 }
 0xad0   :  { %v12214_v13 = vpop.f32.mrb[193].mxu0  ;;  %12446 = vmatpush3.bf16.msra.mxu1 %v14368_v22  ;;  %v14409_v22 = vld [vmem:[#allocation19 + $0x38] sm:$0xff]  }
 0xad1   :  { %v15907_v26 = vadd.f32 %v12214_v13, %v12213_v55  ;;  %12516 = vmatpush3.bf16.msra.mxu0 %v14369_v21  ;;  %v12216_v56 = vpop.f32.mrb[194].mxu0  ;;  %12447 = vmatprep.subr.bf16.mxu1 %v14370_v15  ;;  %v14410_v21 = vld [vmem:[#allocation17 + $0x6f0] sm:$0xff]  }
 0xad2   :  { %v12217_v40 = vpop.f32.mrb[195].mxu0  ;;  %12517 = vmatprep.subr.bf16.mxu0 %v14371_v17  ;;  %v14411_v56 = vld [vmem:[#allocation17 + $0x6b0] sm:$0xff]  }
 0xad3   :  { %v14413_v40 = vld [vmem:[#allocation17 + $0x6b8] sm:$0xff]  }
 0xad4   :  { %12448 = vmatpush3.bf16.msra.mxu1 %v14372_v25 }
 0xad5   :  { %12518 = vmatpush3.bf16.msra.mxu0 %v14373_v43  ;;  %12449 = vmatprep.subr.bf16.mxu1 %v14374_v19  ;;  %v14412_v19 = vld [vmem:[#allocation17 + $0x6f8] sm:$0xff]  }
 0xad6   :  { %v7667_v6 = vpop.f32.mrb[160].mxu1  ;;  %12519 = vmatprep.subr.bf16.mxu0 %v14375_v20  ;;  %v14414_v20 = vld [vmem:[#allocation17 + $0x7c0] sm:$0xff]  }
 0xad7   :  { %v15910_v38 = vmul.f32 %v7667_v6, %v15790_v36  ;;  %v7669_v47 = vpop.f32.mrb[161].mxu1  ;;  %v14417_v6 = vld [vmem:[#allocation17 + $0x788] sm:$0xff]  }
 0xad8   :  { %v7783_v50 = vmul.f32 %v7669_v47, %v15790_v36  ;;  %v7671_v35 = vpop.f32.mrb[162].mxu1  ;;  %12450 = vmatpush3.bf16.msra.mxu1 %v14376_v29  ;;  %v14420_v47 = vld [vmem:[#allocation17 + $0x7d8] sm:$0xff]  }
 0xad9   :  { %12520 = vmatpush3.bf16.msra.mxu0 %v14377_v28  ;;  %v7672_v63 = vpop.f32.mrb[163].mxu1  ;;  %12451 = vmatprep.subr.bf16.mxu1 %v14378_v52  ;;  %v7814_v29 = vpack.c.bf16 %v15910_v38, %v15910_v38  ;;  %v14416_v28 = vld [vmem:[#allocation17 + $0x7c8] sm:$0xff]   ;;  %v14422_v35 = vld [vmem:[#allocation17 + $0x7e0] sm:$0xff]  }
 0xada   :  { %12549 = vmatprep.subr.bf16.mxu0 %v14379_v42  ;;  %v7815_v5 = vpack.c.bf16 %v7783_v50, %v7783_v50  ;;  %v14419_v42 = vld [vmem:[#allocation17 + $0x790] sm:$0xff]   ;;  %v14421_v50 = vld [vmem:[#allocation17 + $0x798] sm:$0xff]   ;;  %v14423_v38 = vld [vmem:[#allocation17 + $0x7a0] sm:$0xff]  }
 0xadc   :  { %10525 = vmatmul.mubr.bf16.vlgmr.msra.gmra.mrb[220].mxu0 %v7816_v7  ;;  %12452 = vmatpush3.bf16.msra.mxu1 %v14380_v61 }
 0xadd   :  { %12550 = vmatpush3.bf16.msra.mxu0 %v14381_v16  ;;  %10748 = vmatprep.mubr.bf16.mxu0 %v5563_v44  ;;  %v14425_v44 = vld [vmem:[#allocation17 + $0x7a8] sm:$0xff]  }
 0xade   :  { %12453 = vmatprep.subr.bf16.mxu1 %v14382_v31  ;;  %12551 = vmatprep.subr.bf16.mxu0 %v14383_v4  ;;  %v14424_v31 = vld [vmem:[#allocation17 + $0x7e8] sm:$0xff]  }
 0xae0   :  { %12454 = vmatpush3.bf16.msra.mxu1 %v14384_v33  ;;  %v14426_v33 = vld [vmem:[#allocation17 + $0x7f0] sm:$0xff]  }
 0xae1   :  { %12552 = vmatpush3.bf16.msra.mxu0 %v14385_v2  ;;  %12483 = vmatprep.subr.bf16.mxu1 %v14386_v58 }
 0xae2   :  { %12553 = vmatprep.subr.bf16.mxu0 %v14387_v51 }
 0xae3   :  { %10405 = vmatmul.mubr.bf16.vlgmr.msra.gmra.mrb[188].mxu1 %v7810_v59  ;;  %v14427_v59 = vld [vmem:[#allocation17 + $0x7b0] sm:$0xff]  }
 0xae4   :  { %12484 = vmatpush3.bf16.msra.mxu1 %v14388_v0  ;;  %10484 = vmatprep.mubr.bf16.mxu1 %v7815_v5 }
 0xae5   :  { %12554 = vmatpush3.bf16.msra.mxu0 %v14389_v24  ;;  %12485 = vmatprep.subr.bf16.mxu1 %v14390_v14  ;;  %v14428_v14 = vld [vmem:[#allocation17 + $0x7f8] sm:$0xff]  }
 0xae6   :  { %12555 = vmatprep.subr.bf16.mxu0 %v14391_v32  ;;  %v14429_v32 = vld [vmem:[#allocation17 + $0x7b8] sm:$0xff]  }
 0xae8   :  { %12486 = vmatpush3.bf16.msra.mxu1 %v14392_v1 }
 0xae9   :  { %12556 = vmatpush3.bf16.msra.mxu0 %v14393_v23  ;;  %12487 = vmatprep.subr.bf16.mxu1 %v14394_v10  ;;  %v14430_v23 = vld [vmem:[#allocation19 + $0x80] sm:$0xff]  }
 0xaea   :  { %12557 = vmatprep.subr.bf16.mxu0 %v14395_v37  ;;  %v14431_v37 = vld [vmem:[#allocation19 + $0x88] sm:$0xff]  }
 0xaec   :  { %12488 = vmatpush3.bf16.msra.mxu1 %v14396_v8  ;;  %v14433_v8 = vld [vmem:[#allocation19 + $0x98] sm:$0xff]  }
 0xaed   :  { %12558 = vmatpush3.bf16.msra.mxu0 %v14397_v39  ;;  %12489 = vmatprep.subr.bf16.mxu1 %v14398_v41 }
 0xaee   :  { %12559 = vmatprep.subr.bf16.mxu0 %v14399_v11  ;;  %v14434_v11 = vld [vmem:[#allocation19 + $0xa0] sm:$0xff]  }
 0xaef   :  { %v12257_v62 = vpop.f32.mrb[196].mxu0 }
 0xaf0   :  { %v12258_v60 = vpop.f32.mrb[197].mxu0  ;;  %12490 = vmatpush3.bf16.msra.mxu1 %v14400_v46 }
 0xaf1   :  { %v15919_v48 = vadd.f32 %v12258_v60, %v12257_v62  ;;  %v12260_v12 = vpop.f32.mrb[198].mxu0  ;;  %12560 = vmatpush3.bf16.msra.mxu0 %v14401_v34  ;;  %12491 = vmatprep.subr.bf16.mxu1 %v14402_v30 }
 0xaf2   :  { %v12261_v3 = vpop.f32.mrb[199].mxu0  ;;  %12561 = vmatprep.subr.bf16.mxu0 %v14403_v49  ;;  %v14435_v49 = vld [vmem:[#allocation19 + $0xa8] sm:$0xff]   ;;  %v14436_v12 = vld [vmem:[#allocation19 + $0xb0] sm:$0xff]  }
 0xaf3   :  { %v14437_v3 = vld [vmem:[#allocation19 + $0xb8] sm:$0xff]  }
 0xaf4   :  { %12492 = vmatpush3.bf16.msra.mxu1 %v14404_v54 }
 0xaf5   :  { %12562 = vmatpush3.bf16.msra.mxu0 %v14405_v45  ;;  %12493 = vmatprep.subr.bf16.mxu1 %v14406_v57 }
 0xaf6   :  { %v7749_v15 = vpop.f32.mrb[164].mxu1  ;;  %12563 = vmatprep.subr.bf16.mxu0 %v14407_v18  ;;  %v5478_v18 = vld [vmem:[%s15976_s9 + $0x10] sm:$0xff]  ;;  %s14775_s9 = smov [#allocation20]  }
 0xaf7   :  { %v15922_v17 = vmul.f32 %v7749_v15, %v15790_v36  ;;  %v7751_v55 = vpop.f32.mrb[165].mxu1  ;;  %s10893_s17 = sshll.u32 %s14775_s9, 4  ;;  %s10894_s17 = int_to_ptr.vmem [resolvable:$true] %s10893_s17 }
 0xaf8   :  { %v7787_v13 = vmul.f32 %v7751_v55, %v15790_v36  ;;  %v7753_v25 = vpop.f32.mrb[166].mxu1  ;;  %12494 = vmatpush3.bf16.msra.mxu1 %v14408_v27  ;;  %v14415_v36 = vld [vmem:[#allocation17 + $0x780] sm:$0xff]   ;;  %s14715_s6 = scalar_lea.vmem %s10894_s17, 128  ;;  %p14720_p5 = scmp.lt.s32.totalorder %s10894_s17, %s10894_s17 }
 0xaf9   :  { %12564 = vmatpush3.bf16.msra.mxu0 %v14409_v22  ;;  %v7754_v43 = vpop.f32.mrb[167].mxu1  ;;  %12495 = vmatprep.subr.bf16.mxu1 %v14410_v21  ;;  %v7818_v10 = vpack.c.bf16 %v15922_v17, %v15922_v17  ;;  %v5481_v22 = vpack.c.bf16 %v5478_v18, %v5478_v18  ;;  %p14716_p4 = scmp.ne.s32.totalorder %s10894_s17, %s14715_s6  ;;  %p14721_p6 = scmp.lt.s32.totalorder %s14715_s6, %s14715_s6 }
 0xafa   :  { %13673 = vmatprep.subr.bf16.mxu0 %v14772_v9  ;;  %v7819_v52 = vpack.c.bf16 %v7787_v13, %v7787_v13 }
 0xafb   :  { %p14722_p7 = por %p14721_p6, %p14720_p5 }
 0xafc   :  { %10749 = vmatmul.mubr.bf16.vlgmr.msra.gmra.mrb[224].mxu0 %v15704_v53  ;;  %12496 = vmatpush3.bf16.msra.mxu1 %v14411_v56  ;;  %v14418_v53 = vld [vmem:[#allocation17 + $0x7d0] sm:$0xff]  }
 0xafd   :  { %12497 = vmatprep.subr.bf16.mxu1 %v14412_v19  ;;  %13689 = vmatprep.mubr.msk.bf16.mxu0 %vm14773_vm0, %v14772_v9  ;;  %p14723_p8 = pnand %p14722_p7, %p14716_p4 }
 0xb00   :  { %12498 = vmatpush3.bf16.msra.mxu1 %v14413_v40 }
 0xb01   :  { %12527 = vmatprep.subr.bf16.mxu1 %v14414_v20 }
 0xb03   :  { %10485 = vmatmul.mubr.bf16.vlgmr.msra.gmra.mrb[192].mxu1 %v7814_v29 }
 0xb04   :  { %12528 = vmatpush3.bf16.msra.mxu1 %v14415_v36  ;;  %10564 = vmatprep.mubr.bf16.mxu1 %v7819_v52 }
 0xb05   :  { %12529 = vmatprep.subr.bf16.mxu1 %v14416_v28 }
 0xb08   :  { %12530 = vmatpush3.bf16.msra.mxu1 %v14417_v6 }
 0xb09   :  { %12531 = vmatprep.subr.bf16.mxu1 %v14418_v53 }
 0xb0c   :  { %12532 = vmatpush3.bf16.msra.mxu1 %v14419_v42 }
 0xb0d   :  { %12533 = vmatprep.subr.bf16.mxu1 %v14420_v47 }
 0xb0f   :  { %v12301_v61 = vpop.f32.mrb[200].mxu0 }
 0xb10   :  { %v12302_v63 = vpop.f32.mrb[201].mxu0  ;;  %12534 = vmatpush3.bf16.msra.mxu1 %v14421_v50 }
 0xb11   :  { %v12303_v16 = vadd.f32 %v12302_v63, %v12301_v61  ;;  %v12304_v7 = vpop.f32.mrb[202].mxu0  ;;  %12535 = vmatprep.subr.bf16.mxu1 %v14422_v35 }
 0xb12   :  { %v12305_v4 = vpop.f32.mrb[203].mxu0  ;;  %v14439_v7 = vld [vmem:[#allocation19 + $0xc8] sm:$0xff]  }
 0xb13   :  { %v14441_v4 = vld [vmem:[#allocation19 + $0xd8] sm:$0xff]  }
 0xb14   :  { %12536 = vmatpush3.bf16.msra.mxu1 %v14423_v38  ;;  %v14438_v38 = vld [vmem:[#allocation19 + $0xc0] sm:$0xff]  }
 0xb15   :  { %12537 = vmatprep.subr.bf16.mxu1 %v14424_v31  ;;  %13674 = vmatpush3.bf16.msra.mxu0 %v14438_v38  ;;  %v14440_v31 = vld [vmem:[#allocation19 + $0xd0] sm:$0xff]  }
 0xb16   :  { %v12235_v2 = vpop.f32.mrb[168].mxu1  ;;  %13675 = vmatprep.subr.bf16.mxu0 %v14772_v9 }
 0xb17   :  { %v12236_v58 = vpop.f32.mrb[169].mxu1 }
 0xb18   :  { %v12237_v51 = vadd.f32 %v12236_v58, %v12235_v2  ;;  %v12238_v0 = vpop.f32.mrb[170].mxu1  ;;  %12538 = vmatpush3.bf16.msra.mxu1 %v14425_v44  ;;  %v14442_v44 = vld [vmem:[#allocation19 + $0xe0] sm:$0xff]  }
 0xb19   :  { %v12239_v24 = vpop.f32.mrb[171].mxu1  ;;  %12539 = vmatprep.subr.bf16.mxu1 %v14426_v33  ;;  %13676 = vmatpush3.bf16.msra.mxu0 %v14439_v7  ;;  %v14443_v33 = vld [vmem:[#allocation19 + $0xe8] sm:$0xff]  }
 0xb1a   :  { %v10007_v5 = vadd.f32 %v12237_v51, %v15907_v26  ;;  %v14432_v26 = vld [vmem:[#allocation19 + $0x90] sm:$0xff]   ;;  %13677 = vmatprep.subr.bf16.mxu0 %v14772_v9 }
 0xb1c   :  { %12540 = vmatpush3.bf16.msra.mxu1 %v14427_v59  ;;  %v10047_v1 = vadd.f32 %v15919_v48, %v10007_v5 }
 0xb1d   :  { %12541 = vmatprep.subr.bf16.mxu1 %v14428_v14  ;;  %13678 = vmatpush3.bf16.msra.mxu0 %v14440_v31 }
 0xb1e   :  { %13679 = vmatprep.subr.bf16.mxu0 %v14772_v9 }
 0xb20   :  { %12542 = vmatpush3.bf16.msra.mxu1 %v14429_v32 }
 0xb21   :  { %13653 = vmatprep.subr.bf16.mxu1 %v14772_v9  ;;  %13680 = vmatpush3.bf16.msra.mxu0 %v14441_v4 }
 0xb22   :  { %13681 = vmatprep.subr.bf16.mxu0 %v14772_v9 }
 0xb23   :  { %10565 = vmatmul.mubr.bf16.vlgmr.msra.gmra.mrb[196].mxu1 %v7818_v10  ;;  %v14444_v10 = vld [vmem:[#allocation19 + $0xf0] sm:$0xff]  }
 0xb24   :  { %13654 = vmatpush3.bf16.msra.mxu1 %v14430_v23  ;;  %13669 = vmatprep.mubr.msk.bf16.mxu1 %vm14773_vm0, %v14772_v9 }
 0xb25   :  { %13655 = vmatprep.subr.bf16.mxu1 %v14772_v9  ;;  %13682 = vmatpush3.bf16.msra.mxu0 %v14442_v44 }
 0xb26   :  { %13683 = vmatprep.subr.bf16.mxu0 %v14772_v9 }
 0xb28   :  { %13656 = vmatpush3.bf16.msra.mxu1 %v14431_v37 }
 0xb29   :  { %13657 = vmatprep.subr.bf16.mxu1 %v14772_v9  ;;  %13684 = vmatpush3.bf16.msra.mxu0 %v14443_v33 }
 0xb2a   :  { %13685 = vmatprep.subr.bf16.mxu0 %v14772_v9 }
 0xb2c   :  { %13658 = vmatpush3.bf16.msra.mxu1 %v14432_v26  ;;  %v14445_v26 = vld [vmem:[#allocation19 + $0xf8] sm:$0xff]  }
 0xb2d   :  { %13659 = vmatprep.subr.bf16.mxu1 %v14772_v9  ;;  %13686 = vmatpush3.bf16.msra.mxu0 %v14444_v10 }
 0xb2e   :  { %13687 = vmatprep.subr.bf16.mxu0 %v14772_v9 }
 0xb2f   :  { %v12345_v39 = vpop.f32.mrb[204].mxu0 }
 0xb30   :  { %v12346_v41 = vpop.f32.mrb[205].mxu0  ;;  %13660 = vmatpush3.bf16.msra.mxu1 %v14433_v8 }
 0xb31   :  { %v12347_v46 = vadd.f32 %v12346_v41, %v12345_v39  ;;  %v12348_v34 = vpop.f32.mrb[206].mxu0  ;;  %13661 = vmatprep.subr.bf16.mxu1 %v14772_v9  ;;  %13688 = vmatpush3.bf16.msra.mxu0 %v14445_v26 }
 0xb32   :  { %v12349_v30 = vpop.f32.mrb[207].mxu0 }
 0xb34   :  { %13662 = vmatpush3.bf16.msra.mxu1 %v14434_v11 }
 0xb35   :  { %13663 = vmatprep.subr.bf16.mxu1 %v14772_v9 }
 0xb36   :  { %v12279_v62 = vpop.f32.mrb[172].mxu1 }
 0xb37   :  { %v12280_v60 = vpop.f32.mrb[173].mxu1 }
 0xb38   :  { %v12281_v54 = vadd.f32 %v12280_v60, %v12279_v62  ;;  %v12282_v48 = vpop.f32.mrb[174].mxu1  ;;  %13664 = vmatpush3.bf16.msra.mxu1 %v14435_v49 }
 0xb39   :  { %v12283_v45 = vpop.f32.mrb[175].mxu1  ;;  %13665 = vmatprep.subr.bf16.mxu1 %v14772_v9 }
 0xb3a   :  { %v10087_v57 = vadd.f32 %v12281_v54, %v10047_v1 }
 0xb3c   :  { %13666 = vmatpush3.bf16.msra.mxu1 %v14436_v12  ;;  %v10127_v27 = vadd.f32 %v12303_v16, %v10087_v57 }
 0xb3d   :  { %13667 = vmatprep.subr.bf16.mxu1 %v14772_v9 }
 0xb40   :  { %13668 = vmatpush3.bf16.msra.mxu1 %v14437_v3 }
 0xb43   :  { %13670 = vmatmul.mubr.bf16.vlgmr.msra.gmra.mrb[200].mxu1 %v5481_v22 }
 0xb4f   :  { %v12389_v21 = vpop.f32.mrb[208].mxu0 }
 0xb50   :  { %v12390_v15 = vpop.f32.mrb[209].mxu0 }
 0xb51   :  { %v12391_v17 = vadd.f32 %v12390_v15, %v12389_v21  ;;  %v12392_v55 = vpop.f32.mrb[210].mxu0 }
 0xb52   :  { %v12393_v13 = vpop.f32.mrb[211].mxu0 }
 0xb56   :  { %v12323_v25 = vpop.f32.mrb[176].mxu1 }
 0xb57   :  { %v12324_v56 = vpop.f32.mrb[177].mxu1 }
 0xb58   :  { %v12325_v43 = vadd.f32 %v12324_v56, %v12323_v25  ;;  %v12326_v19 = vpop.f32.mrb[178].mxu1 }
 0xb59   :  { %v12327_v40 = vpop.f32.mrb[179].mxu1 }
 0xb5a   :  { %v10167_v20 = vadd.f32 %v12325_v43, %v10127_v27 }
 0xb5c   :  { %v10207_v36 = vadd.f32 %v12347_v46, %v10167_v20 }
 0xb6f   :  { %v12433_v29 = vpop.f32.mrb[212].mxu0 }
 0xb70   :  { %v12434_v28 = vpop.f32.mrb[213].mxu0 }
 0xb71   :  { %v12435_v52 = vadd.f32 %v12434_v28, %v12433_v29  ;;  %v12436_v6 = vpop.f32.mrb[214].mxu0 }
 0xb72   :  { %v12437_v53 = vpop.f32.mrb[215].mxu0 }
 0xb76   :  { %v12367_v42 = vpop.f32.mrb[180].mxu1 }
 0xb77   :  { %v12368_v47 = vpop.f32.mrb[181].mxu1 }
 0xb78   :  { %v12369_v50 = vadd.f32 %v12368_v47, %v12367_v42  ;;  %v12370_v35 = vpop.f32.mrb[182].mxu1 }
 0xb79   :  { %v12371_v61 = vpop.f32.mrb[183].mxu1 }
 0xb7a   :  { %v10247_v63 = vadd.f32 %v12369_v50, %v10207_v36 }
 0xb7c   :  { %v10287_v16 = vadd.f32 %v12391_v17, %v10247_v63 }
 0xb8f   :  { %v12477_v2 = vpop.f32.mrb[216].mxu0 }
 0xb90   :  { %v12478_v58 = vpop.f32.mrb[217].mxu0 }
 0xb91   :  { %v12479_v51 = vadd.f32 %v12478_v58, %v12477_v2  ;;  %v12480_v0 = vpop.f32.mrb[218].mxu0 }
 0xb92   :  { %v12481_v59 = vpop.f32.mrb[219].mxu0 }
 0xb96   :  { %v12411_v24 = vpop.f32.mrb[184].mxu1 }
 0xb97   :  { %v12412_v14 = vpop.f32.mrb[185].mxu1 }
 0xb98   :  { %v12413_v5 = vadd.f32 %v12412_v14, %v12411_v24  ;;  %v12414_v32 = vpop.f32.mrb[186].mxu1 }
 0xb99   :  { %v12415_v1 = vpop.f32.mrb[187].mxu1 }
 0xb9a   :  { %v10327_v23 = vadd.f32 %v12413_v5, %v10287_v16 }
 0xb9c   :  { %v10367_v37 = vadd.f32 %v12435_v52, %v10327_v23 }
 0xbaf   :  { %v12521_v8 = vpop.f32.mrb[220].mxu0 }
 0xbb0   :  { %v12522_v39 = vpop.f32.mrb[221].mxu0 }
 0xbb1   :  { %v12523_v41 = vadd.f32 %v12522_v39, %v12521_v8  ;;  %v12524_v11 = vpop.f32.mrb[222].mxu0 }
 0xbb2   :  { %v12525_v46 = vpop.f32.mrb[223].mxu0 }
 0xbb6   :  { %v12455_v34 = vpop.f32.mrb[188].mxu1 }
 0xbb7   :  { %v12456_v30 = vpop.f32.mrb[189].mxu1 }
 0xbb8   :  { %v12457_v49 = vadd.f32 %v12456_v30, %v12455_v34  ;;  %v12458_v62 = vpop.f32.mrb[190].mxu1 }
 0xbb9   :  { %v12459_v60 = vpop.f32.mrb[191].mxu1 }
 0xbba   :  { %v10407_v54 = vadd.f32 %v12457_v49, %v10367_v37 }
 0xbbc   :  { %v10447_v48 = vadd.f32 %v12479_v51, %v10407_v54 }
 0xbcf   :  { %v12565_v12 = vpop.f32.mrb[224].mxu0 }
 0xbd0   :  { %v12566_v45 = vpop.f32.mrb[225].mxu0 }
 0xbd1   :  { %v12567_v57 = vadd.f32 %v12566_v45, %v12565_v12  ;;  %v12568_v3 = vpop.f32.mrb[226].mxu0 }
 0xbd2   :  { %v12569_v18 = vpop.f32.mrb[227].mxu0 }
 0xbd6   :  { %v12499_v27 = vpop.f32.mrb[192].mxu1 }
 0xbd7   :  { %v12500_v9 = vpop.f32.mrb[193].mxu1 }
 0xbd8   :  { %v12501_v22 = vadd.f32 %v12500_v9, %v12499_v27  ;;  %v12502_v21 = vpop.f32.mrb[194].mxu1 }
 0xbd9   :  { %v12503_v15 = vpop.f32.mrb[195].mxu1 }
 0xbda   :  { %v10487_v17 = vadd.f32 %v12501_v22, %v10447_v48 }
 0xbdc   :  { %v10527_v55 = vadd.f32 %v12523_v41, %v10487_v17 }
 0xbf6   :  { %v12543_v13 = vpop.f32.mrb[196].mxu1 }
 0xbf7   :  { %v12544_v25 = vpop.f32.mrb[197].mxu1 }
 0xbf8   :  { %v12545_v56 = vadd.f32 %v12544_v25, %v12543_v13  ;;  %v12546_v43 = vpop.f32.mrb[198].mxu1 }
 0xbf9   :  { %v12547_v19 = vpop.f32.mrb[199].mxu1 }
 0xbfa   :  { %v10567_v40 = vadd.f32 %v12545_v56, %v10527_v55 }
 0xbfc   :  { %v10751_v20 = vadd.f32 %v12567_v57, %v10567_v40 }
 0xc16   :  { %v10790_v36 = vpop.f32.mrb[200].mxu1 }
 0xc17   :  { %v10791_v29 = vadd.f32 %v10790_v36, %v10751_v20  ;;  %v13671_v28 = vpop.f32.mrb[201].mxu1 }
 0xc18   :  { %v10793_v52 = vpop.f32.mrb[202].mxu1 }
 0xc19   :  { %v10796_v6 = vmax.f32 %v10791_v29, 0.0  ;;  %v13672_v53 = vpop.f32.mrb[203].mxu1 }
 0xc1b   :  { %v10797_v42 = vpack.c.bf16 %v10796_v6, %v10796_v6 }
 0xc1d   :  { %13690 = vmatmul.mubr.bf16.vlgmr.msra.gmra.mrb[228].mxu0 %v10797_v42 }
 0xcf0   :  { %v10880_v47 = vpop.f32.mrb[228].mxu0 }
 0xcf1   :  { %10886 = vst [vmem:[#allocation20] sm:$0xff] %v10880_v47  ;;  %v13691_v50 = vpop.f32.mrb[229].mxu0 }
 0xcf2   :  { %v10883_v35 = vpop.f32.mrb[230].mxu0 }
 0xcf3   :  { %14726 = shalt.err (!%p14723_p8)
}
 0xcf4   :  { %s14727_s30 = scalar_lea.hbm %s15980_s13, 128 }
 0xcf5   :  { %p14728_p9 = scmp.ne.s32.totalorder %s15980_s13, %s14727_s30  ;;  %p14731_p10 = scmp.lt.u32.totalorder %s14727_s30, %s15980_s13 }
 0xcf7   :  { %p14733_p11 = pnand %p14731_p10, %p14728_p9 }
 0xcf9   :  { %14736 = shalt.err (!%p14733_p11)
}
 0xcfa   :  { %10896 = dma.vmem_to_hbm [thread:$0]  %s10894_s17, 128, %s15980_s13, [#allocation4]   ;;  %v13692_v61 = vpop.f32.mrb[231].mxu0 }
 0xcfb   :  { %14749 = dma.done.wait [#allocation4], 128  }
 0xcfc   :  { %14750 = vsyncadd [#allocation4], 4294967168 }
 0xcfd   :  { %10900 = vsyncpa [#allocation3], 1 }
 0xcfe   :  { %10901 = vsyncpa [#allocation6], 1 }
 0xcff   :  { %10902 = vsyncpa [#allocation9], 1 }
 0xd00   :  { %10903 = vsyncpa [#allocation12], 1 }
 0xd01   :  { %10904 = vsyncpa [#allocation15], 1 }
 0xd02   :  { %10905 = vsyncpa [#allocation18], 1 }
 0xd03   :  { %10906 = vsyncpa [#allocation4], 1 }

</bundles_post_ra>
